<compile_context>
chip_gen: v7x
topology: tpu7x:2x2x1
jax: 0.10.0
libtpu: 0.0.40
codegen_flags: <defaults>
</compile_context>

<pallas_src>
import functools

import jax
import jax.numpy as jnp
from jax.experimental import pallas as pl
from jax.experimental.pallas import tpu as pltpu

_EPS = 1e-12                     # torch.nn.functional.normalize default eps

# lane-dense (zero-padded) channel widths; padded weights/biases are zero so
# the extra channels stay exactly 0 through pool / conv / relu / normalize.
_C1, _C2, _C3, _C4 = 128, 128, 128, 256      # real: 20, 40, 80, 160
_F1, _F2 = 128, 128                          # real: 80, 80

# padded-coordinate grids (Hp, Wp, pad) of each conv's output.
_G1 = (16, 16, 0)     # conv1 (im2col path -> unpadded coords)
_G2 = (10, 10, 1)     # conv2 (8x8 interior)
_G3 = (6, 6, 1)       # conv3 (4x4 interior)
_G4 = (4, 4, 1)       # conv4 (2x2 interior)
_M2 = 1 * 10 + 1      # shift margins for the per-tap slices
_M3 = 1 * 6 + 1
_M4 = 1 * 4 + 1


# ----------------------------------------------------------------------------
# Fused kernel
# ----------------------------------------------------------------------------
def _fused_kernel(B,
                  p_ref, w1_ref, b1_ref,
                  w2_ref, b2_ref, w3_ref, b3_ref, w4_ref, b4_ref,
                  wf1_ref, bf1_ref, wf2_ref, bf2_ref,
                  out_ref,
                  c1_ref, a2_ref, c2_ref, a3_ref, c3_ref, a4_ref, c4_ref,
                  hin_ref):
    f32 = jnp.float32

    # Zero the padded input slabs (true zero padding + shift margins) and the
    # head input rows.  Conv output slabs are fully overwritten -> no init.
    a2_ref[...] = jnp.zeros_like(a2_ref)
    a3_ref[...] = jnp.zeros_like(a3_ref)
    a4_ref[...] = jnp.zeros_like(a4_ref)
    hin_ref[...] = jnp.zeros_like(hin_ref)

    # ---- conv1: one dense matmul on the (B*256, 49) patch matrix -----------
    c1_ref[...] = (
        jnp.dot(p_ref[...], w1_ref[...], preferred_element_type=f32)
        + b1_ref[...]
    )

    def conv3x3(in_ref, margin, rows, wp, w_ref, b_ref, o_ref):
        """pad=1 3x3 conv as 9 shifted-slice MXU matmuls accumulated in VMEM."""
        for t in range(9):
            kh, kw = t // 3, t % 3
            shift = (kh - 1) * wp + (kw - 1)
            lhs = in_ref[pl.ds(margin + shift, rows), :]
            contrib = jnp.dot(lhs, w_ref[t], preferred_element_type=f32)
            if t == 0:
                o_ref[...] = contrib + b_ref[...]
            else:
                o_ref[...] += contrib

    def pool2x2(src_ref, src_g, dst_ref, dst_margin, dst_g):
        """2x2 / stride-2 maxpool: interior of src (padded coords) -> interior
        of the next layer's padded slab, via strided pl.ds window reads."""
        hp, wp, p = src_g
        dhp, dwp, dp = dst_g
        ho_n = (hp - 2 * p) // 2
        wo_n = (wp - 2 * p) // 2
        for b in range(B):
            for ho in range(ho_n):
                base = b * hp * wp + (p + 2 * ho) * wp + p
                if wo_n > 1:
                    r00 = src_ref[pl.ds(base, wo_n, stride=2), :]
                    r01 = src_ref[pl.ds(base + 1, wo_n, stride=2), :]
                    r10 = src_ref[pl.ds(base + wp, wo_n, stride=2), :]
                    r11 = src_ref[pl.ds(base + wp + 1, wo_n, stride=2), :]
                else:
                    r00 = src_ref[pl.ds(base, 1), :]
                    r01 = src_ref[pl.ds(base + 1, 1), :]
                    r10 = src_ref[pl.ds(base + wp, 1), :]
                    r11 = src_ref[pl.ds(base + wp + 1, 1), :]
                pooled = jnp.maximum(jnp.maximum(r00, r01),
                                     jnp.maximum(r10, r11))
                dst = dst_margin + b * dhp * dwp + (dp + ho) * dwp + dp
                dst_ref[pl.ds(dst, wo_n), :] = pooled

    # ---- pool1 -> conv2 -> pool2 -> conv3 -> pool3 -> conv4 -> pool4 -------
    pool2x2(c1_ref, _G1, a2_ref, _M2, _G2)
    conv3x3(a2_ref, _M2, B * _G2[0] * _G2[1], _G2[1], w2_ref, b2_ref, c2_ref)

    pool2x2(c2_ref, _G2, a3_ref, _M3, _G3)
    conv3x3(a3_ref, _M3, B * _G3[0] * _G3[1], _G3[1], w3_ref, b3_ref, c3_ref)

    pool2x2(c3_ref, _G3, a4_ref, _M4, _G4)
    conv3x3(a4_ref, _M4, B * _G4[0] * _G4[1], _G4[1], w4_ref, b4_ref, c4_ref)

    pool2x2(c4_ref, _G4, hin_ref, 0, (1, 1, 0))   # -> head rows 0..B-1

    # ---- head: normalize -> fc1 -> relu -> fc2 -> normalize ----------------
    x = hin_ref[...]
    n1 = jnp.sqrt(jnp.sum(x * x, axis=-1, keepdims=True))
    xn = x / jnp.maximum(n1, _EPS)
    h = jnp.dot(xn, wf1_ref[...], preferred_element_type=f32) + bf1_ref[...]
    h = jnp.maximum(h, 0.0)
    y = jnp.dot(h, wf2_ref[...], preferred_element_type=f32) + bf2_ref[...]
    n2 = jnp.sqrt(jnp.sum(y * y, axis=-1, keepdims=True))
    out_ref[...] = y / jnp.maximum(n2, _EPS)


# ----------------------------------------------------------------------------
# Wrapper (weight repacking + one pallas_call)
# ----------------------------------------------------------------------------
def _prep_conv_w(w, cin_p, cout_p):
    """torch (Cout, Cin, 3, 3) -> (9, Cin_p, Cout_p), zero padded."""
    cout, cin, kh, kw = w.shape
    wt = jnp.transpose(w, (2, 3, 1, 0)).reshape(kh * kw, cin, cout)
    return jnp.pad(wt, ((0, 0), (0, cin_p - cin),
                        (0, cout_p - cout))).astype(jnp.float32)


def _pad_bias(b, c_p):
    return jnp.pad(b, (0, c_p - b.shape[0])).reshape(1, c_p).astype(jnp.float32)


def _prep_fc_w(w, kin_p, kout_p):
    """torch Linear weight (out, in) -> (in_p, out_p), zero padded."""
    wt = w.T
    return jnp.pad(wt, ((0, kin_p - wt.shape[0]),
                        (0, kout_p - wt.shape[1]))).astype(jnp.float32)


@jax.jit
def network_forward(x_nchw, params):
    x = jnp.transpose(x_nchw, (0, 2, 3, 1)).astype(jnp.float32)   # NHWC
    B, H, W, Cin = x.shape
    assert (H, W, Cin) == (16, 16, 1), "module implies 1x16x16 inputs"
    BP = max(8, ((B + 7) // 8) * 8)   # head rows padded to full sublanes

    # conv1 im2col in XLA (Cin == 1 would force K=1 per-tap MXU matmuls).
    xp = jnp.pad(x, ((0, 0), (3, 3), (3, 3), (0, 0)))
    patches = jnp.concatenate(
        [xp[:, kh:kh + H, kw:kw + W, :] for kh in range(7) for kw in range(7)],
        axis=-1,
    ).reshape(B * H * W, 49)

    # weights / biases zero-padded to lane-dense widths.
    w1 = jnp.transpose(params["conv1_w"], (2, 3, 1, 0)).reshape(49, 20)
    w1 = jnp.pad(w1, ((0, 0), (0, _C1 - 20))).astype(jnp.float32)
    b1 = _pad_bias(params["conv1_b"], _C1)
    w2 = _prep_conv_w(params["conv2_w"], _C1, _C2)
    b2 = _pad_bias(params["conv2_b"], _C2)
    w3 = _prep_conv_w(params["conv3_w"], _C2, _C3)
    b3 = _pad_bias(params["conv3_b"], _C3)
    w4 = _prep_conv_w(params["conv4_w"], _C3, _C4)
    b4 = _pad_bias(params["conv4_b"], _C4)
    wf1 = _prep_fc_w(params["fc1_w"], _C4, _F1)
    bf1 = _pad_bias(params["fc1_b"], _F1)
    wf2 = _prep_fc_w(params["fc2_w"], _F1, _F2)
    bf2 = _pad_bias(params["fc2_b"], _F2)

    vspec = pl.BlockSpec(memory_space=pltpu.MemorySpace.VMEM)
    out = pl.pallas_call(
        functools.partial(_fused_kernel, B),
        out_shape=jax.ShapeDtypeStruct((BP, _F2), jnp.float32),
        in_specs=[vspec] * 13,
        out_specs=vspec,
        scratch_shapes=[
            pltpu.VMEM((B * 16 * 16, _C1), jnp.float32),            # conv1 out
            pltpu.VMEM((2 * _M2 + B * 10 * 10, _C1), jnp.float32),  # conv2 in slab
            pltpu.VMEM((B * 10 * 10, _C2), jnp.float32),            # conv2 out
            pltpu.VMEM((2 * _M3 + B * 6 * 6, _C2), jnp.float32),    # conv3 in slab
            pltpu.VMEM((B * 6 * 6, _C3), jnp.float32),              # conv3 out
            pltpu.VMEM((2 * _M4 + B * 4 * 4, _C3), jnp.float32),    # conv4 in slab
            pltpu.VMEM((B * 4 * 4, _C4), jnp.float32),              # conv4 out
            pltpu.VMEM((BP, _C4), jnp.float32),                     # head input
        ],
        compiler_params=pltpu.CompilerParams(
            vmem_limit_bytes=32 * 1024 * 1024),
    )(patches, w1, b1, w2, b2, w3, b3, w4, b4, wf1, bf1, wf2, bf2)

    return out[:B, :80]


# ----------------------------------------------------------------------------
# Deterministic parameter init (synthetic, not a checkpoint load)
# ----------------------------------------------------------------------------
def init_params(key):
    shapes = {
        "conv1_w": (20, 1, 7, 7),   "conv1_b": (20,),
        "conv2_w": (40, 20, 3, 3),  "conv2_b": (40,),
        "conv3_w": (80, 40, 3, 3),  "conv3_b": (80,),
        "conv4_w": (160, 80, 3, 3), "conv4_b": (160,),
        "fc1_w": (80, 160),         "fc1_b": (80,),
        "fc2_w": (80, 80),          "fc2_b": (80,),
    }
    params = {}
    keys = jax.random.split(key, len(shapes))
    for k, (name, shp) in zip(keys, sorted(shapes.items())):
        fan_in = 1
        for d in shp[1:]:
            fan_in *= d
        scale = 1.0 / jnp.sqrt(jnp.float32(max(fan_in, 1)))
        params[name] = scale * jax.random.normal(k, shp, dtype=jnp.float32)
    return params


if __name__ == "__main__":
    root = jax.random.PRNGKey(0)
    k_params, k_x = jax.random.split(root)
    params = init_params(k_params)

    # Input implied by the module: 1 channel, 16x16 spatial (4 pools -> 1x1x160).
    x = jax.random.normal(k_x, (2, 1, 16, 16), dtype=jnp.float32)

    out = network_forward(x, params)
    out = jax.block_until_ready(out)
    assert out.shape == (2, 80), out.shape
    print("KERNEL_OK")
</pallas_src>

<mosaic_0001>
module attributes {stable_mosaic.version = 11 : i64} {
  func.func @_fused_kernel(%arg0: memref<512x49xf32, #tpu.memory_space<vmem>>, %arg1: memref<49x128xf32, #tpu.memory_space<vmem>>, %arg2: memref<1x128xf32, #tpu.memory_space<vmem>>, %arg3: memref<9x128x128xf32, #tpu.memory_space<vmem>>, %arg4: memref<1x128xf32, #tpu.memory_space<vmem>>, %arg5: memref<9x128x128xf32, #tpu.memory_space<vmem>>, %arg6: memref<1x128xf32, #tpu.memory_space<vmem>>, %arg7: memref<9x128x256xf32, #tpu.memory_space<vmem>>, %arg8: memref<1x256xf32, #tpu.memory_space<vmem>>, %arg9: memref<256x128xf32, #tpu.memory_space<vmem>>, %arg10: memref<1x128xf32, #tpu.memory_space<vmem>>, %arg11: memref<128x128xf32, #tpu.memory_space<vmem>>, %arg12: memref<1x128xf32, #tpu.memory_space<vmem>>, %arg13: memref<8x128xf32, #tpu.memory_space<vmem>>, %arg14: memref<512x128xf32, #tpu.memory_space<vmem>>, %arg15: memref<222x128xf32, #tpu.memory_space<vmem>>, %arg16: memref<200x128xf32, #tpu.memory_space<vmem>>, %arg17: memref<86x128xf32, #tpu.memory_space<vmem>>, %arg18: memref<72x128xf32, #tpu.memory_space<vmem>>, %arg19: memref<42x128xf32, #tpu.memory_space<vmem>>, %arg20: memref<32x256xf32, #tpu.memory_space<vmem>>, %arg21: memref<8x256xf32, #tpu.memory_space<vmem>>) attributes {dimension_semantics = [], scalar_prefetch = 0 : i64, scratch_operands = 8 : i64, tpu.core_type = #tpu.core_type<tc>} {
    %cst = arith.constant 0.000000e+00 : f32
    %0 = vector.broadcast %cst : f32 to vector<222x128xf32>
    %c0 = arith.constant 0 : index
    %c0_0 = arith.constant 0 : index
    %1 = vector.load %arg15[%c0, %c0_0] : memref<222x128xf32, #tpu.memory_space<vmem>>, vector<222x128xf32>
    tpu.vector_store %arg15[%c0, %c0_0], %0 {strides = array<i32>} : memref<222x128xf32, #tpu.memory_space<vmem>>, vector<222x128xf32>,
    %cst_1 = arith.constant 0.000000e+00 : f32
    %2 = vector.broadcast %cst_1 : f32 to vector<86x128xf32>
    %c0_2 = arith.constant 0 : index
    %c0_3 = arith.constant 0 : index
    %3 = vector.load %arg17[%c0_2, %c0_3] : memref<86x128xf32, #tpu.memory_space<vmem>>, vector<86x128xf32>
    tpu.vector_store %arg17[%c0_2, %c0_3], %2 {strides = array<i32>} : memref<86x128xf32, #tpu.memory_space<vmem>>, vector<86x128xf32>,
    %cst_4 = arith.constant 0.000000e+00 : f32
    %4 = vector.broadcast %cst_4 : f32 to vector<42x128xf32>
    %c0_5 = arith.constant 0 : index
    %c0_6 = arith.constant 0 : index
    %5 = vector.load %arg19[%c0_5, %c0_6] : memref<42x128xf32, #tpu.memory_space<vmem>>, vector<42x128xf32>
    tpu.vector_store %arg19[%c0_5, %c0_6], %4 {strides = array<i32>} : memref<42x128xf32, #tpu.memory_space<vmem>>, vector<42x128xf32>,
    %cst_7 = arith.constant 0.000000e+00 : f32
    %6 = vector.broadcast %cst_7 : f32 to vector<8x256xf32>
    %c0_8 = arith.constant 0 : index
    %c0_9 = arith.constant 0 : index
    %7 = vector.load %arg21[%c0_8, %c0_9] : memref<8x256xf32, #tpu.memory_space<vmem>>, vector<8x256xf32>
    tpu.vector_store %arg21[%c0_8, %c0_9], %6 {strides = array<i32>} : memref<8x256xf32, #tpu.memory_space<vmem>>, vector<8x256xf32>,
    %c0_10 = arith.constant 0 : index
    %c0_11 = arith.constant 0 : index
    %8 = vector.load %arg0[%c0_10, %c0_11] : memref<512x49xf32, #tpu.memory_space<vmem>>, vector<512x49xf32>
    %c0_12 = arith.constant 0 : index
    %c0_13 = arith.constant 0 : index
    %9 = vector.load %arg1[%c0_12, %c0_13] : memref<49x128xf32, #tpu.memory_space<vmem>>, vector<49x128xf32>
    %cst_14 = arith.constant dense<0.000000e+00> : vector<512x128xf32>
    %10 = tpu.matmul %8, %9, %cst_14 {dimension_numbers = #tpu.dot_dimension_numbers<[1], [0], [0], [1], [0, 0, 1, 1], [], []>} : vector<512x49xf32>, vector<49x128xf32>, vector<512x128xf32> -> vector<512x128xf32>
    %c0_15 = arith.constant 0 : index
    %c0_16 = arith.constant 0 : index
    %11 = vector.load %arg2[%c0_15, %c0_16] : memref<1x128xf32, #tpu.memory_space<vmem>>, vector<1x128xf32>
    %12 = vector.broadcast %11 : vector<1x128xf32> to vector<512x128xf32>
    %13 = arith.addf %10, %12 : vector<512x128xf32>
    %c0_17 = arith.constant 0 : index
    %c0_18 = arith.constant 0 : index
    %14 = vector.load %arg14[%c0_17, %c0_18] : memref<512x128xf32, #tpu.memory_space<vmem>>, vector<512x128xf32>
    tpu.vector_store %arg14[%c0_17, %c0_18], %13 {strides = array<i32>} : memref<512x128xf32, #tpu.memory_space<vmem>>, vector<512x128xf32>,
    %c0_19 = arith.constant 0 : index
    %c0_20 = arith.constant 0 : index
    %15 = tpu.strided_load %arg14[%c0_19, %c0_20] {strides = array<i32: 2, 1>} : memref<512x128xf32, #tpu.memory_space<vmem>>, vector<8x128xf32>
    %c1 = arith.constant 1 : index
    %c0_21 = arith.constant 0 : index
    %16 = tpu.strided_load %arg14[%c1, %c0_21] {strides = array<i32: 2, 1>} : memref<512x128xf32, #tpu.memory_space<vmem>>, vector<8x128xf32>
    %c16 = arith.constant 16 : index
    %c0_22 = arith.constant 0 : index
    %17 = tpu.strided_load %arg14[%c16, %c0_22] {strides = array<i32: 2, 1>} : memref<512x128xf32, #tpu.memory_space<vmem>>, vector<8x128xf32>
    %c17 = arith.constant 17 : index
    %c0_23 = arith.constant 0 : index
    %18 = tpu.strided_load %arg14[%c17, %c0_23] {strides = array<i32: 2, 1>} : memref<512x128xf32, #tpu.memory_space<vmem>>, vector<8x128xf32>
    %19 = arith.maximumf %15, %16 : vector<8x128xf32>
    %20 = arith.maximumf %17, %18 : vector<8x128xf32>
    %21 = arith.maximumf %19, %20 : vector<8x128xf32>
    %c22 = arith.constant 22 : index
    %c0_24 = arith.constant 0 : index
    %22 = vector.load %arg15[%c22, %c0_24] : memref<222x128xf32, #tpu.memory_space<vmem>>, vector<8x128xf32>
    tpu.vector_store %arg15[%c22, %c0_24], %21 {strides = array<i32>} : memref<222x128xf32, #tpu.memory_space<vmem>>, vector<8x128xf32>,
    %c32 = arith.constant 32 : index
    %c0_25 = arith.constant 0 : index
    %23 = tpu.strided_load %arg14[%c32, %c0_25] {strides = array<i32: 2, 1>} : memref<512x128xf32, #tpu.memory_space<vmem>>, vector<8x128xf32>
    %c33 = arith.constant 33 : index
    %c0_26 = arith.constant 0 : index
    %24 = tpu.strided_load %arg14[%c33, %c0_26] {strides = array<i32: 2, 1>} : memref<512x128xf32, #tpu.memory_space<vmem>>, vector<8x128xf32>
    %c48 = arith.constant 48 : index
    %c0_27 = arith.constant 0 : index
    %25 = tpu.strided_load %arg14[%c48, %c0_27] {strides = array<i32: 2, 1>} : memref<512x128xf32, #tpu.memory_space<vmem>>, vector<8x128xf32>
    %c49 = arith.constant 49 : index
    %c0_28 = arith.constant 0 : index
    %26 = tpu.strided_load %arg14[%c49, %c0_28] {strides = array<i32: 2, 1>} : memref<512x128xf32, #tpu.memory_space<vmem>>, vector<8x128xf32>
    %27 = arith.maximumf %23, %24 : vector<8x128xf32>
    %28 = arith.maximumf %25, %26 : vector<8x128xf32>
    %29 = arith.maximumf %27, %28 : vector<8x128xf32>
    %c32_29 = arith.constant 32 : index
    %c0_30 = arith.constant 0 : index
    %30 = vector.load %arg15[%c32_29, %c0_30] : memref<222x128xf32, #tpu.memory_space<vmem>>, vector<8x128xf32>
    tpu.vector_store %arg15[%c32_29, %c0_30], %29 {strides = array<i32>} : memref<222x128xf32, #tpu.memory_space<vmem>>, vector<8x128xf32>,
    %c64 = arith.constant 64 : index
    %c0_31 = arith.constant 0 : index
    %31 = tpu.strided_load %arg14[%c64, %c0_31] {strides = array<i32: 2, 1>} : memref<512x128xf32, #tpu.memory_space<vmem>>, vector<8x128xf32>
    %c65 = arith.constant 65 : index
    %c0_32 = arith.constant 0 : index
    %32 = tpu.strided_load %arg14[%c65, %c0_32] {strides = array<i32: 2, 1>} : memref<512x128xf32, #tpu.memory_space<vmem>>, vector<8x128xf32>
    %c80 = arith.constant 80 : index
    %c0_33 = arith.constant 0 : index
    %33 = tpu.strided_load %arg14[%c80, %c0_33] {strides = array<i32: 2, 1>} : memref<512x128xf32, #tpu.memory_space<vmem>>, vector<8x128xf32>
    %c81 = arith.constant 81 : index
    %c0_34 = arith.constant 0 : index
    %34 = tpu.strided_load %arg14[%c81, %c0_34] {strides = array<i32: 2, 1>} : memref<512x128xf32, #tpu.memory_space<vmem>>, vector<8x128xf32>
    %35 = arith.maximumf %31, %32 : vector<8x128xf32>
    %36 = arith.maximumf %33, %34 : vector<8x128xf32>
    %37 = arith.maximumf %35, %36 : vector<8x128xf32>
    %c42 = arith.constant 42 : index
    %c0_35 = arith.constant 0 : index
    %38 = vector.load %arg15[%c42, %c0_35] : memref<222x128xf32, #tpu.memory_space<vmem>>, vector<8x128xf32>
    tpu.vector_store %arg15[%c42, %c0_35], %37 {strides = array<i32>} : memref<222x128xf32, #tpu.memory_space<vmem>>, vector<8x128xf32>,
    %c96 = arith.constant 96 : index
    %c0_36 = arith.constant 0 : index
    %39 = tpu.strided_load %arg14[%c96, %c0_36] {strides = array<i32: 2, 1>} : memref<512x128xf32, #tpu.memory_space<vmem>>, vector<8x128xf32>
    %c97 = arith.constant 97 : index
    %c0_37 = arith.constant 0 : index
    %40 = tpu.strided_load %arg14[%c97, %c0_37] {strides = array<i32: 2, 1>} : memref<512x128xf32, #tpu.memory_space<vmem>>, vector<8x128xf32>
    %c112 = arith.constant 112 : index
    %c0_38 = arith.constant 0 : index
    %41 = tpu.strided_load %arg14[%c112, %c0_38] {strides = array<i32: 2, 1>} : memref<512x128xf32, #tpu.memory_space<vmem>>, vector<8x128xf32>
    %c113 = arith.constant 113 : index
    %c0_39 = arith.constant 0 : index
    %42 = tpu.strided_load %arg14[%c113, %c0_39] {strides = array<i32: 2, 1>} : memref<512x128xf32, #tpu.memory_space<vmem>>, vector<8x128xf32>
    %43 = arith.maximumf %39, %40 : vector<8x128xf32>
    %44 = arith.maximumf %41, %42 : vector<8x128xf32>
    %45 = arith.maximumf %43, %44 : vector<8x128xf32>
    %c52 = arith.constant 52 : index
    %c0_40 = arith.constant 0 : index
    %46 = vector.load %arg15[%c52, %c0_40] : memref<222x128xf32, #tpu.memory_space<vmem>>, vector<8x128xf32>
    tpu.vector_store %arg15[%c52, %c0_40], %45 {strides = array<i32>} : memref<222x128xf32, #tpu.memory_space<vmem>>, vector<8x128xf32>,
    %c128 = arith.constant 128 : index
    %c0_41 = arith.constant 0 : index
    %47 = tpu.strided_load %arg14[%c128, %c0_41] {strides = array<i32: 2, 1>} : memref<512x128xf32, #tpu.memory_space<vmem>>, vector<8x128xf32>
    %c129 = arith.constant 129 : index
    %c0_42 = arith.constant 0 : index
    %48 = tpu.strided_load %arg14[%c129, %c0_42] {strides = array<i32: 2, 1>} : memref<512x128xf32, #tpu.memory_space<vmem>>, vector<8x128xf32>
    %c144 = arith.constant 144 : index
    %c0_43 = arith.constant 0 : index
    %49 = tpu.strided_load %arg14[%c144, %c0_43] {strides = array<i32: 2, 1>} : memref<512x128xf32, #tpu.memory_space<vmem>>, vector<8x128xf32>
    %c145 = arith.constant 145 : index
    %c0_44 = arith.constant 0 : index
    %50 = tpu.strided_load %arg14[%c145, %c0_44] {strides = array<i32: 2, 1>} : memref<512x128xf32, #tpu.memory_space<vmem>>, vector<8x128xf32>
    %51 = arith.maximumf %47, %48 : vector<8x128xf32>
    %52 = arith.maximumf %49, %50 : vector<8x128xf32>
    %53 = arith.maximumf %51, %52 : vector<8x128xf32>
    %c62 = arith.constant 62 : index
    %c0_45 = arith.constant 0 : index
    %54 = vector.load %arg15[%c62, %c0_45] : memref<222x128xf32, #tpu.memory_space<vmem>>, vector<8x128xf32>
    tpu.vector_store %arg15[%c62, %c0_45], %53 {strides = array<i32>} : memref<222x128xf32, #tpu.memory_space<vmem>>, vector<8x128xf32>,
    %c160 = arith.constant 160 : index
    %c0_46 = arith.constant 0 : index
    %55 = tpu.strided_load %arg14[%c160, %c0_46] {strides = array<i32: 2, 1>} : memref<512x128xf32, #tpu.memory_space<vmem>>, vector<8x128xf32>
    %c161 = arith.constant 161 : index
    %c0_47 = arith.constant 0 : index
    %56 = tpu.strided_load %arg14[%c161, %c0_47] {strides = array<i32: 2, 1>} : memref<512x128xf32, #tpu.memory_space<vmem>>, vector<8x128xf32>
    %c176 = arith.constant 176 : index
    %c0_48 = arith.constant 0 : index
    %57 = tpu.strided_load %arg14[%c176, %c0_48] {strides = array<i32: 2, 1>} : memref<512x128xf32, #tpu.memory_space<vmem>>, vector<8x128xf32>
    %c177 = arith.constant 177 : index
    %c0_49 = arith.constant 0 : index
    %58 = tpu.strided_load %arg14[%c177, %c0_49] {strides = array<i32: 2, 1>} : memref<512x128xf32, #tpu.memory_space<vmem>>, vector<8x128xf32>
    %59 = arith.maximumf %55, %56 : vector<8x128xf32>
    %60 = arith.maximumf %57, %58 : vector<8x128xf32>
    %61 = arith.maximumf %59, %60 : vector<8x128xf32>
    %c72 = arith.constant 72 : index
    %c0_50 = arith.constant 0 : index
    %62 = vector.load %arg15[%c72, %c0_50] : memref<222x128xf32, #tpu.memory_space<vmem>>, vector<8x128xf32>
    tpu.vector_store %arg15[%c72, %c0_50], %61 {strides = array<i32>} : memref<222x128xf32, #tpu.memory_space<vmem>>, vector<8x128xf32>,
    %c192 = arith.constant 192 : index
    %c0_51 = arith.constant 0 : index
    %63 = tpu.strided_load %arg14[%c192, %c0_51] {strides = array<i32: 2, 1>} : memref<512x128xf32, #tpu.memory_space<vmem>>, vector<8x128xf32>
    %c193 = arith.constant 193 : index
    %c0_52 = arith.constant 0 : index
    %64 = tpu.strided_load %arg14[%c193, %c0_52] {strides = array<i32: 2, 1>} : memref<512x128xf32, #tpu.memory_space<vmem>>, vector<8x128xf32>
    %c208 = arith.constant 208 : index
    %c0_53 = arith.constant 0 : index
    %65 = tpu.strided_load %arg14[%c208, %c0_53] {strides = array<i32: 2, 1>} : memref<512x128xf32, #tpu.memory_space<vmem>>, vector<8x128xf32>
    %c209 = arith.constant 209 : index
    %c0_54 = arith.constant 0 : index
    %66 = tpu.strided_load %arg14[%c209, %c0_54] {strides = array<i32: 2, 1>} : memref<512x128xf32, #tpu.memory_space<vmem>>, vector<8x128xf32>
    %67 = arith.maximumf %63, %64 : vector<8x128xf32>
    %68 = arith.maximumf %65, %66 : vector<8x128xf32>
    %69 = arith.maximumf %67, %68 : vector<8x128xf32>
    %c82 = arith.constant 82 : index
    %c0_55 = arith.constant 0 : index
    %70 = vector.load %arg15[%c82, %c0_55] : memref<222x128xf32, #tpu.memory_space<vmem>>, vector<8x128xf32>
    tpu.vector_store %arg15[%c82, %c0_55], %69 {strides = array<i32>} : memref<222x128xf32, #tpu.memory_space<vmem>>, vector<8x128xf32>,
    %c224 = arith.constant 224 : index
    %c0_56 = arith.constant 0 : index
    %71 = tpu.strided_load %arg14[%c224, %c0_56] {strides = array<i32: 2, 1>} : memref<512x128xf32, #tpu.memory_space<vmem>>, vector<8x128xf32>
    %c225 = arith.constant 225 : index
    %c0_57 = arith.constant 0 : index
    %72 = tpu.strided_load %arg14[%c225, %c0_57] {strides = array<i32: 2, 1>} : memref<512x128xf32, #tpu.memory_space<vmem>>, vector<8x128xf32>
    %c240 = arith.constant 240 : index
    %c0_58 = arith.constant 0 : index
    %73 = tpu.strided_load %arg14[%c240, %c0_58] {strides = array<i32: 2, 1>} : memref<512x128xf32, #tpu.memory_space<vmem>>, vector<8x128xf32>
    %c241 = arith.constant 241 : index
    %c0_59 = arith.constant 0 : index
    %74 = tpu.strided_load %arg14[%c241, %c0_59] {strides = array<i32: 2, 1>} : memref<512x128xf32, #tpu.memory_space<vmem>>, vector<8x128xf32>
    %75 = arith.maximumf %71, %72 : vector<8x128xf32>
    %76 = arith.maximumf %73, %74 : vector<8x128xf32>
    %77 = arith.maximumf %75, %76 : vector<8x128xf32>
    %c92 = arith.constant 92 : index
    %c0_60 = arith.constant 0 : index
    %78 = vector.load %arg15[%c92, %c0_60] : memref<222x128xf32, #tpu.memory_space<vmem>>, vector<8x128xf32>
    tpu.vector_store %arg15[%c92, %c0_60], %77 {strides = array<i32>} : memref<222x128xf32, #tpu.memory_space<vmem>>, vector<8x128xf32>,
    %c256 = arith.constant 256 : index
    %c0_61 = arith.constant 0 : index
    %79 = tpu.strided_load %arg14[%c256, %c0_61] {strides = array<i32: 2, 1>} : memref<512x128xf32, #tpu.memory_space<vmem>>, vector<8x128xf32>
    %c257 = arith.constant 257 : index
    %c0_62 = arith.constant 0 : index
    %80 = tpu.strided_load %arg14[%c257, %c0_62] {strides = array<i32: 2, 1>} : memref<512x128xf32, #tpu.memory_space<vmem>>, vector<8x128xf32>
    %c272 = arith.constant 272 : index
    %c0_63 = arith.constant 0 : index
    %81 = tpu.strided_load %arg14[%c272, %c0_63] {strides = array<i32: 2, 1>} : memref<512x128xf32, #tpu.memory_space<vmem>>, vector<8x128xf32>
    %c273 = arith.constant 273 : index
    %c0_64 = arith.constant 0 : index
    %82 = tpu.strided_load %arg14[%c273, %c0_64] {strides = array<i32: 2, 1>} : memref<512x128xf32, #tpu.memory_space<vmem>>, vector<8x128xf32>
    %83 = arith.maximumf %79, %80 : vector<8x128xf32>
    %84 = arith.maximumf %81, %82 : vector<8x128xf32>
    %85 = arith.maximumf %83, %84 : vector<8x128xf32>
    %c122 = arith.constant 122 : index
    %c0_65 = arith.constant 0 : index
    %86 = vector.load %arg15[%c122, %c0_65] : memref<222x128xf32, #tpu.memory_space<vmem>>, vector<8x128xf32>
    tpu.vector_store %arg15[%c122, %c0_65], %85 {strides = array<i32>} : memref<222x128xf32, #tpu.memory_space<vmem>>, vector<8x128xf32>,
    %c288 = arith.constant 288 : index
    %c0_66 = arith.constant 0 : index
    %87 = tpu.strided_load %arg14[%c288, %c0_66] {strides = array<i32: 2, 1>} : memref<512x128xf32, #tpu.memory_space<vmem>>, vector<8x128xf32>
    %c289 = arith.constant 289 : index
    %c0_67 = arith.constant 0 : index
    %88 = tpu.strided_load %arg14[%c289, %c0_67] {strides = array<i32: 2, 1>} : memref<512x128xf32, #tpu.memory_space<vmem>>, vector<8x128xf32>
    %c304 = arith.constant 304 : index
    %c0_68 = arith.constant 0 : index
    %89 = tpu.strided_load %arg14[%c304, %c0_68] {strides = array<i32: 2, 1>} : memref<512x128xf32, #tpu.memory_space<vmem>>, vector<8x128xf32>
    %c305 = arith.constant 305 : index
    %c0_69 = arith.constant 0 : index
    %90 = tpu.strided_load %arg14[%c305, %c0_69] {strides = array<i32: 2, 1>} : memref<512x128xf32, #tpu.memory_space<vmem>>, vector<8x128xf32>
    %91 = arith.maximumf %87, %88 : vector<8x128xf32>
    %92 = arith.maximumf %89, %90 : vector<8x128xf32>
    %93 = arith.maximumf %91, %92 : vector<8x128xf32>
    %c132 = arith.constant 132 : index
    %c0_70 = arith.constant 0 : index
    %94 = vector.load %arg15[%c132, %c0_70] : memref<222x128xf32, #tpu.memory_space<vmem>>, vector<8x128xf32>
    tpu.vector_store %arg15[%c132, %c0_70], %93 {strides = array<i32>} : memref<222x128xf32, #tpu.memory_space<vmem>>, vector<8x128xf32>,
    %c320 = arith.constant 320 : index
    %c0_71 = arith.constant 0 : index
    %95 = tpu.strided_load %arg14[%c320, %c0_71] {strides = array<i32: 2, 1>} : memref<512x128xf32, #tpu.memory_space<vmem>>, vector<8x128xf32>
    %c321 = arith.constant 321 : index
    %c0_72 = arith.constant 0 : index
    %96 = tpu.strided_load %arg14[%c321, %c0_72] {strides = array<i32: 2, 1>} : memref<512x128xf32, #tpu.memory_space<vmem>>, vector<8x128xf32>
    %c336 = arith.constant 336 : index
    %c0_73 = arith.constant 0 : index
    %97 = tpu.strided_load %arg14[%c336, %c0_73] {strides = array<i32: 2, 1>} : memref<512x128xf32, #tpu.memory_space<vmem>>, vector<8x128xf32>
    %c337 = arith.constant 337 : index
    %c0_74 = arith.constant 0 : index
    %98 = tpu.strided_load %arg14[%c337, %c0_74] {strides = array<i32: 2, 1>} : memref<512x128xf32, #tpu.memory_space<vmem>>, vector<8x128xf32>
    %99 = arith.maximumf %95, %96 : vector<8x128xf32>
    %100 = arith.maximumf %97, %98 : vector<8x128xf32>
    %101 = arith.maximumf %99, %100 : vector<8x128xf32>
    %c142 = arith.constant 142 : index
    %c0_75 = arith.constant 0 : index
    %102 = vector.load %arg15[%c142, %c0_75] : memref<222x128xf32, #tpu.memory_space<vmem>>, vector<8x128xf32>
    tpu.vector_store %arg15[%c142, %c0_75], %101 {strides = array<i32>} : memref<222x128xf32, #tpu.memory_space<vmem>>, vector<8x128xf32>,
    %c352 = arith.constant 352 : index
    %c0_76 = arith.constant 0 : index
    %103 = tpu.strided_load %arg14[%c352, %c0_76] {strides = array<i32: 2, 1>} : memref<512x128xf32, #tpu.memory_space<vmem>>, vector<8x128xf32>
    %c353 = arith.constant 353 : index
    %c0_77 = arith.constant 0 : index
    %104 = tpu.strided_load %arg14[%c353, %c0_77] {strides = array<i32: 2, 1>} : memref<512x128xf32, #tpu.memory_space<vmem>>, vector<8x128xf32>
    %c368 = arith.constant 368 : index
    %c0_78 = arith.constant 0 : index
    %105 = tpu.strided_load %arg14[%c368, %c0_78] {strides = array<i32: 2, 1>} : memref<512x128xf32, #tpu.memory_space<vmem>>, vector<8x128xf32>
    %c369 = arith.constant 369 : index
    %c0_79 = arith.constant 0 : index
    %106 = tpu.strided_load %arg14[%c369, %c0_79] {strides = array<i32: 2, 1>} : memref<512x128xf32, #tpu.memory_space<vmem>>, vector<8x128xf32>
    %107 = arith.maximumf %103, %104 : vector<8x128xf32>
    %108 = arith.maximumf %105, %106 : vector<8x128xf32>
    %109 = arith.maximumf %107, %108 : vector<8x128xf32>
    %c152 = arith.constant 152 : index
    %c0_80 = arith.constant 0 : index
    %110 = vector.load %arg15[%c152, %c0_80] : memref<222x128xf32, #tpu.memory_space<vmem>>, vector<8x128xf32>
    tpu.vector_store %arg15[%c152, %c0_80], %109 {strides = array<i32>} : memref<222x128xf32, #tpu.memory_space<vmem>>, vector<8x128xf32>,
    %c384 = arith.constant 384 : index
    %c0_81 = arith.constant 0 : index
    %111 = tpu.strided_load %arg14[%c384, %c0_81] {strides = array<i32: 2, 1>} : memref<512x128xf32, #tpu.memory_space<vmem>>, vector<8x128xf32>
    %c385 = arith.constant 385 : index
    %c0_82 = arith.constant 0 : index
    %112 = tpu.strided_load %arg14[%c385, %c0_82] {strides = array<i32: 2, 1>} : memref<512x128xf32, #tpu.memory_space<vmem>>, vector<8x128xf32>
    %c400 = arith.constant 400 : index
    %c0_83 = arith.constant 0 : index
    %113 = tpu.strided_load %arg14[%c400, %c0_83] {strides = array<i32: 2, 1>} : memref<512x128xf32, #tpu.memory_space<vmem>>, vector<8x128xf32>
    %c401 = arith.constant 401 : index
    %c0_84 = arith.constant 0 : index
    %114 = tpu.strided_load %arg14[%c401, %c0_84] {strides = array<i32: 2, 1>} : memref<512x128xf32, #tpu.memory_space<vmem>>, vector<8x128xf32>
    %115 = arith.maximumf %111, %112 : vector<8x128xf32>
    %116 = arith.maximumf %113, %114 : vector<8x128xf32>
    %117 = arith.maximumf %115, %116 : vector<8x128xf32>
    %c162 = arith.constant 162 : index
    %c0_85 = arith.constant 0 : index
    %118 = vector.load %arg15[%c162, %c0_85] : memref<222x128xf32, #tpu.memory_space<vmem>>, vector<8x128xf32>
    tpu.vector_store %arg15[%c162, %c0_85], %117 {strides = array<i32>} : memref<222x128xf32, #tpu.memory_space<vmem>>, vector<8x128xf32>,
    %c416 = arith.constant 416 : index
    %c0_86 = arith.constant 0 : index
    %119 = tpu.strided_load %arg14[%c416, %c0_86] {strides = array<i32: 2, 1>} : memref<512x128xf32, #tpu.memory_space<vmem>>, vector<8x128xf32>
    %c417 = arith.constant 417 : index
    %c0_87 = arith.constant 0 : index
    %120 = tpu.strided_load %arg14[%c417, %c0_87] {strides = array<i32: 2, 1>} : memref<512x128xf32, #tpu.memory_space<vmem>>, vector<8x128xf32>
    %c432 = arith.constant 432 : index
    %c0_88 = arith.constant 0 : index
    %121 = tpu.strided_load %arg14[%c432, %c0_88] {strides = array<i32: 2, 1>} : memref<512x128xf32, #tpu.memory_space<vmem>>, vector<8x128xf32>
    %c433 = arith.constant 433 : index
    %c0_89 = arith.constant 0 : index
    %122 = tpu.strided_load %arg14[%c433, %c0_89] {strides = array<i32: 2, 1>} : memref<512x128xf32, #tpu.memory_space<vmem>>, vector<8x128xf32>
    %123 = arith.maximumf %119, %120 : vector<8x128xf32>
    %124 = arith.maximumf %121, %122 : vector<8x128xf32>
    %125 = arith.maximumf %123, %124 : vector<8x128xf32>
    %c172 = arith.constant 172 : index
    %c0_90 = arith.constant 0 : index
    %126 = vector.load %arg15[%c172, %c0_90] : memref<222x128xf32, #tpu.memory_space<vmem>>, vector<8x128xf32>
    tpu.vector_store %arg15[%c172, %c0_90], %125 {strides = array<i32>} : memref<222x128xf32, #tpu.memory_space<vmem>>, vector<8x128xf32>,
    %c448 = arith.constant 448 : index
    %c0_91 = arith.constant 0 : index
    %127 = tpu.strided_load %arg14[%c448, %c0_91] {strides = array<i32: 2, 1>} : memref<512x128xf32, #tpu.memory_space<vmem>>, vector<8x128xf32>
    %c449 = arith.constant 449 : index
    %c0_92 = arith.constant 0 : index
    %128 = tpu.strided_load %arg14[%c449, %c0_92] {strides = array<i32: 2, 1>} : memref<512x128xf32, #tpu.memory_space<vmem>>, vector<8x128xf32>
    %c464 = arith.constant 464 : index
    %c0_93 = arith.constant 0 : index
    %129 = tpu.strided_load %arg14[%c464, %c0_93] {strides = array<i32: 2, 1>} : memref<512x128xf32, #tpu.memory_space<vmem>>, vector<8x128xf32>
    %c465 = arith.constant 465 : index
    %c0_94 = arith.constant 0 : index
    %130 = tpu.strided_load %arg14[%c465, %c0_94] {strides = array<i32: 2, 1>} : memref<512x128xf32, #tpu.memory_space<vmem>>, vector<8x128xf32>
    %131 = arith.maximumf %127, %128 : vector<8x128xf32>
    %132 = arith.maximumf %129, %130 : vector<8x128xf32>
    %133 = arith.maximumf %131, %132 : vector<8x128xf32>
    %c182 = arith.constant 182 : index
    %c0_95 = arith.constant 0 : index
    %134 = vector.load %arg15[%c182, %c0_95] : memref<222x128xf32, #tpu.memory_space<vmem>>, vector<8x128xf32>
    tpu.vector_store %arg15[%c182, %c0_95], %133 {strides = array<i32>} : memref<222x128xf32, #tpu.memory_space<vmem>>, vector<8x128xf32>,
    %c480 = arith.constant 480 : index
    %c0_96 = arith.constant 0 : index
    %135 = tpu.strided_load %arg14[%c480, %c0_96] {strides = array<i32: 2, 1>} : memref<512x128xf32, #tpu.memory_space<vmem>>, vector<8x128xf32>
    %c481 = arith.constant 481 : index
    %c0_97 = arith.constant 0 : index
    %136 = tpu.strided_load %arg14[%c481, %c0_97] {strides = array<i32: 2, 1>} : memref<512x128xf32, #tpu.memory_space<vmem>>, vector<8x128xf32>
    %c496 = arith.constant 496 : index
    %c0_98 = arith.constant 0 : index
    %137 = tpu.strided_load %arg14[%c496, %c0_98] {strides = array<i32: 2, 1>} : memref<512x128xf32, #tpu.memory_space<vmem>>, vector<8x128xf32>
    %c497 = arith.constant 497 : index
    %c0_99 = arith.constant 0 : index
    %138 = tpu.strided_load %arg14[%c497, %c0_99] {strides = array<i32: 2, 1>} : memref<512x128xf32, #tpu.memory_space<vmem>>, vector<8x128xf32>
    %139 = arith.maximumf %135, %136 : vector<8x128xf32>
    %140 = arith.maximumf %137, %138 : vector<8x128xf32>
    %141 = arith.maximumf %139, %140 : vector<8x128xf32>
    %c192_100 = arith.constant 192 : index
    %c0_101 = arith.constant 0 : index
    %142 = vector.load %arg15[%c192_100, %c0_101] : memref<222x128xf32, #tpu.memory_space<vmem>>, vector<8x128xf32>
    tpu.vector_store %arg15[%c192_100, %c0_101], %141 {strides = array<i32>} : memref<222x128xf32, #tpu.memory_space<vmem>>, vector<8x128xf32>,
    %c0_102 = arith.constant 0 : index
    %c0_103 = arith.constant 0 : index
    %143 = vector.load %arg15[%c0_102, %c0_103] : memref<222x128xf32, #tpu.memory_space<vmem>>, vector<200x128xf32>
    %c0_104 = arith.constant 0 : index
    %c0_105 = arith.constant 0 : index
    %c0_106 = arith.constant 0 : index
    %144 = vector.load %arg3[%c0_104, %c0_105, %c0_106] : memref<9x128x128xf32, #tpu.memory_space<vmem>>, vector<1x128x128xf32>
    %145 = vector.shape_cast %144 : vector<1x128x128xf32> to vector<128x128xf32>
    %cst_107 = arith.constant dense<0.000000e+00> : vector<200x128xf32>
    %146 = tpu.matmul %143, %145, %cst_107 {dimension_numbers = #tpu.dot_dimension_numbers<[1], [0], [0], [1], [0, 0, 1, 1], [], []>} : vector<200x128xf32>, vector<128x128xf32>, vector<200x128xf32> -> vector<200x128xf32>
    %c0_108 = arith.constant 0 : index
    %c0_109 = arith.constant 0 : index
    %147 = vector.load %arg4[%c0_108, %c0_109] : memref<1x128xf32, #tpu.memory_space<vmem>>, vector<1x128xf32>
    %148 = vector.broadcast %147 : vector<1x128xf32> to vector<200x128xf32>
    %149 = arith.addf %146, %148 : vector<200x128xf32>
    %c0_110 = arith.constant 0 : index
    %c0_111 = arith.constant 0 : index
    %150 = vector.load %arg16[%c0_110, %c0_111] : memref<200x128xf32, #tpu.memory_space<vmem>>, vector<200x128xf32>
    tpu.vector_store %arg16[%c0_110, %c0_111], %149 {strides = array<i32>} : memref<200x128xf32, #tpu.memory_space<vmem>>, vector<200x128xf32>,
    %c1_112 = arith.constant 1 : index
    %c0_113 = arith.constant 0 : index
    %151 = vector.load %arg15[%c1_112, %c0_113] : memref<222x128xf32, #tpu.memory_space<vmem>>, vector<200x128xf32>
    %c1_114 = arith.constant 1 : index
    %c0_115 = arith.constant 0 : index
    %c0_116 = arith.constant 0 : index
    %152 = vector.load %arg3[%c1_114, %c0_115, %c0_116] : memref<9x128x128xf32, #tpu.memory_space<vmem>>, vector<1x128x128xf32>
    %153 = vector.shape_cast %152 : vector<1x128x128xf32> to vector<128x128xf32>
    %cst_117 = arith.constant dense<0.000000e+00> : vector<200x128xf32>
    %154 = tpu.matmul %151, %153, %cst_117 {dimension_numbers = #tpu.dot_dimension_numbers<[1], [0], [0], [1], [0, 0, 1, 1], [], []>} : vector<200x128xf32>, vector<128x128xf32>, vector<200x128xf32> -> vector<200x128xf32>
    %c0_118 = arith.constant 0 : index
    %c0_119 = arith.constant 0 : index
    %155 = vector.load %arg16[%c0_118, %c0_119] : memref<200x128xf32, #tpu.memory_space<vmem>>, vector<200x128xf32>
    %156 = arith.addf %155, %154 : vector<200x128xf32>
    %c0_120 = arith.constant 0 : index
    %c0_121 = arith.constant 0 : index
    %157 = vector.load %arg16[%c0_120, %c0_121] : memref<200x128xf32, #tpu.memory_space<vmem>>, vector<200x128xf32>
    tpu.vector_store %arg16[%c0_120, %c0_121], %156 {strides = array<i32>} : memref<200x128xf32, #tpu.memory_space<vmem>>, vector<200x128xf32>,
    %c2 = arith.constant 2 : index
    %c0_122 = arith.constant 0 : index
    %158 = vector.load %arg15[%c2, %c0_122] : memref<222x128xf32, #tpu.memory_space<vmem>>, vector<200x128xf32>
    %c2_123 = arith.constant 2 : index
    %c0_124 = arith.constant 0 : index
    %c0_125 = arith.constant 0 : index
    %159 = vector.load %arg3[%c2_123, %c0_124, %c0_125] : memref<9x128x128xf32, #tpu.memory_space<vmem>>, vector<1x128x128xf32>
    %160 = vector.shape_cast %159 : vector<1x128x128xf32> to vector<128x128xf32>
    %cst_126 = arith.constant dense<0.000000e+00> : vector<200x128xf32>
    %161 = tpu.matmul %158, %160, %cst_126 {dimension_numbers = #tpu.dot_dimension_numbers<[1], [0], [0], [1], [0, 0, 1, 1], [], []>} : vector<200x128xf32>, vector<128x128xf32>, vector<200x128xf32> -> vector<200x128xf32>
    %c0_127 = arith.constant 0 : index
    %c0_128 = arith.constant 0 : index
    %162 = vector.load %arg16[%c0_127, %c0_128] : memref<200x128xf32, #tpu.memory_space<vmem>>, vector<200x128xf32>
    %163 = arith.addf %162, %161 : vector<200x128xf32>
    %c0_129 = arith.constant 0 : index
    %c0_130 = arith.constant 0 : index
    %164 = vector.load %arg16[%c0_129, %c0_130] : memref<200x128xf32, #tpu.memory_space<vmem>>, vector<200x128xf32>
    tpu.vector_store %arg16[%c0_129, %c0_130], %163 {strides = array<i32>} : memref<200x128xf32, #tpu.memory_space<vmem>>, vector<200x128xf32>,
    %c10 = arith.constant 10 : index
    %c0_131 = arith.constant 0 : index
    %165 = vector.load %arg15[%c10, %c0_131] : memref<222x128xf32, #tpu.memory_space<vmem>>, vector<200x128xf32>
    %c3 = arith.constant 3 : index
    %c0_132 = arith.constant 0 : index
    %c0_133 = arith.constant 0 : index
    %166 = vector.load %arg3[%c3, %c0_132, %c0_133] : memref<9x128x128xf32, #tpu.memory_space<vmem>>, vector<1x128x128xf32>
    %167 = vector.shape_cast %166 : vector<1x128x128xf32> to vector<128x128xf32>
    %cst_134 = arith.constant dense<0.000000e+00> : vector<200x128xf32>
    %168 = tpu.matmul %165, %167, %cst_134 {dimension_numbers = #tpu.dot_dimension_numbers<[1], [0], [0], [1], [0, 0, 1, 1], [], []>} : vector<200x128xf32>, vector<128x128xf32>, vector<200x128xf32> -> vector<200x128xf32>
    %c0_135 = arith.constant 0 : index
    %c0_136 = arith.constant 0 : index
    %169 = vector.load %arg16[%c0_135, %c0_136] : memref<200x128xf32, #tpu.memory_space<vmem>>, vector<200x128xf32>
    %170 = arith.addf %169, %168 : vector<200x128xf32>
    %c0_137 = arith.constant 0 : index
    %c0_138 = arith.constant 0 : index
    %171 = vector.load %arg16[%c0_137, %c0_138] : memref<200x128xf32, #tpu.memory_space<vmem>>, vector<200x128xf32>
    tpu.vector_store %arg16[%c0_137, %c0_138], %170 {strides = array<i32>} : memref<200x128xf32, #tpu.memory_space<vmem>>, vector<200x128xf32>,
    %c11 = arith.constant 11 : index
    %c0_139 = arith.constant 0 : index
    %172 = vector.load %arg15[%c11, %c0_139] : memref<222x128xf32, #tpu.memory_space<vmem>>, vector<200x128xf32>
    %c4 = arith.constant 4 : index
    %c0_140 = arith.constant 0 : index
    %c0_141 = arith.constant 0 : index
    %173 = vector.load %arg3[%c4, %c0_140, %c0_141] : memref<9x128x128xf32, #tpu.memory_space<vmem>>, vector<1x128x128xf32>
    %174 = vector.shape_cast %173 : vector<1x128x128xf32> to vector<128x128xf32>
    %cst_142 = arith.constant dense<0.000000e+00> : vector<200x128xf32>
    %175 = tpu.matmul %172, %174, %cst_142 {dimension_numbers = #tpu.dot_dimension_numbers<[1], [0], [0], [1], [0, 0, 1, 1], [], []>} : vector<200x128xf32>, vector<128x128xf32>, vector<200x128xf32> -> vector<200x128xf32>
    %c0_143 = arith.constant 0 : index
    %c0_144 = arith.constant 0 : index
    %176 = vector.load %arg16[%c0_143, %c0_144] : memref<200x128xf32, #tpu.memory_space<vmem>>, vector<200x128xf32>
    %177 = arith.addf %176, %175 : vector<200x128xf32>
    %c0_145 = arith.constant 0 : index
    %c0_146 = arith.constant 0 : index
    %178 = vector.load %arg16[%c0_145, %c0_146] : memref<200x128xf32, #tpu.memory_space<vmem>>, vector<200x128xf32>
    tpu.vector_store %arg16[%c0_145, %c0_146], %177 {strides = array<i32>} : memref<200x128xf32, #tpu.memory_space<vmem>>, vector<200x128xf32>,
    %c12 = arith.constant 12 : index
    %c0_147 = arith.constant 0 : index
    %179 = vector.load %arg15[%c12, %c0_147] : memref<222x128xf32, #tpu.memory_space<vmem>>, vector<200x128xf32>
    %c5 = arith.constant 5 : index
    %c0_148 = arith.constant 0 : index
    %c0_149 = arith.constant 0 : index
    %180 = vector.load %arg3[%c5, %c0_148, %c0_149] : memref<9x128x128xf32, #tpu.memory_space<vmem>>, vector<1x128x128xf32>
    %181 = vector.shape_cast %180 : vector<1x128x128xf32> to vector<128x128xf32>
    %cst_150 = arith.constant dense<0.000000e+00> : vector<200x128xf32>
    %182 = tpu.matmul %179, %181, %cst_150 {dimension_numbers = #tpu.dot_dimension_numbers<[1], [0], [0], [1], [0, 0, 1, 1], [], []>} : vector<200x128xf32>, vector<128x128xf32>, vector<200x128xf32> -> vector<200x128xf32>
    %c0_151 = arith.constant 0 : index
    %c0_152 = arith.constant 0 : index
    %183 = vector.load %arg16[%c0_151, %c0_152] : memref<200x128xf32, #tpu.memory_space<vmem>>, vector<200x128xf32>
    %184 = arith.addf %183, %182 : vector<200x128xf32>
    %c0_153 = arith.constant 0 : index
    %c0_154 = arith.constant 0 : index
    %185 = vector.load %arg16[%c0_153, %c0_154] : memref<200x128xf32, #tpu.memory_space<vmem>>, vector<200x128xf32>
    tpu.vector_store %arg16[%c0_153, %c0_154], %184 {strides = array<i32>} : memref<200x128xf32, #tpu.memory_space<vmem>>, vector<200x128xf32>,
    %c20 = arith.constant 20 : index
    %c0_155 = arith.constant 0 : index
    %186 = vector.load %arg15[%c20, %c0_155] : memref<222x128xf32, #tpu.memory_space<vmem>>, vector<200x128xf32>
    %c6 = arith.constant 6 : index
    %c0_156 = arith.constant 0 : index
    %c0_157 = arith.constant 0 : index
    %187 = vector.load %arg3[%c6, %c0_156, %c0_157] : memref<9x128x128xf32, #tpu.memory_space<vmem>>, vector<1x128x128xf32>
    %188 = vector.shape_cast %187 : vector<1x128x128xf32> to vector<128x128xf32>
    %cst_158 = arith.constant dense<0.000000e+00> : vector<200x128xf32>
    %189 = tpu.matmul %186, %188, %cst_158 {dimension_numbers = #tpu.dot_dimension_numbers<[1], [0], [0], [1], [0, 0, 1, 1], [], []>} : vector<200x128xf32>, vector<128x128xf32>, vector<200x128xf32> -> vector<200x128xf32>
    %c0_159 = arith.constant 0 : index
    %c0_160 = arith.constant 0 : index
    %190 = vector.load %arg16[%c0_159, %c0_160] : memref<200x128xf32, #tpu.memory_space<vmem>>, vector<200x128xf32>
    %191 = arith.addf %190, %189 : vector<200x128xf32>
    %c0_161 = arith.constant 0 : index
    %c0_162 = arith.constant 0 : index
    %192 = vector.load %arg16[%c0_161, %c0_162] : memref<200x128xf32, #tpu.memory_space<vmem>>, vector<200x128xf32>
    tpu.vector_store %arg16[%c0_161, %c0_162], %191 {strides = array<i32>} : memref<200x128xf32, #tpu.memory_space<vmem>>, vector<200x128xf32>,
    %c21 = arith.constant 21 : index
    %c0_163 = arith.constant 0 : index
    %193 = vector.load %arg15[%c21, %c0_163] : memref<222x128xf32, #tpu.memory_space<vmem>>, vector<200x128xf32>
    %c7 = arith.constant 7 : index
    %c0_164 = arith.constant 0 : index
    %c0_165 = arith.constant 0 : index
    %194 = vector.load %arg3[%c7, %c0_164, %c0_165] : memref<9x128x128xf32, #tpu.memory_space<vmem>>, vector<1x128x128xf32>
    %195 = vector.shape_cast %194 : vector<1x128x128xf32> to vector<128x128xf32>
    %cst_166 = arith.constant dense<0.000000e+00> : vector<200x128xf32>
    %196 = tpu.matmul %193, %195, %cst_166 {dimension_numbers = #tpu.dot_dimension_numbers<[1], [0], [0], [1], [0, 0, 1, 1], [], []>} : vector<200x128xf32>, vector<128x128xf32>, vector<200x128xf32> -> vector<200x128xf32>
    %c0_167 = arith.constant 0 : index
    %c0_168 = arith.constant 0 : index
    %197 = vector.load %arg16[%c0_167, %c0_168] : memref<200x128xf32, #tpu.memory_space<vmem>>, vector<200x128xf32>
    %198 = arith.addf %197, %196 : vector<200x128xf32>
    %c0_169 = arith.constant 0 : index
    %c0_170 = arith.constant 0 : index
    %199 = vector.load %arg16[%c0_169, %c0_170] : memref<200x128xf32, #tpu.memory_space<vmem>>, vector<200x128xf32>
    tpu.vector_store %arg16[%c0_169, %c0_170], %198 {strides = array<i32>} : memref<200x128xf32, #tpu.memory_space<vmem>>, vector<200x128xf32>,
    %c22_171 = arith.constant 22 : index
    %c0_172 = arith.constant 0 : index
    %200 = vector.load %arg15[%c22_171, %c0_172] : memref<222x128xf32, #tpu.memory_space<vmem>>, vector<200x128xf32>
    %c8 = arith.constant 8 : index
    %c0_173 = arith.constant 0 : index
    %c0_174 = arith.constant 0 : index
    %201 = vector.load %arg3[%c8, %c0_173, %c0_174] : memref<9x128x128xf32, #tpu.memory_space<vmem>>, vector<1x128x128xf32>
    %202 = vector.shape_cast %201 : vector<1x128x128xf32> to vector<128x128xf32>
    %cst_175 = arith.constant dense<0.000000e+00> : vector<200x128xf32>
    %203 = tpu.matmul %200, %202, %cst_175 {dimension_numbers = #tpu.dot_dimension_numbers<[1], [0], [0], [1], [0, 0, 1, 1], [], []>} : vector<200x128xf32>, vector<128x128xf32>, vector<200x128xf32> -> vector<200x128xf32>
    %c0_176 = arith.constant 0 : index
    %c0_177 = arith.constant 0 : index
    %204 = vector.load %arg16[%c0_176, %c0_177] : memref<200x128xf32, #tpu.memory_space<vmem>>, vector<200x128xf32>
    %205 = arith.addf %204, %203 : vector<200x128xf32>
    %c0_178 = arith.constant 0 : index
    %c0_179 = arith.constant 0 : index
    %206 = vector.load %arg16[%c0_178, %c0_179] : memref<200x128xf32, #tpu.memory_space<vmem>>, vector<200x128xf32>
    tpu.vector_store %arg16[%c0_178, %c0_179], %205 {strides = array<i32>} : memref<200x128xf32, #tpu.memory_space<vmem>>, vector<200x128xf32>,
    %c11_180 = arith.constant 11 : index
    %c0_181 = arith.constant 0 : index
    %207 = tpu.strided_load %arg16[%c11_180, %c0_181] {strides = array<i32: 2, 1>} : memref<200x128xf32, #tpu.memory_space<vmem>>, vector<4x128xf32>
    %c12_182 = arith.constant 12 : index
    %c0_183 = arith.constant 0 : index
    %208 = tpu.strided_load %arg16[%c12_182, %c0_183] {strides = array<i32: 2, 1>} : memref<200x128xf32, #tpu.memory_space<vmem>>, vector<4x128xf32>
    %c21_184 = arith.constant 21 : index
    %c0_185 = arith.constant 0 : index
    %209 = tpu.strided_load %arg16[%c21_184, %c0_185] {strides = array<i32: 2, 1>} : memref<200x128xf32, #tpu.memory_space<vmem>>, vector<4x128xf32>
    %c22_186 = arith.constant 22 : index
    %c0_187 = arith.constant 0 : index
    %210 = tpu.strided_load %arg16[%c22_186, %c0_187] {strides = array<i32: 2, 1>} : memref<200x128xf32, #tpu.memory_space<vmem>>, vector<4x128xf32>
    %211 = arith.maximumf %207, %208 : vector<4x128xf32>
    %212 = arith.maximumf %209, %210 : vector<4x128xf32>
    %213 = arith.maximumf %211, %212 : vector<4x128xf32>
    %c14 = arith.constant 14 : index
    %c0_188 = arith.constant 0 : index
    %214 = vector.load %arg17[%c14, %c0_188] : memref<86x128xf32, #tpu.memory_space<vmem>>, vector<4x128xf32>
    tpu.vector_store %arg17[%c14, %c0_188], %213 {strides = array<i32>} : memref<86x128xf32, #tpu.memory_space<vmem>>, vector<4x128xf32>,
    %c31 = arith.constant 31 : index
    %c0_189 = arith.constant 0 : index
    %215 = tpu.strided_load %arg16[%c31, %c0_189] {strides = array<i32: 2, 1>} : memref<200x128xf32, #tpu.memory_space<vmem>>, vector<4x128xf32>
    %c32_190 = arith.constant 32 : index
    %c0_191 = arith.constant 0 : index
    %216 = tpu.strided_load %arg16[%c32_190, %c0_191] {strides = array<i32: 2, 1>} : memref<200x128xf32, #tpu.memory_space<vmem>>, vector<4x128xf32>
    %c41 = arith.constant 41 : index
    %c0_192 = arith.constant 0 : index
    %217 = tpu.strided_load %arg16[%c41, %c0_192] {strides = array<i32: 2, 1>} : memref<200x128xf32, #tpu.memory_space<vmem>>, vector<4x128xf32>
    %c42_193 = arith.constant 42 : index
    %c0_194 = arith.constant 0 : index
    %218 = tpu.strided_load %arg16[%c42_193, %c0_194] {strides = array<i32: 2, 1>} : memref<200x128xf32, #tpu.memory_space<vmem>>, vector<4x128xf32>
    %219 = arith.maximumf %215, %216 : vector<4x128xf32>
    %220 = arith.maximumf %217, %218 : vector<4x128xf32>
    %221 = arith.maximumf %219, %220 : vector<4x128xf32>
    %c20_195 = arith.constant 20 : index
    %c0_196 = arith.constant 0 : index
    %222 = vector.load %arg17[%c20_195, %c0_196] : memref<86x128xf32, #tpu.memory_space<vmem>>, vector<4x128xf32>
    tpu.vector_store %arg17[%c20_195, %c0_196], %221 {strides = array<i32>} : memref<86x128xf32, #tpu.memory_space<vmem>>, vector<4x128xf32>,
    %c51 = arith.constant 51 : index
    %c0_197 = arith.constant 0 : index
    %223 = tpu.strided_load %arg16[%c51, %c0_197] {strides = array<i32: 2, 1>} : memref<200x128xf32, #tpu.memory_space<vmem>>, vector<4x128xf32>
    %c52_198 = arith.constant 52 : index
    %c0_199 = arith.constant 0 : index
    %224 = tpu.strided_load %arg16[%c52_198, %c0_199] {strides = array<i32: 2, 1>} : memref<200x128xf32, #tpu.memory_space<vmem>>, vector<4x128xf32>
    %c61 = arith.constant 61 : index
    %c0_200 = arith.constant 0 : index
    %225 = tpu.strided_load %arg16[%c61, %c0_200] {strides = array<i32: 2, 1>} : memref<200x128xf32, #tpu.memory_space<vmem>>, vector<4x128xf32>
    %c62_201 = arith.constant 62 : index
    %c0_202 = arith.constant 0 : index
    %226 = tpu.strided_load %arg16[%c62_201, %c0_202] {strides = array<i32: 2, 1>} : memref<200x128xf32, #tpu.memory_space<vmem>>, vector<4x128xf32>
    %227 = arith.maximumf %223, %224 : vector<4x128xf32>
    %228 = arith.maximumf %225, %226 : vector<4x128xf32>
    %229 = arith.maximumf %227, %228 : vector<4x128xf32>
    %c26 = arith.constant 26 : index
    %c0_203 = arith.constant 0 : index
    %230 = vector.load %arg17[%c26, %c0_203] : memref<86x128xf32, #tpu.memory_space<vmem>>, vector<4x128xf32>
    tpu.vector_store %arg17[%c26, %c0_203], %229 {strides = array<i32>} : memref<86x128xf32, #tpu.memory_space<vmem>>, vector<4x128xf32>,
    %c71 = arith.constant 71 : index
    %c0_204 = arith.constant 0 : index
    %231 = tpu.strided_load %arg16[%c71, %c0_204] {strides = array<i32: 2, 1>} : memref<200x128xf32, #tpu.memory_space<vmem>>, vector<4x128xf32>
    %c72_205 = arith.constant 72 : index
    %c0_206 = arith.constant 0 : index
    %232 = tpu.strided_load %arg16[%c72_205, %c0_206] {strides = array<i32: 2, 1>} : memref<200x128xf32, #tpu.memory_space<vmem>>, vector<4x128xf32>
    %c81_207 = arith.constant 81 : index
    %c0_208 = arith.constant 0 : index
    %233 = tpu.strided_load %arg16[%c81_207, %c0_208] {strides = array<i32: 2, 1>} : memref<200x128xf32, #tpu.memory_space<vmem>>, vector<4x128xf32>
    %c82_209 = arith.constant 82 : index
    %c0_210 = arith.constant 0 : index
    %234 = tpu.strided_load %arg16[%c82_209, %c0_210] {strides = array<i32: 2, 1>} : memref<200x128xf32, #tpu.memory_space<vmem>>, vector<4x128xf32>
    %235 = arith.maximumf %231, %232 : vector<4x128xf32>
    %236 = arith.maximumf %233, %234 : vector<4x128xf32>
    %237 = arith.maximumf %235, %236 : vector<4x128xf32>
    %c32_211 = arith.constant 32 : index
    %c0_212 = arith.constant 0 : index
    %238 = vector.load %arg17[%c32_211, %c0_212] : memref<86x128xf32, #tpu.memory_space<vmem>>, vector<4x128xf32>
    tpu.vector_store %arg17[%c32_211, %c0_212], %237 {strides = array<i32>} : memref<86x128xf32, #tpu.memory_space<vmem>>, vector<4x128xf32>,
    %c111 = arith.constant 111 : index
    %c0_213 = arith.constant 0 : index
    %239 = tpu.strided_load %arg16[%c111, %c0_213] {strides = array<i32: 2, 1>} : memref<200x128xf32, #tpu.memory_space<vmem>>, vector<4x128xf32>
    %c112_214 = arith.constant 112 : index
    %c0_215 = arith.constant 0 : index
    %240 = tpu.strided_load %arg16[%c112_214, %c0_215] {strides = array<i32: 2, 1>} : memref<200x128xf32, #tpu.memory_space<vmem>>, vector<4x128xf32>
    %c121 = arith.constant 121 : index
    %c0_216 = arith.constant 0 : index
    %241 = tpu.strided_load %arg16[%c121, %c0_216] {strides = array<i32: 2, 1>} : memref<200x128xf32, #tpu.memory_space<vmem>>, vector<4x128xf32>
    %c122_217 = arith.constant 122 : index
    %c0_218 = arith.constant 0 : index
    %242 = tpu.strided_load %arg16[%c122_217, %c0_218] {strides = array<i32: 2, 1>} : memref<200x128xf32, #tpu.memory_space<vmem>>, vector<4x128xf32>
    %243 = arith.maximumf %239, %240 : vector<4x128xf32>
    %244 = arith.maximumf %241, %242 : vector<4x128xf32>
    %245 = arith.maximumf %243, %244 : vector<4x128xf32>
    %c50 = arith.constant 50 : index
    %c0_219 = arith.constant 0 : index
    %246 = vector.load %arg17[%c50, %c0_219] : memref<86x128xf32, #tpu.memory_space<vmem>>, vector<4x128xf32>
    tpu.vector_store %arg17[%c50, %c0_219], %245 {strides = array<i32>} : memref<86x128xf32, #tpu.memory_space<vmem>>, vector<4x128xf32>,
    %c131 = arith.constant 131 : index
    %c0_220 = arith.constant 0 : index
    %247 = tpu.strided_load %arg16[%c131, %c0_220] {strides = array<i32: 2, 1>} : memref<200x128xf32, #tpu.memory_space<vmem>>, vector<4x128xf32>
    %c132_221 = arith.constant 132 : index
    %c0_222 = arith.constant 0 : index
    %248 = tpu.strided_load %arg16[%c132_221, %c0_222] {strides = array<i32: 2, 1>} : memref<200x128xf32, #tpu.memory_space<vmem>>, vector<4x128xf32>
    %c141 = arith.constant 141 : index
    %c0_223 = arith.constant 0 : index
    %249 = tpu.strided_load %arg16[%c141, %c0_223] {strides = array<i32: 2, 1>} : memref<200x128xf32, #tpu.memory_space<vmem>>, vector<4x128xf32>
    %c142_224 = arith.constant 142 : index
    %c0_225 = arith.constant 0 : index
    %250 = tpu.strided_load %arg16[%c142_224, %c0_225] {strides = array<i32: 2, 1>} : memref<200x128xf32, #tpu.memory_space<vmem>>, vector<4x128xf32>
    %251 = arith.maximumf %247, %248 : vector<4x128xf32>
    %252 = arith.maximumf %249, %250 : vector<4x128xf32>
    %253 = arith.maximumf %251, %252 : vector<4x128xf32>
    %c56 = arith.constant 56 : index
    %c0_226 = arith.constant 0 : index
    %254 = vector.load %arg17[%c56, %c0_226] : memref<86x128xf32, #tpu.memory_space<vmem>>, vector<4x128xf32>
    tpu.vector_store %arg17[%c56, %c0_226], %253 {strides = array<i32>} : memref<86x128xf32, #tpu.memory_space<vmem>>, vector<4x128xf32>,
    %c151 = arith.constant 151 : index
    %c0_227 = arith.constant 0 : index
    %255 = tpu.strided_load %arg16[%c151, %c0_227] {strides = array<i32: 2, 1>} : memref<200x128xf32, #tpu.memory_space<vmem>>, vector<4x128xf32>
    %c152_228 = arith.constant 152 : index
    %c0_229 = arith.constant 0 : index
    %256 = tpu.strided_load %arg16[%c152_228, %c0_229] {strides = array<i32: 2, 1>} : memref<200x128xf32, #tpu.memory_space<vmem>>, vector<4x128xf32>
    %c161_230 = arith.constant 161 : index
    %c0_231 = arith.constant 0 : index
    %257 = tpu.strided_load %arg16[%c161_230, %c0_231] {strides = array<i32: 2, 1>} : memref<200x128xf32, #tpu.memory_space<vmem>>, vector<4x128xf32>
    %c162_232 = arith.constant 162 : index
    %c0_233 = arith.constant 0 : index
    %258 = tpu.strided_load %arg16[%c162_232, %c0_233] {strides = array<i32: 2, 1>} : memref<200x128xf32, #tpu.memory_space<vmem>>, vector<4x128xf32>
    %259 = arith.maximumf %255, %256 : vector<4x128xf32>
    %260 = arith.maximumf %257, %258 : vector<4x128xf32>
    %261 = arith.maximumf %259, %260 : vector<4x128xf32>
    %c62_234 = arith.constant 62 : index
    %c0_235 = arith.constant 0 : index
    %262 = vector.load %arg17[%c62_234, %c0_235] : memref<86x128xf32, #tpu.memory_space<vmem>>, vector<4x128xf32>
    tpu.vector_store %arg17[%c62_234, %c0_235], %261 {strides = array<i32>} : memref<86x128xf32, #tpu.memory_space<vmem>>, vector<4x128xf32>,
    %c171 = arith.constant 171 : index
    %c0_236 = arith.constant 0 : index
    %263 = tpu.strided_load %arg16[%c171, %c0_236] {strides = array<i32: 2, 1>} : memref<200x128xf32, #tpu.memory_space<vmem>>, vector<4x128xf32>
    %c172_237 = arith.constant 172 : index
    %c0_238 = arith.constant 0 : index
    %264 = tpu.strided_load %arg16[%c172_237, %c0_238] {strides = array<i32: 2, 1>} : memref<200x128xf32, #tpu.memory_space<vmem>>, vector<4x128xf32>
    %c181 = arith.constant 181 : index
    %c0_239 = arith.constant 0 : index
    %265 = tpu.strided_load %arg16[%c181, %c0_239] {strides = array<i32: 2, 1>} : memref<200x128xf32, #tpu.memory_space<vmem>>, vector<4x128xf32>
    %c182_240 = arith.constant 182 : index
    %c0_241 = arith.constant 0 : index
    %266 = tpu.strided_load %arg16[%c182_240, %c0_241] {strides = array<i32: 2, 1>} : memref<200x128xf32, #tpu.memory_space<vmem>>, vector<4x128xf32>
    %267 = arith.maximumf %263, %264 : vector<4x128xf32>
    %268 = arith.maximumf %265, %266 : vector<4x128xf32>
    %269 = arith.maximumf %267, %268 : vector<4x128xf32>
    %c68 = arith.constant 68 : index
    %c0_242 = arith.constant 0 : index
    %270 = vector.load %arg17[%c68, %c0_242] : memref<86x128xf32, #tpu.memory_space<vmem>>, vector<4x128xf32>
    tpu.vector_store %arg17[%c68, %c0_242], %269 {strides = array<i32>} : memref<86x128xf32, #tpu.memory_space<vmem>>, vector<4x128xf32>,
    %c0_243 = arith.constant 0 : index
    %c0_244 = arith.constant 0 : index
    %271 = vector.load %arg17[%c0_243, %c0_244] : memref<86x128xf32, #tpu.memory_space<vmem>>, vector<72x128xf32>
    %c0_245 = arith.constant 0 : index
    %c0_246 = arith.constant 0 : index
    %c0_247 = arith.constant 0 : index
    %272 = vector.load %arg5[%c0_245, %c0_246, %c0_247] : memref<9x128x128xf32, #tpu.memory_space<vmem>>, vector<1x128x128xf32>
    %273 = vector.shape_cast %272 : vector<1x128x128xf32> to vector<128x128xf32>
    %cst_248 = arith.constant dense<0.000000e+00> : vector<72x128xf32>
    %274 = tpu.matmul %271, %273, %cst_248 {dimension_numbers = #tpu.dot_dimension_numbers<[1], [0], [0], [1], [0, 0, 1, 1], [], []>} : vector<72x128xf32>, vector<128x128xf32>, vector<72x128xf32> -> vector<72x128xf32>
    %c0_249 = arith.constant 0 : index
    %c0_250 = arith.constant 0 : index
    %275 = vector.load %arg6[%c0_249, %c0_250] : memref<1x128xf32, #tpu.memory_space<vmem>>, vector<1x128xf32>
    %276 = vector.broadcast %275 : vector<1x128xf32> to vector<72x128xf32>
    %277 = arith.addf %274, %276 : vector<72x128xf32>
    %c0_251 = arith.constant 0 : index
    %c0_252 = arith.constant 0 : index
    %278 = vector.load %arg18[%c0_251, %c0_252] : memref<72x128xf32, #tpu.memory_space<vmem>>, vector<72x128xf32>
    tpu.vector_store %arg18[%c0_251, %c0_252], %277 {strides = array<i32>} : memref<72x128xf32, #tpu.memory_space<vmem>>, vector<72x128xf32>,
    %c1_253 = arith.constant 1 : index
    %c0_254 = arith.constant 0 : index
    %279 = vector.load %arg17[%c1_253, %c0_254] : memref<86x128xf32, #tpu.memory_space<vmem>>, vector<72x128xf32>
    %c1_255 = arith.constant 1 : index
    %c0_256 = arith.constant 0 : index
    %c0_257 = arith.constant 0 : index
    %280 = vector.load %arg5[%c1_255, %c0_256, %c0_257] : memref<9x128x128xf32, #tpu.memory_space<vmem>>, vector<1x128x128xf32>
    %281 = vector.shape_cast %280 : vector<1x128x128xf32> to vector<128x128xf32>
    %cst_258 = arith.constant dense<0.000000e+00> : vector<72x128xf32>
    %282 = tpu.matmul %279, %281, %cst_258 {dimension_numbers = #tpu.dot_dimension_numbers<[1], [0], [0], [1], [0, 0, 1, 1], [], []>} : vector<72x128xf32>, vector<128x128xf32>, vector<72x128xf32> -> vector<72x128xf32>
    %c0_259 = arith.constant 0 : index
    %c0_260 = arith.constant 0 : index
    %283 = vector.load %arg18[%c0_259, %c0_260] : memref<72x128xf32, #tpu.memory_space<vmem>>, vector<72x128xf32>
    %284 = arith.addf %283, %282 : vector<72x128xf32>
    %c0_261 = arith.constant 0 : index
    %c0_262 = arith.constant 0 : index
    %285 = vector.load %arg18[%c0_261, %c0_262] : memref<72x128xf32, #tpu.memory_space<vmem>>, vector<72x128xf32>
    tpu.vector_store %arg18[%c0_261, %c0_262], %284 {strides = array<i32>} : memref<72x128xf32, #tpu.memory_space<vmem>>, vector<72x128xf32>,
    %c2_263 = arith.constant 2 : index
    %c0_264 = arith.constant 0 : index
    %286 = vector.load %arg17[%c2_263, %c0_264] : memref<86x128xf32, #tpu.memory_space<vmem>>, vector<72x128xf32>
    %c2_265 = arith.constant 2 : index
    %c0_266 = arith.constant 0 : index
    %c0_267 = arith.constant 0 : index
    %287 = vector.load %arg5[%c2_265, %c0_266, %c0_267] : memref<9x128x128xf32, #tpu.memory_space<vmem>>, vector<1x128x128xf32>
    %288 = vector.shape_cast %287 : vector<1x128x128xf32> to vector<128x128xf32>
    %cst_268 = arith.constant dense<0.000000e+00> : vector<72x128xf32>
    %289 = tpu.matmul %286, %288, %cst_268 {dimension_numbers = #tpu.dot_dimension_numbers<[1], [0], [0], [1], [0, 0, 1, 1], [], []>} : vector<72x128xf32>, vector<128x128xf32>, vector<72x128xf32> -> vector<72x128xf32>
    %c0_269 = arith.constant 0 : index
    %c0_270 = arith.constant 0 : index
    %290 = vector.load %arg18[%c0_269, %c0_270] : memref<72x128xf32, #tpu.memory_space<vmem>>, vector<72x128xf32>
    %291 = arith.addf %290, %289 : vector<72x128xf32>
    %c0_271 = arith.constant 0 : index
    %c0_272 = arith.constant 0 : index
    %292 = vector.load %arg18[%c0_271, %c0_272] : memref<72x128xf32, #tpu.memory_space<vmem>>, vector<72x128xf32>
    tpu.vector_store %arg18[%c0_271, %c0_272], %291 {strides = array<i32>} : memref<72x128xf32, #tpu.memory_space<vmem>>, vector<72x128xf32>,
    %c6_273 = arith.constant 6 : index
    %c0_274 = arith.constant 0 : index
    %293 = vector.load %arg17[%c6_273, %c0_274] : memref<86x128xf32, #tpu.memory_space<vmem>>, vector<72x128xf32>
    %c3_275 = arith.constant 3 : index
    %c0_276 = arith.constant 0 : index
    %c0_277 = arith.constant 0 : index
    %294 = vector.load %arg5[%c3_275, %c0_276, %c0_277] : memref<9x128x128xf32, #tpu.memory_space<vmem>>, vector<1x128x128xf32>
    %295 = vector.shape_cast %294 : vector<1x128x128xf32> to vector<128x128xf32>
    %cst_278 = arith.constant dense<0.000000e+00> : vector<72x128xf32>
    %296 = tpu.matmul %293, %295, %cst_278 {dimension_numbers = #tpu.dot_dimension_numbers<[1], [0], [0], [1], [0, 0, 1, 1], [], []>} : vector<72x128xf32>, vector<128x128xf32>, vector<72x128xf32> -> vector<72x128xf32>
    %c0_279 = arith.constant 0 : index
    %c0_280 = arith.constant 0 : index
    %297 = vector.load %arg18[%c0_279, %c0_280] : memref<72x128xf32, #tpu.memory_space<vmem>>, vector<72x128xf32>
    %298 = arith.addf %297, %296 : vector<72x128xf32>
    %c0_281 = arith.constant 0 : index
    %c0_282 = arith.constant 0 : index
    %299 = vector.load %arg18[%c0_281, %c0_282] : memref<72x128xf32, #tpu.memory_space<vmem>>, vector<72x128xf32>
    tpu.vector_store %arg18[%c0_281, %c0_282], %298 {strides = array<i32>} : memref<72x128xf32, #tpu.memory_space<vmem>>, vector<72x128xf32>,
    %c7_283 = arith.constant 7 : index
    %c0_284 = arith.constant 0 : index
    %300 = vector.load %arg17[%c7_283, %c0_284] : memref<86x128xf32, #tpu.memory_space<vmem>>, vector<72x128xf32>
    %c4_285 = arith.constant 4 : index
    %c0_286 = arith.constant 0 : index
    %c0_287 = arith.constant 0 : index
    %301 = vector.load %arg5[%c4_285, %c0_286, %c0_287] : memref<9x128x128xf32, #tpu.memory_space<vmem>>, vector<1x128x128xf32>
    %302 = vector.shape_cast %301 : vector<1x128x128xf32> to vector<128x128xf32>
    %cst_288 = arith.constant dense<0.000000e+00> : vector<72x128xf32>
    %303 = tpu.matmul %300, %302, %cst_288 {dimension_numbers = #tpu.dot_dimension_numbers<[1], [0], [0], [1], [0, 0, 1, 1], [], []>} : vector<72x128xf32>, vector<128x128xf32>, vector<72x128xf32> -> vector<72x128xf32>
    %c0_289 = arith.constant 0 : index
    %c0_290 = arith.constant 0 : index
    %304 = vector.load %arg18[%c0_289, %c0_290] : memref<72x128xf32, #tpu.memory_space<vmem>>, vector<72x128xf32>
    %305 = arith.addf %304, %303 : vector<72x128xf32>
    %c0_291 = arith.constant 0 : index
    %c0_292 = arith.constant 0 : index
    %306 = vector.load %arg18[%c0_291, %c0_292] : memref<72x128xf32, #tpu.memory_space<vmem>>, vector<72x128xf32>
    tpu.vector_store %arg18[%c0_291, %c0_292], %305 {strides = array<i32>} : memref<72x128xf32, #tpu.memory_space<vmem>>, vector<72x128xf32>,
    %c8_293 = arith.constant 8 : index
    %c0_294 = arith.constant 0 : index
    %307 = vector.load %arg17[%c8_293, %c0_294] : memref<86x128xf32, #tpu.memory_space<vmem>>, vector<72x128xf32>
    %c5_295 = arith.constant 5 : index
    %c0_296 = arith.constant 0 : index
    %c0_297 = arith.constant 0 : index
    %308 = vector.load %arg5[%c5_295, %c0_296, %c0_297] : memref<9x128x128xf32, #tpu.memory_space<vmem>>, vector<1x128x128xf32>
    %309 = vector.shape_cast %308 : vector<1x128x128xf32> to vector<128x128xf32>
    %cst_298 = arith.constant dense<0.000000e+00> : vector<72x128xf32>
    %310 = tpu.matmul %307, %309, %cst_298 {dimension_numbers = #tpu.dot_dimension_numbers<[1], [0], [0], [1], [0, 0, 1, 1], [], []>} : vector<72x128xf32>, vector<128x128xf32>, vector<72x128xf32> -> vector<72x128xf32>
    %c0_299 = arith.constant 0 : index
    %c0_300 = arith.constant 0 : index
    %311 = vector.load %arg18[%c0_299, %c0_300] : memref<72x128xf32, #tpu.memory_space<vmem>>, vector<72x128xf32>
    %312 = arith.addf %311, %310 : vector<72x128xf32>
    %c0_301 = arith.constant 0 : index
    %c0_302 = arith.constant 0 : index
    %313 = vector.load %arg18[%c0_301, %c0_302] : memref<72x128xf32, #tpu.memory_space<vmem>>, vector<72x128xf32>
    tpu.vector_store %arg18[%c0_301, %c0_302], %312 {strides = array<i32>} : memref<72x128xf32, #tpu.memory_space<vmem>>, vector<72x128xf32>,
    %c12_303 = arith.constant 12 : index
    %c0_304 = arith.constant 0 : index
    %314 = vector.load %arg17[%c12_303, %c0_304] : memref<86x128xf32, #tpu.memory_space<vmem>>, vector<72x128xf32>
    %c6_305 = arith.constant 6 : index
    %c0_306 = arith.constant 0 : index
    %c0_307 = arith.constant 0 : index
    %315 = vector.load %arg5[%c6_305, %c0_306, %c0_307] : memref<9x128x128xf32, #tpu.memory_space<vmem>>, vector<1x128x128xf32>
    %316 = vector.shape_cast %315 : vector<1x128x128xf32> to vector<128x128xf32>
    %cst_308 = arith.constant dense<0.000000e+00> : vector<72x128xf32>
    %317 = tpu.matmul %314, %316, %cst_308 {dimension_numbers = #tpu.dot_dimension_numbers<[1], [0], [0], [1], [0, 0, 1, 1], [], []>} : vector<72x128xf32>, vector<128x128xf32>, vector<72x128xf32> -> vector<72x128xf32>
    %c0_309 = arith.constant 0 : index
    %c0_310 = arith.constant 0 : index
    %318 = vector.load %arg18[%c0_309, %c0_310] : memref<72x128xf32, #tpu.memory_space<vmem>>, vector<72x128xf32>
    %319 = arith.addf %318, %317 : vector<72x128xf32>
    %c0_311 = arith.constant 0 : index
    %c0_312 = arith.constant 0 : index
    %320 = vector.load %arg18[%c0_311, %c0_312] : memref<72x128xf32, #tpu.memory_space<vmem>>, vector<72x128xf32>
    tpu.vector_store %arg18[%c0_311, %c0_312], %319 {strides = array<i32>} : memref<72x128xf32, #tpu.memory_space<vmem>>, vector<72x128xf32>,
    %c13 = arith.constant 13 : index
    %c0_313 = arith.constant 0 : index
    %321 = vector.load %arg17[%c13, %c0_313] : memref<86x128xf32, #tpu.memory_space<vmem>>, vector<72x128xf32>
    %c7_314 = arith.constant 7 : index
    %c0_315 = arith.constant 0 : index
    %c0_316 = arith.constant 0 : index
    %322 = vector.load %arg5[%c7_314, %c0_315, %c0_316] : memref<9x128x128xf32, #tpu.memory_space<vmem>>, vector<1x128x128xf32>
    %323 = vector.shape_cast %322 : vector<1x128x128xf32> to vector<128x128xf32>
    %cst_317 = arith.constant dense<0.000000e+00> : vector<72x128xf32>
    %324 = tpu.matmul %321, %323, %cst_317 {dimension_numbers = #tpu.dot_dimension_numbers<[1], [0], [0], [1], [0, 0, 1, 1], [], []>} : vector<72x128xf32>, vector<128x128xf32>, vector<72x128xf32> -> vector<72x128xf32>
    %c0_318 = arith.constant 0 : index
    %c0_319 = arith.constant 0 : index
    %325 = vector.load %arg18[%c0_318, %c0_319] : memref<72x128xf32, #tpu.memory_space<vmem>>, vector<72x128xf32>
    %326 = arith.addf %325, %324 : vector<72x128xf32>
    %c0_320 = arith.constant 0 : index
    %c0_321 = arith.constant 0 : index
    %327 = vector.load %arg18[%c0_320, %c0_321] : memref<72x128xf32, #tpu.memory_space<vmem>>, vector<72x128xf32>
    tpu.vector_store %arg18[%c0_320, %c0_321], %326 {strides = array<i32>} : memref<72x128xf32, #tpu.memory_space<vmem>>, vector<72x128xf32>,
    %c14_322 = arith.constant 14 : index
    %c0_323 = arith.constant 0 : index
    %328 = vector.load %arg17[%c14_322, %c0_323] : memref<86x128xf32, #tpu.memory_space<vmem>>, vector<72x128xf32>
    %c8_324 = arith.constant 8 : index
    %c0_325 = arith.constant 0 : index
    %c0_326 = arith.constant 0 : index
    %329 = vector.load %arg5[%c8_324, %c0_325, %c0_326] : memref<9x128x128xf32, #tpu.memory_space<vmem>>, vector<1x128x128xf32>
    %330 = vector.shape_cast %329 : vector<1x128x128xf32> to vector<128x128xf32>
    %cst_327 = arith.constant dense<0.000000e+00> : vector<72x128xf32>
    %331 = tpu.matmul %328, %330, %cst_327 {dimension_numbers = #tpu.dot_dimension_numbers<[1], [0], [0], [1], [0, 0, 1, 1], [], []>} : vector<72x128xf32>, vector<128x128xf32>, vector<72x128xf32> -> vector<72x128xf32>
    %c0_328 = arith.constant 0 : index
    %c0_329 = arith.constant 0 : index
    %332 = vector.load %arg18[%c0_328, %c0_329] : memref<72x128xf32, #tpu.memory_space<vmem>>, vector<72x128xf32>
    %333 = arith.addf %332, %331 : vector<72x128xf32>
    %c0_330 = arith.constant 0 : index
    %c0_331 = arith.constant 0 : index
    %334 = vector.load %arg18[%c0_330, %c0_331] : memref<72x128xf32, #tpu.memory_space<vmem>>, vector<72x128xf32>
    tpu.vector_store %arg18[%c0_330, %c0_331], %333 {strides = array<i32>} : memref<72x128xf32, #tpu.memory_space<vmem>>, vector<72x128xf32>,
    %c7_332 = arith.constant 7 : index
    %c0_333 = arith.constant 0 : index
    %335 = tpu.strided_load %arg18[%c7_332, %c0_333] {strides = array<i32: 2, 1>} : memref<72x128xf32, #tpu.memory_space<vmem>>, vector<2x128xf32>
    %c8_334 = arith.constant 8 : index
    %c0_335 = arith.constant 0 : index
    %336 = tpu.strided_load %arg18[%c8_334, %c0_335] {strides = array<i32: 2, 1>} : memref<72x128xf32, #tpu.memory_space<vmem>>, vector<2x128xf32>
    %c13_336 = arith.constant 13 : index
    %c0_337 = arith.constant 0 : index
    %337 = tpu.strided_load %arg18[%c13_336, %c0_337] {strides = array<i32: 2, 1>} : memref<72x128xf32, #tpu.memory_space<vmem>>, vector<2x128xf32>
    %c14_338 = arith.constant 14 : index
    %c0_339 = arith.constant 0 : index
    %338 = tpu.strided_load %arg18[%c14_338, %c0_339] {strides = array<i32: 2, 1>} : memref<72x128xf32, #tpu.memory_space<vmem>>, vector<2x128xf32>
    %339 = arith.maximumf %335, %336 : vector<2x128xf32>
    %340 = arith.maximumf %337, %338 : vector<2x128xf32>
    %341 = arith.maximumf %339, %340 : vector<2x128xf32>
    %c10_340 = arith.constant 10 : index
    %c0_341 = arith.constant 0 : index
    %342 = vector.load %arg19[%c10_340, %c0_341] : memref<42x128xf32, #tpu.memory_space<vmem>>, vector<2x128xf32>
    tpu.vector_store %arg19[%c10_340, %c0_341], %341 {strides = array<i32>} : memref<42x128xf32, #tpu.memory_space<vmem>>, vector<2x128xf32>,
    %c19 = arith.constant 19 : index
    %c0_342 = arith.constant 0 : index
    %343 = tpu.strided_load %arg18[%c19, %c0_342] {strides = array<i32: 2, 1>} : memref<72x128xf32, #tpu.memory_space<vmem>>, vector<2x128xf32>
    %c20_343 = arith.constant 20 : index
    %c0_344 = arith.constant 0 : index
    %344 = tpu.strided_load %arg18[%c20_343, %c0_344] {strides = array<i32: 2, 1>} : memref<72x128xf32, #tpu.memory_space<vmem>>, vector<2x128xf32>
    %c25 = arith.constant 25 : index
    %c0_345 = arith.constant 0 : index
    %345 = tpu.strided_load %arg18[%c25, %c0_345] {strides = array<i32: 2, 1>} : memref<72x128xf32, #tpu.memory_space<vmem>>, vector<2x128xf32>
    %c26_346 = arith.constant 26 : index
    %c0_347 = arith.constant 0 : index
    %346 = tpu.strided_load %arg18[%c26_346, %c0_347] {strides = array<i32: 2, 1>} : memref<72x128xf32, #tpu.memory_space<vmem>>, vector<2x128xf32>
    %347 = arith.maximumf %343, %344 : vector<2x128xf32>
    %348 = arith.maximumf %345, %346 : vector<2x128xf32>
    %349 = arith.maximumf %347, %348 : vector<2x128xf32>
    %c14_348 = arith.constant 14 : index
    %c0_349 = arith.constant 0 : index
    %350 = vector.load %arg19[%c14_348, %c0_349] : memref<42x128xf32, #tpu.memory_space<vmem>>, vector<2x128xf32>
    tpu.vector_store %arg19[%c14_348, %c0_349], %349 {strides = array<i32>} : memref<42x128xf32, #tpu.memory_space<vmem>>, vector<2x128xf32>,
    %c43 = arith.constant 43 : index
    %c0_350 = arith.constant 0 : index
    %351 = tpu.strided_load %arg18[%c43, %c0_350] {strides = array<i32: 2, 1>} : memref<72x128xf32, #tpu.memory_space<vmem>>, vector<2x128xf32>
    %c44 = arith.constant 44 : index
    %c0_351 = arith.constant 0 : index
    %352 = tpu.strided_load %arg18[%c44, %c0_351] {strides = array<i32: 2, 1>} : memref<72x128xf32, #tpu.memory_space<vmem>>, vector<2x128xf32>
    %c49_352 = arith.constant 49 : index
    %c0_353 = arith.constant 0 : index
    %353 = tpu.strided_load %arg18[%c49_352, %c0_353] {strides = array<i32: 2, 1>} : memref<72x128xf32, #tpu.memory_space<vmem>>, vector<2x128xf32>
    %c50_354 = arith.constant 50 : index
    %c0_355 = arith.constant 0 : index
    %354 = tpu.strided_load %arg18[%c50_354, %c0_355] {strides = array<i32: 2, 1>} : memref<72x128xf32, #tpu.memory_space<vmem>>, vector<2x128xf32>
    %355 = arith.maximumf %351, %352 : vector<2x128xf32>
    %356 = arith.maximumf %353, %354 : vector<2x128xf32>
    %357 = arith.maximumf %355, %356 : vector<2x128xf32>
    %c26_356 = arith.constant 26 : index
    %c0_357 = arith.constant 0 : index
    %358 = vector.load %arg19[%c26_356, %c0_357] : memref<42x128xf32, #tpu.memory_space<vmem>>, vector<2x128xf32>
    tpu.vector_store %arg19[%c26_356, %c0_357], %357 {strides = array<i32>} : memref<42x128xf32, #tpu.memory_space<vmem>>, vector<2x128xf32>,
    %c55 = arith.constant 55 : index
    %c0_358 = arith.constant 0 : index
    %359 = tpu.strided_load %arg18[%c55, %c0_358] {strides = array<i32: 2, 1>} : memref<72x128xf32, #tpu.memory_space<vmem>>, vector<2x128xf32>
    %c56_359 = arith.constant 56 : index
    %c0_360 = arith.constant 0 : index
    %360 = tpu.strided_load %arg18[%c56_359, %c0_360] {strides = array<i32: 2, 1>} : memref<72x128xf32, #tpu.memory_space<vmem>>, vector<2x128xf32>
    %c61_361 = arith.constant 61 : index
    %c0_362 = arith.constant 0 : index
    %361 = tpu.strided_load %arg18[%c61_361, %c0_362] {strides = array<i32: 2, 1>} : memref<72x128xf32, #tpu.memory_space<vmem>>, vector<2x128xf32>
    %c62_363 = arith.constant 62 : index
    %c0_364 = arith.constant 0 : index
    %362 = tpu.strided_load %arg18[%c62_363, %c0_364] {strides = array<i32: 2, 1>} : memref<72x128xf32, #tpu.memory_space<vmem>>, vector<2x128xf32>
    %363 = arith.maximumf %359, %360 : vector<2x128xf32>
    %364 = arith.maximumf %361, %362 : vector<2x128xf32>
    %365 = arith.maximumf %363, %364 : vector<2x128xf32>
    %c30 = arith.constant 30 : index
    %c0_365 = arith.constant 0 : index
    %366 = vector.load %arg19[%c30, %c0_365] : memref<42x128xf32, #tpu.memory_space<vmem>>, vector<2x128xf32>
    tpu.vector_store %arg19[%c30, %c0_365], %365 {strides = array<i32>} : memref<42x128xf32, #tpu.memory_space<vmem>>, vector<2x128xf32>,
    %c0_366 = arith.constant 0 : index
    %c0_367 = arith.constant 0 : index
    %367 = vector.load %arg19[%c0_366, %c0_367] : memref<42x128xf32, #tpu.memory_space<vmem>>, vector<32x128xf32>
    %c0_368 = arith.constant 0 : index
    %c0_369 = arith.constant 0 : index
    %c0_370 = arith.constant 0 : index
    %368 = vector.load %arg7[%c0_368, %c0_369, %c0_370] : memref<9x128x256xf32, #tpu.memory_space<vmem>>, vector<1x128x256xf32>
    %369 = vector.shape_cast %368 : vector<1x128x256xf32> to vector<128x256xf32>
    %cst_371 = arith.constant dense<0.000000e+00> : vector<32x256xf32>
    %370 = tpu.matmul %367, %369, %cst_371 {dimension_numbers = #tpu.dot_dimension_numbers<[1], [0], [0], [1], [0, 0, 1, 1], [], []>} : vector<32x128xf32>, vector<128x256xf32>, vector<32x256xf32> -> vector<32x256xf32>
    %c0_372 = arith.constant 0 : index
    %c0_373 = arith.constant 0 : index
    %371 = vector.load %arg8[%c0_372, %c0_373] : memref<1x256xf32, #tpu.memory_space<vmem>>, vector<1x256xf32>
    %372 = vector.broadcast %371 : vector<1x256xf32> to vector<32x256xf32>
    %373 = arith.addf %370, %372 : vector<32x256xf32>
    %c0_374 = arith.constant 0 : index
    %c0_375 = arith.constant 0 : index
    %374 = vector.load %arg20[%c0_374, %c0_375] : memref<32x256xf32, #tpu.memory_space<vmem>>, vector<32x256xf32>
    tpu.vector_store %arg20[%c0_374, %c0_375], %373 {strides = array<i32>} : memref<32x256xf32, #tpu.memory_space<vmem>>, vector<32x256xf32>,
    %c1_376 = arith.constant 1 : index
    %c0_377 = arith.constant 0 : index
    %375 = vector.load %arg19[%c1_376, %c0_377] : memref<42x128xf32, #tpu.memory_space<vmem>>, vector<32x128xf32>
    %c1_378 = arith.constant 1 : index
    %c0_379 = arith.constant 0 : index
    %c0_380 = arith.constant 0 : index
    %376 = vector.load %arg7[%c1_378, %c0_379, %c0_380] : memref<9x128x256xf32, #tpu.memory_space<vmem>>, vector<1x128x256xf32>
    %377 = vector.shape_cast %376 : vector<1x128x256xf32> to vector<128x256xf32>
    %cst_381 = arith.constant dense<0.000000e+00> : vector<32x256xf32>
    %378 = tpu.matmul %375, %377, %cst_381 {dimension_numbers = #tpu.dot_dimension_numbers<[1], [0], [0], [1], [0, 0, 1, 1], [], []>} : vector<32x128xf32>, vector<128x256xf32>, vector<32x256xf32> -> vector<32x256xf32>
    %c0_382 = arith.constant 0 : index
    %c0_383 = arith.constant 0 : index
    %379 = vector.load %arg20[%c0_382, %c0_383] : memref<32x256xf32, #tpu.memory_space<vmem>>, vector<32x256xf32>
    %380 = arith.addf %379, %378 : vector<32x256xf32>
    %c0_384 = arith.constant 0 : index
    %c0_385 = arith.constant 0 : index
    %381 = vector.load %arg20[%c0_384, %c0_385] : memref<32x256xf32, #tpu.memory_space<vmem>>, vector<32x256xf32>
    tpu.vector_store %arg20[%c0_384, %c0_385], %380 {strides = array<i32>} : memref<32x256xf32, #tpu.memory_space<vmem>>, vector<32x256xf32>,
    %c2_386 = arith.constant 2 : index
    %c0_387 = arith.constant 0 : index
    %382 = vector.load %arg19[%c2_386, %c0_387] : memref<42x128xf32, #tpu.memory_space<vmem>>, vector<32x128xf32>
    %c2_388 = arith.constant 2 : index
    %c0_389 = arith.constant 0 : index
    %c0_390 = arith.constant 0 : index
    %383 = vector.load %arg7[%c2_388, %c0_389, %c0_390] : memref<9x128x256xf32, #tpu.memory_space<vmem>>, vector<1x128x256xf32>
    %384 = vector.shape_cast %383 : vector<1x128x256xf32> to vector<128x256xf32>
    %cst_391 = arith.constant dense<0.000000e+00> : vector<32x256xf32>
    %385 = tpu.matmul %382, %384, %cst_391 {dimension_numbers = #tpu.dot_dimension_numbers<[1], [0], [0], [1], [0, 0, 1, 1], [], []>} : vector<32x128xf32>, vector<128x256xf32>, vector<32x256xf32> -> vector<32x256xf32>
    %c0_392 = arith.constant 0 : index
    %c0_393 = arith.constant 0 : index
    %386 = vector.load %arg20[%c0_392, %c0_393] : memref<32x256xf32, #tpu.memory_space<vmem>>, vector<32x256xf32>
    %387 = arith.addf %386, %385 : vector<32x256xf32>
    %c0_394 = arith.constant 0 : index
    %c0_395 = arith.constant 0 : index
    %388 = vector.load %arg20[%c0_394, %c0_395] : memref<32x256xf32, #tpu.memory_space<vmem>>, vector<32x256xf32>
    tpu.vector_store %arg20[%c0_394, %c0_395], %387 {strides = array<i32>} : memref<32x256xf32, #tpu.memory_space<vmem>>, vector<32x256xf32>,
    %c4_396 = arith.constant 4 : index
    %c0_397 = arith.constant 0 : index
    %389 = vector.load %arg19[%c4_396, %c0_397] : memref<42x128xf32, #tpu.memory_space<vmem>>, vector<32x128xf32>
    %c3_398 = arith.constant 3 : index
    %c0_399 = arith.constant 0 : index
    %c0_400 = arith.constant 0 : index
    %390 = vector.load %arg7[%c3_398, %c0_399, %c0_400] : memref<9x128x256xf32, #tpu.memory_space<vmem>>, vector<1x128x256xf32>
    %391 = vector.shape_cast %390 : vector<1x128x256xf32> to vector<128x256xf32>
    %cst_401 = arith.constant dense<0.000000e+00> : vector<32x256xf32>
    %392 = tpu.matmul %389, %391, %cst_401 {dimension_numbers = #tpu.dot_dimension_numbers<[1], [0], [0], [1], [0, 0, 1, 1], [], []>} : vector<32x128xf32>, vector<128x256xf32>, vector<32x256xf32> -> vector<32x256xf32>
    %c0_402 = arith.constant 0 : index
    %c0_403 = arith.constant 0 : index
    %393 = vector.load %arg20[%c0_402, %c0_403] : memref<32x256xf32, #tpu.memory_space<vmem>>, vector<32x256xf32>
    %394 = arith.addf %393, %392 : vector<32x256xf32>
    %c0_404 = arith.constant 0 : index
    %c0_405 = arith.constant 0 : index
    %395 = vector.load %arg20[%c0_404, %c0_405] : memref<32x256xf32, #tpu.memory_space<vmem>>, vector<32x256xf32>
    tpu.vector_store %arg20[%c0_404, %c0_405], %394 {strides = array<i32>} : memref<32x256xf32, #tpu.memory_space<vmem>>, vector<32x256xf32>,
    %c5_406 = arith.constant 5 : index
    %c0_407 = arith.constant 0 : index
    %396 = vector.load %arg19[%c5_406, %c0_407] : memref<42x128xf32, #tpu.memory_space<vmem>>, vector<32x128xf32>
    %c4_408 = arith.constant 4 : index
    %c0_409 = arith.constant 0 : index
    %c0_410 = arith.constant 0 : index
    %397 = vector.load %arg7[%c4_408, %c0_409, %c0_410] : memref<9x128x256xf32, #tpu.memory_space<vmem>>, vector<1x128x256xf32>
    %398 = vector.shape_cast %397 : vector<1x128x256xf32> to vector<128x256xf32>
    %cst_411 = arith.constant dense<0.000000e+00> : vector<32x256xf32>
    %399 = tpu.matmul %396, %398, %cst_411 {dimension_numbers = #tpu.dot_dimension_numbers<[1], [0], [0], [1], [0, 0, 1, 1], [], []>} : vector<32x128xf32>, vector<128x256xf32>, vector<32x256xf32> -> vector<32x256xf32>
    %c0_412 = arith.constant 0 : index
    %c0_413 = arith.constant 0 : index
    %400 = vector.load %arg20[%c0_412, %c0_413] : memref<32x256xf32, #tpu.memory_space<vmem>>, vector<32x256xf32>
    %401 = arith.addf %400, %399 : vector<32x256xf32>
    %c0_414 = arith.constant 0 : index
    %c0_415 = arith.constant 0 : index
    %402 = vector.load %arg20[%c0_414, %c0_415] : memref<32x256xf32, #tpu.memory_space<vmem>>, vector<32x256xf32>
    tpu.vector_store %arg20[%c0_414, %c0_415], %401 {strides = array<i32>} : memref<32x256xf32, #tpu.memory_space<vmem>>, vector<32x256xf32>,
    %c6_416 = arith.constant 6 : index
    %c0_417 = arith.constant 0 : index
    %403 = vector.load %arg19[%c6_416, %c0_417] : memref<42x128xf32, #tpu.memory_space<vmem>>, vector<32x128xf32>
    %c5_418 = arith.constant 5 : index
    %c0_419 = arith.constant 0 : index
    %c0_420 = arith.constant 0 : index
    %404 = vector.load %arg7[%c5_418, %c0_419, %c0_420] : memref<9x128x256xf32, #tpu.memory_space<vmem>>, vector<1x128x256xf32>
    %405 = vector.shape_cast %404 : vector<1x128x256xf32> to vector<128x256xf32>
    %cst_421 = arith.constant dense<0.000000e+00> : vector<32x256xf32>
    %406 = tpu.matmul %403, %405, %cst_421 {dimension_numbers = #tpu.dot_dimension_numbers<[1], [0], [0], [1], [0, 0, 1, 1], [], []>} : vector<32x128xf32>, vector<128x256xf32>, vector<32x256xf32> -> vector<32x256xf32>
    %c0_422 = arith.constant 0 : index
    %c0_423 = arith.constant 0 : index
    %407 = vector.load %arg20[%c0_422, %c0_423] : memref<32x256xf32, #tpu.memory_space<vmem>>, vector<32x256xf32>
    %408 = arith.addf %407, %406 : vector<32x256xf32>
    %c0_424 = arith.constant 0 : index
    %c0_425 = arith.constant 0 : index
    %409 = vector.load %arg20[%c0_424, %c0_425] : memref<32x256xf32, #tpu.memory_space<vmem>>, vector<32x256xf32>
    tpu.vector_store %arg20[%c0_424, %c0_425], %408 {strides = array<i32>} : memref<32x256xf32, #tpu.memory_space<vmem>>, vector<32x256xf32>,
    %c8_426 = arith.constant 8 : index
    %c0_427 = arith.constant 0 : index
    %410 = vector.load %arg19[%c8_426, %c0_427] : memref<42x128xf32, #tpu.memory_space<vmem>>, vector<32x128xf32>
    %c6_428 = arith.constant 6 : index
    %c0_429 = arith.constant 0 : index
    %c0_430 = arith.constant 0 : index
    %411 = vector.load %arg7[%c6_428, %c0_429, %c0_430] : memref<9x128x256xf32, #tpu.memory_space<vmem>>, vector<1x128x256xf32>
    %412 = vector.shape_cast %411 : vector<1x128x256xf32> to vector<128x256xf32>
    %cst_431 = arith.constant dense<0.000000e+00> : vector<32x256xf32>
    %413 = tpu.matmul %410, %412, %cst_431 {dimension_numbers = #tpu.dot_dimension_numbers<[1], [0], [0], [1], [0, 0, 1, 1], [], []>} : vector<32x128xf32>, vector<128x256xf32>, vector<32x256xf32> -> vector<32x256xf32>
    %c0_432 = arith.constant 0 : index
    %c0_433 = arith.constant 0 : index
    %414 = vector.load %arg20[%c0_432, %c0_433] : memref<32x256xf32, #tpu.memory_space<vmem>>, vector<32x256xf32>
    %415 = arith.addf %414, %413 : vector<32x256xf32>
    %c0_434 = arith.constant 0 : index
    %c0_435 = arith.constant 0 : index
    %416 = vector.load %arg20[%c0_434, %c0_435] : memref<32x256xf32, #tpu.memory_space<vmem>>, vector<32x256xf32>
    tpu.vector_store %arg20[%c0_434, %c0_435], %415 {strides = array<i32>} : memref<32x256xf32, #tpu.memory_space<vmem>>, vector<32x256xf32>,
    %c9 = arith.constant 9 : index
    %c0_436 = arith.constant 0 : index
    %417 = vector.load %arg19[%c9, %c0_436] : memref<42x128xf32, #tpu.memory_space<vmem>>, vector<32x128xf32>
    %c7_437 = arith.constant 7 : index
    %c0_438 = arith.constant 0 : index
    %c0_439 = arith.constant 0 : index
    %418 = vector.load %arg7[%c7_437, %c0_438, %c0_439] : memref<9x128x256xf32, #tpu.memory_space<vmem>>, vector<1x128x256xf32>
    %419 = vector.shape_cast %418 : vector<1x128x256xf32> to vector<128x256xf32>
    %cst_440 = arith.constant dense<0.000000e+00> : vector<32x256xf32>
    %420 = tpu.matmul %417, %419, %cst_440 {dimension_numbers = #tpu.dot_dimension_numbers<[1], [0], [0], [1], [0, 0, 1, 1], [], []>} : vector<32x128xf32>, vector<128x256xf32>, vector<32x256xf32> -> vector<32x256xf32>
    %c0_441 = arith.constant 0 : index
    %c0_442 = arith.constant 0 : index
    %421 = vector.load %arg20[%c0_441, %c0_442] : memref<32x256xf32, #tpu.memory_space<vmem>>, vector<32x256xf32>
    %422 = arith.addf %421, %420 : vector<32x256xf32>
    %c0_443 = arith.constant 0 : index
    %c0_444 = arith.constant 0 : index
    %423 = vector.load %arg20[%c0_443, %c0_444] : memref<32x256xf32, #tpu.memory_space<vmem>>, vector<32x256xf32>
    tpu.vector_store %arg20[%c0_443, %c0_444], %422 {strides = array<i32>} : memref<32x256xf32, #tpu.memory_space<vmem>>, vector<32x256xf32>,
    %c10_445 = arith.constant 10 : index
    %c0_446 = arith.constant 0 : index
    %424 = vector.load %arg19[%c10_445, %c0_446] : memref<42x128xf32, #tpu.memory_space<vmem>>, vector<32x128xf32>
    %c8_447 = arith.constant 8 : index
    %c0_448 = arith.constant 0 : index
    %c0_449 = arith.constant 0 : index
    %425 = vector.load %arg7[%c8_447, %c0_448, %c0_449] : memref<9x128x256xf32, #tpu.memory_space<vmem>>, vector<1x128x256xf32>
    %426 = vector.shape_cast %425 : vector<1x128x256xf32> to vector<128x256xf32>
    %cst_450 = arith.constant dense<0.000000e+00> : vector<32x256xf32>
    %427 = tpu.matmul %424, %426, %cst_450 {dimension_numbers = #tpu.dot_dimension_numbers<[1], [0], [0], [1], [0, 0, 1, 1], [], []>} : vector<32x128xf32>, vector<128x256xf32>, vector<32x256xf32> -> vector<32x256xf32>
    %c0_451 = arith.constant 0 : index
    %c0_452 = arith.constant 0 : index
    %428 = vector.load %arg20[%c0_451, %c0_452] : memref<32x256xf32, #tpu.memory_space<vmem>>, vector<32x256xf32>
    %429 = arith.addf %428, %427 : vector<32x256xf32>
    %c0_453 = arith.constant 0 : index
    %c0_454 = arith.constant 0 : index
    %430 = vector.load %arg20[%c0_453, %c0_454] : memref<32x256xf32, #tpu.memory_space<vmem>>, vector<32x256xf32>
    tpu.vector_store %arg20[%c0_453, %c0_454], %429 {strides = array<i32>} : memref<32x256xf32, #tpu.memory_space<vmem>>, vector<32x256xf32>,
    %c5_455 = arith.constant 5 : index
    %c0_456 = arith.constant 0 : index
    %431 = vector.load %arg20[%c5_455, %c0_456] : memref<32x256xf32, #tpu.memory_space<vmem>>, vector<1x256xf32>
    %c6_457 = arith.constant 6 : index
    %c0_458 = arith.constant 0 : index
    %432 = vector.load %arg20[%c6_457, %c0_458] : memref<32x256xf32, #tpu.memory_space<vmem>>, vector<1x256xf32>
    %c9_459 = arith.constant 9 : index
    %c0_460 = arith.constant 0 : index
    %433 = vector.load %arg20[%c9_459, %c0_460] : memref<32x256xf32, #tpu.memory_space<vmem>>, vector<1x256xf32>
    %c10_461 = arith.constant 10 : index
    %c0_462 = arith.constant 0 : index
    %434 = vector.load %arg20[%c10_461, %c0_462] : memref<32x256xf32, #tpu.memory_space<vmem>>, vector<1x256xf32>
    %435 = arith.maximumf %431, %432 : vector<1x256xf32>
    %436 = arith.maximumf %433, %434 : vector<1x256xf32>
    %437 = arith.maximumf %435, %436 : vector<1x256xf32>
    %c0_463 = arith.constant 0 : index
    %c0_464 = arith.constant 0 : index
    %438 = vector.load %arg21[%c0_463, %c0_464] : memref<8x256xf32, #tpu.memory_space<vmem>>, vector<1x256xf32>
    tpu.vector_store %arg21[%c0_463, %c0_464], %437 {strides = array<i32>} : memref<8x256xf32, #tpu.memory_space<vmem>>, vector<1x256xf32>,
    %c21_465 = arith.constant 21 : index
    %c0_466 = arith.constant 0 : index
    %439 = vector.load %arg20[%c21_465, %c0_466] : memref<32x256xf32, #tpu.memory_space<vmem>>, vector<1x256xf32>
    %c22_467 = arith.constant 22 : index
    %c0_468 = arith.constant 0 : index
    %440 = vector.load %arg20[%c22_467, %c0_468] : memref<32x256xf32, #tpu.memory_space<vmem>>, vector<1x256xf32>
    %c25_469 = arith.constant 25 : index
    %c0_470 = arith.constant 0 : index
    %441 = vector.load %arg20[%c25_469, %c0_470] : memref<32x256xf32, #tpu.memory_space<vmem>>, vector<1x256xf32>
    %c26_471 = arith.constant 26 : index
    %c0_472 = arith.constant 0 : index
    %442 = vector.load %arg20[%c26_471, %c0_472] : memref<32x256xf32, #tpu.memory_space<vmem>>, vector<1x256xf32>
    %443 = arith.maximumf %439, %440 : vector<1x256xf32>
    %444 = arith.maximumf %441, %442 : vector<1x256xf32>
    %445 = arith.maximumf %443, %444 : vector<1x256xf32>
    %c1_473 = arith.constant 1 : index
    %c0_474 = arith.constant 0 : index
    %446 = vector.load %arg21[%c1_473, %c0_474] : memref<8x256xf32, #tpu.memory_space<vmem>>, vector<1x256xf32>
    tpu.vector_store %arg21[%c1_473, %c0_474], %445 {strides = array<i32>} : memref<8x256xf32, #tpu.memory_space<vmem>>, vector<1x256xf32>,
    %c0_475 = arith.constant 0 : index
    %c0_476 = arith.constant 0 : index
    %447 = vector.load %arg21[%c0_475, %c0_476] : memref<8x256xf32, #tpu.memory_space<vmem>>, vector<8x256xf32>
    %448 = arith.mulf %447, %447 : vector<8x256xf32>
    %cst_477 = arith.constant dense<0.000000e+00> : vector<8xf32>
    %449 = vector.multi_reduction <add>, %448, %cst_477 [1] : vector<8x256xf32> to vector<8xf32>
    %450 = vector.shape_cast %449 : vector<8xf32> to vector<8x1xf32>
    %451 = math.sqrt %450 : vector<8x1xf32>
    %cst_478 = arith.constant 9.99999996E-13 : f32
    %452 = vector.broadcast %cst_478 : f32 to vector<8x1xf32>
    %453 = arith.maximumf %451, %452 : vector<8x1xf32>
    %454 = vector.broadcast %453 : vector<8x1xf32> to vector<8x256xf32>
    %455 = arith.divf %447, %454 : vector<8x256xf32>
    %c0_479 = arith.constant 0 : index
    %c0_480 = arith.constant 0 : index
    %456 = vector.load %arg9[%c0_479, %c0_480] : memref<256x128xf32, #tpu.memory_space<vmem>>, vector<256x128xf32>
    %cst_481 = arith.constant dense<0.000000e+00> : vector<8x128xf32>
    %457 = tpu.matmul %455, %456, %cst_481 {dimension_numbers = #tpu.dot_dimension_numbers<[1], [0], [0], [1], [0, 0, 1, 1], [], []>} : vector<8x256xf32>, vector<256x128xf32>, vector<8x128xf32> -> vector<8x128xf32>
    %c0_482 = arith.constant 0 : index
    %c0_483 = arith.constant 0 : index
    %458 = vector.load %arg10[%c0_482, %c0_483] : memref<1x128xf32, #tpu.memory_space<vmem>>, vector<1x128xf32>
    %459 = vector.broadcast %458 : vector<1x128xf32> to vector<8x128xf32>
    %460 = arith.addf %457, %459 : vector<8x128xf32>
    %cst_484 = arith.constant 0.000000e+00 : f32
    %461 = vector.broadcast %cst_484 : f32 to vector<8x128xf32>
    %462 = arith.maximumf %460, %461 : vector<8x128xf32>
    %c0_485 = arith.constant 0 : index
    %c0_486 = arith.constant 0 : index
    %463 = vector.load %arg11[%c0_485, %c0_486] : memref<128x128xf32, #tpu.memory_space<vmem>>, vector<128x128xf32>
    %cst_487 = arith.constant dense<0.000000e+00> : vector<8x128xf32>
    %464 = tpu.matmul %462, %463, %cst_487 {dimension_numbers = #tpu.dot_dimension_numbers<[1], [0], [0], [1], [0, 0, 1, 1], [], []>} : vector<8x128xf32>, vector<128x128xf32>, vector<8x128xf32> -> vector<8x128xf32>
    %c0_488 = arith.constant 0 : index
    %c0_489 = arith.constant 0 : index
    %465 = vector.load %arg12[%c0_488, %c0_489] : memref<1x128xf32, #tpu.memory_space<vmem>>, vector<1x128xf32>
    %466 = vector.broadcast %465 : vector<1x128xf32> to vector<8x128xf32>
    %467 = arith.addf %464, %466 : vector<8x128xf32>
    %468 = arith.mulf %467, %467 : vector<8x128xf32>
    %cst_490 = arith.constant dense<0.000000e+00> : vector<8xf32>
    %469 = vector.multi_reduction <add>, %468, %cst_490 [1] : vector<8x128xf32> to vector<8xf32>
    %470 = vector.shape_cast %469 : vector<8xf32> to vector<8x1xf32>
    %471 = math.sqrt %470 : vector<8x1xf32>
    %cst_491 = arith.constant 9.99999996E-13 : f32
    %472 = vector.broadcast %cst_491 : f32 to vector<8x1xf32>
    %473 = arith.maximumf %471, %472 : vector<8x1xf32>
    %474 = vector.broadcast %473 : vector<8x1xf32> to vector<8x128xf32>
    %475 = arith.divf %467, %474 : vector<8x128xf32>
    %c0_492 = arith.constant 0 : index
    %c0_493 = arith.constant 0 : index
    %476 = vector.load %arg13[%c0_492, %c0_493] : memref<8x128xf32, #tpu.memory_space<vmem>>, vector<8x128xf32>
    tpu.vector_store %arg13[%c0_492, %c0_493], %475 {strides = array<i32>} : memref<8x128xf32, #tpu.memory_space<vmem>>, vector<8x128xf32>,
    return
  }
}

</mosaic_0001>

<bundles_post_ra>
// kernel: network_forward.1
= control target key start
LH: loop header
LB: loop body
LE: loop exit
PB: predicated region body
PF: predicated region fallthrough
CT: control target
= control target key end

     0   :  { %vm169_vm0 = vcmask 400384   ;;  %vm362_vm1 = vcmask 1040384   ;;  %v11414_v12 = vmov 0.0|0.0   ;;  %vm11416_vm2 = vmmov 0   ;;  %s14919_s1 = inlined_call_operand.vmem [shape: f32[49,128], index: 1, kind: input, shape index: {}]   ;;  %s14920_s0 = inlined_call_operand.vmem [shape: f32[512,49], index: 0, kind: input, shape index: {}]   ;;  %s14921_s3 = inlined_call_operand.vmem [shape: f32[9,128,128], index: 3, kind: input, shape index: {}]   ;;  %s14922_s2 = inlined_call_operand.vmem [shape: f32[1,128], index: 2, kind: input, shape index: {}]   ;;  %s14923_s4 = inlined_call_operand.vmem [shape: f32[1,128], index: 4, kind: input, shape index: {}]   ;;  %s14924_s5 = inlined_call_operand.vmem [shape: f32[9,128,128], index: 5, kind: input, shape index: {}]   ;;  %s14925_s7 = inlined_call_operand.vmem [shape: f32[9,128,256], index: 7, kind: input, shape index: {}]   ;;  %s14926_s6 = inlined_call_operand.vmem [shape: f32[1,128], index: 6, kind: input, shape index: {}]   ;;  %s14927_s9 = inlined_call_operand.vmem [shape: f32[256,128], index: 9, kind: input, shape index: {}]   ;;  %s14928_s8 = inlined_call_operand.vmem [shape: f32[1,256], index: 8, kind: input, shape index: {}]   ;;  %s14929_s11 = inlined_call_operand.vmem [shape: f32[128,128], index: 11, kind: input, shape index: {}]   ;;  %s14930_s10 = inlined_call_operand.vmem [shape: f32[1,128], index: 10, kind: input, shape index: {}]   ;;  %s14931_s12 = inlined_call_operand.vmem [shape: f32[1,128], index: 12, kind: input, shape index: {}]   ;;  %s14932_s13 = inlined_call_operand.vmem [shape: f32[8,128], index: 13, kind: output, shape index: {}]  }
   0x1   :  { %v155_v0 = vld [vmem:[%s14919_s1] sm:$0xff]  ;;  %v156_v1 = vld [vmem:[%s14919_s1 + $0x8] sm:$0xff]  ;;  %v157_v2 = vld [vmem:[%s14919_s1 + $0x10] sm:$0xff]  ;;  %10665 = vmatprep.subr.bf16.mxu1 %v11414_v12 }
   0x2   :  { %v9877_v3 = vpack.c.bf16 %v156_v1, %v155_v0  ;;  %v158_v4 = vld [vmem:[%s14919_s1 + $0x18] sm:$0xff]  ;;  %v159_v6 = vld [vmem:[%s14919_s1 + $0x20] sm:$0xff]  ;;  %v160_v7 = vld [vmem:[%s14919_s1 + $0x28] sm:$0xff] }
   0x3   :  { %v9881_v5 = vpack.c.bf16 %v158_v4, %v157_v2  ;;  %v91_v8 = vld [vmem:[%s14920_s0] sm:$0xff]  ;;  %v9885_v9 = vpack.c.bf16 %v160_v7, %v159_v6  ;;  %v161_v10 = vld [vmem:[%s14919_s1 + $0x30] sm:$0x1]  ;;  %v92_v11 = vld [vmem:[%s14920_s0 + $0x8] sm:$0xff] }
   0x4   :  { %9878 = vmatprep.subr.bf16.mxu0 %v9877_v3  ;;  %8252 = vmatprep.mubr.msk.f32.mxu0 %vm169_vm0, %v91_v8  ;;  %v93_v13 = vld [vmem:[%s14920_s0 + $0x10] sm:$0xff]  ;;  %v94_v14 = vld [vmem:[%s14920_s0 + $0x18] sm:$0xff]  ;;  %v95_v15 = vld [vmem:[%s14920_s0 + $0x20] sm:$0xff] }
   0x5   :  { %9880 = vmatpush3.bf16.msra.mxu0 %v9877_v3  ;;  %v96_v16 = vld [vmem:[%s14920_s0 + $0x28] sm:$0xff]  ;;  %v97_v17 = vld [vmem:[%s14920_s0 + $0x30] sm:$0xff]  ;;  %v1031_v18 = vld [vmem:[%s14921_s3] sm:$0xff] }
   0x6   :  { %9882 = vmatprep.subr.bf16.mxu0 %v9881_v5  ;;  %v1032_v19 = vld [vmem:[%s14921_s3 + $0x8] sm:$0xff]  ;;  %v1033_v20 = vld [vmem:[%s14921_s3 + $0x10] sm:$0xff]  ;;  %v1034_v21 = vld [vmem:[%s14921_s3 + $0x18] sm:$0xff] }
   0x7   :  { %v9890_v22 = vpack.c.bf16 %v1032_v19, %v1031_v18  ;;  %v98_v23 = vld [vmem:[%s14920_s0 + $0x38] sm:$0xff]  ;;  %v99_v24 = vld [vmem:[%s14920_s0 + $0x40] sm:$0xff]  ;;  %v9893_v25 = vpack.c.bf16 %v1034_v21, %v1033_v20  ;;  %v1036_v27 = vld [vmem:[%s14921_s3 + $0x28] sm:$0xff] }
   0x8   :  { %v1035_v26 = vld [vmem:[%s14921_s3 + $0x20] sm:$0xff]  ;;  %v100_v28 = vld [vmem:[%s14920_s0 + $0x48] sm:$0xff]  ;;  %v101_v29 = vld [vmem:[%s14920_s0 + $0x50] sm:$0xff] }
   0x9   :  { %9884 = vmatpush3.bf16.msra.mxu0 %v9881_v5  ;;  %10673 = vmatpush3.bf16.msra.mxu1 %v9890_v22  ;;  %v9896_v30 = vpack.c.bf16 %v1036_v27, %v1035_v26  ;;  %v102_v31 = vld [vmem:[%s14920_s0 + $0x58] sm:$0xff]  ;;  %v103_v32 = vld [vmem:[%s14920_s0 + $0x60] sm:$0xff]  ;;  %v104_v33 = vld [vmem:[%s14920_s0 + $0x68] sm:$0xff]  ;;  %v11415_v27 = vmov 0.0  }
   0xa   :  { %9886 = vmatprep.subr.bf16.mxu0 %v9885_v9  ;;  %10666 = vmatprep.subr.bf16.mxu1 %v11414_v12  ;;  %v105_v34 = vld [vmem:[%s14920_s0 + $0x70] sm:$0xff]  ;;  %v106_v35 = vld [vmem:[%s14920_s0 + $0x78] sm:$0xff]  ;;  %v107_v36 = vld [vmem:[%s14920_s0 + $0x80] sm:$0xff]  ;;  %44 = vst [vmem:[#allocation3] sm:$0xff] %v11415_v27 }
   0xb   :  { %v108_v37 = vld [vmem:[%s14920_s0 + $0x88] sm:$0xff]  ;;  %v109_v38 = vld [vmem:[%s14920_s0 + $0x90] sm:$0xff]  ;;  %v110_v39 = vld [vmem:[%s14920_s0 + $0x98] sm:$0xff]  ;;  %45 = vst [vmem:[#allocation3 + $0x8] sm:$0xff] %v11415_v27  ;;  %8431 = vmatprep.mubr.msk.f32.mxu1 %vm11416_vm2, %v11415_v27 }
   0xc   :  { %v111_v40 = vld [vmem:[%s14920_s0 + $0xa0] sm:$0xff]  ;;  %v112_v41 = vld [vmem:[%s14920_s0 + $0xa8] sm:$0xff]  ;;  %v113_v42 = vld [vmem:[%s14920_s0 + $0xb0] sm:$0xff]  ;;  %46 = vst [vmem:[#allocation3 + $0x10] sm:$0xff] %v11415_v27 }
   0xd   :  { %9888 = vmatpush3.bf16.msra.mxu0 %v9885_v9  ;;  %10674 = vmatpush3.bf16.msra.mxu1 %v9893_v25  ;;  %v114_v43 = vld [vmem:[%s14920_s0 + $0xb8] sm:$0xff]  ;;  %v115_v44 = vld [vmem:[%s14920_s0 + $0xc0] sm:$0xff]  ;;  %v116_v45 = vld [vmem:[%s14920_s0 + $0xc8] sm:$0xff]  ;;  %47 = vst [vmem:[#allocation3 + $0x18] sm:$0xff] %v11415_v27 }
   0xe   :  { %8250 = vmatprep.subr.msk.mxu0 %vm362_vm1, %v161_v10  ;;  %10667 = vmatprep.subr.bf16.mxu1 %v11414_v12  ;;  %v117_v46 = vld [vmem:[%s14920_s0 + $0xd0] sm:$0xff]  ;;  %v118_v47 = vld [vmem:[%s14920_s0 + $0xd8] sm:$0xff]  ;;  %v119_v48 = vld [vmem:[%s14920_s0 + $0xe0] sm:$0xff]  ;;  %49 = vst [vmem:[#allocation3 + $0x28] sm:$0xff] %v11415_v27 }
   0xf   :  { %v120_v49 = vld [vmem:[%s14920_s0 + $0xe8] sm:$0xff]  ;;  %v121_v50 = vld [vmem:[%s14920_s0 + $0xf0] sm:$0xff]  ;;  %v122_v51 = vld [vmem:[%s14920_s0 + $0xf8] sm:$0xff]  ;;  %50 = vst [vmem:[#allocation3 + $0x30] sm:$0xff] %v11415_v27 }
  0x10   :  { %v123_v52 = vld [vmem:[%s14920_s0 + $0x100] sm:$0xff]  ;;  %v124_v53 = vld [vmem:[%s14920_s0 + $0x108] sm:$0xff]  ;;  %v125_v54 = vld [vmem:[%s14920_s0 + $0x110] sm:$0xff]  ;;  %51 = vst [vmem:[#allocation3 + $0x38] sm:$0xff] %v11415_v27 }
  0x11   :  { %8251 = vmatpush3.msk.msra.mxu0 %vm362_vm1, %v161_v10  ;;  %10675 = vmatpush3.bf16.msra.mxu1 %v9896_v30  ;;  %v126_v55 = vld [vmem:[%s14920_s0 + $0x118] sm:$0xff]  ;;  %v127_v56 = vld [vmem:[%s14920_s0 + $0x120] sm:$0xff]  ;;  %v128_v57 = vld [vmem:[%s14920_s0 + $0x128] sm:$0xff]  ;;  %52 = vst [vmem:[#allocation3 + $0x40] sm:$0xff] %v11415_v27 }
  0x12   :  { %8253 = vmatmul.mubr.msk.f32.vlgmr.msra.gmra.mrb[0].mxu0 %vm169_vm0, %v92_v11  ;;  %9889 = vmatprep.subr.bf16.mxu0 %v11414_v12  ;;  %v129_v58 = vld [vmem:[%s14920_s0 + $0x130] sm:$0xff]  ;;  %v130_v59 = vld [vmem:[%s14920_s0 + $0x138] sm:$0xff]  ;;  %v131_v60 = vld [vmem:[%s14920_s0 + $0x140] sm:$0xff]  ;;  %54 = vst [vmem:[#allocation3 + $0x50] sm:$0xff] %v11415_v27 }
  0x13   :  { %8255 = vmatprep.mubr.msk.f32.mxu0 %vm169_vm0, %v93_v13  ;;  %9891 = vmatpush3.bf16.msra.mxu0 %v9890_v22  ;;  %v132_v61 = vld [vmem:[%s14920_s0 + $0x148] sm:$0xff]  ;;  %v133_v62 = vld [vmem:[%s14920_s0 + $0x150] sm:$0xff]  ;;  %v134_v63 = vld [vmem:[%s14920_s0 + $0x158] sm:$0xff]  ;;  %55 = vst [vmem:[#allocation3 + $0x58] sm:$0xff] %v11415_v27 }
  0x14   :  { %9892 = vmatprep.subr.bf16.mxu0 %v11414_v12  ;;  %10668 = vmatprep.subr.bf16.mxu1 %v11414_v12  ;;  %v1037_v0 = vld [vmem:[%s14921_s3 + $0x30] sm:$0xff]  ;;  %v1038_v1 = vld [vmem:[%s14921_s3 + $0x38] sm:$0xff]  ;;  %v135_v2 = vld [vmem:[%s14920_s0 + $0x160] sm:$0xff]  ;;  %56 = vst [vmem:[#allocation3 + $0x60] sm:$0xff] %v11415_v27 }
  0x15   :  { %v9899_v3 = vpack.c.bf16 %v1038_v1, %v1037_v0  ;;  %v136_v4 = vld [vmem:[%s14920_s0 + $0x168] sm:$0xff]  ;;  %v1039_v5 = vld [vmem:[%s14921_s3 + $0x40] sm:$0xff]  ;;  %v137_v7 = vld [vmem:[%s14920_s0 + $0x170] sm:$0xff]  ;;  %57 = vst [vmem:[#allocation3 + $0x68] sm:$0xff] %v11415_v27 }
  0x16   :  { %8256 = vmatmul.mubr.msk.f32.gmra.mrb[2].mxu0 %vm169_vm0, %v94_v14  ;;  %v1040_v6 = vld [vmem:[%s14921_s3 + $0x48] sm:$0xff]  ;;  %v138_v9 = vld [vmem:[%s14920_s0 + $0x178] sm:$0xff]  ;;  %v1041_v10 = vld [vmem:[%s14921_s3 + $0x50] sm:$0xff]  ;;  %58 = vst [vmem:[#allocation3 + $0x70] sm:$0xff] %v11415_v27 }
  0x17   :  { %8258 = vmatprep.mubr.msk.f32.mxu0 %vm169_vm0, %v95_v15  ;;  %9894 = vmatpush3.bf16.msra.mxu0 %v9893_v25  ;;  %v9902_v8 = vpack.c.bf16 %v1040_v6, %v1039_v5  ;;  %v1042_v11 = vld [vmem:[%s14921_s3 + $0x58] sm:$0xff]  ;;  %v139_v13 = vld [vmem:[%s14920_s0 + $0x180] sm:$0xff]  ;;  %v140_v15 = vld [vmem:[%s14920_s0 + $0x188] sm:$0xff]  ;;  %59 = vst [vmem:[#allocation3 + $0x78] sm:$0xff] %v11415_v27 }
  0x18   :  { %9895 = vmatprep.subr.bf16.mxu0 %v11414_v12  ;;  %10676 = vmatpush3.bf16.msra.mxu1 %v9899_v3  ;;  %v9905_v14 = vpack.c.bf16 %v1042_v11, %v1041_v10  ;;  %v141_v18 = vld [vmem:[%s14920_s0 + $0x190] sm:$0xff]  ;;  %v142_v20 = vld [vmem:[%s14920_s0 + $0x198] sm:$0xff]  ;;  %v144_v25 = vld [vmem:[%s14920_s0 + $0x1a8] sm:$0xff]  ;;  %60 = vst [vmem:[#allocation3 + $0x80] sm:$0xff] %v11415_v27 }
  0x19   :  { %10669 = vmatprep.subr.bf16.mxu1 %v11414_v12  ;;  %v1045_v21 = vld [vmem:[%s14921_s3 + $0x70] sm:$0xff]  ;;  %v1046_v22 = vld [vmem:[%s14921_s3 + $0x78] sm:$0xff]  ;;  %61 = vst [vmem:[#allocation3 + $0x88] sm:$0xff] %v11415_v27  ;;  %62 = vst [vmem:[#allocation3 + $0x90] sm:$0xff] %v11415_v27 }
  0x1a   :  { %8259 = vmatmul.mubr.msk.f32.gmra.mrb[4].mxu0 %vm169_vm0, %v96_v16  ;;  %v1043_v16 = vld [vmem:[%s14921_s3 + $0x60] sm:$0xff]  ;;  %v145_v26 = vld [vmem:[%s14920_s0 + $0x1b0] sm:$0xff]  ;;  %64 = vst [vmem:[#allocation3 + $0xa0] sm:$0xff] %v11415_v27  ;;  %65 = vst [vmem:[#allocation3 + $0xa8] sm:$0xff] %v11415_v27 }
  0x1b   :  { %8261 = vmatprep.mubr.msk.f32.mxu0 %vm169_vm0, %v97_v17  ;;  %9897 = vmatpush3.bf16.msra.mxu0 %v9896_v30  ;;  %v1044_v17 = vld [vmem:[%s14921_s3 + $0x68] sm:$0xff]  ;;  %66 = vst [vmem:[#allocation3 + $0xb0] sm:$0xff] %v11415_v27  ;;  %67 = vst [vmem:[#allocation3 + $0xb8] sm:$0xff] %v11415_v27 }
  0x1c   :  { %9898 = vmatprep.subr.bf16.mxu0 %v11414_v12  ;;  %10677 = vmatpush3.bf16.msra.mxu1 %v9902_v8  ;;  %v9908_v19 = vpack.c.bf16 %v1044_v17, %v1043_v16  ;;  %69 = vst [vmem:[#allocation3 + $0xc8] sm:$0xff] %v11415_v27  ;;  %70 = vst [vmem:[#allocation3 + $0xd0] sm:$0xff] %v11415_v27  ;;  %v148_v30 = vld [vmem:[%s14920_s0 + $0x1c8] sm:$0xff] }
  0x1d   :  { %10670 = vmatprep.subr.bf16.mxu1 %v11414_v12  ;;  %71 = vst [vmem:[#allocation3 + $0xd8] sm:$0x3f] %v11415_v27  ;;  %72 = vst [vmem:[#allocation5] sm:$0xff] %v11415_v27 }
  0x1e   :  { %8262 = vmatmul.mubr.msk.f32.gmra.mrb[6].mxu0 %vm169_vm0, %v98_v23  ;;  %v143_v23 = vld [vmem:[%s14920_s0 + $0x1a0] sm:$0xff]  ;;  %73 = vst [vmem:[#allocation5 + $0x8] sm:$0xff] %v11415_v27  ;;  %74 = vst [vmem:[#allocation5 + $0x10] sm:$0xff] %v11415_v27 }
  0x1f   :  { %8264 = vmatprep.mubr.msk.f32.mxu0 %vm169_vm0, %v99_v24  ;;  %9900 = vmatpush3.bf16.msra.mxu0 %v9899_v3  ;;  %v9911_v24 = vpack.c.bf16 %v1046_v22, %v1045_v21  ;;  %75 = vst [vmem:[#allocation5 + $0x18] sm:$0xff] %v11415_v27  ;;  %76 = vst [vmem:[#allocation5 + $0x20] sm:$0xff] %v11415_v27 }
  0x20   :  { %9901 = vmatprep.subr.bf16.mxu0 %v11414_v12  ;;  %10678 = vmatpush3.bf16.msra.mxu1 %v9905_v14  ;;  %77 = vst [vmem:[#allocation5 + $0x28] sm:$0xff] %v11415_v27  ;;  %78 = vst [vmem:[#allocation5 + $0x30] sm:$0xff] %v11415_v27 }
  0x21   :  { %10671 = vmatprep.subr.bf16.mxu1 %v11414_v12  ;;  %79 = vst [vmem:[#allocation5 + $0x38] sm:$0xff] %v11415_v27  ;;  %80 = vst [vmem:[#allocation5 + $0x40] sm:$0xff] %v11415_v27 }
  0x22   :  { %8265 = vmatmul.mubr.msk.f32.gmra.mrb[8].mxu0 %vm169_vm0, %v100_v28  ;;  %81 = vst [vmem:[#allocation5 + $0x48] sm:$0xff] %v11415_v27  ;;  %82 = vst [vmem:[#allocation5 + $0x50] sm:$0x3f] %v11415_v27  ;;  %v146_v28 = vld [vmem:[%s14920_s0 + $0x1b8] sm:$0xff] }
  0x23   :  { %8267 = vmatprep.mubr.msk.f32.mxu0 %vm169_vm0, %v101_v29  ;;  %9903 = vmatpush3.bf16.msra.mxu0 %v9902_v8  ;;  %83 = vst [vmem:[#allocation7] sm:$0xff] %v11415_v27  ;;  %84 = vst [vmem:[#allocation7 + $0x8] sm:$0xff] %v11415_v27  ;;  %v147_v29 = vld [vmem:[%s14920_s0 + $0x1c0] sm:$0xff] }
  0x24   :  { %9904 = vmatprep.subr.bf16.mxu0 %v11414_v12  ;;  %10679 = vmatpush3.bf16.msra.mxu1 %v9908_v19  ;;  %85 = vst [vmem:[#allocation7 + $0x10] sm:$0xff] %v11415_v27  ;;  %86 = vst [vmem:[#allocation7 + $0x18] sm:$0xff] %v11415_v27 }
  0x25   :  { %10672 = vmatprep.subr.bf16.mxu1 %v11414_v12  ;;  %87 = vst [vmem:[#allocation7 + $0x20] sm:$0xff] %v11415_v27  ;;  %88 = vst [vmem:[#allocation7 + $0x28] sm:$0x3] %v11415_v27 }
  0x26   :  { %8268 = vmatmul.mubr.msk.f32.gmra.mrb[10].mxu0 %vm169_vm0, %v102_v31  ;;  %89 = vst [vmem:[#allocation9] sm:$0xff] %v11415_v27  ;;  %90 = vst [vmem:[#allocation9 + $0x8] sm:$0xff] %v11415_v27  ;;  %v149_v31 = vld [vmem:[%s14920_s0 + $0x1d0] sm:$0xff] }
  0x27   :  { %8270 = vmatprep.mubr.msk.f32.mxu0 %vm169_vm0, %v103_v32  ;;  %9906 = vmatpush3.bf16.msra.mxu0 %v9905_v14  ;;  %v150_v32 = vld [vmem:[%s14920_s0 + $0x1d8] sm:$0xff] }
  0x28   :  { %9907 = vmatprep.subr.bf16.mxu0 %v11414_v12  ;;  %10680 = vmatpush3.bf16.msra.mxu1 %v9911_v24 }
  0x29   :  { %9913 = vmatprep.subr.bf16.mxu1 %v11414_v12 }
  0x2a   :  { %8271 = vmatmul.mubr.msk.f32.gmra.mrb[12].mxu0 %vm169_vm0, %v104_v33  ;;  %v151_v33 = vld [vmem:[%s14920_s0 + $0x1e0] sm:$0xff] }
  0x2b   :  { %8273 = vmatprep.mubr.msk.f32.mxu0 %vm169_vm0, %v105_v34  ;;  %9909 = vmatpush3.bf16.msra.mxu0 %v9908_v19  ;;  %v152_v34 = vld [vmem:[%s14920_s0 + $0x1e8] sm:$0xff] }
  0x2c   :  { %9910 = vmatprep.subr.bf16.mxu0 %v11414_v12 }
  0x2e   :  { %8274 = vmatmul.mubr.msk.f32.gmra.mrb[14].mxu0 %vm169_vm0, %v106_v35  ;;  %v153_v35 = vld [vmem:[%s14920_s0 + $0x1f0] sm:$0xff] }
  0x2f   :  { %8276 = vmatprep.mubr.msk.f32.mxu0 %vm169_vm0, %v107_v36  ;;  %9912 = vmatpush3.bf16.msra.mxu0 %v9911_v24  ;;  %v154_v36 = vld [vmem:[%s14920_s0 + $0x1f8] sm:$0xff] }
  0x30   :  { %10105 = vmatprep.subr.bf16.mxu0 %v11414_v12 }
  0x32   :  { %8277 = vmatmul.mubr.msk.f32.gmra.mrb[16].mxu0 %vm169_vm0, %v108_v37  ;;  %v11886_v37 = vld [vmem:[%s14922_s2] ss:$0 sm:$0xff] }
  0x33   :  { %8279 = vmatprep.mubr.msk.f32.mxu0 %vm169_vm0, %v109_v38 }
  0x36   :  { %8280 = vmatmul.mubr.msk.f32.gmra.mrb[18].mxu0 %vm169_vm0, %v110_v39 }
  0x37   :  { %8282 = vmatprep.mubr.msk.f32.mxu0 %vm169_vm0, %v111_v40 }
  0x3a   :  { %8283 = vmatmul.mubr.msk.f32.gmra.mrb[20].mxu0 %vm169_vm0, %v112_v41 }
  0x3b   :  { %8285 = vmatprep.mubr.msk.f32.mxu0 %vm169_vm0, %v113_v42 }
  0x3e   :  { %8286 = vmatmul.mubr.msk.f32.gmra.mrb[22].mxu0 %vm169_vm0, %v114_v43 }
  0x3f   :  { %8288 = vmatprep.mubr.msk.f32.mxu0 %vm169_vm0, %v115_v44 }
  0x42   :  { %8289 = vmatmul.mubr.msk.f32.gmra.mrb[24].mxu0 %vm169_vm0, %v116_v45 }
  0x43   :  { %8291 = vmatprep.mubr.msk.f32.mxu0 %vm169_vm0, %v117_v46 }
  0x46   :  { %8292 = vmatmul.mubr.msk.f32.gmra.mrb[26].mxu0 %vm169_vm0, %v118_v47 }
  0x47   :  { %8294 = vmatprep.mubr.msk.f32.mxu0 %vm169_vm0, %v119_v48 }
  0x4a   :  { %8295 = vmatmul.mubr.msk.f32.gmra.mrb[28].mxu0 %vm169_vm0, %v120_v49 }
  0x4b   :  { %8297 = vmatprep.mubr.msk.f32.mxu0 %vm169_vm0, %v121_v50 }
  0x4e   :  { %8298 = vmatmul.mubr.msk.f32.gmra.mrb[30].mxu0 %vm169_vm0, %v122_v51 }
  0x4f   :  { %8300 = vmatprep.mubr.msk.f32.mxu0 %vm169_vm0, %v123_v52 }
  0x52   :  { %8301 = vmatmul.mubr.msk.f32.gmra.mrb[32].mxu0 %vm169_vm0, %v124_v53 }
  0x53   :  { %8303 = vmatprep.mubr.msk.f32.mxu0 %vm169_vm0, %v125_v54 }
  0x56   :  { %8304 = vmatmul.mubr.msk.f32.gmra.mrb[34].mxu0 %vm169_vm0, %v126_v55 }
  0x57   :  { %8306 = vmatprep.mubr.msk.f32.mxu0 %vm169_vm0, %v127_v56 }
  0x5a   :  { %8307 = vmatmul.mubr.msk.f32.gmra.mrb[36].mxu0 %vm169_vm0, %v128_v57 }
  0x5b   :  { %8309 = vmatprep.mubr.msk.f32.mxu0 %vm169_vm0, %v129_v58 }
  0x5e   :  { %8310 = vmatmul.mubr.msk.f32.gmra.mrb[38].mxu0 %vm169_vm0, %v130_v59 }
  0x5f   :  { %8312 = vmatprep.mubr.msk.f32.mxu0 %vm169_vm0, %v131_v60 }
  0x62   :  { %8313 = vmatmul.mubr.msk.f32.gmra.mrb[40].mxu0 %vm169_vm0, %v132_v61 }
  0x63   :  { %8315 = vmatprep.mubr.msk.f32.mxu0 %vm169_vm0, %v133_v62 }
  0x66   :  { %8316 = vmatmul.mubr.msk.f32.gmra.mrb[42].mxu0 %vm169_vm0, %v134_v63 }
  0x67   :  { %8318 = vmatprep.mubr.msk.f32.mxu0 %vm169_vm0, %v135_v2 }
  0x6a   :  { %8319 = vmatmul.mubr.msk.f32.gmra.mrb[44].mxu0 %vm169_vm0, %v136_v4 }
  0x6b   :  { %8321 = vmatprep.mubr.msk.f32.mxu0 %vm169_vm0, %v137_v7 }
  0x6e   :  { %8322 = vmatmul.mubr.msk.f32.gmra.mrb[46].mxu0 %vm169_vm0, %v138_v9 }
  0x6f   :  { %8324 = vmatprep.mubr.msk.f32.mxu0 %vm169_vm0, %v139_v13 }
  0x72   :  { %8325 = vmatmul.mubr.msk.f32.gmra.mrb[48].mxu0 %vm169_vm0, %v140_v15 }
  0x73   :  { %8327 = vmatprep.mubr.msk.f32.mxu0 %vm169_vm0, %v141_v18 }
  0x76   :  { %8328 = vmatmul.mubr.msk.f32.gmra.mrb[50].mxu0 %vm169_vm0, %v142_v20 }
  0x77   :  { %8330 = vmatprep.mubr.msk.f32.mxu0 %vm169_vm0, %v143_v23 }
  0x7a   :  { %8331 = vmatmul.mubr.msk.f32.gmra.mrb[52].mxu0 %vm169_vm0, %v144_v25 }
  0x7b   :  { %8333 = vmatprep.mubr.msk.f32.mxu0 %vm169_vm0, %v145_v26 }
  0x7e   :  { %8334 = vmatmul.mubr.msk.f32.gmra.mrb[54].mxu0 %vm169_vm0, %v146_v28 }
  0x7f   :  { %8336 = vmatprep.mubr.msk.f32.mxu0 %vm169_vm0, %v147_v29 }
  0x82   :  { %8337 = vmatmul.mubr.msk.f32.gmra.mrb[56].mxu0 %vm169_vm0, %v148_v30 }
  0x83   :  { %8339 = vmatprep.mubr.msk.f32.mxu0 %vm169_vm0, %v149_v31 }
  0x86   :  { %8340 = vmatmul.mubr.msk.f32.gmra.mrb[58].mxu0 %vm169_vm0, %v150_v32 }
  0x87   :  { %8342 = vmatprep.mubr.msk.f32.mxu0 %vm169_vm0, %v151_v33 }
  0x8a   :  { %8343 = vmatmul.mubr.msk.f32.gmra.mrb[60].mxu0 %vm169_vm0, %v152_v34 }
  0x8b   :  { %8345 = vmatprep.mubr.msk.f32.mxu0 %vm169_vm0, %v153_v35 }
  0x8e   :  { %8346 = vmatmul.mubr.msk.f32.gmra.mrb[62].mxu0 %vm169_vm0, %v154_v36 }
  0x8f   :  { %8380 = vmatprep.mubr.msk.f32.mxu0 %vm11416_vm2, %v11415_v27 }
  0x92   :  { %8381 = vmatmul.mubr.f32.vlgmr.msra.gmra.mrb[64].mxu0 %v11415_v27 }
  0x93   :  { %8383 = vmatprep.mubr.msk.f32.mxu0 %vm11416_vm2, %v11415_v27 }
  0x96   :  { %8384 = vmatmul.mubr.f32.gmra.mrb[66].mxu0 %v11415_v27 }
  0x97   :  { %8386 = vmatprep.mubr.msk.f32.mxu0 %vm11416_vm2, %v11415_v27 }
  0xe5   :  { %v8254_v38 = vpop.f32.mrb[0].mxu0 }
  0xe6   :  { %v438_v39 = vadd.f32 %v8254_v38, %v11886_v37  ;;  %v432_v40 = vpop.f32.mrb[1].mxu0 }
  0xe7   :  { %v433_v41 = vadd.f32 %v11886_v37, %v432_v40 }
  0xe8   :  { %752 = vst [vmem:[#allocation2 + $0x8] sm:$0xff] %v438_v39 }
  0xe9   :  { %751 = vst [vmem:[#allocation2] sm:$0xff] %v433_v41  ;;  %v8257_v42 = vpop.f32.mrb[2].mxu0 }
  0xea   :  { %v448_v43 = vadd.f32 %v8257_v42, %v11886_v37  ;;  %v442_v44 = vpop.f32.mrb[3].mxu0 }
  0xeb   :  { %v443_v45 = vadd.f32 %v11886_v37, %v442_v44 }
  0xec   :  { %754 = vst [vmem:[#allocation2 + $0x18] sm:$0xff] %v448_v43 }
  0xed   :  { %753 = vst [vmem:[#allocation2 + $0x10] sm:$0xff] %v443_v45  ;;  %v8260_v46 = vpop.f32.mrb[4].mxu0 }
  0xee   :  { %v458_v47 = vadd.f32 %v8260_v46, %v11886_v37  ;;  %v452_v48 = vpop.f32.mrb[5].mxu0 }
  0xef   :  { %v453_v49 = vadd.f32 %v11886_v37, %v452_v48 }
  0xf0   :  { %756 = vst [vmem:[#allocation2 + $0x28] sm:$0xff] %v458_v47  ;;  %v815_v51 = vld [vmem:[#allocation2] ss:$2 sm:$0xff]  ;;  %v817_v52 = vld [vmem:[#allocation2 + $0x1] ss:$2 sm:$0xff] }
  0xf1   :  { %755 = vst [vmem:[#allocation2 + $0x20] sm:$0xff] %v453_v49  ;;  %v8263_v50 = vpop.f32.mrb[6].mxu0  ;;  %v822_v58 = vmax.f32 %v815_v51, %v817_v52 }
  0xf2   :  { %v468_v53 = vadd.f32 %v8263_v50, %v11886_v37  ;;  %v462_v54 = vpop.f32.mrb[7].mxu0 }
  0xf3   :  { %v463_v55 = vadd.f32 %v11886_v37, %v462_v54 }
  0xf4   :  { %v819_v56 = vld [vmem:[#allocation2 + $0x10] ss:$2 sm:$0xff]  ;;  %v821_v57 = vld [vmem:[#allocation2 + $0x11] ss:$2 sm:$0xff]  ;;  %758 = vst [vmem:[#allocation2 + $0x38] sm:$0xff] %v468_v53 }
  0xf5   :  { %v823_v59 = vmax.f32 %v819_v56, %v821_v57  ;;  %757 = vst [vmem:[#allocation2 + $0x30] sm:$0xff] %v463_v55  ;;  %v8266_v60 = vpop.f32.mrb[8].mxu0 }
  0xf6   :  { %v478_v61 = vadd.f32 %v8266_v60, %v11886_v37  ;;  %v472_v62 = vpop.f32.mrb[9].mxu0 }
  0xf7   :  { %v824_v63 = vmax.f32 %v822_v58, %v823_v59  ;;  %v473_v0 = vadd.f32 %v11886_v37, %v472_v62 }
  0xf8   :  { %760 = vst [vmem:[#allocation2 + $0x48] sm:$0xff] %v478_v61  ;;  %v827_v2 = vld [vmem:[#allocation2 + $0x20] ss:$2 sm:$0xff]  ;;  %v829_v3 = vld [vmem:[#allocation2 + $0x21] ss:$2 sm:$0xff] }
  0xf9   :  { %759 = vst [vmem:[#allocation2 + $0x40] sm:$0xff] %v473_v0  ;;  %v8269_v1 = vpop.f32.mrb[10].mxu0  ;;  %825 = vst [vmem:[#allocation3 + $0x16] sm:$0xff] %v824_v63  ;;  %v834_v9 = vmax.f32 %v827_v2, %v829_v3 }
  0xfa   :  { %v488_v4 = vadd.f32 %v8269_v1, %v11886_v37  ;;  %v482_v5 = vpop.f32.mrb[11].mxu0 }
  0xfb   :  { %v483_v6 = vadd.f32 %v11886_v37, %v482_v5 }
  0xfc   :  { %v831_v7 = vld [vmem:[#allocation2 + $0x30] ss:$2 sm:$0xff]  ;;  %v833_v8 = vld [vmem:[#allocation2 + $0x31] ss:$2 sm:$0xff]  ;;  %762 = vst [vmem:[#allocation2 + $0x58] sm:$0xff] %v488_v4 }
  0xfd   :  { %v835_v10 = vmax.f32 %v831_v7, %v833_v8  ;;  %761 = vst [vmem:[#allocation2 + $0x50] sm:$0xff] %v483_v6  ;;  %v8272_v11 = vpop.f32.mrb[12].mxu0 }
  0xfe   :  { %v498_v13 = vadd.f32 %v8272_v11, %v11886_v37  ;;  %v492_v14 = vpop.f32.mrb[13].mxu0 }
  0xff   :  { %v493_v15 = vadd.f32 %v11886_v37, %v492_v14  ;;  %v836_v16 = vmax.f32 %v834_v9, %v835_v10 }
 0x100   :  { %764 = vst [vmem:[#allocation2 + $0x68] sm:$0xff] %v498_v13  ;;  %v1008_v17 = vld [vmem:[#allocation3 + $0x10] sm:$0xff]  ;;  %v839_v19 = vld [vmem:[#allocation2 + $0x40] ss:$2 sm:$0xff]  ;;  %v841_v20 = vld [vmem:[#allocation2 + $0x41] ss:$2 sm:$0xff] }
 0x101   :  { %763 = vst [vmem:[#allocation2 + $0x60] sm:$0xff] %v493_v15  ;;  %v8275_v18 = vpop.f32.mrb[14].mxu0  ;;  %8387 = vmatmul.mubr.f32.gmra.mrb[68].mxu0 %v1008_v17  ;;  %837 = vst [vmem:[#allocation3 + $0x20] sm:$0xff] %v836_v16  ;;  %v1009_v26 = vld [vmem:[#allocation3 + $0x18] sm:$0xff]  ;;  %v846_v28 = vmax.f32 %v839_v19, %v841_v20 }
 0x102   :  { %v508_v21 = vadd.f32 %v8275_v18, %v11886_v37  ;;  %v502_v22 = vpop.f32.mrb[15].mxu0  ;;  %8389 = vmatprep.mubr.msk.f32.mxu0 %vm11416_vm2, %v11415_v27 }
 0x103   :  { %v503_v23 = vadd.f32 %v11886_v37, %v502_v22 }
 0x104   :  { %v843_v24 = vld [vmem:[#allocation2 + $0x50] ss:$2 sm:$0xff]  ;;  %v845_v25 = vld [vmem:[#allocation2 + $0x51] ss:$2 sm:$0xff]  ;;  %766 = vst [vmem:[#allocation2 + $0x78] sm:$0xff] %v508_v21 }
 0x105   :  { %v847_v29 = vmax.f32 %v843_v24, %v845_v25  ;;  %765 = vst [vmem:[#allocation2 + $0x70] sm:$0xff] %v503_v23  ;;  %v8278_v30 = vpop.f32.mrb[16].mxu0  ;;  %8390 = vmatmul.mubr.f32.gmra.mrb[70].mxu0 %v1009_v26 }
 0x106   :  { %v518_v31 = vadd.f32 %v8278_v30, %v11886_v37  ;;  %v512_v32 = vpop.f32.mrb[17].mxu0  ;;  %8392 = vmatprep.mubr.msk.f32.mxu0 %vm11416_vm2, %v11415_v27 }
 0x107   :  { %v848_v33 = vmax.f32 %v846_v28, %v847_v29  ;;  %v513_v34 = vadd.f32 %v11886_v37, %v512_v32 }
 0x108   :  { %768 = vst [vmem:[#allocation2 + $0x88] sm:$0xff] %v518_v31  ;;  %v851_v36 = vld [vmem:[#allocation2 + $0x60] ss:$2 sm:$0xff]  ;;  %v853_v38 = vld [vmem:[#allocation2 + $0x61] ss:$2 sm:$0xff] }
 0x109   :  { %849 = vst [vmem:[#allocation3 + $0x2a] sm:$0xff] %v848_v33  ;;  %767 = vst [vmem:[#allocation2 + $0x80] sm:$0xff] %v513_v34  ;;  %v8281_v35 = vpop.f32.mrb[18].mxu0  ;;  %8393 = vmatmul.mubr.f32.gmra.mrb[72].mxu0 %v836_v16  ;;  %v858_v44 = vmax.f32 %v851_v36, %v853_v38 }
 0x10a   :  { %v528_v39 = vadd.f32 %v8281_v35, %v11886_v37  ;;  %v522_v40 = vpop.f32.mrb[19].mxu0  ;;  %8395 = vmatprep.mubr.msk.f32.mxu0 %vm11416_vm2, %v11415_v27 }
 0x10b   :  { %v523_v41 = vadd.f32 %v11886_v37, %v522_v40 }
 0x10c   :  { %v855_v42 = vld [vmem:[#allocation2 + $0x70] ss:$2 sm:$0xff]  ;;  %v857_v43 = vld [vmem:[#allocation2 + $0x71] ss:$2 sm:$0xff]  ;;  %770 = vst [vmem:[#allocation2 + $0x98] sm:$0xff] %v528_v39 }
 0x10d   :  { %v859_v45 = vmax.f32 %v855_v42, %v857_v43  ;;  %769 = vst [vmem:[#allocation2 + $0x90] sm:$0xff] %v523_v41  ;;  %v8284_v46 = vpop.f32.mrb[20].mxu0 }
 0x10e   :  { %v538_v47 = vadd.f32 %v8284_v46, %v11886_v37  ;;  %v532_v48 = vpop.f32.mrb[21].mxu0 }
 0x10f   :  { %v860_v49 = vmax.f32 %v858_v44, %v859_v45  ;;  %v533_v50 = vadd.f32 %v11886_v37, %v532_v48 }
 0x110   :  { %772 = vst [vmem:[#allocation2 + $0xa8] sm:$0xff] %v538_v47  ;;  %v1011_v51 = vld [vmem:[#allocation3 + $0x28] sm:$0xff] }
 0x111   :  { %861 = vst [vmem:[#allocation3 + $0x34] sm:$0xff] %v860_v49  ;;  %771 = vst [vmem:[#allocation2 + $0xa0] sm:$0xff] %v533_v50  ;;  %v8287_v52 = vpop.f32.mrb[22].mxu0  ;;  %8396 = vmatmul.mubr.f32.gmra.mrb[74].mxu0 %v1011_v51  ;;  %v863_v53 = vld [vmem:[#allocation2 + $0x80] ss:$2 sm:$0xff] }
 0x112   :  { %v865_v54 = vld [vmem:[#allocation2 + $0x81] ss:$2 sm:$0xff]  ;;  %v548_v55 = vadd.f32 %v8287_v52, %v11886_v37  ;;  %v542_v56 = vpop.f32.mrb[23].mxu0  ;;  %8398 = vmatprep.mubr.msk.f32.mxu0 %vm11416_vm2, %v11415_v27 }
 0x113   :  { %v543_v57 = vadd.f32 %v11886_v37, %v542_v56  ;;  %v870_v60 = vmax.f32 %v863_v53, %v865_v54 }
 0x114   :  { %v867_v58 = vld [vmem:[#allocation2 + $0x90] ss:$2 sm:$0xff]  ;;  %v869_v59 = vld [vmem:[#allocation2 + $0x91] ss:$2 sm:$0xff]  ;;  %774 = vst [vmem:[#allocation2 + $0xb8] sm:$0xff] %v548_v55 }
 0x115   :  { %v871_v61 = vmax.f32 %v867_v58, %v869_v59  ;;  %773 = vst [vmem:[#allocation2 + $0xb0] sm:$0xff] %v543_v57  ;;  %v8290_v62 = vpop.f32.mrb[24].mxu0 }
 0x116   :  { %v558_v63 = vadd.f32 %v8290_v62, %v11886_v37  ;;  %v552_v0 = vpop.f32.mrb[25].mxu0 }
 0x117   :  { %v872_v1 = vmax.f32 %v870_v60, %v871_v61  ;;  %v553_v2 = vadd.f32 %v11886_v37, %v552_v0 }
 0x118   :  { %776 = vst [vmem:[#allocation2 + $0xc8] sm:$0xff] %v558_v63  ;;  %v1012_v3 = vld [vmem:[#allocation3 + $0x30] sm:$0xff]  ;;  %v875_v5 = vld [vmem:[#allocation2 + $0xa0] ss:$2 sm:$0xff]  ;;  %v877_v6 = vld [vmem:[#allocation2 + $0xa1] ss:$2 sm:$0xff] }
 0x119   :  { %873 = vst [vmem:[#allocation3 + $0x3e] sm:$0xff] %v872_v1  ;;  %775 = vst [vmem:[#allocation2 + $0xc0] sm:$0xff] %v553_v2  ;;  %v8293_v4 = vpop.f32.mrb[26].mxu0  ;;  %8399 = vmatmul.mubr.f32.gmra.mrb[76].mxu0 %v1012_v3  ;;  %v882_v13 = vmax.f32 %v875_v5, %v877_v6 }
 0x11a   :  { %v568_v7 = vadd.f32 %v8293_v4, %v11886_v37  ;;  %v562_v8 = vpop.f32.mrb[27].mxu0  ;;  %8401 = vmatprep.mubr.msk.f32.mxu0 %vm11416_vm2, %v11415_v27 }
 0x11b   :  { %v563_v9 = vadd.f32 %v11886_v37, %v562_v8 }
 0x11c   :  { %v879_v10 = vld [vmem:[#allocation2 + $0xb0] ss:$2 sm:$0xff]  ;;  %v881_v11 = vld [vmem:[#allocation2 + $0xb1] ss:$2 sm:$0xff]  ;;  %778 = vst [vmem:[#allocation2 + $0xd8] sm:$0xff] %v568_v7 }
 0x11d   :  { %v883_v14 = vmax.f32 %v879_v10, %v881_v11  ;;  %777 = vst [vmem:[#allocation2 + $0xd0] sm:$0xff] %v563_v9  ;;  %v8296_v15 = vpop.f32.mrb[28].mxu0 }
 0x11e   :  { %v578_v16 = vadd.f32 %v8296_v15, %v11886_v37  ;;  %v572_v17 = vpop.f32.mrb[29].mxu0 }
 0x11f   :  { %v573_v18 = vadd.f32 %v11886_v37, %v572_v17  ;;  %v884_v19 = vmax.f32 %v882_v13, %v883_v14 }
 0x120   :  { %780 = vst [vmem:[#allocation2 + $0xe8] sm:$0xff] %v578_v16  ;;  %v1013_v20 = vld [vmem:[#allocation3 + $0x38] sm:$0xff]  ;;  %v887_v22 = vld [vmem:[#allocation2 + $0xc0] ss:$2 sm:$0xff]  ;;  %v889_v23 = vld [vmem:[#allocation2 + $0xc1] ss:$2 sm:$0xff] }
 0x121   :  { %779 = vst [vmem:[#allocation2 + $0xe0] sm:$0xff] %v573_v18  ;;  %v8299_v21 = vpop.f32.mrb[30].mxu0  ;;  %8402 = vmatmul.mubr.f32.gmra.mrb[78].mxu0 %v1013_v20  ;;  %885 = vst [vmem:[#allocation3 + $0x48] sm:$0xff] %v884_v19  ;;  %v1014_v30 = vld [vmem:[#allocation3 + $0x40] sm:$0xff]  ;;  %v894_v31 = vmax.f32 %v887_v22, %v889_v23 }
 0x122   :  { %v588_v24 = vadd.f32 %v8299_v21, %v11886_v37  ;;  %v582_v25 = vpop.f32.mrb[31].mxu0  ;;  %8404 = vmatprep.mubr.msk.f32.mxu0 %vm11416_vm2, %v11415_v27 }
 0x123   :  { %v583_v26 = vadd.f32 %v11886_v37, %v582_v25 }
 0x124   :  { %v891_v28 = vld [vmem:[#allocation2 + $0xd0] ss:$2 sm:$0xff]  ;;  %v893_v29 = vld [vmem:[#allocation2 + $0xd1] ss:$2 sm:$0xff]  ;;  %782 = vst [vmem:[#allocation2 + $0xf8] sm:$0xff] %v588_v24 }
 0x125   :  { %v895_v32 = vmax.f32 %v891_v28, %v893_v29  ;;  %781 = vst [vmem:[#allocation2 + $0xf0] sm:$0xff] %v583_v26  ;;  %v8302_v33 = vpop.f32.mrb[32].mxu0  ;;  %8405 = vmatmul.mubr.f32.gmra.mrb[80].mxu0 %v1014_v30 }
 0x126   :  { %v598_v34 = vadd.f32 %v8302_v33, %v11886_v37  ;;  %v592_v35 = vpop.f32.mrb[33].mxu0  ;;  %8407 = vmatprep.mubr.msk.f32.mxu0 %vm11416_vm2, %v11415_v27 }
 0x127   :  { %v896_v36 = vmax.f32 %v894_v31, %v895_v32  ;;  %v593_v38 = vadd.f32 %v11886_v37, %v592_v35 }
 0x128   :  { %784 = vst [vmem:[#allocation2 + $0x108] sm:$0xff] %v598_v34  ;;  %v899_v40 = vld [vmem:[#allocation2 + $0xe0] ss:$2 sm:$0xff]  ;;  %v901_v41 = vld [vmem:[#allocation2 + $0xe1] ss:$2 sm:$0xff] }
 0x129   :  { %897 = vst [vmem:[#allocation3 + $0x52] sm:$0xff] %v896_v36  ;;  %783 = vst [vmem:[#allocation2 + $0x100] sm:$0xff] %v593_v38  ;;  %v8305_v39 = vpop.f32.mrb[34].mxu0  ;;  %8408 = vmatmul.mubr.f32.gmra.mrb[82].mxu0 %v884_v19  ;;  %v906_v47 = vmax.f32 %v899_v40, %v901_v41 }
 0x12a   :  { %v608_v42 = vadd.f32 %v8305_v39, %v11886_v37  ;;  %v602_v43 = vpop.f32.mrb[35].mxu0  ;;  %8410 = vmatprep.mubr.msk.f32.mxu0 %vm11416_vm2, %v11415_v27 }
 0x12b   :  { %v603_v44 = vadd.f32 %v11886_v37, %v602_v43 }
 0x12c   :  { %v903_v45 = vld [vmem:[#allocation2 + $0xf0] ss:$2 sm:$0xff]  ;;  %v905_v46 = vld [vmem:[#allocation2 + $0xf1] ss:$2 sm:$0xff]  ;;  %786 = vst [vmem:[#allocation2 + $0x118] sm:$0xff] %v608_v42 }
 0x12d   :  { %v907_v48 = vmax.f32 %v903_v45, %v905_v46  ;;  %785 = vst [vmem:[#allocation2 + $0x110] sm:$0xff] %v603_v44  ;;  %v8308_v49 = vpop.f32.mrb[36].mxu0 }
 0x12e   :  { %v618_v50 = vadd.f32 %v8308_v49, %v11886_v37  ;;  %v612_v51 = vpop.f32.mrb[37].mxu0  ;;  %v7007_v49 = vld [vmem:[%s14921_s3 + $0x88] sm:$0xff] }
 0x12f   :  { %v908_v52 = vmax.f32 %v906_v47, %v907_v48  ;;  %v613_v53 = vadd.f32 %v11886_v37, %v612_v51  ;;  %v7006_v48 = vld [vmem:[%s14921_s3 + $0x80] sm:$0xff] }
 0x130   :  { %788 = vst [vmem:[#allocation2 + $0x128] sm:$0xff] %v618_v50  ;;  %v1016_v54 = vld [vmem:[#allocation3 + $0x50] sm:$0xff]  ;;  %v911_v56 = vld [vmem:[#allocation2 + $0x100] ss:$2 sm:$0xff]  ;;  %v913_v57 = vld [vmem:[#allocation2 + $0x101] ss:$2 sm:$0xff] }
 0x131   :  { %909 = vst [vmem:[#allocation3 + $0x5c] sm:$0xff] %v908_v52  ;;  %787 = vst [vmem:[#allocation2 + $0x120] sm:$0xff] %v613_v53  ;;  %v8311_v55 = vpop.f32.mrb[38].mxu0  ;;  %8411 = vmatmul.mubr.f32.gmra.mrb[84].mxu0 %v1016_v54  ;;  %v918_v63 = vmax.f32 %v911_v56, %v913_v57 }
 0x132   :  { %v628_v58 = vadd.f32 %v8311_v55, %v11886_v37  ;;  %v622_v59 = vpop.f32.mrb[39].mxu0  ;;  %8413 = vmatprep.mubr.msk.f32.mxu0 %vm11416_vm2, %v11415_v27 }
 0x133   :  { %v623_v60 = vadd.f32 %v11886_v37, %v622_v59  ;;  %v11983_v59 = vld [vmem:[%s14923_s4] ss:$0 sm:$0xff] }
 0x134   :  { %v915_v61 = vld [vmem:[#allocation2 + $0x110] ss:$2 sm:$0xff]  ;;  %v917_v62 = vld [vmem:[#allocation2 + $0x111] ss:$2 sm:$0xff]  ;;  %790 = vst [vmem:[#allocation2 + $0x138] sm:$0xff] %v628_v58  ;;  %v9914_v58 = vpack.c.bf16 %v7007_v49, %v7006_v48  ;;  %10749 = vst [vmem:[#allocation4 + $0x88] sm:$0xff] %v11983_v59 }
 0x135   :  { %v919_v0 = vmax.f32 %v915_v61, %v917_v62  ;;  %789 = vst [vmem:[#allocation2 + $0x130] sm:$0xff] %v623_v60  ;;  %v8314_v1 = vpop.f32.mrb[40].mxu0  ;;  %v7008_v62 = vld [vmem:[%s14921_s3 + $0x90] sm:$0xff]  ;;  %10752 = vst [vmem:[#allocation4 + $0x90] sm:$0xff] %v11983_v59 }
 0x136   :  { %v638_v2 = vadd.f32 %v8314_v1, %v11886_v37  ;;  %v632_v3 = vpop.f32.mrb[41].mxu0  ;;  %10755 = vst [vmem:[#allocation4 + $0x98] sm:$0xff] %v11983_v59  ;;  %10758 = vst [vmem:[#allocation4 + $0xa0] sm:$0xff] %v11983_v59 }
 0x137   :  { %v11947_v4 = vmax.f32 %v918_v63, %v919_v0  ;;  %v633_v5 = vadd.f32 %v11886_v37, %v632_v3  ;;  %v7009_v63 = vld [vmem:[%s14921_s3 + $0x98] sm:$0xff]  ;;  %10761 = vst [vmem:[#allocation4 + $0xa8] sm:$0xff] %v11983_v59  ;;  %10764 = vst [vmem:[#allocation4 + $0xb0] sm:$0xff] %v11983_v59 }
 0x138   :  { %792 = vst [vmem:[#allocation2 + $0x148] sm:$0xff] %v638_v2  ;;  %v1017_v6 = vld [vmem:[#allocation3 + $0x58] sm:$0xff]  ;;  %v923_v8 = vld [vmem:[#allocation2 + $0x120] ss:$2 sm:$0xff]  ;;  %v925_v9 = vld [vmem:[#allocation2 + $0x121] ss:$2 sm:$0xff] }
 0x139   :  { %921 = vst [vmem:[#allocation3 + $0x7a] sm:$0xff] %v11947_v4  ;;  %791 = vst [vmem:[#allocation2 + $0x140] sm:$0xff] %v633_v5  ;;  %v8317_v7 = vpop.f32.mrb[42].mxu0  ;;  %8414 = vmatmul.mubr.f32.gmra.mrb[86].mxu0 %v1017_v6  ;;  %v1018_v16 = vld [vmem:[#allocation3 + $0x60] sm:$0xff]  ;;  %v930_v17 = vmax.f32 %v923_v8, %v925_v9 }
 0x13a   :  { %v648_v10 = vadd.f32 %v8317_v7, %v11886_v37  ;;  %v642_v11 = vpop.f32.mrb[43].mxu0  ;;  %8416 = vmatprep.mubr.msk.f32.mxu0 %vm11416_vm2, %v11415_v27  ;;  %10767 = vst [vmem:[#allocation4 + $0xb8] sm:$0xff] %v11983_v59  ;;  %10770 = vst [vmem:[#allocation4 + $0xc0] sm:$0xff] %v11983_v59  ;;  %v9917_v7 = vpack.c.bf16 %v7009_v63, %v7008_v62  ;;  %v7010_v9 = vld [vmem:[%s14921_s3 + $0xa0] sm:$0xff] }
 0x13b   :  { %v643_v13 = vadd.f32 %v11886_v37, %v642_v11 }
 0x13c   :  { %v927_v14 = vld [vmem:[#allocation2 + $0x130] ss:$2 sm:$0xff]  ;;  %v929_v15 = vld [vmem:[#allocation2 + $0x131] ss:$2 sm:$0xff]  ;;  %794 = vst [vmem:[#allocation2 + $0x158] sm:$0xff] %v648_v10  ;;  %v7011_v10 = vld [vmem:[%s14921_s3 + $0xa8] sm:$0xff] }
 0x13d   :  { %v931_v18 = vmax.f32 %v927_v14, %v929_v15  ;;  %793 = vst [vmem:[#allocation2 + $0x150] sm:$0xff] %v643_v13  ;;  %v8320_v19 = vpop.f32.mrb[44].mxu0  ;;  %8417 = vmatmul.mubr.f32.gmra.mrb[88].mxu0 %v1018_v16 }
 0x13e   :  { %v658_v20 = vadd.f32 %v8320_v19, %v11886_v37  ;;  %v652_v21 = vpop.f32.mrb[45].mxu0  ;;  %8419 = vmatprep.mubr.msk.f32.mxu0 %vm11416_vm2, %v11415_v27 }
 0x13f   :  { %v932_v22 = vmax.f32 %v930_v17, %v931_v18  ;;  %v653_v23 = vadd.f32 %v11886_v37, %v652_v21 }
 0x140   :  { %796 = vst [vmem:[#allocation2 + $0x168] sm:$0xff] %v658_v20  ;;  %v935_v25 = vld [vmem:[#allocation2 + $0x140] ss:$2 sm:$0xff]  ;;  %v937_v26 = vld [vmem:[#allocation2 + $0x141] ss:$2 sm:$0xff]  ;;  %v1021_v41 = vld [vmem:[#allocation3 + $0x78] sm:$0xff]  ;;  %v9920_v20 = vpack.c.bf16 %v7011_v10, %v7010_v9 }
 0x141   :  { %933 = vst [vmem:[#allocation3 + $0x84] sm:$0xff] %v932_v22  ;;  %795 = vst [vmem:[#allocation2 + $0x160] sm:$0xff] %v653_v23  ;;  %v8323_v24 = vpop.f32.mrb[46].mxu0  ;;  %8420 = vmatmul.mubr.f32.gmra.mrb[90].mxu0 %v11415_v27  ;;  %v942_v33 = vmax.f32 %v935_v25, %v937_v26  ;;  %v7012_v23 = vld [vmem:[%s14921_s3 + $0xb0] sm:$0xff] }
 0x142   :  { %v668_v28 = vadd.f32 %v8323_v24, %v11886_v37  ;;  %v662_v29 = vpop.f32.mrb[47].mxu0  ;;  %8422 = vmatprep.mubr.msk.f32.mxu0 %vm11416_vm2, %v11415_v27  ;;  %v7013_v24 = vld [vmem:[%s14921_s3 + $0xb8] sm:$0xff] }
 0x143   :  { %v663_v30 = vadd.f32 %v11886_v37, %v662_v29 }
 0x144   :  { %v939_v31 = vld [vmem:[#allocation2 + $0x150] ss:$2 sm:$0xff]  ;;  %v941_v32 = vld [vmem:[#allocation2 + $0x151] ss:$2 sm:$0xff]  ;;  %798 = vst [vmem:[#allocation2 + $0x178] sm:$0xff] %v668_v28 }
 0x145   :  { %v943_v34 = vmax.f32 %v939_v31, %v941_v32  ;;  %797 = vst [vmem:[#allocation2 + $0x170] sm:$0xff] %v663_v30  ;;  %v8326_v35 = vpop.f32.mrb[48].mxu0  ;;  %8423 = vmatmul.mubr.f32.gmra.mrb[92].mxu0 %v11415_v27  ;;  %v9923_v31 = vpack.c.bf16 %v7013_v24, %v7012_v23  ;;  %v7023_v23 = vld [vmem:[%s14921_s3 + $0x108] sm:$0xff]  ;;  %v12081_v24 = vld [vmem:[#allocation3] sm:$0xff] }
 0x146   :  { %v678_v36 = vadd.f32 %v8326_v35, %v11886_v37  ;;  %v672_v38 = vpop.f32.mrb[49].mxu0  ;;  %8425 = vmatprep.mubr.msk.f32.mxu0 %vm11416_vm2, %v11415_v27 }
 0x147   :  { %v944_v39 = vmax.f32 %v942_v33, %v943_v34  ;;  %v673_v40 = vadd.f32 %v11886_v37, %v672_v38  ;;  %v7014_v33 = vld [vmem:[%s14921_s3 + $0xc0] sm:$0xff]  ;;  %v7015_v34 = vld [vmem:[%s14921_s3 + $0xc8] sm:$0xff] }
 0x148   :  { %800 = vst [vmem:[#allocation2 + $0x188] sm:$0xff] %v678_v36  ;;  %v947_v43 = vld [vmem:[#allocation2 + $0x160] ss:$2 sm:$0xff]  ;;  %v949_v44 = vld [vmem:[#allocation2 + $0x161] ss:$2 sm:$0xff] }
 0x149   :  { %945 = vst [vmem:[#allocation3 + $0x8e] sm:$0xff] %v944_v39  ;;  %799 = vst [vmem:[#allocation2 + $0x180] sm:$0xff] %v673_v40  ;;  %v8329_v42 = vpop.f32.mrb[50].mxu0  ;;  %8426 = vmatmul.mubr.f32.gmra.mrb[94].mxu0 %v1021_v41  ;;  %v1022_v52 = vld [vmem:[#allocation3 + $0x80] sm:$0xff]  ;;  %v954_v53 = vmax.f32 %v947_v43, %v949_v44  ;;  %v9926_v43 = vpack.c.bf16 %v7015_v34, %v7014_v33  ;;  %v7028_v34 = vld [vmem:[%s14921_s3 + $0x130] sm:$0xff] }
 0x14a   :  { %v688_v45 = vadd.f32 %v8329_v42, %v11886_v37  ;;  %v682_v46 = vpop.f32.mrb[51].mxu0  ;;  %8428 = vmatprep.mubr.msk.f32.mxu0 %vm11416_vm2, %v11415_v27 }
 0x14b   :  { %v683_v47 = vadd.f32 %v11886_v37, %v682_v46  ;;  %v7016_v46 = vld [vmem:[%s14921_s3 + $0xd0] sm:$0xff] }
 0x14c   :  { %v951_v50 = vld [vmem:[#allocation2 + $0x170] ss:$2 sm:$0xff]  ;;  %v953_v51 = vld [vmem:[#allocation2 + $0x171] ss:$2 sm:$0xff]  ;;  %802 = vst [vmem:[#allocation2 + $0x198] sm:$0xff] %v688_v45 }
 0x14d   :  { %v955_v54 = vmax.f32 %v951_v50, %v953_v51  ;;  %801 = vst [vmem:[#allocation2 + $0x190] sm:$0xff] %v683_v47  ;;  %v8332_v55 = vpop.f32.mrb[52].mxu0  ;;  %8429 = vmatmul.mubr.f32.gmra.mrb[96].mxu0 %v1022_v52  ;;  %v7017_v47 = vld [vmem:[%s14921_s3 + $0xd8] sm:$0xff] }
 0x14e   :  { %v698_v56 = vadd.f32 %v8332_v55, %v11886_v37  ;;  %v692_v57 = vpop.f32.mrb[53].mxu0  ;;  %9343 = vmatprep.mubr.msk.f32.mxu0 %vm11416_vm2, %v11415_v27 }
 0x14f   :  { %v693_v60 = vadd.f32 %v11886_v37, %v692_v57  ;;  %v956_v61 = vmax.f32 %v954_v53, %v955_v54  ;;  %v9929_v54 = vpack.c.bf16 %v7017_v47, %v7016_v46  ;;  %v7019_v57 = vld [vmem:[%s14921_s3 + $0xe8] sm:$0xff]  ;;  %v7034_v47 = vld [vmem:[%s14921_s3 + $0x160] sm:$0xff] }
 0x150   :  { %804 = vst [vmem:[#allocation2 + $0x1a8] sm:$0xff] %v698_v56  ;;  %v1023_v0 = vld [vmem:[#allocation3 + $0x88] sm:$0xff]  ;;  %v1024_v14 = vld [vmem:[#allocation3 + $0x90] sm:$0xff]  ;;  %v7018_v56 = vld [vmem:[%s14921_s3 + $0xe0] sm:$0xff] }
 0x151   :  { %803 = vst [vmem:[#allocation2 + $0x1a0] sm:$0xff] %v693_v60  ;;  %v8335_v1 = vpop.f32.mrb[54].mxu0  ;;  %8432 = vmatmul.mubr.f32.vlgmr.msra.gmra.mrb[0].mxu1 %v1023_v0  ;;  %957 = vst [vmem:[#allocation3 + $0x98] sm:$0xff] %v956_v61  ;;  %v959_v2 = vld [vmem:[#allocation2 + $0x180] ss:$2 sm:$0xff]  ;;  %v9932_v0 = vpack.c.bf16 %v7019_v57, %v7018_v56 }
 0x152   :  { %v961_v3 = vld [vmem:[#allocation2 + $0x181] ss:$2 sm:$0xff]  ;;  %v708_v5 = vadd.f32 %v8335_v1, %v11886_v37  ;;  %v702_v6 = vpop.f32.mrb[55].mxu0  ;;  %8434 = vmatprep.mubr.msk.f32.mxu1 %vm11416_vm2, %v11415_v27  ;;  %9915 = vmatpush3.bf16.msra.mxu1 %v9914_v58 }
 0x153   :  { %v703_v8 = vadd.f32 %v11886_v37, %v702_v6  ;;  %9916 = vmatprep.subr.bf16.mxu1 %v11414_v12  ;;  %v966_v15 = vmax.f32 %v959_v2, %v961_v3  ;;  %v7020_v3 = vld [vmem:[%s14921_s3 + $0xf0] sm:$0xff]  ;;  %v1277_v56 = vld [vmem:[#allocation3 + $0x41] sm:$0xff] }
 0x154   :  { %v963_v11 = vld [vmem:[#allocation2 + $0x190] ss:$2 sm:$0xff]  ;;  %v965_v13 = vld [vmem:[#allocation2 + $0x191] ss:$2 sm:$0xff]  ;;  %806 = vst [vmem:[#allocation2 + $0x1b8] sm:$0xff] %v708_v5 }
 0x155   :  { %v967_v16 = vmax.f32 %v963_v11, %v965_v13  ;;  %805 = vst [vmem:[#allocation2 + $0x1b0] sm:$0xff] %v703_v8  ;;  %v8338_v17 = vpop.f32.mrb[56].mxu0  ;;  %8435 = vmatmul.mubr.f32.gmra.mrb[2].mxu1 %v1024_v14  ;;  %v7021_v5 = vld [vmem:[%s14921_s3 + $0xf8] sm:$0xff]  ;;  %v1278_v57 = vld [vmem:[#allocation3 + $0x49] sm:$0xff] }
 0x156   :  { %v718_v18 = vadd.f32 %v8338_v17, %v11886_v37  ;;  %v712_v19 = vpop.f32.mrb[57].mxu0  ;;  %8437 = vmatprep.mubr.msk.f32.mxu1 %vm11416_vm2, %v11415_v27  ;;  %9918 = vmatpush3.bf16.msra.mxu1 %v9917_v7  ;;  %v9935_v10 = vpack.c.bf16 %v7021_v5, %v7020_v3 }
 0x157   :  { %v12016_v21 = vmax.f32 %v966_v15, %v967_v16  ;;  %v713_v22 = vadd.f32 %v11886_v37, %v712_v19  ;;  %9919 = vmatprep.subr.bf16.mxu1 %v11414_v12 }
 0x158   :  { %808 = vst [vmem:[#allocation2 + $0x1c8] sm:$0xff] %v718_v18  ;;  %v971_v26 = vld [vmem:[#allocation2 + $0x1a0] ss:$2 sm:$0xff]  ;;  %v973_v28 = vld [vmem:[#allocation2 + $0x1a1] ss:$2 sm:$0xff] }
 0x159   :  { %969 = vst [vmem:[#allocation3 + $0xa2] sm:$0xff] %v12016_v21  ;;  %807 = vst [vmem:[#allocation2 + $0x1c0] sm:$0xff] %v713_v22  ;;  %v8341_v25 = vpop.f32.mrb[58].mxu0  ;;  %8438 = vmatmul.mubr.f32.gmra.mrb[4].mxu1 %v956_v61  ;;  %v978_v38 = vmax.f32 %v971_v26, %v973_v28  ;;  %v7022_v22 = vld [vmem:[%s14921_s3 + $0x100] sm:$0xff]  ;;  %v7025_v28 = vld [vmem:[%s14921_s3 + $0x118] sm:$0xff] }
 0x15a   :  { %v728_v29 = vadd.f32 %v8341_v25, %v11886_v37  ;;  %v722_v30 = vpop.f32.mrb[59].mxu0  ;;  %8440 = vmatprep.mubr.msk.f32.mxu1 %vm11416_vm2, %v11415_v27  ;;  %9921 = vmatpush3.bf16.msra.mxu1 %v9920_v20  ;;  %v1269_v25 = vld [vmem:[#allocation3 + $0x1] sm:$0xff]  ;;  %v9938_v26 = vpack.c.bf16 %v7023_v23, %v7022_v22  ;;  %v1288_v3 = vld [vmem:[#allocation3 + $0x99] sm:$0xff] }
 0x15b   :  { %v723_v32 = vadd.f32 %v11886_v37, %v722_v30  ;;  %9922 = vmatprep.subr.bf16.mxu1 %v11414_v12  ;;  %v1576_v23 = vld [vmem:[#allocation3 + $0x2] sm:$0xff] }
 0x15c   :  { %v975_v35 = vld [vmem:[#allocation2 + $0x1b0] ss:$2 sm:$0xff]  ;;  %v977_v36 = vld [vmem:[#allocation2 + $0x1b1] ss:$2 sm:$0xff]  ;;  %810 = vst [vmem:[#allocation2 + $0x1d8] sm:$0xff] %v728_v29 }
 0x15d   :  { %v979_v39 = vmax.f32 %v975_v35, %v977_v36  ;;  %809 = vst [vmem:[#allocation2 + $0x1d0] sm:$0xff] %v723_v32  ;;  %v8344_v40 = vpop.f32.mrb[60].mxu0  ;;  %v1270_v29 = vld [vmem:[#allocation3 + $0x9] sm:$0xff]  ;;  %v7029_v35 = vld [vmem:[%s14921_s3 + $0x138] sm:$0xff] }
 0x15e   :  { %v738_v41 = vadd.f32 %v8344_v40, %v11886_v37  ;;  %v732_v42 = vpop.f32.mrb[61].mxu0  ;;  %9924 = vmatpush3.bf16.msra.mxu1 %v9923_v31  ;;  %v7026_v31 = vld [vmem:[%s14921_s3 + $0x120] sm:$0xff]  ;;  %v7027_v32 = vld [vmem:[%s14921_s3 + $0x128] sm:$0xff]  ;;  %v1271_v36 = vld [vmem:[#allocation3 + $0x11] sm:$0xff] }
 0x15f   :  { %v980_v44 = vmax.f32 %v978_v38, %v979_v39  ;;  %v733_v45 = vadd.f32 %v11886_v37, %v732_v42  ;;  %9925 = vmatprep.subr.bf16.mxu1 %v11414_v12  ;;  %v9944_v33 = vpack.c.bf16 %v7027_v32, %v7026_v31  ;;  %v9947_v38 = vpack.c.bf16 %v7029_v35, %v7028_v34  ;;  %v7030_v39 = vld [vmem:[%s14921_s3 + $0x140] sm:$0xff]  ;;  %v7031_v40 = vld [vmem:[%s14921_s3 + $0x148] sm:$0xff] }
 0x160   :  { %812 = vst [vmem:[#allocation2 + $0x1e8] sm:$0xff] %v738_v41  ;;  %v1026_v48 = vld [vmem:[#allocation3 + $0xa0] sm:$0xff]  ;;  %v9950_v42 = vpack.c.bf16 %v7031_v40, %v7030_v39  ;;  %v7043_v31 = vld [vmem:[%s14921_s3 + $0x1a8] sm:$0xff]  ;;  %v12222_v39 = vld [vmem:[#allocation3 + $0x12] sm:$0xff] }
 0x161   :  { %981 = vst [vmem:[#allocation3 + $0xac] sm:$0xff] %v980_v44  ;;  %811 = vst [vmem:[#allocation2 + $0x1e0] sm:$0xff] %v733_v45  ;;  %v8347_v49 = vpop.f32.mrb[62].mxu0  ;;  %8441 = vmatmul.mubr.f32.gmra.mrb[6].mxu1 %v1026_v48  ;;  %v983_v50 = vld [vmem:[#allocation2 + $0x1c0] ss:$2 sm:$0xff]  ;;  %v7033_v44 = vld [vmem:[%s14921_s3 + $0x158] sm:$0xff] }
 0x162   :  { %v985_v51 = vld [vmem:[#allocation2 + $0x1c1] ss:$2 sm:$0xff]  ;;  %v748_v52 = vadd.f32 %v8347_v49, %v11886_v37  ;;  %v742_v53 = vpop.f32.mrb[63].mxu0  ;;  %8443 = vmatprep.mubr.msk.f32.mxu1 %vm11416_vm2, %v11415_v27  ;;  %9927 = vmatpush3.bf16.msra.mxu1 %v9926_v43  ;;  %v1272_v41 = vld [vmem:[#allocation3 + $0x19] sm:$0xff]  ;;  %v7032_v43 = vld [vmem:[%s14921_s3 + $0x150] sm:$0xff] }
 0x163   :  { %v743_v55 = vadd.f32 %v11886_v37, %v742_v53  ;;  %9928 = vmatprep.subr.bf16.mxu1 %v11414_v12  ;;  %v990_v61 = vmax.f32 %v983_v50, %v985_v51  ;;  %v1273_v45 = vld [vmem:[#allocation3 + $0x21] sm:$0xff]  ;;  %v9953_v46 = vpack.c.bf16 %v7033_v44, %v7032_v43  ;;  %v1274_v49 = vld [vmem:[#allocation3 + $0x29] sm:$0xff]  ;;  %v1275_v53 = vld [vmem:[#allocation3 + $0x31] sm:$0xff] }
 0x164   :  { %v987_v58 = vld [vmem:[#allocation2 + $0x1d0] ss:$2 sm:$0xff]  ;;  %v989_v60 = vld [vmem:[#allocation2 + $0x1d1] ss:$2 sm:$0xff]  ;;  %814 = vst [vmem:[#allocation2 + $0x1f8] sm:$0xff] %v748_v52  ;;  %v7035_v48 = vld [vmem:[%s14921_s3 + $0x168] sm:$0xff] }
 0x165   :  { %v991_v62 = vmax.f32 %v987_v58, %v989_v60  ;;  %813 = vst [vmem:[#allocation2 + $0x1f0] sm:$0xff] %v743_v55  ;;  %v1120_v63 = vpop.f32.mrb[64].mxu0  ;;  %v9956_v50 = vpack.c.bf16 %v7035_v48, %v7034_v47  ;;  %v7036_v51 = vld [vmem:[%s14921_s3 + $0x170] sm:$0xff]  ;;  %v7037_v52 = vld [vmem:[%s14921_s3 + $0x178] sm:$0xff]  ;;  %v1289_v5 = vld [vmem:[#allocation3 + $0xa1] sm:$0xff] }
 0x166   :  { %9930 = vmatpush3.bf16.msra.mxu1 %v9929_v54  ;;  %v1121_v37 = vadd.f32 %v11983_v59, %v1120_v63  ;;  %v8382_v1 = vpop.f32.mrb[65].mxu0  ;;  %v9959_v54 = vpack.c.bf16 %v7037_v52, %v7036_v51  ;;  %v1276_v55 = vld [vmem:[#allocation3 + $0x39] sm:$0xff]  ;;  %v1279_v58 = vld [vmem:[#allocation3 + $0x51] sm:$0xff] }
 0x167   :  { %v992_v2 = vmax.f32 %v990_v61, %v991_v62  ;;  %9931 = vmatprep.subr.bf16.mxu1 %v11414_v12  ;;  %v1280_v60 = vld [vmem:[#allocation3 + $0x59] sm:$0xff]  ;;  %v1281_v61 = vld [vmem:[#allocation3 + $0x61] sm:$0xff]  ;;  %v1282_v62 = vld [vmem:[#allocation3 + $0x69] sm:$0xff] }
 0x168   :  { %v995_v6 = vld [vmem:[#allocation2 + $0x1e0] ss:$2 sm:$0xff]  ;;  %v997_v7 = vld [vmem:[#allocation2 + $0x1e1] ss:$2 sm:$0xff]  ;;  %10682 = vst [vmem:[#allocation4] sm:$0xff] %v1121_v37  ;;  %v1283_v63 = vld [vmem:[#allocation3 + $0x71] sm:$0xff] }
 0x169   :  { %v1027_v8 = vld [vmem:[#allocation3 + $0xa8] sm:$0xff]  ;;  %993 = vst [vmem:[#allocation3 + $0xb6] sm:$0xff] %v992_v2  ;;  %v1125_v9 = vpop.f32.mrb[66].mxu0  ;;  %v1002_v14 = vmax.f32 %v995_v6, %v997_v7  ;;  %v1287_v2 = vld [vmem:[#allocation3 + $0x91] sm:$0xff]  ;;  %v12234_v44 = vld [vmem:[#allocation3 + $0x1a] sm:$0xff] }
 0x16a   :  { %8444 = vmatmul.mubr.f32.gmra.mrb[8].mxu1 %v1027_v8  ;;  %v1126_v11 = vadd.f32 %v11983_v59, %v1125_v9  ;;  %v8385_v13 = vpop.f32.mrb[67].mxu0  ;;  %v1285_v37 = vld [vmem:[#allocation3 + $0x81] sm:$0xff]  ;;  %v1286_v1 = vld [vmem:[#allocation3 + $0x89] sm:$0xff] }
 0x16b   :  { %8446 = vmatprep.mubr.msk.f32.mxu1 %vm11416_vm2, %v11415_v27  ;;  %9933 = vmatpush3.bf16.msra.mxu1 %v9932_v0  ;;  %v1284_v0 = vld [vmem:[#allocation3 + $0x79] sm:$0xff]  ;;  %v1290_v6 = vld [vmem:[#allocation3 + $0xa9] sm:$0xff] }
 0x16c   :  { %9934 = vmatprep.subr.bf16.mxu1 %v11414_v12  ;;  %v999_v15 = vld [vmem:[#allocation2 + $0x1f0] ss:$2 sm:$0xff]  ;;  %v1001_v16 = vld [vmem:[#allocation2 + $0x1f1] ss:$2 sm:$0xff]  ;;  %10686 = vst [vmem:[#allocation4 + $0x8] sm:$0xff] %v1126_v11  ;;  %v7050_v52 = vld [vmem:[%s14921_s3 + $0x1e0] sm:$0xff] }
 0x16d   :  { %v1003_v17 = vmax.f32 %v999_v15, %v1001_v16  ;;  %v7038_v16 = vld [vmem:[%s14921_s3 + $0x180] sm:$0xff]  ;;  %v7048_v48 = vld [vmem:[%s14921_s3 + $0x1d0] sm:$0xff] }
 0x16f   :  { %9936 = vmatpush3.bf16.msra.mxu1 %v9935_v10  ;;  %v1004_v18 = vmax.f32 %v1002_v14, %v1003_v17  ;;  %v7039_v17 = vld [vmem:[%s14921_s3 + $0x188] sm:$0xff] }
 0x170   :  { %9937 = vmatprep.subr.bf16.mxu1 %v11414_v12  ;;  %v1028_v19 = vld [vmem:[#allocation3 + $0xb0] sm:$0xff]  ;;  %v1029_v20 = vld [vmem:[#allocation3 + $0xb8] sm:$0xff] }
 0x171   :  { %8447 = vmatmul.mubr.f32.gmra.mrb[10].mxu1 %v1028_v19  ;;  %1005 = vst [vmem:[#allocation3 + $0xc0] sm:$0xff] %v1004_v18  ;;  %v1291_v8 = vld [vmem:[#allocation3 + $0xb1] sm:$0xff] }
 0x172   :  { %8449 = vmatprep.mubr.msk.f32.mxu1 %vm11416_vm2, %v11415_v27 }
 0x175   :  { %8450 = vmatmul.mubr.f32.gmra.mrb[12].mxu1 %v1029_v20 }
 0x176   :  { %8452 = vmatprep.mubr.msk.f32.mxu1 %vm11416_vm2, %v11415_v27  ;;  %v7024_v27 = vld [vmem:[%s14921_s3 + $0x110] sm:$0xff] }
 0x177   :  { %v9941_v30 = vpack.c.bf16 %v7025_v28, %v7024_v27  ;;  %v7041_v27 = vld [vmem:[%s14921_s3 + $0x198] sm:$0xff]  ;;  %v12202_v28 = vld [vmem:[#allocation3 + $0xa] sm:$0xff] }
 0x178   :  { %v1292_v13 = vld [vmem:[#allocation3 + $0xb9] sm:$0xff]  ;;  %v1293_v19 = vld [vmem:[#allocation3 + $0xc1] sm:$0xff] }
 0x179   :  { %8453 = vmatmul.mubr.f32.gmra.mrb[14].mxu1 %v1004_v18 }
 0x17a   :  { %8487 = vmatprep.mubr.msk.f32.mxu1 %vm11416_vm2, %v12081_v24 }
 0x17d   :  { %8488 = vmatmul.mubr.f32.vlgmr.msra.gmra.mrb[16].mxu1 %v1269_v25  ;;  %v9962_v25 = vpack.c.bf16 %v7039_v17, %v7038_v16 }
 0x17e   :  { %9939 = vmatpush3.bf16.msra.mxu1 %v9938_v26  ;;  %8490 = vmatprep.mubr.msk.f32.mxu1 %vm11416_vm2, %v12081_v24  ;;  %v7040_v26 = vld [vmem:[%s14921_s3 + $0x190] sm:$0xff] }
 0x17f   :  { %9940 = vmatprep.subr.bf16.mxu1 %v11414_v12 }
 0x181   :  { %8491 = vmatmul.mubr.f32.gmra.mrb[18].mxu1 %v1270_v29  ;;  %v9965_v29 = vpack.c.bf16 %v7041_v27, %v7040_v26 }
 0x182   :  { %8493 = vmatprep.mubr.msk.f32.mxu1 %vm11416_vm2, %v12081_v24  ;;  %9942 = vmatpush3.bf16.msra.mxu1 %v9941_v30  ;;  %v7042_v30 = vld [vmem:[%s14921_s3 + $0x1a0] sm:$0xff] }
 0x183   :  { %9943 = vmatprep.subr.bf16.mxu1 %v11414_v12  ;;  %v9968_v35 = vpack.c.bf16 %v7043_v31, %v7042_v30 }
 0x185   :  { %8494 = vmatmul.mubr.f32.gmra.mrb[20].mxu1 %v1271_v36  ;;  %v7044_v36 = vld [vmem:[%s14921_s3 + $0x1b0] sm:$0xff] }
 0x186   :  { %8496 = vmatprep.mubr.msk.f32.mxu1 %vm11416_vm2, %v12081_v24  ;;  %9945 = vmatpush3.bf16.msra.mxu1 %v9944_v33 }
 0x187   :  { %9946 = vmatprep.subr.bf16.mxu1 %v11414_v12 }
 0x189   :  { %8497 = vmatmul.mubr.f32.gmra.mrb[22].mxu1 %v1272_v41  ;;  %v7046_v41 = vld [vmem:[%s14921_s3 + $0x1c0] sm:$0xff] }
 0x18a   :  { %8499 = vmatprep.mubr.msk.f32.mxu1 %vm11416_vm2, %v12081_v24  ;;  %9948 = vmatpush3.bf16.msra.mxu1 %v9947_v38  ;;  %v7045_v38 = vld [vmem:[%s14921_s3 + $0x1b8] sm:$0xff] }
 0x18b   :  { %9949 = vmatprep.subr.bf16.mxu1 %v11414_v12  ;;  %v9971_v40 = vpack.c.bf16 %v7045_v38, %v7044_v36  ;;  %v12330_v38 = vld [vmem:[#allocation3 + $0x82] sm:$0xff] }
 0x18d   :  { %8500 = vmatmul.mubr.f32.gmra.mrb[24].mxu1 %v1273_v45 }
 0x18e   :  { %8502 = vmatprep.mubr.msk.f32.mxu1 %vm11416_vm2, %v12081_v24  ;;  %9951 = vmatpush3.bf16.msra.mxu1 %v9950_v42  ;;  %v7047_v42 = vld [vmem:[%s14921_s3 + $0x1c8] sm:$0xff] }
 0x18f   :  { %9952 = vmatprep.subr.bf16.mxu1 %v11414_v12  ;;  %v9974_v47 = vpack.c.bf16 %v7047_v42, %v7046_v41  ;;  %v12336_v42 = vld [vmem:[#allocation3 + $0x8a] sm:$0xff] }
 0x191   :  { %8503 = vmatmul.mubr.f32.gmra.mrb[26].mxu1 %v1274_v49  ;;  %v7049_v49 = vld [vmem:[%s14921_s3 + $0x1d8] sm:$0xff] }
 0x192   :  { %8505 = vmatprep.mubr.msk.f32.mxu1 %vm11416_vm2, %v12081_v24  ;;  %9954 = vmatpush3.bf16.msra.mxu1 %v9953_v46  ;;  %v9977_v51 = vpack.c.bf16 %v7049_v49, %v7048_v48  ;;  %v12375_v48 = vld [vmem:[#allocation3 + $0xc2] sm:$0xff] }
 0x193   :  { %9955 = vmatprep.subr.bf16.mxu1 %v11414_v12 }
 0x195   :  { %8506 = vmatmul.mubr.f32.gmra.mrb[28].mxu1 %v1275_v53  ;;  %v7051_v53 = vld [vmem:[%s14921_s3 + $0x1e8] sm:$0xff] }
 0x196   :  { %8508 = vmatprep.mubr.msk.f32.mxu1 %vm11416_vm2, %v12081_v24  ;;  %9957 = vmatpush3.bf16.msra.mxu1 %v9956_v50  ;;  %v12247_v50 = vld [vmem:[#allocation3 + $0x22] sm:$0xff] }
 0x197   :  { %9958 = vmatprep.subr.bf16.mxu1 %v11414_v12 }
 0x199   :  { %8509 = vmatmul.mubr.f32.gmra.mrb[30].mxu1 %v1276_v55  ;;  %v12259_v55 = vld [vmem:[#allocation3 + $0x2a] sm:$0xff] }
 0x19a   :  { %8511 = vmatprep.mubr.msk.f32.mxu1 %vm11416_vm2, %v12081_v24  ;;  %9960 = vmatpush3.bf16.msra.mxu1 %v9959_v54 }
 0x19b   :  { %9961 = vmatprep.subr.bf16.mxu1 %v11414_v12 }
 0x19d   :  { %8512 = vmatmul.mubr.f32.gmra.mrb[32].mxu1 %v1277_v56 }
 0x19e   :  { %8514 = vmatprep.mubr.msk.f32.mxu1 %vm11416_vm2, %v12081_v24 }
 0x1a1   :  { %8515 = vmatmul.mubr.f32.gmra.mrb[34].mxu1 %v1278_v57 }
 0x1a2   :  { %8517 = vmatprep.mubr.msk.f32.mxu1 %vm11416_vm2, %v12081_v24 }
 0x1a5   :  { %8518 = vmatmul.mubr.f32.gmra.mrb[36].mxu1 %v1279_v58  ;;  %v9980_v58 = vpack.c.bf16 %v7051_v53, %v7050_v52  ;;  %v7057_v52 = vld [vmem:[%s14921_s3 + $0x218] sm:$0xff] }
 0x1a6   :  { %8520 = vmatprep.mubr.msk.f32.mxu1 %vm11416_vm2, %v12081_v24 }
 0x1a9   :  { %8521 = vmatmul.mubr.f32.gmra.mrb[38].mxu1 %v1280_v60  ;;  %v7052_v60 = vld [vmem:[%s14921_s3 + $0x1f0] sm:$0xff] }
 0x1aa   :  { %8523 = vmatprep.mubr.msk.f32.mxu1 %vm11416_vm2, %v12081_v24 }
 0x1ad   :  { %8524 = vmatmul.mubr.f32.gmra.mrb[40].mxu1 %v1281_v61  ;;  %v7053_v61 = vld [vmem:[%s14921_s3 + $0x1f8] sm:$0xff] }
 0x1ae   :  { %8526 = vmatprep.mubr.msk.f32.mxu1 %vm11416_vm2, %v12081_v24 }
 0x1b1   :  { %8527 = vmatmul.mubr.f32.gmra.mrb[42].mxu1 %v1282_v62 }
 0x1b2   :  { %8529 = vmatprep.mubr.msk.f32.mxu1 %vm11416_vm2, %v12081_v24 }
 0x1b5   :  { %8530 = vmatmul.mubr.f32.gmra.mrb[44].mxu1 %v1283_v63  ;;  %v12272_v63 = vld [vmem:[#allocation3 + $0x32] sm:$0xff] }
 0x1b6   :  { %8532 = vmatprep.mubr.msk.f32.mxu1 %vm11416_vm2, %v12081_v24 }
 0x1b9   :  { %8533 = vmatmul.mubr.f32.gmra.mrb[46].mxu1 %v1284_v0 }
 0x1ba   :  { %8535 = vmatprep.mubr.msk.f32.mxu1 %vm11416_vm2, %v12081_v24 }
 0x1bd   :  { %8536 = vmatmul.mubr.f32.gmra.mrb[48].mxu1 %v1285_v37 }
 0x1be   :  { %8538 = vmatprep.mubr.msk.f32.mxu1 %vm11416_vm2, %v12081_v24 }
 0x1c1   :  { %8539 = vmatmul.mubr.f32.gmra.mrb[0].mxu1 %v1286_v1  ;;  %v9983_v1 = vpack.c.bf16 %v7053_v61, %v7052_v60  ;;  %v7062_v60 = vld [vmem:[%s14921_s3 + $0x240] sm:$0xff]  ;;  %v7063_v61 = vld [vmem:[%s14921_s3 + $0x248] sm:$0xff] }
 0x1c2   :  { %8541 = vmatprep.mubr.msk.f32.mxu1 %vm11416_vm2, %v12081_v24 }
 0x1c5   :  { %8542 = vmatmul.mubr.f32.gmra.mrb[2].mxu1 %v1287_v2 }
 0x1c6   :  { %8544 = vmatprep.mubr.msk.f32.mxu1 %vm11416_vm2, %v12081_v24 }
 0x1c9   :  { %8545 = vmatmul.mubr.f32.gmra.mrb[4].mxu1 %v1288_v3  ;;  %v12279_v3 = vld [vmem:[#allocation3 + $0x3a] sm:$0xff] }
 0x1ca   :  { %8547 = vmatprep.mubr.msk.f32.mxu1 %vm11416_vm2, %v12081_v24 }
 0x1cd   :  { %8548 = vmatmul.mubr.f32.gmra.mrb[6].mxu1 %v1289_v5 }
 0x1ce   :  { %8550 = vmatprep.mubr.msk.f32.mxu1 %vm11416_vm2, %v12081_v24 }
 0x1d1   :  { %8551 = vmatmul.mubr.f32.gmra.mrb[8].mxu1 %v1290_v6 }
 0x1d2   :  { %8553 = vmatprep.mubr.msk.f32.mxu1 %vm11416_vm2, %v12081_v24 }
 0x1d4   :  { %v1130_v7 = vpop.f32.mrb[68].mxu0 }
 0x1d5   :  { %v1131_v9 = vadd.f32 %v11983_v59, %v1130_v7  ;;  %v8388_v10 = vpop.f32.mrb[69].mxu0  ;;  %8554 = vmatmul.mubr.f32.gmra.mrb[10].mxu1 %v1291_v8  ;;  %v12286_v7 = vld [vmem:[#allocation3 + $0x42] sm:$0xff] }
 0x1d6   :  { %8556 = vmatprep.mubr.msk.f32.mxu1 %vm11416_vm2, %v12081_v24 }
 0x1d7   :  { %10690 = vst [vmem:[#allocation4 + $0x10] sm:$0xff] %v1131_v9  ;;  %v12291_v9 = vld [vmem:[#allocation3 + $0x4a] sm:$0xff] }
 0x1d8   :  { %v1135_v11 = vpop.f32.mrb[70].mxu0 }
 0x1d9   :  { %v1136_v14 = vadd.f32 %v11983_v59, %v1135_v11  ;;  %v8391_v15 = vpop.f32.mrb[71].mxu0  ;;  %8557 = vmatmul.mubr.f32.gmra.mrb[12].mxu1 %v1292_v13  ;;  %v12297_v13 = vld [vmem:[#allocation3 + $0x52] sm:$0xff] }
 0x1da   :  { %8559 = vmatprep.mubr.msk.f32.mxu1 %vm11416_vm2, %v12081_v24  ;;  %v12302_v15 = vld [vmem:[#allocation3 + $0x5a] sm:$0xff] }
 0x1db   :  { %10694 = vst [vmem:[#allocation4 + $0x18] sm:$0xff] %v1136_v14 }
 0x1dc   :  { %v1140_v18 = vpop.f32.mrb[72].mxu0 }
 0x1dd   :  { %v1141_v20 = vadd.f32 %v11983_v59, %v1140_v18  ;;  %v8394_v22 = vpop.f32.mrb[73].mxu0  ;;  %8560 = vmatmul.mubr.f32.gmra.mrb[14].mxu1 %v1293_v19  ;;  %v12308_v19 = vld [vmem:[#allocation3 + $0x62] sm:$0xff] }
 0x1de   :  { %8594 = vmatprep.mubr.msk.f32.mxu1 %vm11416_vm2, %v12081_v24 }
 0x1df   :  { %10698 = vst [vmem:[#allocation4 + $0x20] sm:$0xff] %v1141_v20 }
 0x1e1   :  { %8595 = vmatmul.mubr.f32.vlgmr.msra.gmra.mrb[16].mxu1 %v1576_v23  ;;  %v12314_v23 = vld [vmem:[#allocation3 + $0x6a] sm:$0xff] }
 0x1e2   :  { %9963 = vmatpush3.bf16.msra.mxu1 %v9962_v25  ;;  %8597 = vmatprep.mubr.msk.f32.mxu1 %vm11416_vm2, %v12081_v24 }
 0x1e3   :  { %9964 = vmatprep.subr.bf16.mxu1 %v11414_v12 }
 0x1e4   :  { %v1145_v32 = vpop.f32.mrb[74].mxu0 }
 0x1e5   :  { %v1146_v33 = vadd.f32 %v11983_v59, %v1145_v32  ;;  %v8397_v34 = vpop.f32.mrb[75].mxu0  ;;  %8598 = vmatmul.mubr.f32.gmra.mrb[18].mxu1 %v12202_v28 }
 0x1e6   :  { %8600 = vmatprep.mubr.msk.f32.mxu1 %vm11416_vm2, %v12081_v24  ;;  %9966 = vmatpush3.bf16.msra.mxu1 %v9965_v29  ;;  %v12320_v29 = vld [vmem:[#allocation3 + $0x72] sm:$0xff] }
 0x1e7   :  { %10702 = vst [vmem:[#allocation4 + $0x28] sm:$0xff] %v1146_v33  ;;  %9967 = vmatprep.subr.bf16.mxu1 %v11414_v12 }
 0x1e9   :  { %8601 = vmatmul.mubr.f32.gmra.mrb[20].mxu1 %v12222_v39 }
 0x1ea   :  { %8603 = vmatprep.mubr.msk.f32.mxu1 %vm11416_vm2, %v12081_v24  ;;  %9969 = vmatpush3.bf16.msra.mxu1 %v9968_v35 }
 0x1eb   :  { %9970 = vmatprep.subr.bf16.mxu1 %v11414_v12 }
 0x1ec   :  { %v1150_v43 = vpop.f32.mrb[76].mxu0 }
 0x1ed   :  { %v1151_v45 = vadd.f32 %v11983_v59, %v1150_v43  ;;  %v8400_v46 = vpop.f32.mrb[77].mxu0  ;;  %8604 = vmatmul.mubr.f32.gmra.mrb[22].mxu1 %v12234_v44  ;;  %v12354_v43 = vld [vmem:[#allocation3 + $0xaa] sm:$0xff] }
 0x1ee   :  { %8606 = vmatprep.mubr.msk.f32.mxu1 %vm11416_vm2, %v12081_v24  ;;  %9972 = vmatpush3.bf16.msra.mxu1 %v9971_v40  ;;  %v12364_v46 = vld [vmem:[#allocation3 + $0xba] sm:$0xff] }
 0x1ef   :  { %10706 = vst [vmem:[#allocation4 + $0x30] sm:$0xff] %v1151_v45  ;;  %9973 = vmatprep.subr.bf16.mxu1 %v11414_v12  ;;  %v12359_v45 = vld [vmem:[#allocation3 + $0xb2] sm:$0xff] }
 0x1f1   :  { %8607 = vmatmul.mubr.f32.gmra.mrb[24].mxu1 %v12247_v50 }
 0x1f2   :  { %8609 = vmatprep.mubr.msk.f32.mxu1 %vm11416_vm2, %v12081_v24  ;;  %9975 = vmatpush3.bf16.msra.mxu1 %v9974_v47  ;;  %v7055_v47 = vld [vmem:[%s14921_s3 + $0x208] sm:$0xff] }
 0x1f3   :  { %9976 = vmatprep.subr.bf16.mxu1 %v11414_v12 }
 0x1f4   :  { %v1155_v54 = vpop.f32.mrb[78].mxu0 }
 0x1f5   :  { %v1156_v56 = vadd.f32 %v11983_v59, %v1155_v54  ;;  %v8403_v57 = vpop.f32.mrb[79].mxu0  ;;  %8610 = vmatmul.mubr.f32.gmra.mrb[26].mxu1 %v12259_v55  ;;  %v7058_v54 = vld [vmem:[%s14921_s3 + $0x220] sm:$0xff] }
 0x1f6   :  { %8612 = vmatprep.mubr.msk.f32.mxu1 %vm11416_vm2, %v12081_v24  ;;  %9978 = vmatpush3.bf16.msra.mxu1 %v9977_v51  ;;  %v7056_v51 = vld [vmem:[%s14921_s3 + $0x210] sm:$0xff] }
 0x1f7   :  { %10710 = vst [vmem:[#allocation4 + $0x38] sm:$0xff] %v1156_v56  ;;  %9979 = vmatprep.subr.bf16.mxu1 %v11414_v12  ;;  %v9989_v53 = vpack.c.bf16 %v7057_v52, %v7056_v51  ;;  %v7059_v56 = vld [vmem:[%s14921_s3 + $0x228] sm:$0xff]  ;;  %v7060_v57 = vld [vmem:[%s14921_s3 + $0x230] sm:$0xff]  ;;  %v2204_v51 = vld [vmem:[#allocation3 + $0x7b] sm:$0xff] }
 0x1f8   :  { %v1160_v62 = vpop.f32.mrb[80].mxu0  ;;  %v2205_v52 = vld [vmem:[#allocation3 + $0x83] sm:$0xff] }
 0x1f9   :  { %v1161_v0 = vadd.f32 %v11983_v59, %v1160_v62  ;;  %v8406_v37 = vpop.f32.mrb[81].mxu0  ;;  %8613 = vmatmul.mubr.f32.gmra.mrb[28].mxu1 %v12272_v63  ;;  %v7064_v62 = vld [vmem:[%s14921_s3 + $0x250] sm:$0xff] }
 0x1fa   :  { %8615 = vmatprep.mubr.msk.f32.mxu1 %vm11416_vm2, %v12081_v24  ;;  %9981 = vmatpush3.bf16.msra.mxu1 %v9980_v58  ;;  %v7061_v58 = vld [vmem:[%s14921_s3 + $0x238] sm:$0xff]  ;;  %v7066_v37 = vld [vmem:[%s14921_s3 + $0x260] sm:$0xff] }
 0x1fb   :  { %10714 = vst [vmem:[#allocation4 + $0x40] sm:$0xff] %v1161_v0  ;;  %9982 = vmatprep.subr.bf16.mxu1 %v11414_v12  ;;  %v7065_v0 = vld [vmem:[%s14921_s3 + $0x258] sm:$0xff] }
 0x1fc   :  { %v1165_v2 = vpop.f32.mrb[82].mxu0 }
 0x1fd   :  { %v1166_v5 = vadd.f32 %v11983_v59, %v1165_v2  ;;  %v8409_v6 = vpop.f32.mrb[83].mxu0  ;;  %8616 = vmatmul.mubr.f32.gmra.mrb[30].mxu1 %v12279_v3  ;;  %v7068_v2 = vld [vmem:[%s14921_s3 + $0x270] sm:$0xff] }
 0x1fe   :  { %8618 = vmatprep.mubr.msk.f32.mxu1 %vm11416_vm2, %v12081_v24  ;;  %9984 = vmatpush3.bf16.msra.mxu1 %v9983_v1  ;;  %v7067_v1 = vld [vmem:[%s14921_s3 + $0x268] sm:$0xff] }
 0x1ff   :  { %10718 = vst [vmem:[#allocation4 + $0x48] sm:$0xff] %v1166_v5  ;;  %9985 = vmatprep.subr.bf16.mxu1 %v11414_v12  ;;  %v7069_v5 = vld [vmem:[%s14921_s3 + $0x278] sm:$0xff]  ;;  %v1902_v6 = vld [vmem:[#allocation3 + $0xa2] sm:$0xff] }
 0x201   :  { %8619 = vmatmul.mubr.f32.gmra.mrb[32].mxu1 %v12286_v7 }
 0x202   :  { %8621 = vmatprep.mubr.msk.f32.mxu1 %vm11416_vm2, %v12081_v24 }
 0x204   :  { %v1170_v8 = vpop.f32.mrb[84].mxu0 }
 0x205   :  { %v1171_v10 = vadd.f32 %v11983_v59, %v1170_v8  ;;  %v8412_v11 = vpop.f32.mrb[85].mxu0  ;;  %8622 = vmatmul.mubr.f32.gmra.mrb[34].mxu1 %v12291_v9  ;;  %v7070_v8 = vld [vmem:[%s14921_s3 + $0x280] sm:$0xff] }
 0x206   :  { %8624 = vmatprep.mubr.msk.f32.mxu1 %vm11416_vm2, %v12081_v24 }
 0x207   :  { %10722 = vst [vmem:[#allocation4 + $0x50] sm:$0xff] %v1171_v10  ;;  %v2190_v10 = vld [vmem:[#allocation3 + $0xb] sm:$0xff] }
 0x209   :  { %8625 = vmatmul.mubr.f32.gmra.mrb[36].mxu1 %v12297_v13 }
 0x20a   :  { %8627 = vmatprep.mubr.msk.f32.mxu1 %vm11416_vm2, %v12081_v24 }
 0x20c   :  { %v1175_v14 = vpop.f32.mrb[86].mxu0 }
 0x20d   :  { %v1176_v16 = vadd.f32 %v11983_v59, %v1175_v14  ;;  %v8415_v17 = vpop.f32.mrb[87].mxu0  ;;  %8628 = vmatmul.mubr.f32.gmra.mrb[38].mxu1 %v12302_v15  ;;  %v7073_v14 = vld [vmem:[%s14921_s3 + $0x298] sm:$0xff] }
 0x20e   :  { %8630 = vmatprep.mubr.msk.f32.mxu1 %vm11416_vm2, %v12081_v24  ;;  %v7075_v17 = vld [vmem:[%s14921_s3 + $0x2a8] sm:$0xff] }
 0x20f   :  { %10726 = vst [vmem:[#allocation4 + $0x58] sm:$0xff] %v1176_v16  ;;  %v7074_v16 = vld [vmem:[%s14921_s3 + $0x2a0] sm:$0xff] }
 0x210   :  { %v1180_v18 = vpop.f32.mrb[88].mxu0 }
 0x211   :  { %v1181_v20 = vadd.f32 %v11983_v59, %v1180_v18  ;;  %v8418_v22 = vpop.f32.mrb[89].mxu0  ;;  %8631 = vmatmul.mubr.f32.gmra.mrb[40].mxu1 %v12308_v19  ;;  %v2191_v18 = vld [vmem:[#allocation3 + $0x13] sm:$0xff] }
 0x212   :  { %8633 = vmatprep.mubr.msk.f32.mxu1 %vm11416_vm2, %v12081_v24  ;;  %v7077_v22 = vld [vmem:[%s14921_s3 + $0x2b8] sm:$0xff] }
 0x213   :  { %10730 = vst [vmem:[#allocation4 + $0x60] sm:$0xff] %v1181_v20  ;;  %v7076_v20 = vld [vmem:[%s14921_s3 + $0x2b0] sm:$0xff] }
 0x214   :  { %v1185_v25 = vpop.f32.mrb[90].mxu0 }
 0x215   :  { %8634 = vmatmul.mubr.f32.gmra.mrb[42].mxu1 %v12314_v23  ;;  %v1186_v26 = vadd.f32 %v11983_v59, %v1185_v25  ;;  %v8421_v27 = vpop.f32.mrb[91].mxu0  ;;  %v10019_v25 = vpack.c.bf16 %v7077_v22, %v7076_v20  ;;  %v7099_v20 = vld [vmem:[%s14921_s3 + $0x368] sm:$0xff]  ;;  %v12679_v22 = vld [vmem:[#allocation3 + $0x34] sm:$0xff] }
 0x216   :  { %8636 = vmatprep.mubr.msk.f32.mxu1 %vm11416_vm2, %v12081_v24  ;;  %v7079_v27 = vld [vmem:[%s14921_s3 + $0x2c8] sm:$0xff] }
 0x217   :  { %10734 = vst [vmem:[#allocation4 + $0x68] sm:$0xff] %v1186_v26  ;;  %v7078_v26 = vld [vmem:[%s14921_s3 + $0x2c0] sm:$0xff] }
 0x218   :  { %v1190_v30 = vpop.f32.mrb[92].mxu0 }
 0x219   :  { %8637 = vmatmul.mubr.f32.gmra.mrb[44].mxu1 %v12320_v29  ;;  %v1191_v31 = vadd.f32 %v11983_v59, %v1190_v30  ;;  %v8424_v32 = vpop.f32.mrb[93].mxu0  ;;  %v10022_v30 = vpack.c.bf16 %v7079_v27, %v7078_v26  ;;  %v7101_v26 = vld [vmem:[%s14921_s3 + $0x378] sm:$0xff] }
 0x21a   :  { %8639 = vmatprep.mubr.msk.f32.mxu1 %vm11416_vm2, %v12081_v24  ;;  %v7081_v32 = vld [vmem:[%s14921_s3 + $0x2d8] sm:$0xff] }
 0x21b   :  { %10738 = vst [vmem:[#allocation4 + $0x70] sm:$0xff] %v1191_v31  ;;  %v7080_v31 = vld [vmem:[%s14921_s3 + $0x2d0] sm:$0xff]  ;;  %v12691_v27 = vld [vmem:[#allocation3 + $0x3c] sm:$0xff] }
 0x21c   :  { %v1195_v33 = vpop.f32.mrb[94].mxu0 }
 0x21d   :  { %v1196_v34 = vadd.f32 %v11983_v59, %v1195_v33  ;;  %v8427_v35 = vpop.f32.mrb[95].mxu0  ;;  %8640 = vmatmul.mubr.f32.gmra.mrb[46].mxu1 %v11947_v4  ;;  %v12341_v4 = vld [vmem:[#allocation3 + $0x92] sm:$0xff] }
 0x21e   :  { %8642 = vmatprep.mubr.msk.f32.mxu1 %vm11416_vm2, %v12081_v24  ;;  %v2194_v33 = vld [vmem:[#allocation3 + $0x2b] sm:$0xff]  ;;  %v7082_v35 = vld [vmem:[%s14921_s3 + $0x2e0] sm:$0xff] }
 0x21f   :  { %10742 = vst [vmem:[#allocation4 + $0x78] sm:$0xff] %v1196_v34  ;;  %v10025_v34 = vpack.c.bf16 %v7081_v32, %v7080_v31  ;;  %v12703_v31 = vld [vmem:[#allocation3 + $0x4c] sm:$0xff]  ;;  %v12708_v32 = vld [vmem:[#allocation3 + $0x54] sm:$0xff] }
 0x220   :  { %v1200_v36 = vpop.f32.mrb[96].mxu0 }
 0x221   :  { %v1201_v40 = vadd.f32 %v11983_v59, %v1200_v36  ;;  %v8430_v41 = vpop.f32.mrb[97].mxu0  ;;  %8643 = vmatmul.mubr.f32.gmra.mrb[48].mxu1 %v12330_v38  ;;  %v12346_v59 = vld [vmem:[#allocation3 + $0x9a] sm:$0xff]  ;;  %v7083_v36 = vld [vmem:[%s14921_s3 + $0x2e8] sm:$0xff] }
 0x222   :  { %8645 = vmatprep.mubr.msk.f32.mxu1 %vm11416_vm2, %v12081_v24  ;;  %v7084_v41 = vld [vmem:[%s14921_s3 + $0x2f0] sm:$0xff] }
 0x223   :  { %10746 = vst [vmem:[#allocation4 + $0x80] sm:$0xff] %v1201_v40  ;;  %v10028_v40 = vpack.c.bf16 %v7083_v36, %v7082_v35  ;;  %v12723_v35 = vld [vmem:[#allocation3 + $0x6c] sm:$0xff]  ;;  %v12728_v36 = vld [vmem:[#allocation3 + $0x74] sm:$0xff] }
 0x225   :  { %8646 = vmatmul.mubr.f32.gmra.mrb[0].mxu1 %v12336_v42 }
 0x226   :  { %8648 = vmatprep.mubr.msk.f32.mxu1 %vm11416_vm2, %v12081_v24 }
 0x229   :  { %8649 = vmatmul.mubr.f32.gmra.mrb[2].mxu1 %v12341_v4 }
 0x22a   :  { %8651 = vmatprep.mubr.msk.f32.mxu1 %vm11416_vm2, %v12081_v24 }
 0x22d   :  { %8652 = vmatmul.mubr.f32.gmra.mrb[4].mxu1 %v12346_v59 }
 0x22e   :  { %8654 = vmatprep.mubr.msk.f32.mxu1 %vm11416_vm2, %v12081_v24 }
 0x231   :  { %8655 = vmatmul.mubr.f32.gmra.mrb[6].mxu1 %v12016_v21  ;;  %v7054_v21 = vld [vmem:[%s14921_s3 + $0x200] sm:$0xff] }
 0x232   :  { %8657 = vmatprep.mubr.msk.f32.mxu1 %vm11416_vm2, %v12081_v24  ;;  %v9986_v49 = vpack.c.bf16 %v7055_v47, %v7054_v21  ;;  %v2200_v21 = vld [vmem:[#allocation3 + $0x5b] sm:$0xff]  ;;  %v2201_v47 = vld [vmem:[#allocation3 + $0x63] sm:$0xff] }
 0x235   :  { %8658 = vmatmul.mubr.f32.gmra.mrb[8].mxu1 %v12354_v43 }
 0x236   :  { %8660 = vmatprep.mubr.msk.f32.mxu1 %vm11416_vm2, %v12081_v24 }
 0x239   :  { %8661 = vmatmul.mubr.f32.gmra.mrb[10].mxu1 %v12359_v45 }
 0x23a   :  { %8663 = vmatprep.mubr.msk.f32.mxu1 %vm11416_vm2, %v12081_v24 }
 0x23d   :  { %8664 = vmatmul.mubr.f32.gmra.mrb[12].mxu1 %v12364_v46 }
 0x23e   :  { %8666 = vmatprep.mubr.msk.f32.mxu1 %vm11416_vm2, %v12081_v24 }
 0x241   :  { %8667 = vmatmul.mubr.f32.gmra.mrb[14].mxu1 %v12375_v48 }
 0x242   :  { %8701 = vmatprep.mubr.msk.f32.mxu1 %vm11416_vm2, %v12081_v24 }
 0x245   :  { %8702 = vmatmul.mubr.f32.vlgmr.msra.gmra.mrb[16].mxu1 %v12202_v28  ;;  %v9992_v28 = vpack.c.bf16 %v7059_v56, %v7058_v54  ;;  %v2207_v54 = vld [vmem:[#allocation3 + $0x93] sm:$0xff]  ;;  %v2208_v56 = vld [vmem:[#allocation3 + $0x9b] sm:$0xff] }
 0x246   :  { %9987 = vmatpush3.bf16.msra.mxu1 %v9986_v49  ;;  %8704 = vmatprep.mubr.msk.f32.mxu1 %vm11416_vm2, %v12081_v24  ;;  %v2203_v49 = vld [vmem:[#allocation3 + $0x73] sm:$0xff] }
 0x247   :  { %9988 = vmatprep.subr.bf16.mxu1 %v11414_v12 }
 0x249   :  { %8705 = vmatmul.mubr.f32.gmra.mrb[18].mxu1 %v12222_v39  ;;  %v9995_v39 = vpack.c.bf16 %v7061_v58, %v7060_v57  ;;  %v2210_v57 = vld [vmem:[#allocation3 + $0xab] sm:$0xff]  ;;  %v2211_v58 = vld [vmem:[#allocation3 + $0xb3] sm:$0xff] }
 0x24a   :  { %8707 = vmatprep.mubr.msk.f32.mxu1 %vm11416_vm2, %v12081_v24  ;;  %9990 = vmatpush3.bf16.msra.mxu1 %v9989_v53  ;;  %v2206_v53 = vld [vmem:[#allocation3 + $0x8b] sm:$0xff] }
 0x24b   :  { %9991 = vmatprep.subr.bf16.mxu1 %v11414_v12 }
 0x24d   :  { %8708 = vmatmul.mubr.f32.gmra.mrb[20].mxu1 %v12234_v44  ;;  %v9998_v44 = vpack.c.bf16 %v7063_v61, %v7062_v60  ;;  %v2213_v60 = vld [vmem:[#allocation3 + $0xc3] sm:$0xff]  ;;  %v2214_v61 = vld [vmem:[#allocation3 + $0xcb] sm:$0xff] }
 0x24e   :  { %8710 = vmatprep.mubr.msk.f32.mxu1 %vm11416_vm2, %v12081_v24  ;;  %9993 = vmatpush3.bf16.msra.mxu1 %v9992_v28  ;;  %v2209_v28 = vld [vmem:[#allocation3 + $0xa3] sm:$0xff] }
 0x24f   :  { %9994 = vmatprep.subr.bf16.mxu1 %v11414_v12 }
 0x251   :  { %8711 = vmatmul.mubr.f32.gmra.mrb[22].mxu1 %v12247_v50  ;;  %v10001_v50 = vpack.c.bf16 %v7065_v0, %v7064_v62  ;;  %v7087_v62 = vld [vmem:[%s14921_s3 + $0x308] sm:$0xff] }
 0x252   :  { %8713 = vmatprep.mubr.msk.f32.mxu1 %vm11416_vm2, %v12081_v24  ;;  %9996 = vmatpush3.bf16.msra.mxu1 %v9995_v39  ;;  %v2212_v39 = vld [vmem:[#allocation3 + $0xbb] sm:$0xff]  ;;  %v2497_v0 = vld [vmem:[#allocation3 + $0xc] sm:$0xff] }
 0x253   :  { %9997 = vmatprep.subr.bf16.mxu1 %v11414_v12 }
 0x255   :  { %8714 = vmatmul.mubr.f32.gmra.mrb[24].mxu1 %v12259_v55  ;;  %v10004_v55 = vpack.c.bf16 %v7067_v1, %v7066_v37  ;;  %v7088_v37 = vld [vmem:[%s14921_s3 + $0x310] sm:$0xff]  ;;  %v7089_v1 = vld [vmem:[%s14921_s3 + $0x318] sm:$0xff] }
 0x256   :  { %8716 = vmatprep.mubr.msk.f32.mxu1 %vm11416_vm2, %v12081_v24  ;;  %9999 = vmatpush3.bf16.msra.mxu1 %v9998_v44  ;;  %v7086_v44 = vld [vmem:[%s14921_s3 + $0x300] sm:$0xff] }
 0x257   :  { %10000 = vmatprep.subr.bf16.mxu1 %v11414_v12 }
 0x259   :  { %8717 = vmatmul.mubr.f32.gmra.mrb[26].mxu1 %v12272_v63  ;;  %v10007_v63 = vpack.c.bf16 %v7069_v5, %v7068_v2  ;;  %v7090_v2 = vld [vmem:[%s14921_s3 + $0x320] sm:$0xff]  ;;  %v7091_v5 = vld [vmem:[%s14921_s3 + $0x328] sm:$0xff] }
 0x25a   :  { %8719 = vmatprep.mubr.msk.f32.mxu1 %vm11416_vm2, %v12081_v24  ;;  %10002 = vmatpush3.bf16.msra.mxu1 %v10001_v50  ;;  %v10034_v50 = vpack.c.bf16 %v7087_v62, %v7086_v44  ;;  %v7111_v44 = vld [vmem:[%s14921_s3 + $0x3c8] sm:$0xff] }
 0x25b   :  { %10003 = vmatprep.subr.bf16.mxu1 %v11414_v12 }
 0x25d   :  { %8720 = vmatmul.mubr.f32.gmra.mrb[28].mxu1 %v12279_v3  ;;  %v1897_v3 = vld [vmem:[#allocation3 + $0x7a] sm:$0xff] }
 0x25e   :  { %8722 = vmatprep.mubr.msk.f32.mxu1 %vm11416_vm2, %v12081_v24  ;;  %10005 = vmatpush3.bf16.msra.mxu1 %v10004_v55  ;;  %v10037_v55 = vpack.c.bf16 %v7089_v1, %v7088_v37  ;;  %v7114_v1 = vld [vmem:[%s14921_s3 + $0x3e0] sm:$0xff] }
 0x25f   :  { %10006 = vmatprep.subr.bf16.mxu1 %v11414_v12 }
 0x261   :  { %8723 = vmatmul.mubr.f32.gmra.mrb[30].mxu1 %v12286_v7  ;;  %v1907_v7 = vld [vmem:[#allocation3 + $0xca] sm:$0xff] }
 0x262   :  { %8725 = vmatprep.mubr.msk.f32.mxu1 %vm11416_vm2, %v12081_v24  ;;  %10008 = vmatpush3.bf16.msra.mxu1 %v10007_v63  ;;  %v12629_v63 = vld [vmem:[#allocation3 + $0x14] sm:$0xff] }
 0x263   :  { %10009 = vmatprep.subr.bf16.mxu1 %v11414_v12 }
 0x265   :  { %8726 = vmatmul.mubr.f32.gmra.mrb[32].mxu1 %v12291_v9  ;;  %v7071_v9 = vld [vmem:[%s14921_s3 + $0x288] sm:$0xff] }
 0x266   :  { %8728 = vmatprep.mubr.msk.f32.mxu1 %vm11416_vm2, %v12081_v24  ;;  %v10010_v11 = vpack.c.bf16 %v7071_v9, %v7070_v8  ;;  %v12641_v8 = vld [vmem:[#allocation3 + $0x1c] sm:$0xff] }
 0x267   :  { %v12644_v9 = vld [vmem:[#allocation3] sm:$0xff] }
 0x269   :  { %8729 = vmatmul.mubr.f32.gmra.mrb[34].mxu1 %v12297_v13  ;;  %v7072_v13 = vld [vmem:[%s14921_s3 + $0x290] sm:$0xff] }
 0x26a   :  { %8731 = vmatprep.mubr.msk.f32.mxu1 %vm11416_vm2, %v12081_v24 }
 0x26d   :  { %8732 = vmatmul.mubr.f32.gmra.mrb[36].mxu1 %v12302_v15  ;;  %v10013_v15 = vpack.c.bf16 %v7073_v14, %v7072_v13  ;;  %v12655_v13 = vld [vmem:[#allocation3 + $0x24] sm:$0xff] }
 0x26e   :  { %8734 = vmatprep.mubr.msk.f32.mxu1 %vm11416_vm2, %v12081_v24 }
 0x271   :  { %8735 = vmatmul.mubr.f32.gmra.mrb[38].mxu1 %v12308_v19  ;;  %v10016_v19 = vpack.c.bf16 %v7075_v17, %v7074_v16  ;;  %v7097_v16 = vld [vmem:[%s14921_s3 + $0x358] sm:$0xff]  ;;  %v12667_v17 = vld [vmem:[#allocation3 + $0x2c] sm:$0xff] }
 0x272   :  { %8737 = vmatprep.mubr.msk.f32.mxu1 %vm11416_vm2, %v12081_v24 }
 0x275   :  { %8738 = vmatmul.mubr.f32.gmra.mrb[40].mxu1 %v12314_v23  ;;  %v2192_v23 = vld [vmem:[#allocation3 + $0x1b] sm:$0xff] }
 0x276   :  { %8740 = vmatprep.mubr.msk.f32.mxu1 %vm11416_vm2, %v12081_v24 }
 0x279   :  { %8741 = vmatmul.mubr.f32.gmra.mrb[42].mxu1 %v12320_v29  ;;  %v2193_v29 = vld [vmem:[#allocation3 + $0x23] sm:$0xff] }
 0x27a   :  { %8743 = vmatprep.mubr.msk.f32.mxu1 %vm11416_vm2, %v12081_v24 }
 0x27d   :  { %8744 = vmatmul.mubr.f32.gmra.mrb[44].mxu1 %v1897_v3  ;;  %v10040_v3 = vpack.c.bf16 %v7091_v5, %v7090_v2  ;;  %v7116_v5 = vld [vmem:[%s14921_s3 + $0x3f0] sm:$0xff] }
 0x27e   :  { %8746 = vmatprep.mubr.msk.f32.mxu1 %vm11416_vm2, %v12081_v24 }
 0x281   :  { %8747 = vmatmul.mubr.f32.gmra.mrb[46].mxu1 %v12330_v38  ;;  %v2195_v38 = vld [vmem:[#allocation3 + $0x33] sm:$0xff] }
 0x282   :  { %8749 = vmatprep.mubr.msk.f32.mxu1 %vm11416_vm2, %v12081_v24 }
 0x285   :  { %8750 = vmatmul.mubr.f32.gmra.mrb[48].mxu1 %v12336_v42  ;;  %v7085_v42 = vld [vmem:[%s14921_s3 + $0x2f8] sm:$0xff] }
 0x286   :  { %8752 = vmatprep.mubr.msk.f32.mxu1 %vm11416_vm2, %v12081_v24 }
 0x289   :  { %8753 = vmatmul.mubr.f32.gmra.mrb[0].mxu1 %v12341_v4  ;;  %v2196_v4 = vld [vmem:[#allocation3 + $0x3b] sm:$0xff] }
 0x28a   :  { %8755 = vmatprep.mubr.msk.f32.mxu1 %vm11416_vm2, %v12081_v24 }
 0x28d   :  { %8756 = vmatmul.mubr.f32.gmra.mrb[2].mxu1 %v12346_v59  ;;  %v10031_v59 = vpack.c.bf16 %v7085_v42, %v7084_v41  ;;  %v12743_v41 = vld [vmem:[#allocation3 + $0x8c] sm:$0xff]  ;;  %v12748_v42 = vld [vmem:[#allocation3 + $0x94] sm:$0xff] }
 0x28e   :  { %8758 = vmatprep.mubr.msk.f32.mxu1 %vm11416_vm2, %v12081_v24 }
 0x291   :  { %8759 = vmatmul.mubr.f32.gmra.mrb[4].mxu1 %v1902_v6  ;;  %v7092_v6 = vld [vmem:[%s14921_s3 + $0x330] sm:$0xff] }
 0x292   :  { %8761 = vmatprep.mubr.msk.f32.mxu1 %vm11416_vm2, %v12081_v24 }
 0x295   :  { %8762 = vmatmul.mubr.f32.gmra.mrb[6].mxu1 %v12354_v43  ;;  %v2197_v43 = vld [vmem:[#allocation3 + $0x43] sm:$0xff] }
 0x296   :  { %8764 = vmatprep.mubr.msk.f32.mxu1 %vm11416_vm2, %v12081_v24 }
 0x299   :  { %8765 = vmatmul.mubr.f32.gmra.mrb[8].mxu1 %v12359_v45  ;;  %v2198_v45 = vld [vmem:[#allocation3 + $0x4b] sm:$0xff] }
 0x29a   :  { %8767 = vmatprep.mubr.msk.f32.mxu1 %vm11416_vm2, %v12081_v24 }
 0x29d   :  { %8768 = vmatmul.mubr.f32.gmra.mrb[10].mxu1 %v12364_v46  ;;  %v2199_v46 = vld [vmem:[#allocation3 + $0x53] sm:$0xff] }
 0x29e   :  { %8770 = vmatprep.mubr.msk.f32.mxu1 %vm11416_vm2, %v12081_v24 }
 0x2a1   :  { %8771 = vmatmul.mubr.f32.gmra.mrb[12].mxu1 %v12375_v48  ;;  %v2202_v48 = vld [vmem:[#allocation3 + $0x6b] sm:$0xff] }
 0x2a2   :  { %8773 = vmatprep.mubr.msk.f32.mxu1 %vm11416_vm2, %v12081_v24 }
 0x2a5   :  { %8774 = vmatmul.mubr.f32.gmra.mrb[14].mxu1 %v1907_v7  ;;  %v7093_v7 = vld [vmem:[%s14921_s3 + $0x338] sm:$0xff] }
 0x2a6   :  { %8808 = vmatprep.mubr.msk.f32.mxu1 %vm11416_vm2, %v12081_v24 }
 0x2a9   :  { %8809 = vmatmul.mubr.f32.vlgmr.msra.gmra.mrb[16].mxu1 %v2190_v10  ;;  %v7094_v10 = vld [vmem:[%s14921_s3 + $0x340] sm:$0xff] }
 0x2aa   :  { %10011 = vmatpush3.bf16.msra.mxu1 %v10010_v11  ;;  %8811 = vmatprep.mubr.msk.f32.mxu1 %vm11416_vm2, %v12081_v24  ;;  %v7095_v11 = vld [vmem:[%s14921_s3 + $0x348] sm:$0xff] }
 0x2ab   :  { %10012 = vmatprep.subr.bf16.mxu1 %v11414_v12  ;;  %v10046_v14 = vpack.c.bf16 %v7095_v11, %v7094_v10  ;;  %v7120_v10 = vld [vmem:[%s14921_s3 + $0x410] sm:$0xff]  ;;  %v7121_v11 = vld [vmem:[%s14921_s3 + $0x418] sm:$0xff] }
 0x2ad   :  { %8812 = vmatmul.mubr.f32.gmra.mrb[18].mxu1 %v2191_v18 }
 0x2ae   :  { %8814 = vmatprep.mubr.msk.f32.mxu1 %vm11416_vm2, %v12081_v24  ;;  %10014 = vmatpush3.bf16.msra.mxu1 %v10013_v15  ;;  %v7096_v15 = vld [vmem:[%s14921_s3 + $0x350] sm:$0xff] }
 0x2af   :  { %10015 = vmatprep.subr.bf16.mxu1 %v11414_v12  ;;  %v10049_v18 = vpack.c.bf16 %v7097_v16, %v7096_v15  ;;  %v7122_v15 = vld [vmem:[%s14921_s3 + $0x420] sm:$0xff]  ;;  %v7123_v16 = vld [vmem:[%s14921_s3 + $0x428] sm:$0xff] }
 0x2b1   :  { %8815 = vmatmul.mubr.f32.gmra.mrb[20].mxu1 %v2192_v23 }
 0x2b2   :  { %8817 = vmatprep.mubr.msk.f32.mxu1 %vm11416_vm2, %v12081_v24  ;;  %10017 = vmatpush3.bf16.msra.mxu1 %v10016_v19  ;;  %v7098_v19 = vld [vmem:[%s14921_s3 + $0x360] sm:$0xff] }
 0x2b3   :  { %10018 = vmatprep.subr.bf16.mxu1 %v11414_v12  ;;  %v10052_v23 = vpack.c.bf16 %v7099_v20, %v7098_v19  ;;  %v7124_v19 = vld [vmem:[%s14921_s3 + $0x430] sm:$0xff]  ;;  %v7125_v20 = vld [vmem:[%s14921_s3 + $0x438] sm:$0xff] }
 0x2b5   :  { %8818 = vmatmul.mubr.f32.gmra.mrb[22].mxu1 %v2193_v29 }
 0x2b6   :  { %8820 = vmatprep.mubr.msk.f32.mxu1 %vm11416_vm2, %v12081_v24  ;;  %10020 = vmatpush3.bf16.msra.mxu1 %v10019_v25  ;;  %v7100_v25 = vld [vmem:[%s14921_s3 + $0x370] sm:$0xff] }
 0x2b7   :  { %10021 = vmatprep.subr.bf16.mxu1 %v11414_v12  ;;  %v10055_v29 = vpack.c.bf16 %v7101_v26, %v7100_v25  ;;  %v7126_v25 = vld [vmem:[%s14921_s3 + $0x440] sm:$0xff]  ;;  %v7127_v26 = vld [vmem:[%s14921_s3 + $0x448] sm:$0xff] }
 0x2b9   :  { %8821 = vmatmul.mubr.f32.gmra.mrb[24].mxu1 %v2194_v33  ;;  %v12713_v33 = vld [vmem:[#allocation3 + $0x5c] sm:$0xff] }
 0x2ba   :  { %8823 = vmatprep.mubr.msk.f32.mxu1 %vm11416_vm2, %v12081_v24  ;;  %10023 = vmatpush3.bf16.msra.mxu1 %v10022_v30  ;;  %v12697_v30 = vld [vmem:[#allocation3 + $0x44] sm:$0xff] }
 0x2bb   :  { %10024 = vmatprep.subr.bf16.mxu1 %v11414_v12 }
 0x2bd   :  { %8824 = vmatmul.mubr.f32.gmra.mrb[26].mxu1 %v2195_v38  ;;  %v12733_v38 = vld [vmem:[#allocation3 + $0x7c] sm:$0xff] }
 0x2be   :  { %8826 = vmatprep.mubr.msk.f32.mxu1 %vm11416_vm2, %v12081_v24  ;;  %10026 = vmatpush3.bf16.msra.mxu1 %v10025_v34  ;;  %v12718_v34 = vld [vmem:[#allocation3 + $0x64] sm:$0xff] }
 0x2bf   :  { %10027 = vmatprep.subr.bf16.mxu1 %v11414_v12 }
 0x2c1   :  { %8827 = vmatmul.mubr.f32.gmra.mrb[28].mxu1 %v2196_v4  ;;  %v12753_v4 = vld [vmem:[#allocation3 + $0x9c] sm:$0xff] }
 0x2c2   :  { %8829 = vmatprep.mubr.msk.f32.mxu1 %vm11416_vm2, %v12081_v24  ;;  %10029 = vmatpush3.bf16.msra.mxu1 %v10028_v40  ;;  %v12738_v40 = vld [vmem:[#allocation3 + $0x84] sm:$0xff] }
 0x2c3   :  { %10030 = vmatprep.subr.bf16.mxu1 %v11414_v12 }
 0x2c5   :  { %8830 = vmatmul.mubr.f32.gmra.mrb[30].mxu1 %v2197_v43  ;;  %v12763_v43 = vld [vmem:[#allocation3 + $0xac] sm:$0xff] }
 0x2c6   :  { %8832 = vmatprep.mubr.msk.f32.mxu1 %vm11416_vm2, %v12081_v24  ;;  %10032 = vmatpush3.bf16.msra.mxu1 %v10031_v59  ;;  %v12758_v59 = vld [vmem:[#allocation3 + $0xa4] sm:$0xff] }
 0x2c7   :  { %10033 = vmatprep.subr.bf16.mxu1 %v11414_v12 }
 0x2c9   :  { %8833 = vmatmul.mubr.f32.gmra.mrb[32].mxu1 %v2198_v45  ;;  %v12768_v45 = vld [vmem:[#allocation3 + $0xb4] sm:$0xff] }
 0x2ca   :  { %8835 = vmatprep.mubr.msk.f32.mxu1 %vm11416_vm2, %v12081_v24 }
 0x2cd   :  { %8836 = vmatmul.mubr.f32.gmra.mrb[34].mxu1 %v2199_v46  ;;  %v12773_v46 = vld [vmem:[#allocation3 + $0xbc] sm:$0xff] }
 0x2ce   :  { %8838 = vmatprep.mubr.msk.f32.mxu1 %vm11416_vm2, %v12081_v24 }
 0x2d1   :  { %8839 = vmatmul.mubr.f32.gmra.mrb[36].mxu1 %v2200_v21  ;;  %v12778_v21 = vld [vmem:[#allocation3 + $0xc4] sm:$0xff] }
 0x2d2   :  { %8841 = vmatprep.mubr.msk.f32.mxu1 %vm11416_vm2, %v12081_v24 }
 0x2d5   :  { %8842 = vmatmul.mubr.f32.gmra.mrb[38].mxu1 %v2201_v47  ;;  %v12783_v47 = vld [vmem:[#allocation3 + $0xcc] sm:$0xff] }
 0x2d6   :  { %8844 = vmatprep.mubr.msk.f32.mxu1 %vm11416_vm2, %v12081_v24 }
 0x2d9   :  { %8845 = vmatmul.mubr.f32.gmra.mrb[40].mxu1 %v2202_v48  ;;  %v7102_v48 = vld [vmem:[%s14921_s3 + $0x380] sm:$0xff] }
 0x2da   :  { %8847 = vmatprep.mubr.msk.f32.mxu1 %vm11416_vm2, %v12081_v24 }
 0x2dd   :  { %8848 = vmatmul.mubr.f32.gmra.mrb[42].mxu1 %v2203_v49  ;;  %v7103_v49 = vld [vmem:[%s14921_s3 + $0x388] sm:$0xff] }
 0x2de   :  { %8850 = vmatprep.mubr.msk.f32.mxu1 %vm11416_vm2, %v12081_v24 }
 0x2e1   :  { %8851 = vmatmul.mubr.f32.gmra.mrb[44].mxu1 %v2204_v51  ;;  %v10058_v51 = vpack.c.bf16 %v7103_v49, %v7102_v48  ;;  %v3124_v48 = vld [vmem:[#allocation3 + $0x7d] sm:$0xff]  ;;  %v3125_v49 = vld [vmem:[#allocation3 + $0x85] sm:$0xff] }
 0x2e2   :  { %8853 = vmatprep.mubr.msk.f32.mxu1 %vm11416_vm2, %v12081_v24 }
 0x2e5   :  { %8854 = vmatmul.mubr.f32.gmra.mrb[46].mxu1 %v2205_v52  ;;  %v7104_v52 = vld [vmem:[%s14921_s3 + $0x390] sm:$0xff] }
 0x2e6   :  { %8856 = vmatprep.mubr.msk.f32.mxu1 %vm11416_vm2, %v12081_v24 }
 0x2e9   :  { %8857 = vmatmul.mubr.f32.gmra.mrb[48].mxu1 %v2206_v53  ;;  %v7105_v53 = vld [vmem:[%s14921_s3 + $0x398] sm:$0xff] }
 0x2ea   :  { %8859 = vmatprep.mubr.msk.f32.mxu1 %vm11416_vm2, %v12081_v24 }
 0x2ed   :  { %8860 = vmatmul.mubr.f32.gmra.mrb[0].mxu1 %v2207_v54  ;;  %v10061_v54 = vpack.c.bf16 %v7105_v53, %v7104_v52  ;;  %v3127_v52 = vld [vmem:[#allocation3 + $0x95] sm:$0xff]  ;;  %v3128_v53 = vld [vmem:[#allocation3 + $0x9d] sm:$0xff] }
 0x2ee   :  { %8862 = vmatprep.mubr.msk.f32.mxu1 %vm11416_vm2, %v12081_v24 }
 0x2f1   :  { %8863 = vmatmul.mubr.f32.gmra.mrb[2].mxu1 %v2208_v56  ;;  %v7106_v56 = vld [vmem:[%s14921_s3 + $0x3a0] sm:$0xff] }
 0x2f2   :  { %8865 = vmatprep.mubr.msk.f32.mxu1 %vm11416_vm2, %v12081_v24 }
 0x2f5   :  { %8866 = vmatmul.mubr.f32.gmra.mrb[4].mxu1 %v2209_v28  ;;  %v7107_v28 = vld [vmem:[%s14921_s3 + $0x3a8] sm:$0xff] }
 0x2f6   :  { %8868 = vmatprep.mubr.msk.f32.mxu1 %vm11416_vm2, %v12081_v24 }
 0x2f9   :  { %8869 = vmatmul.mubr.f32.gmra.mrb[6].mxu1 %v2210_v57  ;;  %v10064_v57 = vpack.c.bf16 %v7107_v28, %v7106_v56  ;;  %v3130_v56 = vld [vmem:[#allocation3 + $0xad] sm:$0xff]  ;;  %v3131_v28 = vld [vmem:[#allocation3 + $0xb5] sm:$0xff] }
 0x2fa   :  { %8871 = vmatprep.mubr.msk.f32.mxu1 %vm11416_vm2, %v12081_v24 }
 0x2fd   :  { %8872 = vmatmul.mubr.f32.gmra.mrb[8].mxu1 %v2211_v58  ;;  %v7108_v58 = vld [vmem:[%s14921_s3 + $0x3b0] sm:$0xff] }
 0x2fe   :  { %8874 = vmatprep.mubr.msk.f32.mxu1 %vm11416_vm2, %v12081_v24 }
 0x301   :  { %8875 = vmatmul.mubr.f32.gmra.mrb[10].mxu1 %v2212_v39  ;;  %v7109_v39 = vld [vmem:[%s14921_s3 + $0x3b8] sm:$0xff] }
 0x302   :  { %8877 = vmatprep.mubr.msk.f32.mxu1 %vm11416_vm2, %v12081_v24 }
 0x305   :  { %8878 = vmatmul.mubr.f32.gmra.mrb[12].mxu1 %v2213_v60  ;;  %v10067_v60 = vpack.c.bf16 %v7109_v39, %v7108_v58  ;;  %v3133_v58 = vld [vmem:[#allocation3 + $0xc5] sm:$0xff]  ;;  %v3134_v39 = vld [vmem:[#allocation3 + $0xcd] sm:$0xff] }
 0x306   :  { %8880 = vmatprep.mubr.msk.f32.mxu1 %vm11416_vm2, %v12081_v24 }
 0x309   :  { %8881 = vmatmul.mubr.f32.gmra.mrb[14].mxu1 %v2214_v61  ;;  %v7110_v61 = vld [vmem:[%s14921_s3 + $0x3c0] sm:$0xff] }
 0x30a   :  { %8915 = vmatprep.mubr.msk.f32.mxu1 %vm11416_vm2, %v12081_v24  ;;  %v10070_v62 = vpack.c.bf16 %v7111_v44, %v7110_v61  ;;  %v3418_v61 = vld [vmem:[#allocation3 + $0x16] sm:$0xff]  ;;  %v3419_v44 = vld [vmem:[#allocation3 + $0x1e] sm:$0xff] }
 0x30d   :  { %8916 = vmatmul.mubr.f32.vlgmr.msra.gmra.mrb[16].mxu1 %v2497_v0  ;;  %v7112_v0 = vld [vmem:[%s14921_s3 + $0x3d0] sm:$0xff] }
 0x30e   :  { %10035 = vmatpush3.bf16.msra.mxu1 %v10034_v50  ;;  %8918 = vmatprep.mubr.msk.f32.mxu1 %vm11416_vm2, %v12081_v24  ;;  %v7113_v50 = vld [vmem:[%s14921_s3 + $0x3d8] sm:$0xff] }
 0x30f   :  { %10036 = vmatprep.subr.bf16.mxu1 %v11414_v12  ;;  %v10073_v37 = vpack.c.bf16 %v7113_v50, %v7112_v0  ;;  %v3421_v0 = vld [vmem:[#allocation3 + $0x2e] sm:$0xff]  ;;  %v3422_v50 = vld [vmem:[#allocation3 + $0x36] sm:$0xff] }
 0x311   :  { %8919 = vmatmul.mubr.f32.gmra.mrb[18].mxu1 %v12629_v63 }
 0x312   :  { %8921 = vmatprep.mubr.msk.f32.mxu1 %vm11416_vm2, %v12081_v24  ;;  %10038 = vmatpush3.bf16.msra.mxu1 %v10037_v55  ;;  %v10043_v24 = vpack.c.bf16 %v7093_v7, %v7092_v6  ;;  %v7115_v55 = vld [vmem:[%s14921_s3 + $0x3e8] sm:$0xff]  ;;  %v2828_v6 = vld [vmem:[#allocation3 + $0xd4] sm:$0xff]  ;;  %v7118_v7 = vld [vmem:[%s14921_s3 + $0x400] sm:$0xff] }
 0x313   :  { %10039 = vmatprep.subr.bf16.mxu1 %v11414_v12  ;;  %v10076_v2 = vpack.c.bf16 %v7115_v55, %v7114_v1  ;;  %v3424_v1 = vld [vmem:[#allocation3 + $0x46] sm:$0xff]  ;;  %v3425_v55 = vld [vmem:[#allocation3 + $0x4e] sm:$0xff] }
 0x315   :  { %8922 = vmatmul.mubr.f32.gmra.mrb[20].mxu1 %v12641_v8 }
 0x316   :  { %8924 = vmatprep.mubr.msk.f32.mxu1 %vm11416_vm2, %v12644_v9  ;;  %10041 = vmatpush3.bf16.msra.mxu1 %v10040_v3 }
 0x317   :  { %10042 = vmatprep.subr.bf16.mxu1 %v11414_v12 }
 0x319   :  { %8925 = vmatmul.mubr.f32.gmra.mrb[22].mxu1 %v12655_v13 }
 0x31a   :  { %8927 = vmatprep.mubr.msk.f32.mxu1 %vm11416_vm2, %v12644_v9  ;;  %10044 = vmatpush3.bf16.msra.mxu1 %v10043_v24 }
 0x31b   :  { %10045 = vmatprep.subr.bf16.mxu1 %v11414_v12 }
 0x31d   :  { %8928 = vmatmul.mubr.f32.gmra.mrb[24].mxu1 %v12667_v17 }
 0x31e   :  { %8930 = vmatprep.mubr.msk.f32.mxu1 %vm11416_vm2, %v12644_v9  ;;  %10047 = vmatpush3.bf16.msra.mxu1 %v10046_v14  ;;  %v10085_v14 = vpack.c.bf16 %v7121_v11, %v7120_v10  ;;  %v3434_v10 = vld [vmem:[#allocation3 + $0x96] sm:$0xff]  ;;  %v3435_v11 = vld [vmem:[#allocation3 + $0x9e] sm:$0xff] }
 0x31f   :  { %10048 = vmatprep.subr.bf16.mxu1 %v11414_v12 }
 0x321   :  { %8931 = vmatmul.mubr.f32.gmra.mrb[26].mxu1 %v12679_v22 }
 0x322   :  { %8933 = vmatprep.mubr.msk.f32.mxu1 %vm11416_vm2, %v12644_v9  ;;  %10050 = vmatpush3.bf16.msra.mxu1 %v10049_v18  ;;  %v10088_v18 = vpack.c.bf16 %v7123_v16, %v7122_v15  ;;  %v3438_v15 = vld [vmem:[#allocation3 + $0xb6] sm:$0xff]  ;;  %v3439_v16 = vld [vmem:[#allocation3 + $0xbe] sm:$0xff] }
 0x323   :  { %10051 = vmatprep.subr.bf16.mxu1 %v11414_v12 }
 0x325   :  { %8934 = vmatmul.mubr.f32.gmra.mrb[28].mxu1 %v12691_v27 }
 0x326   :  { %8936 = vmatprep.mubr.msk.f32.mxu1 %vm11416_vm2, %v12644_v9  ;;  %10053 = vmatpush3.bf16.msra.mxu1 %v10052_v23  ;;  %v10091_v23 = vpack.c.bf16 %v7125_v20, %v7124_v19  ;;  %v3440_v19 = vld [vmem:[#allocation3 + $0xc6] sm:$0xff] }
 0x327   :  { %10054 = vmatprep.subr.bf16.mxu1 %v11414_v12 }
 0x329   :  { %8937 = vmatmul.mubr.f32.gmra.mrb[30].mxu1 %v12697_v30 }
 0x32a   :  { %8939 = vmatprep.mubr.msk.f32.mxu1 %vm11416_vm2, %v12644_v9  ;;  %10056 = vmatpush3.bf16.msra.mxu1 %v10055_v29  ;;  %v10094_v29 = vpack.c.bf16 %v7127_v26, %v7126_v25  ;;  %v3833_v25 = vld [vmem:[%s14924_s5 + $0x18] sm:$0xff] }
 0x32b   :  { %10057 = vmatprep.subr.bf16.mxu1 %v11414_v12 }
 0x32d   :  { %8940 = vmatmul.mubr.f32.gmra.mrb[32].mxu1 %v12703_v31 }
 0x32e   :  { %8942 = vmatprep.mubr.msk.f32.mxu1 %vm11416_vm2, %v12644_v9 }
 0x331   :  { %8943 = vmatmul.mubr.f32.gmra.mrb[34].mxu1 %v12708_v32 }
 0x332   :  { %8945 = vmatprep.mubr.msk.f32.mxu1 %vm11416_vm2, %v12644_v9 }
 0x335   :  { %8946 = vmatmul.mubr.f32.gmra.mrb[36].mxu1 %v12713_v33 }
 0x336   :  { %8948 = vmatprep.mubr.msk.f32.mxu1 %vm11416_vm2, %v12644_v9 }
 0x339   :  { %8949 = vmatmul.mubr.f32.gmra.mrb[38].mxu1 %v12718_v34 }
 0x33a   :  { %8951 = vmatprep.mubr.msk.f32.mxu1 %vm11416_vm2, %v12644_v9 }
 0x33d   :  { %8952 = vmatmul.mubr.f32.gmra.mrb[40].mxu1 %v12723_v35 }
 0x33e   :  { %8954 = vmatprep.mubr.msk.f32.mxu1 %vm11416_vm2, %v12644_v9 }
 0x341   :  { %8955 = vmatmul.mubr.f32.gmra.mrb[42].mxu1 %v12728_v36 }
 0x342   :  { %8957 = vmatprep.mubr.msk.f32.mxu1 %vm11416_vm2, %v12644_v9 }
 0x345   :  { %8958 = vmatmul.mubr.f32.gmra.mrb[44].mxu1 %v12733_v38 }
 0x346   :  { %8960 = vmatprep.mubr.msk.f32.mxu1 %vm11416_vm2, %v12644_v9 }
 0x349   :  { %8961 = vmatmul.mubr.f32.gmra.mrb[46].mxu1 %v12738_v40 }
 0x34a   :  { %8963 = vmatprep.mubr.msk.f32.mxu1 %vm11416_vm2, %v12644_v9 }
 0x34d   :  { %8964 = vmatmul.mubr.f32.gmra.mrb[48].mxu1 %v12743_v41 }
 0x34e   :  { %8966 = vmatprep.mubr.msk.f32.mxu1 %vm11416_vm2, %v12644_v9 }
 0x351   :  { %8967 = vmatmul.mubr.f32.gmra.mrb[0].mxu1 %v12748_v42 }
 0x352   :  { %8969 = vmatprep.mubr.msk.f32.mxu1 %vm11416_vm2, %v12644_v9 }
 0x355   :  { %8970 = vmatmul.mubr.f32.gmra.mrb[2].mxu1 %v12753_v4 }
 0x356   :  { %8972 = vmatprep.mubr.msk.f32.mxu1 %vm11416_vm2, %v12644_v9 }
 0x359   :  { %8973 = vmatmul.mubr.f32.gmra.mrb[4].mxu1 %v12758_v59 }
 0x35a   :  { %8975 = vmatprep.mubr.msk.f32.mxu1 %vm11416_vm2, %v12644_v9 }
 0x35d   :  { %8976 = vmatmul.mubr.f32.gmra.mrb[6].mxu1 %v12763_v43 }
 0x35e   :  { %8978 = vmatprep.mubr.msk.f32.mxu1 %vm11416_vm2, %v12644_v9 }
 0x361   :  { %8979 = vmatmul.mubr.f32.gmra.mrb[8].mxu1 %v12768_v45 }
 0x362   :  { %8981 = vmatprep.mubr.msk.f32.mxu1 %vm11416_vm2, %v12644_v9 }
 0x365   :  { %8982 = vmatmul.mubr.f32.gmra.mrb[10].mxu1 %v12773_v46 }
 0x366   :  { %8984 = vmatprep.mubr.msk.f32.mxu1 %vm11416_vm2, %v12644_v9 }
 0x369   :  { %8985 = vmatmul.mubr.f32.gmra.mrb[12].mxu1 %v12778_v21 }
 0x36a   :  { %8987 = vmatprep.mubr.msk.f32.mxu1 %vm11416_vm2, %v12644_v9 }
 0x36d   :  { %8988 = vmatmul.mubr.f32.gmra.mrb[14].mxu1 %v12783_v47 }
 0x36e   :  { %9022 = vmatprep.mubr.msk.f32.mxu1 %vm11416_vm2, %v12644_v9 }
 0x371   :  { %9023 = vmatmul.mubr.f32.vlgmr.msra.gmra.mrb[16].mxu1 %v12629_v63  ;;  %v7117_v63 = vld [vmem:[%s14921_s3 + $0x3f8] sm:$0xff] }
 0x372   :  { %10059 = vmatpush3.bf16.msra.mxu1 %v10058_v51  ;;  %9025 = vmatprep.mubr.msk.f32.mxu1 %vm11416_vm2, %v12644_v9  ;;  %v10079_v3 = vpack.c.bf16 %v7117_v63, %v7116_v5  ;;  %v3126_v51 = vld [vmem:[#allocation3 + $0x8d] sm:$0xff]  ;;  %v3427_v5 = vld [vmem:[#allocation3 + $0x5e] sm:$0xff] }
 0x373   :  { %10060 = vmatprep.subr.bf16.mxu1 %v11414_v12  ;;  %v3428_v63 = vld [vmem:[#allocation3 + $0x66] sm:$0xff] }
 0x375   :  { %9026 = vmatmul.mubr.f32.gmra.mrb[18].mxu1 %v12641_v8  ;;  %v7119_v8 = vld [vmem:[%s14921_s3 + $0x408] sm:$0xff] }
 0x376   :  { %9028 = vmatprep.mubr.msk.f32.mxu1 %vm11416_vm2, %v12644_v9  ;;  %10062 = vmatpush3.bf16.msra.mxu1 %v10061_v54  ;;  %v10082_v24 = vpack.c.bf16 %v7119_v8, %v7118_v7  ;;  %v3129_v54 = vld [vmem:[#allocation3 + $0xa5] sm:$0xff] }
 0x377   :  { %10063 = vmatprep.subr.bf16.mxu1 %v11414_v12  ;;  %v3431_v7 = vld [vmem:[#allocation3 + $0x7e] sm:$0xff]  ;;  %v3432_v8 = vld [vmem:[#allocation3 + $0x86] sm:$0xff] }
 0x379   :  { %9029 = vmatmul.mubr.f32.gmra.mrb[20].mxu1 %v12655_v13  ;;  %v3111_v13 = vld [vmem:[#allocation3 + $0x15] sm:$0xff] }
 0x37a   :  { %9031 = vmatprep.mubr.msk.f32.mxu1 %vm11416_vm2, %v12644_v9  ;;  %10065 = vmatpush3.bf16.msra.mxu1 %v10064_v57  ;;  %v3132_v57 = vld [vmem:[#allocation3 + $0xbd] sm:$0xff] }
 0x37b   :  { %10066 = vmatprep.subr.bf16.mxu1 %v11414_v12 }
 0x37d   :  { %9032 = vmatmul.mubr.f32.gmra.mrb[22].mxu1 %v12667_v17  ;;  %v3112_v17 = vld [vmem:[#allocation3 + $0x1d] sm:$0xff] }
 0x37e   :  { %9034 = vmatprep.mubr.msk.f32.mxu1 %vm11416_vm2, %v12644_v9  ;;  %10068 = vmatpush3.bf16.msra.mxu1 %v10067_v60  ;;  %v3135_v60 = vld [vmem:[#allocation3 + $0xd5] sm:$0xff] }
 0x37f   :  { %10069 = vmatprep.subr.bf16.mxu1 %v11414_v12 }
 0x381   :  { %9035 = vmatmul.mubr.f32.gmra.mrb[24].mxu1 %v12679_v22  ;;  %v3113_v22 = vld [vmem:[#allocation3 + $0x25] sm:$0xff] }
 0x382   :  { %9037 = vmatprep.mubr.msk.f32.mxu1 %vm11416_vm2, %v12644_v9  ;;  %10071 = vmatpush3.bf16.msra.mxu1 %v10070_v62  ;;  %v3420_v62 = vld [vmem:[#allocation3 + $0x26] sm:$0xff] }
 0x383   :  { %10072 = vmatprep.subr.bf16.mxu1 %v11414_v12 }
 0x385   :  { %9038 = vmatmul.mubr.f32.gmra.mrb[26].mxu1 %v12691_v27  ;;  %v3114_v27 = vld [vmem:[#allocation3 + $0x2d] sm:$0xff] }
 0x386   :  { %9040 = vmatprep.mubr.msk.f32.mxu1 %vm11416_vm2, %v12644_v9  ;;  %10074 = vmatpush3.bf16.msra.mxu1 %v10073_v37  ;;  %v3423_v37 = vld [vmem:[#allocation3 + $0x3e] sm:$0xff] }
 0x387   :  { %10075 = vmatprep.subr.bf16.mxu1 %v11414_v12 }
 0x389   :  { %9041 = vmatmul.mubr.f32.gmra.mrb[28].mxu1 %v12697_v30  ;;  %v7128_v30 = vld [vmem:[%s14921_s3 + $0x450] sm:$0xff] }
 0x38a   :  { %9043 = vmatprep.mubr.msk.f32.mxu1 %vm11416_vm2, %v12644_v9  ;;  %10077 = vmatpush3.bf16.msra.mxu1 %v10076_v2  ;;  %v3426_v2 = vld [vmem:[#allocation3 + $0x56] sm:$0xff] }
 0x38b   :  { %10078 = vmatprep.subr.bf16.mxu1 %v11414_v12 }
 0x38d   :  { %9044 = vmatmul.mubr.f32.gmra.mrb[30].mxu1 %v12703_v31  ;;  %v7129_v31 = vld [vmem:[%s14921_s3 + $0x458] sm:$0xff] }
 0x38e   :  { %9046 = vmatprep.mubr.msk.f32.mxu1 %vm11416_vm2, %v12644_v9  ;;  %10080 = vmatpush3.bf16.msra.mxu1 %v10079_v3  ;;  %v3429_v3 = vld [vmem:[#allocation3 + $0x6e] sm:$0xff] }
 0x38f   :  { %10081 = vmatprep.subr.bf16.mxu1 %v11414_v12 }
 0x391   :  { %9047 = vmatmul.mubr.f32.gmra.mrb[32].mxu1 %v12708_v32  ;;  %v3115_v32 = vld [vmem:[#allocation3 + $0x35] sm:$0xff] }
 0x392   :  { %9049 = vmatprep.mubr.msk.f32.mxu1 %vm11416_vm2, %v12644_v9 }
 0x395   :  { %9050 = vmatmul.mubr.f32.gmra.mrb[34].mxu1 %v12713_v33  ;;  %v10097_v33 = vpack.c.bf16 %v7129_v31, %v7128_v30  ;;  %v3835_v30 = vld [vmem:[%s14924_s5 + $0x28] sm:$0xff] }
 0x396   :  { %9052 = vmatprep.mubr.msk.f32.mxu1 %vm11416_vm2, %v12644_v9 }
 0x399   :  { %9053 = vmatmul.mubr.f32.gmra.mrb[36].mxu1 %v12718_v34  ;;  %v7130_v34 = vld [vmem:[%s14921_s3 + $0x460] sm:$0xff] }
 0x39a   :  { %9055 = vmatprep.mubr.msk.f32.mxu1 %vm11416_vm2, %v12644_v9 }
 0x39d   :  { %9056 = vmatmul.mubr.f32.gmra.mrb[38].mxu1 %v12723_v35  ;;  %v7131_v35 = vld [vmem:[%s14921_s3 + $0x468] sm:$0xff] }
 0x39e   :  { %9058 = vmatprep.mubr.msk.f32.mxu1 %vm11416_vm2, %v12644_v9 }
 0x3a1   :  { %9059 = vmatmul.mubr.f32.gmra.mrb[40].mxu1 %v12728_v36  ;;  %v3116_v36 = vld [vmem:[#allocation3 + $0x3d] sm:$0xff] }
 0x3a2   :  { %9061 = vmatprep.mubr.msk.f32.mxu1 %vm11416_vm2, %v12644_v9 }
 0x3a5   :  { %9062 = vmatmul.mubr.f32.gmra.mrb[42].mxu1 %v12733_v38  ;;  %v10100_v38 = vpack.c.bf16 %v7131_v35, %v7130_v34  ;;  %v3838_v35 = vld [vmem:[%s14924_s5 + $0x40] sm:$0xff] }
 0x3a6   :  { %9064 = vmatprep.mubr.msk.f32.mxu1 %vm11416_vm2, %v12644_v9 }
 0x3a9   :  { %9065 = vmatmul.mubr.f32.gmra.mrb[44].mxu1 %v12738_v40  ;;  %v7132_v40 = vld [vmem:[%s14921_s3 + $0x470] sm:$0xff] }
 0x3aa   :  { %9067 = vmatprep.mubr.msk.f32.mxu1 %vm11416_vm2, %v12644_v9 }
 0x3ad   :  { %9068 = vmatmul.mubr.f32.gmra.mrb[46].mxu1 %v12743_v41  ;;  %v7133_v41 = vld [vmem:[%s14921_s3 + $0x478] sm:$0xff] }
 0x3ae   :  { %9070 = vmatprep.mubr.msk.f32.mxu1 %vm11416_vm2, %v12644_v9 }
 0x3b1   :  { %9071 = vmatmul.mubr.f32.gmra.mrb[48].mxu1 %v12748_v42  ;;  %v3117_v42 = vld [vmem:[#allocation3 + $0x45] sm:$0xff] }
 0x3b2   :  { %9073 = vmatprep.mubr.msk.f32.mxu1 %vm11416_vm2, %v12644_v9 }
 0x3b5   :  { %9074 = vmatmul.mubr.f32.gmra.mrb[0].mxu1 %v12753_v4  ;;  %v10103_v4 = vpack.c.bf16 %v7133_v41, %v7132_v40  ;;  %v3840_v40 = vld [vmem:[%s14924_s5 + $0x50] sm:$0xff]  ;;  %v3841_v41 = vld [vmem:[%s14924_s5 + $0x58] sm:$0xff] }
 0x3b6   :  { %9076 = vmatprep.mubr.msk.f32.mxu1 %vm11416_vm2, %v12644_v9 }
 0x3b9   :  { %9077 = vmatmul.mubr.f32.gmra.mrb[2].mxu1 %v12758_v59  ;;  %v3118_v59 = vld [vmem:[#allocation3 + $0x4d] sm:$0xff] }
 0x3ba   :  { %9079 = vmatprep.mubr.msk.f32.mxu1 %vm11416_vm2, %v12644_v9 }
 0x3bd   :  { %9080 = vmatmul.mubr.f32.gmra.mrb[4].mxu1 %v12763_v43  ;;  %v3119_v43 = vld [vmem:[#allocation3 + $0x55] sm:$0xff] }
 0x3be   :  { %9082 = vmatprep.mubr.msk.f32.mxu1 %vm11416_vm2, %v12644_v9 }
 0x3c1   :  { %9083 = vmatmul.mubr.f32.gmra.mrb[6].mxu1 %v12768_v45  ;;  %v3120_v45 = vld [vmem:[#allocation3 + $0x5d] sm:$0xff] }
 0x3c2   :  { %9085 = vmatprep.mubr.msk.f32.mxu1 %vm11416_vm2, %v12644_v9 }
 0x3c5   :  { %9086 = vmatmul.mubr.f32.gmra.mrb[8].mxu1 %v12773_v46  ;;  %v3121_v46 = vld [vmem:[#allocation3 + $0x65] sm:$0xff] }
 0x3c6   :  { %9088 = vmatprep.mubr.msk.f32.mxu1 %vm11416_vm2, %v12644_v9 }
 0x3c9   :  { %9089 = vmatmul.mubr.f32.gmra.mrb[10].mxu1 %v12778_v21  ;;  %v3122_v21 = vld [vmem:[#allocation3 + $0x6d] sm:$0xff] }
 0x3ca   :  { %9091 = vmatprep.mubr.msk.f32.mxu1 %vm11416_vm2, %v12644_v9 }
 0x3cd   :  { %9092 = vmatmul.mubr.f32.gmra.mrb[12].mxu1 %v12783_v47  ;;  %v3123_v47 = vld [vmem:[#allocation3 + $0x75] sm:$0xff] }
 0x3ce   :  { %9094 = vmatprep.mubr.msk.f32.mxu1 %vm11416_vm2, %v12644_v9 }
 0x3d1   :  { %9095 = vmatmul.mubr.f32.gmra.mrb[14].mxu1 %v2828_v6  ;;  %v3430_v6 = vld [vmem:[#allocation3 + $0x76] sm:$0xff] }
 0x3d2   :  { %9129 = vmatprep.mubr.msk.f32.mxu1 %vm11416_vm2, %v12644_v9 }
 0x3d5   :  { %9130 = vmatmul.mubr.f32.vlgmr.msra.gmra.mrb[16].mxu1 %v3111_v13  ;;  %v3436_v13 = vld [vmem:[#allocation3 + $0xa6] sm:$0xff] }
 0x3d6   :  { %10083 = vmatpush3.bf16.msra.mxu1 %v10082_v24  ;;  %9132 = vmatprep.mubr.msk.f32.mxu1 %vm11416_vm2, %v12644_v9  ;;  %v3433_v24 = vld [vmem:[#allocation3 + $0x8e] sm:$0xff] }
 0x3d7   :  { %10084 = vmatprep.subr.bf16.mxu1 %v11414_v12 }
 0x3d9   :  { %9133 = vmatmul.mubr.f32.gmra.mrb[18].mxu1 %v3112_v17  ;;  %v3830_v17 = vld [vmem:[%s14924_s5] sm:$0xff] }
 0x3da   :  { %9135 = vmatprep.mubr.msk.f32.mxu1 %vm11416_vm2, %v12644_v9  ;;  %10086 = vmatpush3.bf16.msra.mxu1 %v10085_v14  ;;  %v3437_v14 = vld [vmem:[#allocation3 + $0xae] sm:$0xff] }
 0x3db   :  { %10087 = vmatprep.subr.bf16.mxu1 %v11414_v12 }
 0x3dd   :  { %9136 = vmatmul.mubr.f32.gmra.mrb[20].mxu1 %v3113_v22  ;;  %v3441_v22 = vld [vmem:[#allocation3 + $0xce] sm:$0xff] }
 0x3de   :  { %9138 = vmatprep.mubr.msk.f32.mxu1 %vm11416_vm2, %v12644_v9  ;;  %10089 = vmatpush3.bf16.msra.mxu1 %v10088_v18  ;;  %v3831_v18 = vld [vmem:[%s14924_s5 + $0x8] sm:$0xff] }
 0x3df   :  { %10090 = vmatprep.subr.bf16.mxu1 %v11414_v12  ;;  %v10106_v20 = vpack.c.bf16 %v3831_v18, %v3830_v17  ;;  %v10695_v18 = vld [vmem:[#allocation4 + $0x18] sm:$0xff] }
 0x3e1   :  { %9139 = vmatmul.mubr.f32.gmra.mrb[22].mxu1 %v3114_v27  ;;  %10107 = vmatpush3.bf16.msra.mxu0 %v10106_v20  ;;  %v3442_v27 = vld [vmem:[#allocation3 + $0xd6] sm:$0xff] }
 0x3e2   :  { %9141 = vmatprep.mubr.msk.f32.mxu1 %vm11416_vm2, %v12644_v9  ;;  %10092 = vmatpush3.bf16.msra.mxu1 %v10091_v23  ;;  %v3832_v23 = vld [vmem:[%s14924_s5 + $0x10] sm:$0xff] }
 0x3e3   :  { %10093 = vmatprep.subr.bf16.mxu1 %v11414_v12  ;;  %10108 = vmatprep.subr.bf16.mxu0 %v11414_v12  ;;  %v10109_v26 = vpack.c.bf16 %v3833_v25, %v3832_v23  ;;  %v10699_v23 = vld [vmem:[#allocation4 + $0x20] sm:$0xff] }
 0x3e5   :  { %9142 = vmatmul.mubr.f32.gmra.mrb[24].mxu1 %v3115_v32  ;;  %10110 = vmatpush3.bf16.msra.mxu0 %v10109_v26  ;;  %v3836_v32 = vld [vmem:[%s14924_s5 + $0x30] sm:$0xff] }
 0x3e6   :  { %9144 = vmatprep.mubr.msk.f32.mxu1 %vm11416_vm2, %v12644_v9  ;;  %10095 = vmatpush3.bf16.msra.mxu1 %v10094_v29  ;;  %v3834_v29 = vld [vmem:[%s14924_s5 + $0x20] sm:$0xff] }
 0x3e7   :  { %10096 = vmatprep.subr.bf16.mxu1 %v11414_v12  ;;  %10111 = vmatprep.subr.bf16.mxu0 %v11414_v12  ;;  %v10112_v31 = vpack.c.bf16 %v3835_v30, %v3834_v29 }
 0x3e9   :  { %9145 = vmatmul.mubr.f32.gmra.mrb[26].mxu1 %v3116_v36  ;;  %10113 = vmatpush3.bf16.msra.mxu0 %v10112_v31  ;;  %v3839_v36 = vld [vmem:[%s14924_s5 + $0x48] sm:$0xff] }
 0x3ea   :  { %9147 = vmatprep.mubr.msk.f32.mxu1 %vm11416_vm2, %v12644_v9  ;;  %10098 = vmatpush3.bf16.msra.mxu1 %v10097_v33  ;;  %v3837_v33 = vld [vmem:[%s14924_s5 + $0x38] sm:$0xff]  ;;  %v10703_v31 = vld [vmem:[#allocation4 + $0x28] sm:$0xff] }
 0x3eb   :  { %10099 = vmatprep.subr.bf16.mxu1 %v11414_v12  ;;  %10114 = vmatprep.subr.bf16.mxu0 %v11414_v12  ;;  %v10115_v34 = vpack.c.bf16 %v3837_v33, %v3836_v32 }
 0x3ed   :  { %9148 = vmatmul.mubr.f32.gmra.mrb[28].mxu1 %v3117_v42  ;;  %10116 = vmatpush3.bf16.msra.mxu0 %v10115_v34  ;;  %v10121_v42 = vpack.c.bf16 %v3841_v41, %v3840_v40  ;;  %v10707_v41 = vld [vmem:[#allocation4 + $0x30] sm:$0xff] }
 0x3ee   :  { %9150 = vmatprep.mubr.msk.f32.mxu1 %vm11416_vm2, %v12644_v9  ;;  %10101 = vmatpush3.bf16.msra.mxu1 %v10100_v38  ;;  %v10118_v38 = vpack.c.bf16 %v3839_v36, %v3838_v35 }
 0x3ef   :  { %10102 = vmatprep.subr.bf16.mxu1 %v11414_v12  ;;  %10117 = vmatprep.subr.bf16.mxu0 %v11414_v12 }
 0x3f1   :  { %9151 = vmatmul.mubr.f32.gmra.mrb[30].mxu1 %v3118_v59  ;;  %10119 = vmatpush3.bf16.msra.mxu0 %v10118_v38  ;;  %v3843_v59 = vld [vmem:[%s14924_s5 + $0x68] sm:$0xff] }
 0x3f2   :  { %9153 = vmatprep.mubr.msk.f32.mxu1 %vm11416_vm2, %v12644_v9  ;;  %10104 = vmatpush3.bf16.msra.mxu1 %v10103_v4  ;;  %v3842_v4 = vld [vmem:[%s14924_s5 + $0x60] sm:$0xff] }
 0x3f3   :  { %10120 = vmatprep.subr.bf16.mxu0 %v11414_v12 }
 0x3f5   :  { %9154 = vmatmul.mubr.f32.gmra.mrb[32].mxu1 %v3119_v43  ;;  %10122 = vmatpush3.bf16.msra.mxu0 %v10121_v42  ;;  %v10124_v43 = vpack.c.bf16 %v3843_v59, %v3842_v4 }
 0x3f6   :  { %9156 = vmatprep.mubr.msk.f32.mxu1 %vm11416_vm2, %v12644_v9  ;;  %10123 = vmatprep.subr.bf16.mxu0 %v11414_v12 }
 0x3f9   :  { %9157 = vmatmul.mubr.f32.gmra.mrb[34].mxu1 %v3120_v45  ;;  %10125 = vmatpush3.bf16.msra.mxu0 %v10124_v43  ;;  %v3844_v45 = vld [vmem:[%s14924_s5 + $0x70] sm:$0xff] }
 0x3fa   :  { %9159 = vmatprep.mubr.msk.f32.mxu1 %vm11416_vm2, %v12644_v9  ;;  %10126 = vmatprep.subr.bf16.mxu0 %v11414_v12 }
 0x3fd   :  { %9160 = vmatmul.mubr.f32.gmra.mrb[36].mxu1 %v3121_v46  ;;  %v3845_v46 = vld [vmem:[%s14924_s5 + $0x78] sm:$0xff] }
 0x3fe   :  { %9162 = vmatprep.mubr.msk.f32.mxu1 %vm11416_vm2, %v12644_v9 }
 0x401   :  { %9163 = vmatmul.mubr.f32.gmra.mrb[38].mxu1 %v3122_v21  ;;  %v10127_v21 = vpack.c.bf16 %v3845_v46, %v3844_v45  ;;  %v10711_v45 = vld [vmem:[#allocation4 + $0x38] sm:$0xff] }
 0x402   :  { %9165 = vmatprep.mubr.msk.f32.mxu1 %vm11416_vm2, %v12644_v9 }
 0x403   :  { %10128 = vmatpush3.bf16.msra.mxu0 %v10127_v21 }
 0x404   :  { %10129 = vmatprep.subr.bf16.mxu0 %v11414_v12 }
 0x405   :  { %9166 = vmatmul.mubr.f32.gmra.mrb[40].mxu1 %v3123_v47  ;;  %v7135_v47 = vld [vmem:[%s14924_s5 + $0x80] sm:$0xff] }
 0x406   :  { %9168 = vmatprep.mubr.msk.f32.mxu1 %vm11416_vm2, %v12644_v9  ;;  %9344 = vmatmul.mubr.f32.vlgmr.msra.gmra.mrb[98].mxu0 %v12644_v9 }
 0x407   :  { %9346 = vmatprep.mubr.msk.f32.mxu0 %vm11416_vm2, %v12644_v9 }
 0x409   :  { %9169 = vmatmul.mubr.f32.gmra.mrb[42].mxu1 %v3124_v48  ;;  %v7136_v48 = vld [vmem:[%s14924_s5 + $0x88] sm:$0xff] }
 0x40a   :  { %9171 = vmatprep.mubr.msk.f32.mxu1 %vm11416_vm2, %v12644_v9 }
 0x40d   :  { %9172 = vmatmul.mubr.f32.gmra.mrb[44].mxu1 %v3125_v49  ;;  %v10130_v49 = vpack.c.bf16 %v7136_v48, %v7135_v47 }
 0x40e   :  { %9174 = vmatprep.mubr.msk.f32.mxu1 %vm11416_vm2, %v12644_v9 }
 0x40f   :  { %10131 = vmatpush3.bf16.msra.mxu0 %v10130_v49 }
 0x410   :  { %10132 = vmatprep.subr.bf16.mxu0 %v11414_v12 }
 0x411   :  { %9175 = vmatmul.mubr.f32.gmra.mrb[46].mxu1 %v3126_v51  ;;  %v7137_v51 = vld [vmem:[%s14924_s5 + $0x90] sm:$0xff] }
 0x412   :  { %9177 = vmatprep.mubr.msk.f32.mxu1 %vm11416_vm2, %v12644_v9 }
 0x415   :  { %9178 = vmatmul.mubr.f32.gmra.mrb[48].mxu1 %v3127_v52 }
 0x416   :  { %9180 = vmatprep.mubr.msk.f32.mxu1 %vm11416_vm2, %v12644_v9 }
 0x419   :  { %9181 = vmatmul.mubr.f32.gmra.mrb[0].mxu1 %v3128_v53  ;;  %v7139_v53 = vld [vmem:[%s14924_s5 + $0xa0] sm:$0xff] }
 0x41a   :  { %9183 = vmatprep.mubr.msk.f32.mxu1 %vm11416_vm2, %v12644_v9 }
 0x41d   :  { %9184 = vmatmul.mubr.f32.gmra.mrb[2].mxu1 %v3129_v54  ;;  %v7140_v54 = vld [vmem:[%s14924_s5 + $0xa8] sm:$0xff] }
 0x41e   :  { %9186 = vmatprep.mubr.msk.f32.mxu1 %vm11416_vm2, %v12644_v9 }
 0x421   :  { %9187 = vmatmul.mubr.f32.gmra.mrb[4].mxu1 %v3130_v56  ;;  %v10136_v56 = vpack.c.bf16 %v7140_v54, %v7139_v53 }
 0x422   :  { %9189 = vmatprep.mubr.msk.f32.mxu1 %vm11416_vm2, %v12644_v9 }
 0x425   :  { %9190 = vmatmul.mubr.f32.gmra.mrb[6].mxu1 %v3131_v28  ;;  %v7141_v28 = vld [vmem:[%s14924_s5 + $0xb0] sm:$0xff] }
 0x426   :  { %9192 = vmatprep.mubr.msk.f32.mxu1 %vm11416_vm2, %v12644_v9 }
 0x429   :  { %9193 = vmatmul.mubr.f32.gmra.mrb[8].mxu1 %v3132_v57  ;;  %v7142_v57 = vld [vmem:[%s14924_s5 + $0xb8] sm:$0xff] }
 0x42a   :  { %9195 = vmatprep.mubr.msk.f32.mxu1 %vm11416_vm2, %v12644_v9 }
 0x42d   :  { %9196 = vmatmul.mubr.f32.gmra.mrb[10].mxu1 %v3133_v58  ;;  %v7143_v58 = vld [vmem:[%s14924_s5 + $0xc0] sm:$0xff] }
 0x42e   :  { %9198 = vmatprep.mubr.msk.f32.mxu1 %vm11416_vm2, %v12644_v9 }
 0x431   :  { %9199 = vmatmul.mubr.f32.gmra.mrb[12].mxu1 %v3134_v39  ;;  %v10139_v39 = vpack.c.bf16 %v7142_v57, %v7141_v28 }
 0x432   :  { %9201 = vmatprep.mubr.msk.f32.mxu1 %vm11416_vm2, %v12644_v9 }
 0x435   :  { %9202 = vmatmul.mubr.f32.gmra.mrb[14].mxu1 %v3135_v60  ;;  %v7144_v60 = vld [vmem:[%s14924_s5 + $0xc8] sm:$0xff] }
 0x436   :  { %9236 = vmatprep.mubr.msk.f32.mxu1 %vm11416_vm2, %v12644_v9 }
 0x439   :  { %9237 = vmatmul.mubr.f32.vlgmr.msra.gmra.mrb[16].mxu1 %v3418_v61  ;;  %v10142_v61 = vpack.c.bf16 %v7144_v60, %v7143_v58  ;;  %v13189_v60 = vld [vmem:[#allocation3] sm:$0xff] }
 0x43a   :  { %9239 = vmatprep.mubr.msk.f32.mxu1 %vm11416_vm2, %v12644_v9 }
 0x43d   :  { %9240 = vmatmul.mubr.f32.gmra.mrb[18].mxu1 %v3419_v44  ;;  %v7145_v44 = vld [vmem:[%s14924_s5 + $0xd0] sm:$0xff] }
 0x43e   :  { %9242 = vmatprep.mubr.msk.f32.mxu1 %vm11416_vm2, %v12644_v9 }
 0x441   :  { %9243 = vmatmul.mubr.f32.gmra.mrb[20].mxu1 %v3420_v62  ;;  %v7146_v62 = vld [vmem:[%s14924_s5 + $0xd8] sm:$0xff] }
 0x442   :  { %9245 = vmatprep.mubr.msk.f32.mxu1 %vm11416_vm2, %v12644_v9 }
 0x445   :  { %9246 = vmatmul.mubr.f32.gmra.mrb[22].mxu1 %v3421_v0  ;;  %v10145_v0 = vpack.c.bf16 %v7146_v62, %v7145_v44 }
 0x446   :  { %9248 = vmatprep.mubr.msk.f32.mxu1 %vm11416_vm2, %v12644_v9 }
 0x449   :  { %9249 = vmatmul.mubr.f32.gmra.mrb[24].mxu1 %v3422_v50  ;;  %v7147_v50 = vld [vmem:[%s14924_s5 + $0xe0] sm:$0xff] }
 0x44a   :  { %9251 = vmatprep.mubr.msk.f32.mxu1 %vm11416_vm2, %v12644_v9 }
 0x44d   :  { %9252 = vmatmul.mubr.f32.gmra.mrb[26].mxu1 %v3423_v37  ;;  %v7148_v37 = vld [vmem:[%s14924_s5 + $0xe8] sm:$0xff] }
 0x44e   :  { %9254 = vmatprep.mubr.msk.f32.mxu1 %vm11416_vm2, %v12644_v9 }
 0x451   :  { %9255 = vmatmul.mubr.f32.gmra.mrb[28].mxu1 %v3424_v1  ;;  %v10148_v1 = vpack.c.bf16 %v7148_v37, %v7147_v50 }
 0x452   :  { %9257 = vmatprep.mubr.msk.f32.mxu1 %vm11416_vm2, %v12644_v9 }
 0x455   :  { %9258 = vmatmul.mubr.f32.gmra.mrb[30].mxu1 %v3425_v55  ;;  %v7149_v55 = vld [vmem:[%s14924_s5 + $0xf0] sm:$0xff] }
 0x456   :  { %9260 = vmatprep.mubr.msk.f32.mxu1 %vm11416_vm2, %v12644_v9 }
 0x459   :  { %9261 = vmatmul.mubr.f32.gmra.mrb[32].mxu1 %v3426_v2  ;;  %v7150_v2 = vld [vmem:[%s14924_s5 + $0xf8] sm:$0xff] }
 0x45a   :  { %9263 = vmatprep.mubr.msk.f32.mxu1 %vm11416_vm2, %v12644_v9 }
 0x45d   :  { %9264 = vmatmul.mubr.f32.gmra.mrb[34].mxu1 %v3427_v5  ;;  %v10151_v5 = vpack.c.bf16 %v7150_v2, %v7149_v55 }
 0x45e   :  { %9266 = vmatprep.mubr.msk.f32.mxu1 %vm11416_vm2, %v12644_v9 }
 0x461   :  { %9267 = vmatmul.mubr.f32.gmra.mrb[36].mxu1 %v3428_v63  ;;  %v10683_v63 = vld [vmem:[#allocation4] sm:$0xff] }
 0x462   :  { %9269 = vmatprep.mubr.msk.f32.mxu1 %vm11416_vm2, %v12644_v9 }
 0x465   :  { %9270 = vmatmul.mubr.f32.gmra.mrb[38].mxu1 %v3429_v3 }
 0x466   :  { %9272 = vmatprep.mubr.msk.f32.mxu1 %vm11416_vm2, %v12644_v9 }
 0x469   :  { %9273 = vmatmul.mubr.f32.gmra.mrb[40].mxu1 %v3430_v6 }
 0x46a   :  { %9275 = vmatprep.mubr.msk.f32.mxu1 %vm11416_vm2, %v12644_v9 }
 0x46d   :  { %9276 = vmatmul.mubr.f32.gmra.mrb[42].mxu1 %v3431_v7 }
 0x46e   :  { %9278 = vmatprep.mubr.msk.f32.mxu1 %vm11416_vm2, %v12644_v9 }
 0x471   :  { %9279 = vmatmul.mubr.f32.gmra.mrb[44].mxu1 %v3432_v8  ;;  %v10687_v8 = vld [vmem:[#allocation4 + $0x8] sm:$0xff] }
 0x472   :  { %9281 = vmatprep.mubr.msk.f32.mxu1 %vm11416_vm2, %v12644_v9 }
 0x475   :  { %9282 = vmatmul.mubr.f32.gmra.mrb[46].mxu1 %v3433_v24 }
 0x476   :  { %9284 = vmatprep.mubr.msk.f32.mxu1 %vm11416_vm2, %v12644_v9 }
 0x479   :  { %9285 = vmatmul.mubr.f32.gmra.mrb[48].mxu1 %v3434_v10 }
 0x47a   :  { %9287 = vmatprep.mubr.msk.f32.mxu1 %vm11416_vm2, %v12644_v9 }
 0x47d   :  { %9288 = vmatmul.mubr.f32.gmra.mrb[0].mxu1 %v3435_v11 }
 0x47e   :  { %9290 = vmatprep.mubr.msk.f32.mxu1 %vm11416_vm2, %v12644_v9 }
 0x481   :  { %9291 = vmatmul.mubr.f32.gmra.mrb[2].mxu1 %v3436_v13 }
 0x482   :  { %9293 = vmatprep.mubr.msk.f32.mxu1 %vm11416_vm2, %v12644_v9 }
 0x485   :  { %9294 = vmatmul.mubr.f32.gmra.mrb[4].mxu1 %v3437_v14  ;;  %v10691_v14 = vld [vmem:[#allocation4 + $0x10] sm:$0xff] }
 0x486   :  { %9296 = vmatprep.mubr.msk.f32.mxu1 %vm11416_vm2, %v12644_v9 }
 0x489   :  { %9297 = vmatmul.mubr.f32.gmra.mrb[6].mxu1 %v3438_v15 }
 0x48a   :  { %9299 = vmatprep.mubr.msk.f32.mxu1 %vm11416_vm2, %v12644_v9 }
 0x48d   :  { %9300 = vmatmul.mubr.f32.gmra.mrb[8].mxu1 %v3439_v16 }
 0x48e   :  { %9302 = vmatprep.mubr.msk.f32.mxu1 %vm11416_vm2, %v12644_v9 }
 0x491   :  { %9303 = vmatmul.mubr.f32.gmra.mrb[10].mxu1 %v3440_v19 }
 0x492   :  { %9305 = vmatprep.mubr.msk.f32.mxu1 %vm11416_vm2, %v12644_v9 }
 0x495   :  { %9306 = vmatmul.mubr.f32.gmra.mrb[12].mxu1 %v3441_v22 }
 0x496   :  { %9308 = vmatprep.mubr.msk.f32.mxu1 %vm11416_vm2, %v12644_v9  ;;  %v7138_v9 = vld [vmem:[%s14924_s5 + $0x98] sm:$0xff] }
 0x497   :  { %v10133_v52 = vpack.c.bf16 %v7138_v9, %v7137_v51  ;;  %v10715_v51 = vld [vmem:[#allocation4 + $0x40] sm:$0xff] }
 0x499   :  { %9309 = vmatmul.mubr.f32.gmra.mrb[14].mxu1 %v3442_v27  ;;  %10134 = vmatpush3.bf16.msra.mxu0 %v10133_v52 }
 0x49a   :  { %10135 = vmatprep.subr.bf16.mxu0 %v11414_v12 }
 0x49d   :  { %10137 = vmatpush3.bf16.msra.mxu0 %v10136_v56 }
 0x49e   :  { %10138 = vmatprep.subr.bf16.mxu0 %v11414_v12 }
 0x4a1   :  { %10140 = vmatpush3.bf16.msra.mxu0 %v10139_v39  ;;  %v10719_v39 = vld [vmem:[#allocation4 + $0x48] sm:$0xff] }
 0x4a2   :  { %10141 = vmatprep.subr.bf16.mxu0 %v11414_v12 }
 0x4a5   :  { %10143 = vmatpush3.bf16.msra.mxu0 %v10142_v61 }
 0x4a6   :  { %10144 = vmatprep.subr.bf16.mxu0 %v11414_v12 }
 0x4a9   :  { %10146 = vmatpush3.bf16.msra.mxu0 %v10145_v0 }
 0x4aa   :  { %10147 = vmatprep.subr.bf16.mxu0 %v11414_v12 }
 0x4ad   :  { %10149 = vmatpush3.bf16.msra.mxu0 %v10148_v1  ;;  %v10723_v1 = vld [vmem:[#allocation4 + $0x50] sm:$0xff] }
 0x4ae   :  { %10150 = vmatprep.subr.bf16.mxu0 %v11414_v12 }
 0x4b1   :  { %10152 = vmatpush3.bf16.msra.mxu0 %v10151_v5 }
 0x4b2   :  { %10153 = vmatprep.subr.bf16.mxu0 %v11414_v12 }
 0x50c   :  { %v3526_v3 = vpop.f32.mrb[16].mxu1 }
 0x50d   :  { %v10684_v6 = vadd.f32 %v10683_v63, %v3526_v3  ;;  %v9238_v7 = vpop.f32.mrb[17].mxu1 }
 0x50f   :  { %3700 = vst [vmem:[#allocation4] sm:$0xff] %v10684_v6 }
 0x510   :  { %v3531_v24 = vpop.f32.mrb[18].mxu1 }
 0x511   :  { %v10688_v10 = vadd.f32 %v10687_v8, %v3531_v24  ;;  %v9241_v11 = vpop.f32.mrb[19].mxu1  ;;  %v10727_v8 = vld [vmem:[#allocation4 + $0x58] sm:$0xff] }
 0x513   :  { %3701 = vst [vmem:[#allocation4 + $0x8] sm:$0xff] %v10688_v10 }
 0x514   :  { %v3536_v13 = vpop.f32.mrb[20].mxu1 }
 0x515   :  { %v10692_v15 = vadd.f32 %v10691_v14, %v3536_v13  ;;  %v9244_v16 = vpop.f32.mrb[21].mxu1 }
 0x517   :  { %3702 = vst [vmem:[#allocation4 + $0x10] sm:$0xff] %v10692_v15  ;;  %v10731_v15 = vld [vmem:[#allocation4 + $0x60] sm:$0xff] }
 0x518   :  { %v3541_v17 = vpop.f32.mrb[22].mxu1 }
 0x519   :  { %v10696_v19 = vadd.f32 %v10695_v18, %v3541_v17  ;;  %v9247_v20 = vpop.f32.mrb[23].mxu1  ;;  %v10735_v18 = vld [vmem:[#allocation4 + $0x68] sm:$0xff] }
 0x51b   :  { %3703 = vst [vmem:[#allocation4 + $0x18] sm:$0xff] %v10696_v19 }
 0x51c   :  { %v3546_v22 = vpop.f32.mrb[24].mxu1 }
 0x51d   :  { %v10700_v25 = vadd.f32 %v10699_v23, %v3546_v22  ;;  %v9250_v26 = vpop.f32.mrb[25].mxu1 }
 0x51e   :  { %v3726_v27 = vld [vmem:[#allocation4 + $0xb] ss:$2 sm:$0xf]  ;;  %v3728_v29 = vld [vmem:[#allocation4 + $0xc] ss:$2 sm:$0xf] }
 0x51f   :  { %3704 = vst [vmem:[#allocation4 + $0x20] sm:$0xff] %v10700_v25  ;;  %v3733_v36 = vmax.f32 %v3726_v27, %v3728_v29 }
 0x520   :  { %v3551_v30 = vpop.f32.mrb[26].mxu1 }
 0x521   :  { %v10704_v32 = vadd.f32 %v10703_v31, %v3551_v30  ;;  %v9253_v33 = vpop.f32.mrb[27].mxu1  ;;  %v10739_v30 = vld [vmem:[#allocation4 + $0x70] sm:$0xff] }
 0x522   :  { %v3730_v34 = vld [vmem:[#allocation4 + $0x15] ss:$2 sm:$0xf]  ;;  %v3732_v35 = vld [vmem:[#allocation4 + $0x16] ss:$2 sm:$0xf] }
 0x523   :  { %v3734_v38 = vmax.f32 %v3730_v34, %v3732_v35  ;;  %3705 = vst [vmem:[#allocation4 + $0x28] sm:$0xff] %v10704_v32 }
 0x524   :  { %v3556_v40 = vpop.f32.mrb[28].mxu1 }
 0x525   :  { %v10708_v42 = vadd.f32 %v10707_v41, %v3556_v40  ;;  %v9256_v4 = vpop.f32.mrb[29].mxu1  ;;  %v3735_v59 = vmax.f32 %v3733_v36, %v3734_v38  ;;  %v10743_v40 = vld [vmem:[#allocation4 + $0x78] sm:$0xff] }
 0x526   :  { %v3738_v47 = vld [vmem:[#allocation4 + $0x1f] ss:$2 sm:$0xf]  ;;  %v3740_v48 = vld [vmem:[#allocation4 + $0x20] ss:$2 sm:$0xf] }
 0x527   :  { %3706 = vst [vmem:[#allocation4 + $0x30] sm:$0xff] %v10708_v42  ;;  %3736 = vst [vmem:[#allocation5 + $0xe] sm:$0xf] %v3735_v59  ;;  %v3745_v28 = vmax.f32 %v3738_v47, %v3740_v48  ;;  %v10747_v59 = vld [vmem:[#allocation4 + $0x80] sm:$0xff] }
 0x528   :  { %v3561_v43 = vpop.f32.mrb[30].mxu1 }
 0x529   :  { %v10712_v46 = vadd.f32 %v10711_v45, %v3561_v43  ;;  %v9259_v21 = vpop.f32.mrb[31].mxu1 }
 0x52a   :  { %v3742_v9 = vld [vmem:[#allocation4 + $0x29] ss:$2 sm:$0xf] }
 0x52b   :  { %3707 = vst [vmem:[#allocation4 + $0x38] sm:$0xff] %v10712_v46  ;;  %v10750_v46 = vld [vmem:[#allocation4 + $0x88] sm:$0xff] }
 0x52c   :  { %v3566_v49 = vpop.f32.mrb[32].mxu1 }
 0x52d   :  { %v10716_v52 = vadd.f32 %v10715_v51, %v3566_v49  ;;  %v9262_v53 = vpop.f32.mrb[33].mxu1  ;;  %v10753_v51 = vld [vmem:[#allocation4 + $0x90] sm:$0xff] }
 0x52e   :  { %v3744_v54 = vld [vmem:[#allocation4 + $0x2a] ss:$2 sm:$0xf] }
 0x52f   :  { %v13186_v56 = vld [vmem:[#allocation5 + $0x8] sm:$0xff]  ;;  %v3746_v57 = vmax.f32 %v3742_v9, %v3744_v54  ;;  %3708 = vst [vmem:[#allocation4 + $0x40] sm:$0xff] %v10716_v52 }
 0x530   :  { %9347 = vmatmul.mubr.f32.gmra.mrb[100].mxu0 %v13186_v56  ;;  %v3571_v58 = vpop.f32.mrb[34].mxu1 }
 0x531   :  { %9349 = vmatprep.mubr.msk.f32.mxu0 %vm11416_vm2, %v13189_v60  ;;  %v10720_v61 = vadd.f32 %v10719_v39, %v3571_v58  ;;  %v9265_v44 = vpop.f32.mrb[35].mxu1  ;;  %v3747_v62 = vmax.f32 %v3745_v28, %v3746_v57  ;;  %v10756_v57 = vld [vmem:[#allocation4 + $0x98] sm:$0xff] }
 0x532   :  { %v3750_v0 = vld [vmem:[#allocation4 + $0x33] ss:$2 sm:$0xf]  ;;  %v3752_v50 = vld [vmem:[#allocation4 + $0x34] ss:$2 sm:$0xf] }
 0x533   :  { %3709 = vst [vmem:[#allocation4 + $0x48] sm:$0xff] %v10720_v61  ;;  %3748 = vst [vmem:[#allocation5 + $0x14] sm:$0xf] %v3747_v62  ;;  %v3757_v3 = vmax.f32 %v3750_v0, %v3752_v50 }
 0x534   :  { %v3576_v37 = vpop.f32.mrb[36].mxu1 }
 0x535   :  { %v10724_v55 = vadd.f32 %v10723_v1, %v3576_v37  ;;  %v9268_v2 = vpop.f32.mrb[37].mxu1  ;;  %v10759_v1 = vld [vmem:[#allocation4 + $0xa0] sm:$0xff] }
 0x536   :  { %v3754_v5 = vld [vmem:[#allocation4 + $0x3d] ss:$2 sm:$0xf]  ;;  %v3756_v63 = vld [vmem:[#allocation4 + $0x3e] ss:$2 sm:$0xf] }
 0x537   :  { %v3758_v6 = vmax.f32 %v3754_v5, %v3756_v63  ;;  %3710 = vst [vmem:[#allocation4 + $0x50] sm:$0xff] %v10724_v55 }
 0x538   :  { %v3581_v7 = vpop.f32.mrb[38].mxu1 }
 0x539   :  { %v10728_v24 = vadd.f32 %v10727_v8, %v3581_v7  ;;  %v9271_v10 = vpop.f32.mrb[39].mxu1  ;;  %v3759_v11 = vmax.f32 %v3757_v3, %v3758_v6  ;;  %v10762_v6 = vld [vmem:[#allocation4 + $0xa8] sm:$0xff] }
 0x53a   :  { %v13193_v13 = vld [vmem:[#allocation5 + $0x10] sm:$0xff]  ;;  %v3762_v19 = vld [vmem:[#allocation4 + $0x47] ss:$2 sm:$0xf] }
 0x53b   :  { %3711 = vst [vmem:[#allocation4 + $0x58] sm:$0xff] %v10728_v24  ;;  %3760 = vst [vmem:[#allocation5 + $0x1a] sm:$0xf] %v3759_v11  ;;  %9350 = vmatmul.mubr.f32.gmra.mrb[102].mxu0 %v13193_v13  ;;  %v3764_v20 = vld [vmem:[#allocation4 + $0x48] ss:$2 sm:$0xf] }
 0x53c   :  { %v3586_v14 = vpop.f32.mrb[40].mxu1  ;;  %9352 = vmatprep.mubr.msk.f32.mxu0 %vm11416_vm2, %v13189_v60  ;;  %v3769_v31 = vmax.f32 %v3762_v19, %v3764_v20 }
 0x53d   :  { %v10732_v16 = vadd.f32 %v10731_v15, %v3586_v14  ;;  %v9274_v17 = vpop.f32.mrb[41].mxu1 }
 0x53e   :  { %v3766_v23 = vld [vmem:[#allocation4 + $0x51] ss:$2 sm:$0xf] }
 0x53f   :  { %3712 = vst [vmem:[#allocation4 + $0x60] sm:$0xff] %v10732_v16  ;;  %v10765_v17 = vld [vmem:[#allocation4 + $0xb0] sm:$0xff] }
 0x540   :  { %v3591_v22 = vpop.f32.mrb[42].mxu1 }
 0x541   :  { %v10736_v25 = vadd.f32 %v10735_v18, %v3591_v22  ;;  %v9277_v26 = vpop.f32.mrb[43].mxu1 }
 0x542   :  { %v3768_v27 = vld [vmem:[#allocation4 + $0x52] ss:$2 sm:$0xf]  ;;  %v13198_v29 = vld [vmem:[#allocation5 + $0x18] sm:$0xff] }
 0x543   :  { %v3770_v32 = vmax.f32 %v3766_v23, %v3768_v27  ;;  %3713 = vst [vmem:[#allocation4 + $0x68] sm:$0xff] %v10736_v25  ;;  %9353 = vmatmul.mubr.f32.gmra.mrb[104].mxu0 %v13198_v29  ;;  %v10768_v23 = vld [vmem:[#allocation4 + $0xb8] sm:$0xff] }
 0x544   :  { %v3596_v33 = vpop.f32.mrb[44].mxu1  ;;  %9355 = vmatprep.mubr.msk.f32.mxu0 %vm11416_vm2, %v13189_v60 }
 0x545   :  { %v10740_v34 = vadd.f32 %v10739_v30, %v3596_v33  ;;  %v9280_v35 = vpop.f32.mrb[45].mxu1  ;;  %v3771_v36 = vmax.f32 %v3769_v31, %v3770_v32  ;;  %v10771_v32 = vld [vmem:[#allocation4 + $0xc0] sm:$0xff] }
 0x547   :  { %3714 = vst [vmem:[#allocation4 + $0x70] sm:$0xff] %v10740_v34  ;;  %3772 = vst [vmem:[#allocation5 + $0x20] sm:$0xf] %v3771_v36 }
 0x548   :  { %v3601_v38 = vpop.f32.mrb[46].mxu1 }
 0x549   :  { %v10744_v41 = vadd.f32 %v10743_v40, %v3601_v38  ;;  %v9283_v42 = vpop.f32.mrb[47].mxu1 }
 0x54b   :  { %3715 = vst [vmem:[#allocation4 + $0x78] sm:$0xff] %v10744_v41 }
 0x54c   :  { %v3606_v4 = vpop.f32.mrb[48].mxu1 }
 0x54d   :  { %v10748_v43 = vadd.f32 %v10747_v59, %v3606_v4  ;;  %v9286_v45 = vpop.f32.mrb[49].mxu1 }
 0x54e   :  { %v13203_v21 = vld [vmem:[#allocation5 + $0x20] sm:$0xff]  ;;  %v3776_v52 = vld [vmem:[#allocation4 + $0x70] ss:$2 sm:$0xf] }
 0x54f   :  { %3716 = vst [vmem:[#allocation4 + $0x80] sm:$0xff] %v10748_v43  ;;  %9356 = vmatmul.mubr.f32.gmra.mrb[106].mxu0 %v13203_v21  ;;  %v3774_v9 = vld [vmem:[#allocation4 + $0x6f] ss:$2 sm:$0xf] }
 0x550   :  { %v3611_v47 = vpop.f32.mrb[0].mxu1  ;;  %9358 = vmatprep.mubr.msk.f32.mxu0 %vm11416_vm2, %v13189_v60  ;;  %v3781_v61 = vmax.f32 %v3774_v9, %v3776_v52  ;;  %v7152_v9 = vld [vmem:[%s14924_s5 + $0x108] sm:$0xff] }
 0x551   :  { %v10751_v48 = vadd.f32 %v10750_v46, %v3611_v47  ;;  %v9289_v49 = vpop.f32.mrb[1].mxu1 }
 0x552   :  { %v3778_v58 = vld [vmem:[#allocation4 + $0x79] ss:$2 sm:$0xf] }
 0x553   :  { %3717 = vst [vmem:[#allocation4 + $0x88] sm:$0xff] %v10751_v48  ;;  %9359 = vmatmul.mubr.f32.gmra.mrb[108].mxu0 %v13189_v60 }
 0x554   :  { %v3616_v53 = vpop.f32.mrb[2].mxu1  ;;  %9361 = vmatprep.mubr.msk.f32.mxu0 %vm11416_vm2, %v13189_v60 }
 0x555   :  { %v10754_v54 = vadd.f32 %v10753_v51, %v3616_v53  ;;  %v9292_v28 = vpop.f32.mrb[3].mxu1  ;;  %v7151_v51 = vld [vmem:[%s14924_s5 + $0x100] sm:$0xff]  ;;  %v3972_v53 = vld [vmem:[#allocation5 + $0x1] sm:$0xff] }
 0x556   :  { %v3780_v39 = vld [vmem:[#allocation4 + $0x7a] ss:$2 sm:$0xf]  ;;  %v7153_v28 = vld [vmem:[%s14924_s5 + $0x110] sm:$0xff] }
 0x557   :  { %v3782_v44 = vmax.f32 %v3778_v58, %v3780_v39  ;;  %3718 = vst [vmem:[#allocation4 + $0x90] sm:$0xff] %v10754_v54  ;;  %v10154_v54 = vpack.c.bf16 %v7152_v9, %v7151_v51  ;;  %v7155_v39 = vld [vmem:[%s14924_s5 + $0x120] sm:$0xff]  ;;  %v4140_v51 = vld [vmem:[#allocation5 + $0x2a] sm:$0xff] }
 0x558   :  { %v3621_v62 = vpop.f32.mrb[4].mxu1 }
 0x559   :  { %v10757_v0 = vadd.f32 %v10756_v57, %v3621_v62  ;;  %v9295_v50 = vpop.f32.mrb[5].mxu1  ;;  %v3783_v37 = vmax.f32 %v3781_v61, %v3782_v44  ;;  %v7154_v57 = vld [vmem:[%s14924_s5 + $0x118] sm:$0xff]  ;;  %v7156_v61 = vld [vmem:[%s14924_s5 + $0x128] sm:$0xff] }
 0x55a   :  { %v3786_v55 = vld [vmem:[#allocation4 + $0x83] ss:$2 sm:$0xf]  ;;  %v3788_v2 = vld [vmem:[#allocation4 + $0x84] ss:$2 sm:$0xf]  ;;  %v10157_v58 = vpack.c.bf16 %v7154_v57, %v7153_v28  ;;  %v10160_v62 = vpack.c.bf16 %v7156_v61, %v7155_v39 }
 0x55b   :  { %3719 = vst [vmem:[#allocation4 + $0x98] sm:$0xff] %v10757_v0  ;;  %3784 = vst [vmem:[#allocation5 + $0x32] sm:$0xf] %v3783_v37  ;;  %v3793_v24 = vmax.f32 %v3786_v55, %v3788_v2  ;;  %v3973_v44 = vld [vmem:[#allocation5 + $0x9] sm:$0xff]  ;;  %v3974_v37 = vld [vmem:[#allocation5 + $0x11] sm:$0xff] }
 0x55c   :  { %v3626_v5 = vpop.f32.mrb[6].mxu1  ;;  %v7157_v0 = vld [vmem:[%s14924_s5 + $0x130] sm:$0xff]  ;;  %v7158_v50 = vld [vmem:[%s14924_s5 + $0x138] sm:$0xff]  ;;  %v7159_v55 = vld [vmem:[%s14924_s5 + $0x140] sm:$0xff] }
 0x55d   :  { %v10760_v63 = vadd.f32 %v10759_v1, %v3626_v5  ;;  %v9298_v3 = vpop.f32.mrb[7].mxu1  ;;  %v10163_v1 = vpack.c.bf16 %v7158_v50, %v7157_v0  ;;  %v7160_v2 = vld [vmem:[%s14924_s5 + $0x148] sm:$0xff]  ;;  %v7181_v57 = vld [vmem:[%s14924_s5 + $0x1f0] sm:$0xff] }
 0x55e   :  { %v3790_v7 = vld [vmem:[#allocation4 + $0x8d] ss:$2 sm:$0xf]  ;;  %v3792_v8 = vld [vmem:[#allocation4 + $0x8e] ss:$2 sm:$0xf] }
 0x55f   :  { %v3794_v10 = vmax.f32 %v3790_v7, %v3792_v8  ;;  %3720 = vst [vmem:[#allocation4 + $0xa0] sm:$0xff] %v10760_v63  ;;  %v3975_v5 = vld [vmem:[#allocation5 + $0x19] sm:$0xff]  ;;  %v10166_v63 = vpack.c.bf16 %v7160_v2, %v7159_v55  ;;  %v7161_v3 = vld [vmem:[%s14924_s5 + $0x150] sm:$0xff]  ;;  %v7186_v2 = vld [vmem:[%s14924_s5 + $0x218] sm:$0xff] }
 0x560   :  { %v3631_v11 = vpop.f32.mrb[8].mxu1  ;;  %v3976_v7 = vld [vmem:[#allocation5 + $0x21] sm:$0xff]  ;;  %v3977_v8 = vld [vmem:[#allocation5 + $0x29] sm:$0xff] }
 0x561   :  { %v10763_v14 = vadd.f32 %v10762_v6, %v3631_v11  ;;  %v9301_v15 = vpop.f32.mrb[9].mxu1  ;;  %v3795_v16 = vmax.f32 %v3793_v24, %v3794_v10  ;;  %v7162_v6 = vld [vmem:[%s14924_s5 + $0x158] sm:$0xff]  ;;  %v7163_v10 = vld [vmem:[%s14924_s5 + $0x160] sm:$0xff]  ;;  %v7164_v11 = vld [vmem:[%s14924_s5 + $0x168] sm:$0xff] }
 0x562   :  { %v13211_v18 = vld [vmem:[#allocation5 + $0x30] sm:$0xff]  ;;  %v10169_v24 = vpack.c.bf16 %v7162_v6, %v7161_v3  ;;  %v7165_v15 = vld [vmem:[%s14924_s5 + $0x170] sm:$0xff]  ;;  %v7184_v0 = vld [vmem:[%s14924_s5 + $0x208] sm:$0xff] }
 0x563   :  { %3721 = vst [vmem:[#allocation4 + $0xa8] sm:$0xff] %v10763_v14  ;;  %3796 = vst [vmem:[#allocation5 + $0x38] sm:$0xf] %v3795_v16  ;;  %9362 = vmatmul.mubr.f32.gmra.mrb[110].mxu0 %v13211_v18  ;;  %v3798_v25 = vld [vmem:[#allocation4 + $0x97] ss:$2 sm:$0xf]  ;;  %v10172_v14 = vpack.c.bf16 %v7164_v11, %v7163_v10 }
 0x564   :  { %v3636_v19 = vpop.f32.mrb[10].mxu1  ;;  %9364 = vmatprep.mubr.msk.f32.mxu0 %vm11416_vm2, %v13189_v60  ;;  %v3800_v26 = vld [vmem:[#allocation4 + $0x98] ss:$2 sm:$0xf]  ;;  %v7185_v55 = vld [vmem:[%s14924_s5 + $0x210] sm:$0xff]  ;;  %v7188_v3 = vld [vmem:[%s14924_s5 + $0x228] sm:$0xff] }
 0x565   :  { %v10766_v20 = vadd.f32 %v10765_v17, %v3636_v19  ;;  %v9304_v22 = vpop.f32.mrb[11].mxu1  ;;  %v3805_v35 = vmax.f32 %v3798_v25, %v3800_v26  ;;  %v7166_v16 = vld [vmem:[%s14924_s5 + $0x178] sm:$0xff]  ;;  %v4135_v26 = vld [vmem:[#allocation5 + $0x2] sm:$0xff] }
 0x566   :  { %v3802_v33 = vld [vmem:[#allocation4 + $0xa1] ss:$2 sm:$0xf]  ;;  %v10175_v19 = vpack.c.bf16 %v7166_v16, %v7165_v15  ;;  %v13395_v6 = vld [vmem:[#allocation5 + $0xe] sm:$0xff]  ;;  %v7192_v15 = vld [vmem:[%s14924_s5 + $0x248] sm:$0xff] }
 0x567   :  { %3722 = vst [vmem:[#allocation4 + $0xb0] sm:$0xff] %v10766_v20  ;;  %v7167_v22 = vld [vmem:[%s14924_s5 + $0x180] sm:$0xff] }
 0x568   :  { %v3641_v27 = vpop.f32.mrb[12].mxu1  ;;  %v13407_v10 = vld [vmem:[#allocation5 + $0x16] sm:$0xff]  ;;  %v13419_v16 = vld [vmem:[#allocation5 + $0x1e] sm:$0xff] }
 0x569   :  { %v10769_v30 = vadd.f32 %v10768_v23, %v3641_v27  ;;  %v9307_v31 = vpop.f32.mrb[13].mxu1  ;;  %v7168_v23 = vld [vmem:[%s14924_s5 + $0x188] sm:$0xff] }
 0x56a   :  { %v3804_v34 = vld [vmem:[#allocation4 + $0xa2] ss:$2 sm:$0xf]  ;;  %v3978_v17 = vld [vmem:[#allocation5 + $0x31] sm:$0xff]  ;;  %v10178_v27 = vpack.c.bf16 %v7168_v23, %v7167_v22 }
 0x56b   :  { %v3806_v36 = vmax.f32 %v3802_v33, %v3804_v34  ;;  %3723 = vst [vmem:[#allocation4 + $0xb8] sm:$0xff] %v10769_v30  ;;  %v7169_v30 = vld [vmem:[%s14924_s5 + $0x190] sm:$0xff]  ;;  %v7170_v31 = vld [vmem:[%s14924_s5 + $0x198] sm:$0xff]  ;;  %v7171_v33 = vld [vmem:[%s14924_s5 + $0x1a0] sm:$0xff] }
 0x56c   :  { %v3646_v38 = vpop.f32.mrb[14].mxu1  ;;  %v7172_v34 = vld [vmem:[%s14924_s5 + $0x1a8] sm:$0xff]  ;;  %v4141_v39 = vld [vmem:[#allocation5 + $0x32] sm:$0xff] }
 0x56d   :  { %v10772_v40 = vadd.f32 %v10771_v32, %v3646_v38  ;;  %v9310_v41 = vpop.f32.mrb[15].mxu1  ;;  %v3807_v42 = vmax.f32 %v3805_v35, %v3806_v36  ;;  %v10181_v32 = vpack.c.bf16 %v7170_v31, %v7169_v30  ;;  %v4136_v35 = vld [vmem:[#allocation5 + $0xa] sm:$0xff]  ;;  %v10184_v36 = vpack.c.bf16 %v7172_v34, %v7171_v33  ;;  %v13455_v33 = vld [vmem:[#allocation5 + $0x36] sm:$0xff] }
 0x56e   :  { %v3810_v4 = vld [vmem:[#allocation4 + $0xab] ss:$2 sm:$0xf]  ;;  %v3812_v59 = vld [vmem:[#allocation4 + $0xac] ss:$2 sm:$0xf] }
 0x56f   :  { %3724 = vst [vmem:[#allocation4 + $0xc0] sm:$0xff] %v10772_v40  ;;  %3808 = vst [vmem:[#allocation5 + $0x3e] sm:$0xf] %v3807_v42  ;;  %v3817_v46 = vmax.f32 %v3810_v4, %v3812_v59  ;;  %v7173_v38 = vld [vmem:[%s14924_s5 + $0x1b0] sm:$0xff]  ;;  %v7174_v40 = vld [vmem:[%s14924_s5 + $0x1b8] sm:$0xff] }
 0x570   :  { %v4137_v41 = vld [vmem:[#allocation5 + $0x12] sm:$0xff]  ;;  %v10187_v42 = vpack.c.bf16 %v7174_v40, %v7173_v38  ;;  %v7176_v59 = vld [vmem:[%s14924_s5 + $0x1c8] sm:$0xff]  ;;  %v7197_v31 = vld [vmem:[%s14924_s5 + $0x270] sm:$0xff] }
 0x571   :  { %v7175_v4 = vld [vmem:[%s14924_s5 + $0x1c0] sm:$0xff]  ;;  %v7194_v22 = vld [vmem:[%s14924_s5 + $0x258] sm:$0xff]  ;;  %v7200_v38 = vld [vmem:[%s14924_s5 + $0x288] sm:$0xff] }
 0x572   :  { %v3814_v43 = vld [vmem:[#allocation4 + $0xb5] ss:$2 sm:$0xf]  ;;  %v3816_v45 = vld [vmem:[#allocation4 + $0xb6] ss:$2 sm:$0xf] }
 0x573   :  { %v3818_v47 = vmax.f32 %v3814_v43, %v3816_v45  ;;  %v4138_v43 = vld [vmem:[#allocation5 + $0x1a] sm:$0xff]  ;;  %v10190_v45 = vpack.c.bf16 %v7176_v59, %v7175_v4  ;;  %v7202_v4 = vld [vmem:[%s14924_s5 + $0x298] sm:$0xff]  ;;  %v4461_v59 = vld [vmem:[#allocation5 + $0x7] sm:$0xff] }
 0x575   :  { %v3819_v48 = vmax.f32 %v3817_v46, %v3818_v47  ;;  %v7177_v46 = vld [vmem:[%s14924_s5 + $0x1d0] sm:$0xff]  ;;  %v7178_v47 = vld [vmem:[%s14924_s5 + $0x1d8] sm:$0xff] }
 0x576   :  { %v13216_v49 = vld [vmem:[#allocation5 + $0x38] sm:$0xff]  ;;  %v10193_v9 = vpack.c.bf16 %v7178_v47, %v7177_v46  ;;  %v7204_v46 = vld [vmem:[%s14924_s5 + $0x2a8] sm:$0xff]  ;;  %v4462_v47 = vld [vmem:[#allocation5 + $0xf] sm:$0xff] }
 0x577   :  { %9365 = vmatmul.mubr.f32.gmra.mrb[112].mxu0 %v13216_v49  ;;  %3820 = vst [vmem:[#allocation5 + $0x44] sm:$0xf] %v3819_v48  ;;  %v3979_v20 = vld [vmem:[#allocation5 + $0x39] sm:$0xff]  ;;  %v4139_v48 = vld [vmem:[#allocation5 + $0x22] sm:$0xff] }
 0x578   :  { %9367 = vmatprep.mubr.msk.f32.mxu0 %vm11416_vm2, %v13189_v60 }
 0x57e   :  { %v13227_v52 = vld [vmem:[#allocation5 + $0x40] sm:$0xff] }
 0x57f   :  { %9368 = vmatmul.mubr.f32.gmra.mrb[114].mxu0 %v13227_v52  ;;  %v3980_v25 = vld [vmem:[#allocation5 + $0x41] sm:$0xff] }
 0x580   :  { %9402 = vmatprep.mubr.msk.f32.mxu0 %vm11416_vm2, %v13189_v60  ;;  %v4143_v50 = vld [vmem:[#allocation5 + $0x42] sm:$0xff] }
 0x581   :  { %v13473_v40 = vld [vmem:[#allocation5 + $0x46] sm:$0xff] }
 0x583   :  { %9403 = vmatmul.mubr.f32.vlgmr.msra.gmra.mrb[98].mxu0 %v3972_v53  ;;  %v7179_v53 = vld [vmem:[%s14924_s5 + $0x1e0] sm:$0xff] }
 0x584   :  { %10155 = vmatpush3.bf16.msra.mxu0 %v10154_v54  ;;  %9405 = vmatprep.mubr.msk.f32.mxu0 %vm11416_vm2, %v13189_v60  ;;  %v7180_v54 = vld [vmem:[%s14924_s5 + $0x1e8] sm:$0xff] }
 0x585   :  { %10156 = vmatprep.subr.bf16.mxu0 %v11414_v12  ;;  %v10196_v28 = vpack.c.bf16 %v7180_v54, %v7179_v53  ;;  %v4463_v53 = vld [vmem:[#allocation5 + $0x17] sm:$0xff] }
 0x587   :  { %9406 = vmatmul.mubr.f32.gmra.mrb[100].mxu0 %v3973_v44  ;;  %v4142_v44 = vld [vmem:[#allocation5 + $0x3a] sm:$0xff] }
 0x588   :  { %10158 = vmatpush3.bf16.msra.mxu0 %v10157_v58  ;;  %9408 = vmatprep.mubr.msk.f32.mxu0 %vm11416_vm2, %v13189_v60  ;;  %v7182_v58 = vld [vmem:[%s14924_s5 + $0x1f8] sm:$0xff] }
 0x589   :  { %10159 = vmatprep.subr.bf16.mxu0 %v11414_v12  ;;  %v10199_v61 = vpack.c.bf16 %v7182_v58, %v7181_v57  ;;  %v7208_v57 = vld [vmem:[%s14924_s5 + $0x2c8] sm:$0xff] }
 0x58a   :  { %v4464_v58 = vld [vmem:[#allocation5 + $0x1f] sm:$0xff] }
 0x58b   :  { %9409 = vmatmul.mubr.f32.gmra.mrb[102].mxu0 %v3974_v37  ;;  %v4298_v37 = vld [vmem:[#allocation5 + $0x6] sm:$0xff] }
 0x58c   :  { %10161 = vmatpush3.bf16.msra.mxu0 %v10160_v62  ;;  %9411 = vmatprep.mubr.msk.f32.mxu0 %vm11416_vm2, %v13189_v60  ;;  %v7183_v62 = vld [vmem:[%s14924_s5 + $0x200] sm:$0xff] }
 0x58d   :  { %10162 = vmatprep.subr.bf16.mxu0 %v11414_v12 }
 0x58f   :  { %9412 = vmatmul.mubr.f32.gmra.mrb[104].mxu0 %v3975_v5  ;;  %v10205_v5 = vpack.c.bf16 %v7186_v2, %v7185_v55  ;;  %v7213_v2 = vld [vmem:[%s14924_s5 + $0x2f0] sm:$0xff] }
 0x590   :  { %10164 = vmatpush3.bf16.msra.mxu0 %v10163_v1  ;;  %9414 = vmatprep.mubr.msk.f32.mxu0 %vm11416_vm2, %v13189_v60  ;;  %v10202_v1 = vpack.c.bf16 %v7184_v0, %v7183_v62  ;;  %v7210_v62 = vld [vmem:[%s14924_s5 + $0x2d8] sm:$0xff] }
 0x591   :  { %10165 = vmatprep.subr.bf16.mxu0 %v11414_v12 }
 0x593   :  { %9415 = vmatmul.mubr.f32.gmra.mrb[106].mxu0 %v3976_v7 }
 0x594   :  { %10167 = vmatpush3.bf16.msra.mxu0 %v10166_v63  ;;  %9417 = vmatprep.mubr.msk.f32.mxu0 %vm11416_vm2, %v13189_v60  ;;  %v7187_v63 = vld [vmem:[%s14924_s5 + $0x220] sm:$0xff] }
 0x595   :  { %10168 = vmatprep.subr.bf16.mxu0 %v11414_v12  ;;  %v10208_v7 = vpack.c.bf16 %v7188_v3, %v7187_v63  ;;  %v4467_v63 = vld [vmem:[#allocation5 + $0x37] sm:$0xff] }
 0x597   :  { %9418 = vmatmul.mubr.f32.gmra.mrb[108].mxu0 %v3977_v8  ;;  %v7189_v8 = vld [vmem:[%s14924_s5 + $0x230] sm:$0xff] }
 0x598   :  { %9420 = vmatprep.mubr.msk.f32.mxu0 %vm11416_vm2, %v13189_v60  ;;  %10170 = vmatpush3.bf16.msra.mxu0 %v10169_v24  ;;  %v7190_v24 = vld [vmem:[%s14924_s5 + $0x238] sm:$0xff] }
 0x599   :  { %10171 = vmatprep.subr.bf16.mxu0 %v11414_v12  ;;  %v10211_v11 = vpack.c.bf16 %v7190_v24, %v7189_v8  ;;  %v7215_v8 = vld [vmem:[%s14924_s5 + $0x300] sm:$0xff]  ;;  %v7216_v24 = vld [vmem:[%s14924_s5 + $0x308] sm:$0xff] }
 0x59b   :  { %9421 = vmatmul.mubr.f32.gmra.mrb[110].mxu0 %v3978_v17  ;;  %v13424_v17 = vld [vmem:[#allocation5 + $0x26] sm:$0xff] }
 0x59c   :  { %9423 = vmatprep.mubr.msk.f32.mxu0 %vm11416_vm2, %v13189_v60  ;;  %10173 = vmatpush3.bf16.msra.mxu0 %v10172_v14  ;;  %v7191_v14 = vld [vmem:[%s14924_s5 + $0x240] sm:$0xff] }
 0x59d   :  { %10174 = vmatprep.subr.bf16.mxu0 %v11414_v12 }
 0x59f   :  { %9424 = vmatmul.mubr.f32.gmra.mrb[112].mxu0 %v3979_v20  ;;  %v7193_v20 = vld [vmem:[%s14924_s5 + $0x250] sm:$0xff] }
 0x5a0   :  { %9426 = vmatprep.mubr.msk.f32.mxu0 %vm11416_vm2, %v13189_v60  ;;  %10176 = vmatpush3.bf16.msra.mxu0 %v10175_v19  ;;  %v10214_v19 = vpack.c.bf16 %v7192_v15, %v7191_v14  ;;  %v10217_v23 = vpack.c.bf16 %v7194_v22, %v7193_v20  ;;  %v10250_v14 = vpack.c.bf16 %v7216_v24, %v7215_v8  ;;  %v7217_v15 = vld [vmem:[%s14924_s5 + $0x310] sm:$0xff]  ;;  %v7219_v22 = vld [vmem:[%s14924_s5 + $0x320] sm:$0xff] }
 0x5a1   :  { %10177 = vmatprep.subr.bf16.mxu0 %v11414_v12  ;;  %v4793_v8 = vld [vmem:[#allocation5 + $0x3c] sm:$0xff] }
 0x5a3   :  { %9427 = vmatmul.mubr.f32.gmra.mrb[114].mxu0 %v3980_v25  ;;  %v7195_v25 = vld [vmem:[%s14924_s5 + $0x260] sm:$0xff] }
 0x5a4   :  { %9461 = vmatprep.mubr.msk.f32.mxu0 %vm11416_vm2, %v13189_v60 }
 0x5a7   :  { %9462 = vmatmul.mubr.f32.vlgmr.msra.gmra.mrb[98].mxu0 %v4135_v26  ;;  %v7196_v26 = vld [vmem:[%s14924_s5 + $0x268] sm:$0xff] }
 0x5a8   :  { %10179 = vmatpush3.bf16.msra.mxu0 %v10178_v27  ;;  %9464 = vmatprep.mubr.msk.f32.mxu0 %vm11416_vm2, %v13189_v60  ;;  %v13443_v27 = vld [vmem:[#allocation5 + $0x2e] sm:$0xff]  ;;  %v10220_v30 = vpack.c.bf16 %v7196_v26, %v7195_v25 }
 0x5a9   :  { %10180 = vmatprep.subr.bf16.mxu0 %v11414_v12  ;;  %v7221_v25 = vld [vmem:[%s14924_s5 + $0x330] sm:$0xff]  ;;  %v7222_v26 = vld [vmem:[%s14924_s5 + $0x338] sm:$0xff] }
 0x5ab   :  { %9465 = vmatmul.mubr.f32.gmra.mrb[100].mxu0 %v4136_v35  ;;  %v13461_v35 = vld [vmem:[#allocation5 + $0x3e] sm:$0xff] }
 0x5ac   :  { %10182 = vmatpush3.bf16.msra.mxu0 %v10181_v32  ;;  %9467 = vmatprep.mubr.msk.f32.mxu0 %vm11416_vm2, %v13189_v60  ;;  %v7198_v32 = vld [vmem:[%s14924_s5 + $0x278] sm:$0xff] }
 0x5ad   :  { %10183 = vmatprep.subr.bf16.mxu0 %v11414_v12  ;;  %v10223_v34 = vpack.c.bf16 %v7198_v32, %v7197_v31  ;;  %v7224_v31 = vld [vmem:[%s14924_s5 + $0x348] sm:$0xff]  ;;  %v7225_v32 = vld [vmem:[%s14924_s5 + $0x350] sm:$0xff] }
 0x5af   :  { %9468 = vmatmul.mubr.f32.gmra.mrb[102].mxu0 %v4137_v41 }
 0x5b0   :  { %10185 = vmatpush3.bf16.msra.mxu0 %v10184_v36  ;;  %9470 = vmatprep.mubr.msk.f32.mxu0 %vm11416_vm2, %v13189_v60  ;;  %v7199_v36 = vld [vmem:[%s14924_s5 + $0x280] sm:$0xff] }
 0x5b1   :  { %10186 = vmatprep.subr.bf16.mxu0 %v11414_v12  ;;  %v10226_v41 = vpack.c.bf16 %v7200_v38, %v7199_v36  ;;  %v7227_v36 = vld [vmem:[%s14924_s5 + $0x360] sm:$0xff]  ;;  %v7228_v38 = vld [vmem:[%s14924_s5 + $0x368] sm:$0xff] }
 0x5b3   :  { %9471 = vmatmul.mubr.f32.gmra.mrb[104].mxu0 %v4138_v43 }
 0x5b4   :  { %10188 = vmatpush3.bf16.msra.mxu0 %v10187_v42  ;;  %9473 = vmatprep.mubr.msk.f32.mxu0 %vm11416_vm2, %v13189_v60  ;;  %v7201_v42 = vld [vmem:[%s14924_s5 + $0x290] sm:$0xff] }
 0x5b5   :  { %10189 = vmatprep.subr.bf16.mxu0 %v11414_v12  ;;  %v10229_v43 = vpack.c.bf16 %v7202_v4, %v7201_v42  ;;  %v7229_v42 = vld [vmem:[%s14924_s5 + $0x370] sm:$0xff]  ;;  %v7230_v4 = vld [vmem:[%s14924_s5 + $0x378] sm:$0xff] }
 0x5b7   :  { %9474 = vmatmul.mubr.f32.gmra.mrb[106].mxu0 %v4139_v48 }
 0x5b8   :  { %10191 = vmatpush3.bf16.msra.mxu0 %v10190_v45  ;;  %9476 = vmatprep.mubr.msk.f32.mxu0 %vm11416_vm2, %v13189_v60  ;;  %v7203_v45 = vld [vmem:[%s14924_s5 + $0x2a0] sm:$0xff] }
 0x5b9   :  { %10192 = vmatprep.subr.bf16.mxu0 %v11414_v12  ;;  %v10232_v48 = vpack.c.bf16 %v7204_v46, %v7203_v45  ;;  %v7234_v45 = vld [vmem:[%s14924_s5 + $0x398] sm:$0xff] }
 0x5ba   :  { %v4787_v46 = vld [vmem:[#allocation5 + $0xc] sm:$0xff] }
 0x5bb   :  { %9477 = vmatmul.mubr.f32.gmra.mrb[108].mxu0 %v4140_v51  ;;  %v7205_v51 = vld [vmem:[%s14924_s5 + $0x2b0] sm:$0xff] }
 0x5bc   :  { %9479 = vmatprep.mubr.msk.f32.mxu0 %vm11416_vm2, %v13189_v60  ;;  %10194 = vmatpush3.bf16.msra.mxu0 %v10193_v9  ;;  %v7206_v9 = vld [vmem:[%s14924_s5 + $0x2b8] sm:$0xff] }
 0x5bd   :  { %10195 = vmatprep.subr.bf16.mxu0 %v11414_v12  ;;  %v10235_v54 = vpack.c.bf16 %v7206_v9, %v7205_v51  ;;  %v7236_v51 = vld [vmem:[%s14924_s5 + $0x3a8] sm:$0xff]  ;;  %v4788_v9 = vld [vmem:[#allocation5 + $0x14] sm:$0xff] }
 0x5bf   :  { %9480 = vmatmul.mubr.f32.gmra.mrb[110].mxu0 %v4141_v39  ;;  %v4465_v39 = vld [vmem:[#allocation5 + $0x27] sm:$0xff] }
 0x5c0   :  { %9482 = vmatprep.mubr.msk.f32.mxu0 %vm11416_vm2, %v13189_v60  ;;  %10197 = vmatpush3.bf16.msra.mxu0 %v10196_v28  ;;  %v7207_v28 = vld [vmem:[%s14924_s5 + $0x2c0] sm:$0xff] }
 0x5c1   :  { %10198 = vmatprep.subr.bf16.mxu0 %v11414_v12 }
 0x5c3   :  { %9483 = vmatmul.mubr.f32.gmra.mrb[112].mxu0 %v4142_v44  ;;  %v7209_v44 = vld [vmem:[%s14924_s5 + $0x2d0] sm:$0xff] }
 0x5c4   :  { %9485 = vmatprep.mubr.msk.f32.mxu0 %vm11416_vm2, %v13189_v60  ;;  %10200 = vmatpush3.bf16.msra.mxu0 %v10199_v61  ;;  %v10238_v61 = vpack.c.bf16 %v7208_v57, %v7207_v28  ;;  %v10241_v0 = vpack.c.bf16 %v7210_v62, %v7209_v44  ;;  %v7238_v28 = vld [vmem:[%s14924_s5 + $0x3b8] sm:$0xff]  ;;  %v4789_v57 = vld [vmem:[#allocation5 + $0x1c] sm:$0xff] }
 0x5c5   :  { %10201 = vmatprep.subr.bf16.mxu0 %v11414_v12  ;;  %v7240_v44 = vld [vmem:[%s14924_s5 + $0x3c8] sm:$0xff] }
 0x5c7   :  { %9486 = vmatmul.mubr.f32.gmra.mrb[114].mxu0 %v4143_v50  ;;  %v7211_v50 = vld [vmem:[%s14924_s5 + $0x2e0] sm:$0xff] }
 0x5c8   :  { %9520 = vmatprep.mubr.msk.f32.mxu0 %vm11416_vm2, %v13189_v60 }
 0x5cb   :  { %9521 = vmatmul.mubr.f32.vlgmr.msra.gmra.mrb[98].mxu0 %v4298_v37  ;;  %v7212_v37 = vld [vmem:[%s14924_s5 + $0x2e8] sm:$0xff] }
 0x5cc   :  { %10203 = vmatpush3.bf16.msra.mxu0 %v10202_v1  ;;  %9523 = vmatprep.mubr.msk.f32.mxu0 %vm11416_vm2, %v13189_v60  ;;  %v4466_v1 = vld [vmem:[#allocation5 + $0x2f] sm:$0xff]  ;;  %v10244_v55 = vpack.c.bf16 %v7212_v37, %v7211_v50 }
 0x5cd   :  { %10204 = vmatprep.subr.bf16.mxu0 %v11414_v12  ;;  %v7242_v50 = vld [vmem:[%s14924_s5 + $0x3d8] sm:$0xff] }
 0x5ce   :  { %v4791_v37 = vld [vmem:[#allocation5 + $0x2c] sm:$0xff] }
 0x5cf   :  { %9524 = vmatmul.mubr.f32.gmra.mrb[100].mxu0 %v13395_v6 }
 0x5d0   :  { %10206 = vmatpush3.bf16.msra.mxu0 %v10205_v5  ;;  %9526 = vmatprep.mubr.msk.f32.mxu0 %vm11416_vm2, %v13189_v60  ;;  %v7214_v5 = vld [vmem:[%s14924_s5 + $0x2f8] sm:$0xff] }
 0x5d1   :  { %10207 = vmatprep.subr.bf16.mxu0 %v11414_v12  ;;  %v10247_v3 = vpack.c.bf16 %v7214_v5, %v7213_v2  ;;  %v7244_v2 = vld [vmem:[%s14924_s5 + $0x3e8] sm:$0xff]  ;;  %v4792_v5 = vld [vmem:[#allocation5 + $0x34] sm:$0xff] }
 0x5d3   :  { %9527 = vmatmul.mubr.f32.gmra.mrb[102].mxu0 %v13407_v10 }
 0x5d4   :  { %10209 = vmatpush3.bf16.msra.mxu0 %v10208_v7  ;;  %9529 = vmatprep.mubr.msk.f32.mxu0 %vm11416_vm2, %v13189_v60  ;;  %v4468_v7 = vld [vmem:[#allocation5 + $0x3f] sm:$0xff] }
 0x5d5   :  { %10210 = vmatprep.subr.bf16.mxu0 %v11414_v12 }
 0x5d7   :  { %9530 = vmatmul.mubr.f32.gmra.mrb[104].mxu0 %v13419_v16 }
 0x5d8   :  { %10212 = vmatpush3.bf16.msra.mxu0 %v10211_v11  ;;  %9532 = vmatprep.mubr.msk.f32.mxu0 %vm11416_vm2, %v13189_v60  ;;  %v4469_v11 = vld [vmem:[#allocation5 + $0x47] sm:$0xff] }
 0x5d9   :  { %10213 = vmatprep.subr.bf16.mxu0 %v11414_v12 }
 0x5db   :  { %9533 = vmatmul.mubr.f32.gmra.mrb[106].mxu0 %v13424_v17 }
 0x5dc   :  { %10215 = vmatpush3.bf16.msra.mxu0 %v10214_v19  ;;  %9535 = vmatprep.mubr.msk.f32.mxu0 %vm11416_vm2, %v13189_v60  ;;  %v7218_v19 = vld [vmem:[%s14924_s5 + $0x318] sm:$0xff] }
 0x5dd   :  { %10216 = vmatprep.subr.bf16.mxu0 %v11414_v12  ;;  %v10253_v20 = vpack.c.bf16 %v7218_v19, %v7217_v15  ;;  %v7247_v15 = vld [vmem:[%s14924_s5 + $0x400] sm:$0xff]  ;;  %v7248_v19 = vld [vmem:[%s14924_s5 + $0x408] sm:$0xff] }
 0x5df   :  { %9536 = vmatmul.mubr.f32.gmra.mrb[108].mxu0 %v13443_v27 }
 0x5e0   :  { %9538 = vmatprep.mubr.msk.f32.mxu0 %vm11416_vm2, %v13189_v60  ;;  %10218 = vmatpush3.bf16.msra.mxu0 %v10217_v23  ;;  %v7220_v23 = vld [vmem:[%s14924_s5 + $0x328] sm:$0xff] }
 0x5e1   :  { %10219 = vmatprep.subr.bf16.mxu0 %v11414_v12 }
 0x5e3   :  { %9539 = vmatmul.mubr.f32.gmra.mrb[110].mxu0 %v13455_v33 }
 0x5e4   :  { %9541 = vmatprep.mubr.msk.f32.mxu0 %vm11416_vm2, %v13189_v60  ;;  %10221 = vmatpush3.bf16.msra.mxu0 %v10220_v30  ;;  %v7223_v30 = vld [vmem:[%s14924_s5 + $0x340] sm:$0xff] }
 0x5e5   :  { %10222 = vmatprep.subr.bf16.mxu0 %v11414_v12 }
 0x5e7   :  { %9542 = vmatmul.mubr.f32.gmra.mrb[112].mxu0 %v13461_v35 }
 0x5e8   :  { %9544 = vmatprep.mubr.msk.f32.mxu0 %vm11416_vm2, %v13189_v60  ;;  %10224 = vmatpush3.bf16.msra.mxu0 %v10223_v34  ;;  %v7226_v34 = vld [vmem:[%s14924_s5 + $0x358] sm:$0xff] }
 0x5e9   :  { %10225 = vmatprep.subr.bf16.mxu0 %v11414_v12 }
 0x5eb   :  { %9545 = vmatmul.mubr.f32.gmra.mrb[114].mxu0 %v13473_v40 }
 0x5ec   :  { %9579 = vmatprep.mubr.msk.f32.mxu0 %vm11416_vm2, %v13189_v60 }
 0x5ef   :  { %9580 = vmatmul.mubr.f32.vlgmr.msra.gmra.mrb[98].mxu0 %v4461_v59  ;;  %v7231_v59 = vld [vmem:[%s14924_s5 + $0x380] sm:$0xff] }
 0x5f0   :  { %10227 = vmatpush3.bf16.msra.mxu0 %v10226_v41  ;;  %9582 = vmatprep.mubr.msk.f32.mxu0 %vm11416_vm2, %v13189_v60  ;;  %v10268_v41 = vpack.c.bf16 %v7228_v38, %v7227_v36  ;;  %v7255_v38 = vld [vmem:[%s14924_s5 + $0x440] sm:$0xff] }
 0x5f1   :  { %10228 = vmatprep.subr.bf16.mxu0 %v11414_v12 }
 0x5f3   :  { %9583 = vmatmul.mubr.f32.gmra.mrb[100].mxu0 %v4462_v47 }
 0x5f4   :  { %10230 = vmatpush3.bf16.msra.mxu0 %v10229_v43  ;;  %9585 = vmatprep.mubr.msk.f32.mxu0 %vm11416_vm2, %v13189_v60  ;;  %v7233_v43 = vld [vmem:[%s14924_s5 + $0x390] sm:$0xff] }
 0x5f5   :  { %10231 = vmatprep.subr.bf16.mxu0 %v11414_v12  ;;  %v10277_v47 = vpack.c.bf16 %v7234_v45, %v7233_v43  ;;  %v7260_v43 = vld [vmem:[%s14924_s5 + $0x468] sm:$0xff]  ;;  %v4955_v45 = vld [vmem:[#allocation5 + $0x35] sm:$0xff] }
 0x5f7   :  { %9586 = vmatmul.mubr.f32.gmra.mrb[102].mxu0 %v4463_v53 }
 0x5f8   :  { %10233 = vmatpush3.bf16.msra.mxu0 %v10232_v48  ;;  %9588 = vmatprep.mubr.msk.f32.mxu0 %vm11416_vm2, %v13189_v60  ;;  %v7235_v48 = vld [vmem:[%s14924_s5 + $0x3a0] sm:$0xff] }
 0x5f9   :  { %10234 = vmatprep.subr.bf16.mxu0 %v11414_v12  ;;  %v10280_v53 = vpack.c.bf16 %v7236_v51, %v7235_v48  ;;  %v7262_v48 = vld [vmem:[%s14924_s5 + $0x478] sm:$0xff]  ;;  %v4956_v51 = vld [vmem:[#allocation5 + $0x3d] sm:$0xff] }
 0x5fb   :  { %9589 = vmatmul.mubr.f32.gmra.mrb[104].mxu0 %v4464_v58  ;;  %v4790_v58 = vld [vmem:[#allocation5 + $0x24] sm:$0xff] }
 0x5fc   :  { %10236 = vmatpush3.bf16.msra.mxu0 %v10235_v54  ;;  %9591 = vmatprep.mubr.msk.f32.mxu0 %vm11416_vm2, %v13189_v60  ;;  %v7237_v54 = vld [vmem:[%s14924_s5 + $0x3b0] sm:$0xff] }
 0x5fd   :  { %10237 = vmatprep.subr.bf16.mxu0 %v11414_v12 }
 0x5ff   :  { %9592 = vmatmul.mubr.f32.gmra.mrb[106].mxu0 %v4465_v39  ;;  %v10283_v39 = vpack.c.bf16 %v7238_v28, %v7237_v54 }
 0x600   :  { %10239 = vmatpush3.bf16.msra.mxu0 %v10238_v61  ;;  %9594 = vmatprep.mubr.msk.f32.mxu0 %vm11416_vm2, %v13189_v60  ;;  %v7239_v61 = vld [vmem:[%s14924_s5 + $0x3c0] sm:$0xff] }
 0x601   :  { %10240 = vmatprep.subr.bf16.mxu0 %v11414_v12  ;;  %v10286_v62 = vpack.c.bf16 %v7240_v44, %v7239_v61  ;;  %v5330_v61 = vld [vmem:[%s14925_s7 + $0x10] sm:$0xff]  ;;  %v5333_v44 = vld [vmem:[%s14925_s7 + $0x28] sm:$0xff] }
 0x603   :  { %9595 = vmatmul.mubr.f32.gmra.mrb[108].mxu0 %v4466_v1  ;;  %v13677_v1 = vld [vmem:[#allocation3] sm:$0xff] }
 0x604   :  { %9597 = vmatprep.mubr.msk.f32.mxu0 %vm11416_vm2, %v13189_v60  ;;  %10242 = vmatpush3.bf16.msra.mxu0 %v10241_v0  ;;  %v7241_v0 = vld [vmem:[%s14924_s5 + $0x3d0] sm:$0xff] }
 0x605   :  { %10243 = vmatprep.subr.bf16.mxu0 %v11414_v12 }
 0x607   :  { %9598 = vmatmul.mubr.f32.gmra.mrb[110].mxu0 %v4467_v63 }
 0x608   :  { %9600 = vmatprep.mubr.msk.f32.mxu0 %vm11416_vm2, %v13189_v60  ;;  %10245 = vmatpush3.bf16.msra.mxu0 %v10244_v55  ;;  %v7243_v55 = vld [vmem:[%s14924_s5 + $0x3e0] sm:$0xff] }
 0x609   :  { %10246 = vmatprep.subr.bf16.mxu0 %v11414_v12  ;;  %v10292_v63 = vpack.c.bf16 %v7244_v2, %v7243_v55  ;;  %v5337_v55 = vld [vmem:[%s14925_s7 + $0x48] sm:$0xff]  ;;  %v5339_v2 = vld [vmem:[%s14925_s7 + $0x58] sm:$0xff] }
 0x60b   :  { %9601 = vmatmul.mubr.f32.gmra.mrb[112].mxu0 %v4468_v7  ;;  %v7246_v7 = vld [vmem:[%s14924_s5 + $0x3f8] sm:$0xff] }
 0x60c   :  { %9603 = vmatprep.mubr.msk.f32.mxu0 %vm11416_vm2, %v13189_v60  ;;  %10248 = vmatpush3.bf16.msra.mxu0 %v10247_v3  ;;  %v7245_v3 = vld [vmem:[%s14924_s5 + $0x3f0] sm:$0xff] }
 0x60d   :  { %10249 = vmatprep.subr.bf16.mxu0 %v11414_v12  ;;  %v10295_v24 = vpack.c.bf16 %v7246_v7, %v7245_v3  ;;  %v5342_v3 = vld [vmem:[%s14925_s7 + $0x70] sm:$0xff] }
 0x60f   :  { %9604 = vmatmul.mubr.f32.gmra.mrb[114].mxu0 %v4469_v11  ;;  %v4794_v11 = vld [vmem:[#allocation5 + $0x44] sm:$0xff] }
 0x610   :  { %9638 = vmatprep.mubr.msk.f32.mxu0 %vm11416_vm2, %v13189_v60 }
 0x613   :  { %9639 = vmatmul.mubr.f32.vlgmr.msra.gmra.mrb[98].mxu0 %v13186_v56  ;;  %v10256_v56 = vpack.c.bf16 %v7220_v23, %v7219_v22  ;;  %v7249_v22 = vld [vmem:[%s14924_s5 + $0x410] sm:$0xff]  ;;  %v7250_v23 = vld [vmem:[%s14924_s5 + $0x418] sm:$0xff] }
 0x614   :  { %10251 = vmatpush3.bf16.msra.mxu0 %v10250_v14  ;;  %9641 = vmatprep.mubr.msk.f32.mxu0 %vm11416_vm2, %v13189_v60  ;;  %v4795_v14 = vld [vmem:[#allocation5 + $0x4c] sm:$0xff] }
 0x615   :  { %10252 = vmatprep.subr.bf16.mxu0 %v11414_v12 }
 0x617   :  { %9642 = vmatmul.mubr.f32.gmra.mrb[100].mxu0 %v13193_v13  ;;  %v10259_v13 = vpack.c.bf16 %v7222_v26, %v7221_v25  ;;  %v10301_v25 = vpack.c.bf16 %v7250_v23, %v7249_v22  ;;  %v7251_v26 = vld [vmem:[%s14924_s5 + $0x420] sm:$0xff]  ;;  %v5351_v22 = vld [vmem:[%s14925_s7 + $0xb8] sm:$0xff] }
 0x618   :  { %10254 = vmatpush3.bf16.msra.mxu0 %v10253_v20  ;;  %9644 = vmatprep.mubr.msk.f32.mxu0 %vm11416_vm2, %v13189_v60  ;;  %v10298_v20 = vpack.c.bf16 %v7248_v19, %v7247_v15  ;;  %v5346_v15 = vld [vmem:[%s14925_s7 + $0x90] sm:$0xff] }
 0x619   :  { %10255 = vmatprep.subr.bf16.mxu0 %v11414_v12 }
 0x61b   :  { %9645 = vmatmul.mubr.f32.gmra.mrb[102].mxu0 %v13198_v29  ;;  %v10262_v29 = vpack.c.bf16 %v7224_v31, %v7223_v30  ;;  %v4951_v30 = vld [vmem:[#allocation5 + $0x15] sm:$0xff] }
 0x61c   :  { %10257 = vmatpush3.bf16.msra.mxu0 %v10256_v56  ;;  %9647 = vmatprep.mubr.msk.f32.mxu0 %vm11416_vm2, %v13189_v60  ;;  %v4950_v56 = vld [vmem:[#allocation5 + $0xd] sm:$0xff] }
 0x61d   :  { %10258 = vmatprep.subr.bf16.mxu0 %v11414_v12 }
 0x61f   :  { %9648 = vmatmul.mubr.f32.gmra.mrb[104].mxu0 %v13203_v21  ;;  %v10265_v21 = vpack.c.bf16 %v7226_v34, %v7225_v32  ;;  %v7254_v32 = vld [vmem:[%s14924_s5 + $0x438] sm:$0xff]  ;;  %v4952_v34 = vld [vmem:[#allocation5 + $0x1d] sm:$0xff] }
 0x620   :  { %10260 = vmatpush3.bf16.msra.mxu0 %v10259_v13  ;;  %9650 = vmatprep.mubr.msk.f32.mxu0 %vm11416_vm2, %v13189_v60  ;;  %v7252_v13 = vld [vmem:[%s14924_s5 + $0x428] sm:$0xff] }
 0x621   :  { %10261 = vmatprep.subr.bf16.mxu0 %v11414_v12  ;;  %v10304_v31 = vpack.c.bf16 %v7252_v13, %v7251_v26  ;;  %v5353_v13 = vld [vmem:[%s14925_s7 + $0xc8] sm:$0xff] }
 0x623   :  { %9651 = vmatmul.mubr.f32.gmra.mrb[106].mxu0 %v13189_v60 }
 0x624   :  { %10263 = vmatpush3.bf16.msra.mxu0 %v10262_v29  ;;  %9653 = vmatprep.mubr.msk.f32.mxu0 %vm11416_vm2, %v13189_v60  ;;  %v7253_v29 = vld [vmem:[%s14924_s5 + $0x430] sm:$0xff] }
 0x625   :  { %10264 = vmatprep.subr.bf16.mxu0 %v11414_v12  ;;  %v10307_v36 = vpack.c.bf16 %v7254_v32, %v7253_v29  ;;  %v5352_v29 = vld [vmem:[%s14925_s7 + $0xc0] sm:$0xff]  ;;  %v5354_v32 = vld [vmem:[%s14925_s7 + $0xd0] sm:$0xff] }
 0x627   :  { %9654 = vmatmul.mubr.f32.gmra.mrb[108].mxu0 %v13211_v18  ;;  %v10271_v18 = vpack.c.bf16 %v7230_v4, %v7229_v42  ;;  %v7257_v4 = vld [vmem:[%s14924_s5 + $0x450] sm:$0xff] }
 0x628   :  { %9656 = vmatprep.mubr.msk.f32.mxu0 %vm11416_vm2, %v13189_v60  ;;  %10266 = vmatpush3.bf16.msra.mxu0 %v10265_v21  ;;  %v4953_v21 = vld [vmem:[#allocation5 + $0x25] sm:$0xff] }
 0x629   :  { %10267 = vmatprep.subr.bf16.mxu0 %v11414_v12 }
 0x62b   :  { %9657 = vmatmul.mubr.f32.gmra.mrb[110].mxu0 %v13216_v49  ;;  %v7232_v49 = vld [vmem:[%s14924_s5 + $0x388] sm:$0xff] }
 0x62c   :  { %9659 = vmatprep.mubr.msk.f32.mxu0 %vm11416_vm2, %v13189_v60  ;;  %10269 = vmatpush3.bf16.msra.mxu0 %v10268_v41  ;;  %v7256_v41 = vld [vmem:[%s14924_s5 + $0x448] sm:$0xff] }
 0x62d   :  { %10270 = vmatprep.subr.bf16.mxu0 %v11414_v12  ;;  %v10310_v42 = vpack.c.bf16 %v7256_v41, %v7255_v38  ;;  %v5356_v41 = vld [vmem:[%s14925_s7 + $0xe0] sm:$0xff] }
 0x62f   :  { %9660 = vmatmul.mubr.f32.gmra.mrb[112].mxu0 %v13227_v52  ;;  %v10274_v52 = vpack.c.bf16 %v7232_v49, %v7231_v59  ;;  %v4954_v59 = vld [vmem:[#allocation5 + $0x2d] sm:$0xff] }
 0x630   :  { %9662 = vmatprep.mubr.msk.f32.mxu0 %vm11416_vm2, %v13189_v60  ;;  %10272 = vmatpush3.bf16.msra.mxu0 %v10271_v18  ;;  %v7258_v18 = vld [vmem:[%s14924_s5 + $0x458] sm:$0xff] }
 0x631   :  { %10273 = vmatprep.subr.bf16.mxu0 %v11414_v12  ;;  %v10313_v49 = vpack.c.bf16 %v7258_v18, %v7257_v4  ;;  %v7264_v18 = vld [vmem:[%s14925_s7 + $0x108] sm:$0xff] }
 0x633   :  { %9663 = vmatmul.mubr.f32.gmra.mrb[114].mxu0 %v13189_v60 }
 0x634   :  { %9697 = vmatprep.mubr.msk.f32.mxu0 %vm11416_vm2, %v13189_v60 }
 0x637   :  { %9698 = vmatmul.mubr.f32.vlgmr.msra.gmra.mrb[98].mxu0 %v4787_v46 }
 0x638   :  { %10275 = vmatpush3.bf16.msra.mxu0 %v10274_v52  ;;  %9700 = vmatprep.mubr.msk.f32.mxu0 %vm11416_vm2, %v13189_v60  ;;  %v7259_v52 = vld [vmem:[%s14924_s5 + $0x460] sm:$0xff] }
 0x639   :  { %10276 = vmatprep.subr.bf16.mxu0 %v11414_v12  ;;  %v10316_v46 = vpack.c.bf16 %v7260_v43, %v7259_v52  ;;  %v7263_v52 = vld [vmem:[%s14925_s7 + $0x100] sm:$0xff]  ;;  %v7265_v43 = vld [vmem:[%s14925_s7 + $0x110] sm:$0xff] }
 0x63b   :  { %9701 = vmatmul.mubr.f32.gmra.mrb[100].mxu0 %v4788_v9  ;;  %v5329_v9 = vld [vmem:[%s14925_s7 + $0x8] sm:$0xff] }
 0x63c   :  { %10278 = vmatpush3.bf16.msra.mxu0 %v10277_v47  ;;  %9703 = vmatprep.mubr.msk.f32.mxu0 %vm11416_vm2, %v13189_v60  ;;  %v7261_v47 = vld [vmem:[%s14924_s5 + $0x470] sm:$0xff] }
 0x63d   :  { %10279 = vmatprep.subr.bf16.mxu0 %v11414_v12  ;;  %v10319_v54 = vpack.c.bf16 %v7262_v48, %v7261_v47  ;;  %v7270_v47 = vld [vmem:[%s14925_s7 + $0x138] sm:$0xff] }
 0x63f   :  { %9704 = vmatmul.mubr.f32.gmra.mrb[102].mxu0 %v4789_v57  ;;  %v4957_v57 = vld [vmem:[#allocation5 + $0x45] sm:$0xff] }
 0x640   :  { %10281 = vmatpush3.bf16.msra.mxu0 %v10280_v53  ;;  %9706 = vmatprep.mubr.msk.f32.mxu0 %vm11416_vm2, %v13189_v60  ;;  %v5331_v53 = vld [vmem:[%s14925_s7 + $0x18] sm:$0xff] }
 0x641   :  { %10282 = vmatprep.subr.bf16.mxu0 %v11414_v12  ;;  %v10321_v28 = vpack.c.bf16 %v5331_v53, %v5329_v9  ;;  %v7269_v9 = vld [vmem:[%s14925_s7 + $0x130] sm:$0xff] }
 0x643   :  { %9707 = vmatmul.mubr.f32.gmra.mrb[104].mxu0 %v4790_v58  ;;  %v4958_v58 = vld [vmem:[#allocation5 + $0x4d] sm:$0xff] }
 0x644   :  { %10284 = vmatpush3.bf16.msra.mxu0 %v10283_v39  ;;  %9709 = vmatprep.mubr.msk.f32.mxu0 %vm11416_vm2, %v13189_v60  ;;  %v10289_v60 = vpack.c.bf16 %v7242_v50, %v7241_v0  ;;  %v5328_v39 = vld [vmem:[%s14925_s7] sm:$0xff] }
 0x645   :  { %10285 = vmatprep.subr.bf16.mxu0 %v11414_v12  ;;  %v10323_v0 = vpack.c.bf16 %v5330_v61, %v5328_v39  ;;  %v7273_v39 = vld [vmem:[%s14925_s7 + $0x150] sm:$0xff] }
 0x647   :  { %9710 = vmatmul.mubr.f32.gmra.mrb[106].mxu0 %v4791_v37  ;;  %v5332_v37 = vld [vmem:[%s14925_s7 + $0x20] sm:$0xff] }
 0x648   :  { %10287 = vmatpush3.bf16.msra.mxu0 %v10286_v62  ;;  %9712 = vmatprep.mubr.msk.f32.mxu0 %vm11416_vm2, %v13677_v1  ;;  %v5335_v62 = vld [vmem:[%s14925_s7 + $0x38] sm:$0xff] }
 0x649   :  { %10288 = vmatprep.subr.bf16.mxu0 %v11414_v12  ;;  %v10325_v50 = vpack.c.bf16 %v5335_v62, %v5333_v44  ;;  %v7276_v44 = vld [vmem:[%s14925_s7 + $0x168] sm:$0xff]  ;;  %v7278_v62 = vld [vmem:[%s14925_s7 + $0x178] sm:$0xff] }
 0x64b   :  { %9713 = vmatmul.mubr.f32.gmra.mrb[108].mxu0 %v4792_v5 }
 0x64c   :  { %9715 = vmatprep.mubr.msk.f32.mxu0 %vm11416_vm2, %v13677_v1  ;;  %10290 = vmatpush3.bf16.msra.mxu0 %v10289_v60  ;;  %v5334_v60 = vld [vmem:[%s14925_s7 + $0x30] sm:$0xff] }
 0x64d   :  { %10291 = vmatprep.subr.bf16.mxu0 %v11414_v12  ;;  %v10327_v5 = vpack.c.bf16 %v5334_v60, %v5332_v37  ;;  %v7277_v37 = vld [vmem:[%s14925_s7 + $0x170] sm:$0xff] }
 0x64f   :  { %9716 = vmatmul.mubr.f32.gmra.mrb[110].mxu0 %v4793_v8  ;;  %v5345_v8 = vld [vmem:[%s14925_s7 + $0x88] sm:$0xff] }
 0x650   :  { %9718 = vmatprep.mubr.msk.f32.mxu0 %vm11416_vm2, %v13677_v1  ;;  %10293 = vmatpush3.bf16.msra.mxu0 %v10292_v63  ;;  %v10329_v63 = vpack.c.bf16 %v5339_v2, %v5337_v55  ;;  %v7280_v55 = vld [vmem:[%s14925_s7 + $0x188] sm:$0xff]  ;;  %v7282_v2 = vld [vmem:[%s14925_s7 + $0x198] sm:$0xff] }
 0x651   :  { %10294 = vmatprep.subr.bf16.mxu0 %v11414_v12 }
 0x653   :  { %9719 = vmatmul.mubr.f32.gmra.mrb[112].mxu0 %v4794_v11 }
 0x654   :  { %9721 = vmatprep.mubr.msk.f32.mxu0 %vm11416_vm2, %v13677_v1  ;;  %10296 = vmatpush3.bf16.msra.mxu0 %v10295_v24  ;;  %v5347_v24 = vld [vmem:[%s14925_s7 + $0x98] sm:$0xff] }
 0x655   :  { %10297 = vmatprep.subr.bf16.mxu0 %v11414_v12  ;;  %v10337_v11 = vpack.c.bf16 %v5347_v24, %v5345_v8  ;;  %v7287_v24 = vld [vmem:[%s14925_s7 + $0x1c0] sm:$0xff] }
 0x657   :  { %9722 = vmatmul.mubr.f32.gmra.mrb[114].mxu0 %v4795_v14  ;;  %v5344_v14 = vld [vmem:[%s14925_s7 + $0x80] sm:$0xff] }
 0x658   :  { %9756 = vmatprep.mubr.msk.f32.mxu0 %vm11416_vm2, %v13677_v1  ;;  %v10339_v19 = vpack.c.bf16 %v5346_v15, %v5344_v14  ;;  %v7292_v14 = vld [vmem:[%s14925_s7 + $0x1e8] sm:$0xff]  ;;  %v7294_v15 = vld [vmem:[%s14925_s7 + $0x1f8] sm:$0xff] }
 0x65b   :  { %9757 = vmatmul.mubr.f32.vlgmr.msra.gmra.mrb[98].mxu0 %v4950_v56  ;;  %v5348_v56 = vld [vmem:[%s14925_s7 + $0xa0] sm:$0xff] }
 0x65c   :  { %10299 = vmatpush3.bf16.msra.mxu0 %v10298_v20  ;;  %9759 = vmatprep.mubr.msk.f32.mxu0 %vm11416_vm2, %v13677_v1  ;;  %v5349_v20 = vld [vmem:[%s14925_s7 + $0xa8] sm:$0xff] }
 0x65d   :  { %10300 = vmatprep.subr.bf16.mxu0 %v11414_v12  ;;  %v10341_v23 = vpack.c.bf16 %v5351_v22, %v5349_v20  ;;  %v10381_v20 = vpack.c.bf16 %v7294_v15, %v7292_v14  ;;  %v7291_v22 = vld [vmem:[%s14925_s7 + $0x1e0] sm:$0xff] }
 0x65f   :  { %9760 = vmatmul.mubr.f32.gmra.mrb[100].mxu0 %v4951_v30  ;;  %v5355_v30 = vld [vmem:[%s14925_s7 + $0xd8] sm:$0xff] }
 0x660   :  { %10302 = vmatpush3.bf16.msra.mxu0 %v10301_v25  ;;  %9762 = vmatprep.mubr.msk.f32.mxu0 %vm11416_vm2, %v13677_v1  ;;  %v5350_v25 = vld [vmem:[%s14925_s7 + $0xb0] sm:$0xff] }
 0x661   :  { %10303 = vmatprep.subr.bf16.mxu0 %v11414_v12  ;;  %v10343_v26 = vpack.c.bf16 %v5350_v25, %v5348_v56  ;;  %v7296_v56 = vld [vmem:[%s14925_s7 + $0x208] sm:$0xff]  ;;  %v7298_v25 = vld [vmem:[%s14925_s7 + $0x218] sm:$0xff] }
 0x663   :  { %9763 = vmatmul.mubr.f32.gmra.mrb[102].mxu0 %v4952_v34  ;;  %v10347_v34 = vpack.c.bf16 %v5354_v32, %v5352_v29 }
 0x664   :  { %10305 = vmatpush3.bf16.msra.mxu0 %v10304_v31  ;;  %9765 = vmatprep.mubr.msk.f32.mxu0 %vm11416_vm2, %v13677_v1  ;;  %v10345_v31 = vpack.c.bf16 %v5355_v30, %v5353_v13  ;;  %v10385_v13 = vpack.c.bf16 %v7298_v25, %v7296_v56  ;;  %v7134_v30 = vld [vmem:[%s14926_s6] ss:$0 sm:$0xff]  ;;  %v7300_v25 = vld [vmem:[%s14925_s7 + $0x228] sm:$0xff] }
 0x665   :  { %10306 = vmatprep.subr.bf16.mxu0 %v11414_v12 }
 0x667   :  { %9766 = vmatmul.mubr.f32.gmra.mrb[104].mxu0 %v4953_v21  ;;  %v5357_v21 = vld [vmem:[%s14925_s7 + $0xe8] sm:$0xff] }
 0x668   :  { %10308 = vmatpush3.bf16.msra.mxu0 %v10307_v36  ;;  %9768 = vmatprep.mubr.msk.f32.mxu0 %vm11416_vm2, %v13677_v1  ;;  %v5359_v36 = vld [vmem:[%s14925_s7 + $0xf8] sm:$0xff] }
 0x669   :  { %10309 = vmatprep.subr.bf16.mxu0 %v11414_v12  ;;  %v10349_v38 = vpack.c.bf16 %v5359_v36, %v5357_v21 }
 0x66b   :  { %9769 = vmatmul.mubr.f32.gmra.mrb[106].mxu0 %v4954_v59  ;;  %v7266_v59 = vld [vmem:[%s14925_s7 + $0x118] sm:$0xff] }
 0x66c   :  { %10311 = vmatpush3.bf16.msra.mxu0 %v10310_v42  ;;  %9771 = vmatprep.mubr.msk.f32.mxu0 %vm11416_vm2, %v13677_v1  ;;  %v5358_v42 = vld [vmem:[%s14925_s7 + $0xf0] sm:$0xff] }
 0x66d   :  { %10312 = vmatprep.subr.bf16.mxu0 %v11414_v12  ;;  %v10351_v4 = vpack.c.bf16 %v5358_v42, %v5356_v41 }
 0x66f   :  { %9772 = vmatmul.mubr.f32.gmra.mrb[108].mxu0 %v4955_v45  ;;  %v10355_v45 = vpack.c.bf16 %v7265_v43, %v7263_v52 }
 0x670   :  { %9774 = vmatprep.mubr.msk.f32.mxu0 %vm11416_vm2, %v13677_v1  ;;  %10314 = vmatpush3.bf16.msra.mxu0 %v10313_v49  ;;  %v10353_v49 = vpack.c.bf16 %v7266_v59, %v7264_v18 }
 0x671   :  { %10315 = vmatprep.subr.bf16.mxu0 %v11414_v12 }
 0x673   :  { %9775 = vmatmul.mubr.f32.gmra.mrb[110].mxu0 %v4956_v51  ;;  %v7267_v51 = vld [vmem:[%s14925_s7 + $0x120] sm:$0xff] }
 0x674   :  { %9777 = vmatprep.mubr.msk.f32.mxu0 %vm11416_vm2, %v13677_v1  ;;  %10317 = vmatpush3.bf16.msra.mxu0 %v10316_v46  ;;  %v7268_v46 = vld [vmem:[%s14925_s7 + $0x128] sm:$0xff]  ;;  %v10359_v53 = vpack.c.bf16 %v7269_v9, %v7267_v51 }
 0x675   :  { %10318 = vmatprep.subr.bf16.mxu0 %v11414_v12  ;;  %v10357_v48 = vpack.c.bf16 %v7270_v47, %v7268_v46 }
 0x677   :  { %9778 = vmatmul.mubr.f32.gmra.mrb[112].mxu0 %v4957_v57 }
 0x678   :  { %9780 = vmatprep.mubr.msk.f32.mxu0 %vm11416_vm2, %v13677_v1  ;;  %10320 = vmatpush3.bf16.msra.mxu0 %v10319_v54  ;;  %v7272_v54 = vld [vmem:[%s14925_s7 + $0x148] sm:$0xff] }
 0x679   :  { %10322 = vmatprep.subr.bf16.mxu0 %v10321_v28  ;;  %v7274_v28 = vld [vmem:[%s14925_s7 + $0x158] sm:$0xff] }
 0x67a   :  { %v10361_v57 = vpack.c.bf16 %v7274_v28, %v7272_v54 }
 0x67b   :  { %9781 = vmatmul.mubr.f32.gmra.mrb[114].mxu0 %v4958_v58  ;;  %v7271_v58 = vld [vmem:[%s14925_s7 + $0x140] sm:$0xff] }
 0x67c   :  { %9815 = vmatprep.mubr.msk.f32.mxu0 %vm11416_vm2, %v13677_v1  ;;  %v10363_v61 = vpack.c.bf16 %v7273_v39, %v7271_v58 }
 0x67f   :  { %9816 = vmatmul.mubr.f32.vlgmr.msra.gmra.mrb[98].mxu0 %v13395_v6  ;;  %v5121_v6 = vld [vmem:[#allocation5 + $0x4e] sm:$0xff] }
 0x680   :  { %9818 = vmatprep.mubr.msk.f32.mxu0 %vm11416_vm2, %v13677_v1  ;;  %10324 = vmatpush1.bf16.msra.mxu0 %v10323_v0  ;;  %v10365_v0 = vpack.c.bf16 %v7278_v62, %v7276_v44 }
 0x681   :  { %10326 = vmatprep.subr.bf16.mxu0 %v10325_v50  ;;  %v7275_v50 = vld [vmem:[%s14925_s7 + $0x160] sm:$0xff] }
 0x682   :  { %v10367_v60 = vpack.c.bf16 %v7277_v37, %v7275_v50 }
 0x683   :  { %9819 = vmatmul.mubr.f32.gmra.mrb[100].mxu0 %v13407_v10  ;;  %v5336_v10 = vld [vmem:[%s14925_s7 + $0x40] sm:$0xff] }
 0x684   :  { %9821 = vmatprep.mubr.msk.f32.mxu0 %vm11416_vm2, %v13677_v1  ;;  %10328 = vmatpush1.bf16.msra.mxu0 %v10327_v5  ;;  %v7279_v5 = vld [vmem:[%s14925_s7 + $0x180] sm:$0xff] }
 0x685   :  { %10330 = vmatprep.subr.bf16.mxu0 %v10329_v63  ;;  %v10369_v63 = vpack.c.bf16 %v7282_v2, %v7280_v55 }
 0x687   :  { %9822 = vmatmul.mubr.f32.gmra.mrb[102].mxu0 %v13419_v16  ;;  %v5338_v16 = vld [vmem:[%s14925_s7 + $0x50] sm:$0xff] }
 0x688   :  { %9824 = vmatprep.mubr.msk.f32.mxu0 %vm11416_vm2, %v13677_v1 }
 0x68b   :  { %9825 = vmatmul.mubr.f32.gmra.mrb[104].mxu0 %v13424_v17  ;;  %v10331_v17 = vpack.c.bf16 %v5338_v16, %v5336_v10  ;;  %v7284_v10 = vld [vmem:[%s14925_s7 + $0x1a8] sm:$0xff]  ;;  %v7286_v16 = vld [vmem:[%s14925_s7 + $0x1b8] sm:$0xff] }
 0x68c   :  { %9827 = vmatprep.mubr.msk.f32.mxu0 %vm11416_vm2, %v13677_v1 }
 0x68d   :  { %10332 = vmatpush1.bf16.msra.mxu0 %v10331_v17 }
 0x68f   :  { %9828 = vmatmul.mubr.f32.gmra.mrb[106].mxu0 %v13443_v27  ;;  %v5341_v27 = vld [vmem:[%s14925_s7 + $0x68] sm:$0xff] }
 0x690   :  { %9830 = vmatprep.mubr.msk.f32.mxu0 %vm11416_vm2, %v13677_v1 }
 0x693   :  { %9831 = vmatmul.mubr.f32.gmra.mrb[108].mxu0 %v13455_v33  ;;  %v5343_v33 = vld [vmem:[%s14925_s7 + $0x78] sm:$0xff] }
 0x694   :  { %9833 = vmatprep.mubr.msk.f32.mxu0 %vm11416_vm2, %v13677_v1 }
 0x697   :  { %9834 = vmatmul.mubr.f32.gmra.mrb[110].mxu0 %v13461_v35  ;;  %v10333_v35 = vpack.c.bf16 %v5343_v33, %v5341_v27  ;;  %v10373_v27 = vpack.c.bf16 %v7286_v16, %v7284_v10  ;;  %v7283_v33 = vld [vmem:[%s14925_s7 + $0x1a0] sm:$0xff] }
 0x698   :  { %9836 = vmatprep.mubr.msk.f32.mxu0 %vm11416_vm2, %v13677_v1 }
 0x699   :  { %10334 = vmatprep.subr.bf16.mxu0 %v10333_v35  ;;  %v7285_v35 = vld [vmem:[%s14925_s7 + $0x1b0] sm:$0xff] }
 0x69b   :  { %9837 = vmatmul.mubr.f32.gmra.mrb[112].mxu0 %v13473_v40  ;;  %v5340_v40 = vld [vmem:[%s14925_s7 + $0x60] sm:$0xff] }
 0x69c   :  { %9839 = vmatprep.mubr.msk.f32.mxu0 %vm11416_vm2, %v13677_v1  ;;  %v10335_v7 = vpack.c.bf16 %v5342_v3, %v5340_v40  ;;  %v7288_v40 = vld [vmem:[%s14925_s7 + $0x1c8] sm:$0xff]  ;;  %v7290_v3 = vld [vmem:[%s14925_s7 + $0x1d8] sm:$0xff] }
 0x69d   :  { %v10377_v8 = vpack.c.bf16 %v7290_v3, %v7288_v40 }
 0x69e   :  { %10336 = vmatpush1.bf16.msra.mxu0 %v10335_v7  ;;  %v10375_v7 = vpack.c.bf16 %v7285_v35, %v7283_v33 }
 0x69f   :  { %9840 = vmatmul.mubr.f32.gmra.mrb[114].mxu0 %v5121_v6  ;;  %10338 = vmatprep.subr.bf16.mxu0 %v10337_v11  ;;  %v7281_v6 = vld [vmem:[%s14925_s7 + $0x190] sm:$0xff] }
 0x6a0   :  { %5436 = vmatprep.mubr.f32.mxu0 %v13677_v1  ;;  %v10371_v17 = vpack.c.bf16 %v7281_v6, %v7279_v5  ;;  %v7289_v11 = vld [vmem:[%s14925_s7 + $0x1d0] sm:$0xff] }
 0x6a2   :  { %10340 = vmatpush1.bf16.msra.mxu0 %v10339_v19  ;;  %v10379_v19 = vpack.c.bf16 %v7289_v11, %v7287_v24 }
 0x6a3   :  { %10342 = vmatprep.subr.bf16.mxu0 %v10341_v23  ;;  %v7293_v23 = vld [vmem:[%s14925_s7 + $0x1f0] sm:$0xff] }
 0x6a6   :  { %10344 = vmatpush1.bf16.msra.mxu0 %v10343_v26  ;;  %v10383_v26 = vpack.c.bf16 %v7293_v23, %v7291_v22  ;;  %v7295_v22 = vld [vmem:[%s14925_s7 + $0x200] sm:$0xff]  ;;  %v7297_v23 = vld [vmem:[%s14925_s7 + $0x210] sm:$0xff] }
 0x6a7   :  { %10346 = vmatprep.subr.bf16.mxu0 %v10345_v31 }
 0x6aa   :  { %10348 = vmatpush1.bf16.msra.mxu0 %v10347_v34 }
 0x6ab   :  { %10350 = vmatprep.subr.bf16.mxu0 %v10349_v38 }
 0x6ae   :  { %10352 = vmatpush1.bf16.msra.mxu0 %v10351_v4 }
 0x6af   :  { %10354 = vmatprep.subr.bf16.mxu0 %v10353_v49 }
 0x6b1   :  { %5437 = vmatmul.mubr.f32.vlgmr.msra.gmra.mrb[116].mxu0 %v13677_v1 }
 0x6b2   :  { %10356 = vmatpush1.bf16.msra.mxu0 %v10355_v45  ;;  %5442 = vmatprep.mubr.f32.mxu0 %v13677_v1 }
 0x6b3   :  { %10358 = vmatprep.subr.bf16.mxu0 %v10357_v48 }
 0x6b6   :  { %10360 = vmatpush1.bf16.msra.mxu0 %v10359_v53 }
 0x6b7   :  { %10362 = vmatprep.subr.bf16.mxu0 %v10361_v57 }
 0x6ba   :  { %10364 = vmatpush1.bf16.msra.mxu0 %v10363_v61 }
 0x6bb   :  { %10366 = vmatprep.subr.bf16.mxu0 %v10365_v0 }
 0x6be   :  { %10368 = vmatpush1.bf16.msra.mxu0 %v10367_v60 }
 0x6bf   :  { %10370 = vmatprep.subr.bf16.mxu0 %v10369_v63 }
 0x6c2   :  { %10372 = vmatpush1.bf16.msra.mxu0 %v10371_v17 }
 0x6c3   :  { %10374 = vmatprep.subr.bf16.mxu0 %v10373_v27 }
 0x6c6   :  { %10376 = vmatpush1.bf16.msra.mxu0 %v10375_v7 }
 0x6c7   :  { %10378 = vmatprep.subr.bf16.mxu0 %v10377_v8 }
 0x6ca   :  { %10380 = vmatpush1.bf16.msra.mxu0 %v10379_v19 }
 0x6cb   :  { %10382 = vmatprep.subr.bf16.mxu0 %v10381_v20 }
 0x6ce   :  { %10384 = vmatpush1.bf16.msra.mxu0 %v10383_v26  ;;  %v7302_v26 = vld [vmem:[%s14925_s7 + $0x238] sm:$0xff] }
 0x6cf   :  { %10386 = vmatprep.subr.bf16.mxu0 %v10385_v13  ;;  %v5469_v13 = vld [vmem:[#allocation7 + $0x1] sm:$0xff] }
 0x752   :  { %v5205_v31 = vpop.f32.mrb[98].mxu0 }
 0x753   :  { %v10775_v29 = vadd.f32 %v7134_v30, %v5205_v31  ;;  %v9817_v32 = vpop.f32.mrb[99].mxu0  ;;  %v10389_v31 = vpack.c.bf16 %v7302_v26, %v7300_v25  ;;  %v7338_v25 = vld [vmem:[%s14925_s7 + $0x358] sm:$0xff] }
 0x754   :  { %v7301_v32 = vld [vmem:[%s14925_s7 + $0x230] sm:$0xff] }
 0x755   :  { %5267 = vst [vmem:[#allocation6] sm:$0xff] %v10775_v29  ;;  %v7299_v29 = vld [vmem:[%s14925_s7 + $0x220] sm:$0xff] }
 0x756   :  { %v5210_v34 = vpop.f32.mrb[100].mxu0 }
 0x757   :  { %v10778_v21 = vadd.f32 %v7134_v30, %v5210_v34  ;;  %v9820_v36 = vpop.f32.mrb[101].mxu0  ;;  %v7304_v34 = vld [vmem:[%s14925_s7 + $0x248] sm:$0xff] }
 0x758   :  { %v10391_v36 = vpack.c.bf16 %v7301_v32, %v7299_v29  ;;  %v7340_v32 = vld [vmem:[%s14925_s7 + $0x368] sm:$0xff] }
 0x759   :  { %5268 = vst [vmem:[#allocation6 + $0x8] sm:$0xff] %v10778_v21  ;;  %v7306_v21 = vld [vmem:[%s14925_s7 + $0x258] sm:$0xff] }
 0x75a   :  { %v5215_v38 = vpop.f32.mrb[102].mxu0 }
 0x75b   :  { %v10781_v41 = vadd.f32 %v7134_v30, %v5215_v38  ;;  %v9823_v42 = vpop.f32.mrb[103].mxu0  ;;  %v10393_v38 = vpack.c.bf16 %v7306_v21, %v7304_v34  ;;  %v7342_v34 = vld [vmem:[%s14925_s7 + $0x378] sm:$0xff] }
 0x75c   :  { %v7305_v42 = vld [vmem:[%s14925_s7 + $0x250] sm:$0xff]  ;;  %v14166_v21 = vld [vmem:[#allocation7 + $0x12] sm:$0xff] }
 0x75d   :  { %5269 = vst [vmem:[#allocation6 + $0x10] sm:$0xff] %v10781_v41  ;;  %v7303_v41 = vld [vmem:[%s14925_s7 + $0x240] sm:$0xff] }
 0x75e   :  { %v5220_v4 = vpop.f32.mrb[104].mxu0 }
 0x75f   :  { %v10784_v18 = vadd.f32 %v7134_v30, %v5220_v4  ;;  %v9826_v59 = vpop.f32.mrb[105].mxu0 }
 0x760   :  { %v5277_v49 = vld [vmem:[#allocation6 + $0x7] ss:$2 sm:$0x3]  ;;  %v5279_v52 = vld [vmem:[#allocation6 + $0x8] ss:$2 sm:$0x3] }
 0x761   :  { %5270 = vst [vmem:[#allocation6 + $0x18] sm:$0xff] %v10784_v18  ;;  %v5281_v46 = vld [vmem:[#allocation6 + $0xd] ss:$2 sm:$0x3]  ;;  %v5284_v48 = vmax.f32 %v5277_v49, %v5279_v52  ;;  %v7310_v59 = vld [vmem:[%s14925_s7 + $0x278] sm:$0xff]  ;;  %v10395_v52 = vpack.c.bf16 %v7305_v42, %v7303_v41  ;;  %v7339_v41 = vld [vmem:[%s14925_s7 + $0x360] sm:$0xff] }
 0x762   :  { %v5225_v43 = vpop.f32.mrb[106].mxu0  ;;  %v7308_v18 = vld [vmem:[%s14925_s7 + $0x268] sm:$0xff]  ;;  %v14057_v49 = vld [vmem:[#allocation7 + $0x11] sm:$0xff]  ;;  %v7341_v42 = vld [vmem:[%s14925_s7 + $0x370] sm:$0xff] }
 0x763   :  { %v9829_v45 = vpop.f32.mrb[107].mxu0  ;;  %v10397_v43 = vpack.c.bf16 %v7310_v59, %v7308_v18  ;;  %v7344_v18 = vld [vmem:[%s14925_s7 + $0x388] sm:$0xff]  ;;  %v7346_v59 = vld [vmem:[%s14925_s7 + $0x398] sm:$0xff] }
 0x764   :  { %v5283_v47 = vld [vmem:[#allocation6 + $0xe] ss:$2 sm:$0x3]  ;;  %v5289_v9 = vld [vmem:[#allocation6 + $0x13] ss:$2 sm:$0x3] }
 0x765   :  { %v5285_v51 = vmax.f32 %v5281_v46, %v5283_v47  ;;  %v5291_v53 = vld [vmem:[#allocation6 + $0x14] ss:$2 sm:$0x3]  ;;  %v7307_v45 = vld [vmem:[%s14925_s7 + $0x260] sm:$0xff]  ;;  %v7312_v47 = vld [vmem:[%s14925_s7 + $0x288] sm:$0xff] }
 0x766   :  { %v5230_v54 = vpop.f32.mrb[108].mxu0  ;;  %v5296_v44 = vmax.f32 %v5289_v9, %v5291_v53  ;;  %v7309_v46 = vld [vmem:[%s14925_s7 + $0x270] sm:$0xff]  ;;  %v7311_v53 = vld [vmem:[%s14925_s7 + $0x280] sm:$0xff] }
 0x767   :  { %v10790_v28 = vadd.f32 %v7134_v30, %v5230_v54  ;;  %v9832_v57 = vpop.f32.mrb[109].mxu0  ;;  %v5286_v58 = vmax.f32 %v5284_v48, %v5285_v51  ;;  %v7314_v48 = vld [vmem:[%s14925_s7 + $0x298] sm:$0xff]  ;;  %v10399_v51 = vpack.c.bf16 %v7309_v46, %v7307_v45  ;;  %v7313_v54 = vld [vmem:[%s14925_s7 + $0x290] sm:$0xff]  ;;  %v7343_v45 = vld [vmem:[%s14925_s7 + $0x380] sm:$0xff] }
 0x768   :  { %v5293_v39 = vld [vmem:[#allocation6 + $0x19] ss:$2 sm:$0x3]  ;;  %v5295_v61 = vld [vmem:[#allocation6 + $0x1a] ss:$2 sm:$0x3]  ;;  %v10401_v9 = vpack.c.bf16 %v7314_v48, %v7312_v47 }
 0x769   :  { %v5297_v62 = vmax.f32 %v5293_v39, %v5295_v61  ;;  %5272 = vst [vmem:[#allocation6 + $0x28] sm:$0xff] %v10790_v28  ;;  %5287 = vst [vmem:[#allocation7 + $0xa] sm:$0x3] %v5286_v58  ;;  %v7316_v57 = vld [vmem:[%s14925_s7 + $0x2a8] sm:$0xff]  ;;  %v7318_v58 = vld [vmem:[%s14925_s7 + $0x2b8] sm:$0xff]  ;;  %v10403_v39 = vpack.c.bf16 %v7313_v54, %v7311_v53 }
 0x76a   :  { %v5235_v0 = vpop.f32.mrb[110].mxu0  ;;  %v10405_v61 = vpack.c.bf16 %v7318_v58, %v7316_v57  ;;  %v7345_v46 = vld [vmem:[%s14925_s7 + $0x390] sm:$0xff]  ;;  %v7348_v48 = vld [vmem:[%s14925_s7 + $0x3a8] sm:$0xff]  ;;  %v7347_v54 = vld [vmem:[%s14925_s7 + $0x3a0] sm:$0xff] }
 0x76b   :  { %v10793_v50 = vadd.f32 %v7134_v30, %v5235_v0  ;;  %v9835_v37 = vpop.f32.mrb[111].mxu0  ;;  %v5298_v60 = vmax.f32 %v5296_v44, %v5297_v62  ;;  %v7315_v44 = vld [vmem:[%s14925_s7 + $0x2a0] sm:$0xff]  ;;  %v7317_v62 = vld [vmem:[%s14925_s7 + $0x2b0] sm:$0xff]  ;;  %v7320_v0 = vld [vmem:[%s14925_s7 + $0x2c8] sm:$0xff] }
 0x76c   :  { %v10407_v37 = vpack.c.bf16 %v7317_v62, %v7315_v44  ;;  %v7349_v57 = vld [vmem:[%s14925_s7 + $0x3b0] sm:$0xff]  ;;  %v7352_v58 = vld [vmem:[%s14925_s7 + $0x3c8] sm:$0xff]  ;;  %v7351_v62 = vld [vmem:[%s14925_s7 + $0x3c0] sm:$0xff] }
 0x76d   :  { %5273 = vst [vmem:[#allocation6 + $0x30] sm:$0xff] %v10793_v50  ;;  %5299 = vst [vmem:[#allocation7 + $0xe] sm:$0x3] %v5298_v60  ;;  %v7322_v50 = vld [vmem:[%s14925_s7 + $0x2d8] sm:$0xff] }
 0x76e   :  { %v5240_v55 = vpop.f32.mrb[112].mxu0  ;;  %v10409_v60 = vpack.c.bf16 %v7322_v50, %v7320_v0  ;;  %v7353_v0 = vld [vmem:[%s14925_s7 + $0x3d0] sm:$0xff]  ;;  %v7356_v50 = vld [vmem:[%s14925_s7 + $0x3e8] sm:$0xff] }
 0x76f   :  { %v10796_v2 = vadd.f32 %v7134_v30, %v5240_v55  ;;  %v9838_v5 = vpop.f32.mrb[113].mxu0  ;;  %v7319_v55 = vld [vmem:[%s14925_s7 + $0x2c0] sm:$0xff] }
 0x770   :  { %v5301_v63 = vld [vmem:[#allocation6 + $0x2b] ss:$2 sm:$0x3]  ;;  %v5303_v6 = vld [vmem:[#allocation6 + $0x2c] ss:$2 sm:$0x3] }
 0x771   :  { %5274 = vst [vmem:[#allocation6 + $0x38] sm:$0xff] %v10796_v2  ;;  %v5308_v35 = vmax.f32 %v5301_v63, %v5303_v6  ;;  %v7321_v2 = vld [vmem:[%s14925_s7 + $0x2d0] sm:$0xff]  ;;  %v7324_v5 = vld [vmem:[%s14925_s7 + $0x2e8] sm:$0xff]  ;;  %v7326_v63 = vld [vmem:[%s14925_s7 + $0x2f8] sm:$0xff] }
 0x772   :  { %v5245_v10 = vpop.f32.mrb[114].mxu0  ;;  %v10411_v6 = vpack.c.bf16 %v7321_v2, %v7319_v55  ;;  %v7355_v2 = vld [vmem:[%s14925_s7 + $0x3e0] sm:$0xff] }
 0x773   :  { %v10799_v16 = vadd.f32 %v7134_v30, %v5245_v10  ;;  %v9841_v17 = vpop.f32.mrb[115].mxu0  ;;  %v10387_v30 = vpack.c.bf16 %v7297_v23, %v7295_v22  ;;  %v10413_v10 = vpack.c.bf16 %v7326_v63, %v7324_v5  ;;  %v7333_v22 = vld [vmem:[%s14925_s7 + $0x330] sm:$0xff]  ;;  %v7336_v23 = vld [vmem:[%s14925_s7 + $0x348] sm:$0xff] }
 0x774   :  { %v5305_v27 = vld [vmem:[#allocation6 + $0x31] ss:$2 sm:$0x3]  ;;  %v5307_v33 = vld [vmem:[#allocation6 + $0x32] ss:$2 sm:$0x3] }
 0x775   :  { %v5309_v40 = vmax.f32 %v5305_v27, %v5307_v33  ;;  %5275 = vst [vmem:[#allocation6 + $0x40] sm:$0xff] %v10799_v16  ;;  %v14006_v3 = vld [vmem:[#allocation7 + $0x8] sm:$0xff]  ;;  %v7323_v16 = vld [vmem:[%s14925_s7 + $0x2e0] sm:$0xff]  ;;  %v7328_v27 = vld [vmem:[%s14925_s7 + $0x308] sm:$0xff] }
 0x776   :  { %5443 = vmatmul.mubr.f32.gmra.mrb[118].mxu0 %v14006_v3  ;;  %v14047_v4 = vld [vmem:[#allocation7 + $0x9] sm:$0xff]  ;;  %v7360_v63 = vld [vmem:[%s14925_s7 + $0x408] sm:$0xff] }
 0x777   :  { %5448 = vmatprep.mubr.f32.mxu0 %v13677_v1  ;;  %v5310_v7 = vmax.f32 %v5308_v35, %v5309_v40  ;;  %v7325_v17 = vld [vmem:[%s14925_s7 + $0x2f0] sm:$0xff]  ;;  %v7330_v33 = vld [vmem:[%s14925_s7 + $0x318] sm:$0xff] }
 0x778   :  { %v5313_v8 = vld [vmem:[#allocation6 + $0x37] ss:$2 sm:$0x3]  ;;  %v5315_v24 = vld [vmem:[#allocation6 + $0x38] ss:$2 sm:$0x3]  ;;  %v10415_v35 = vpack.c.bf16 %v7325_v17, %v7323_v16  ;;  %v10417_v40 = vpack.c.bf16 %v7330_v33, %v7328_v27 }
 0x779   :  { %5311 = vst [vmem:[#allocation7 + $0x1a] sm:$0x3] %v5310_v7  ;;  %v5317_v11 = vld [vmem:[#allocation6 + $0x3d] ss:$2 sm:$0x3]  ;;  %v5320_v15 = vmax.f32 %v5313_v8, %v5315_v24  ;;  %v7327_v7 = vld [vmem:[%s14925_s7 + $0x300] sm:$0xff] }
 0x77a   :  { %5449 = vmatmul.mubr.f32.gmra.mrb[120].mxu0 %v13677_v1  ;;  %v7329_v8 = vld [vmem:[%s14925_s7 + $0x310] sm:$0xff]  ;;  %v7332_v24 = vld [vmem:[%s14925_s7 + $0x328] sm:$0xff]  ;;  %v7359_v17 = vld [vmem:[%s14925_s7 + $0x400] sm:$0xff] }
 0x77b   :  { %5454 = vmatprep.mubr.f32.mxu0 %v13677_v1  ;;  %v14156_v29 = vld [vmem:[#allocation7 + $0xa] sm:$0xff]  ;;  %v7364_v33 = vld [vmem:[%s14925_s7 + $0x428] sm:$0xff] }
 0x77c   :  { %v5319_v14 = vld [vmem:[#allocation6 + $0x3e] ss:$2 sm:$0x3]  ;;  %v7357_v5 = vld [vmem:[%s14925_s7 + $0x3f0] sm:$0xff] }
 0x77d   :  { %v5321_v19 = vmax.f32 %v5317_v11, %v5319_v14  ;;  %v7334_v11 = vld [vmem:[%s14925_s7 + $0x338] sm:$0xff]  ;;  %v5619_v14 = vld [vmem:[#allocation7 + $0x2] sm:$0xff] }
 0x77e   :  { %v7361_v27 = vld [vmem:[%s14925_s7 + $0x410] sm:$0xff] }
 0x77f   :  { %v5322_v20 = vmax.f32 %v5320_v15, %v5321_v19  ;;  %v10419_v15 = vpack.c.bf16 %v7329_v8, %v7327_v7  ;;  %v10421_v19 = vpack.c.bf16 %v7334_v11, %v7332_v24  ;;  %v7363_v8 = vld [vmem:[%s14925_s7 + $0x420] sm:$0xff]  ;;  %v7365_v24 = vld [vmem:[%s14925_s7 + $0x430] sm:$0xff] }
 0x780   :  { %v5769_v11 = vld [vmem:[#allocation7 + $0x4] sm:$0xff] }
 0x781   :  { %5323 = vst [vmem:[#allocation7 + $0x1e] sm:$0x3] %v5322_v20  ;;  %v7331_v20 = vld [vmem:[%s14925_s7 + $0x320] sm:$0xff] }
 0x782   :  { %v10423_v26 = vpack.c.bf16 %v7333_v22, %v7331_v20  ;;  %v7367_v22 = vld [vmem:[%s14925_s7 + $0x440] sm:$0xff] }
 0x788   :  { %v14018_v56 = vld [vmem:[#allocation7 + $0x18] sm:$0xff] }
 0x789   :  { %5455 = vmatmul.mubr.f32.gmra.mrb[122].mxu0 %v14018_v56  ;;  %v14079_v28 = vld [vmem:[#allocation7 + $0x19] sm:$0xff] }
 0x78a   :  { %5570 = vmatprep.mubr.f32.mxu0 %v13677_v1  ;;  %v14188_v47 = vld [vmem:[#allocation7 + $0x1a] sm:$0xff] }
 0x78d   :  { %5571 = vmatmul.mubr.f32.vlgmr.msra.gmra.mrb[116].mxu0 %v5469_v13  ;;  %v10425_v13 = vpack.c.bf16 %v7338_v25, %v7336_v23  ;;  %v7369_v23 = vld [vmem:[%s14925_s7 + $0x450] sm:$0xff] }
 0x78e   :  { %10388 = vmatpush1.bf16.msra.mxu0 %v10387_v30  ;;  %5576 = vmatprep.mubr.f32.mxu0 %v13677_v1  ;;  %v7335_v30 = vld [vmem:[%s14925_s7 + $0x340] sm:$0xff]  ;;  %v5770_v25 = vld [vmem:[#allocation7 + $0xc] sm:$0xff] }
 0x78f   :  { %10390 = vmatprep.subr.bf16.mxu0 %v10389_v31  ;;  %v7337_v31 = vld [vmem:[%s14925_s7 + $0x350] sm:$0xff] }
 0x791   :  { %5577 = vmatmul.mubr.f32.gmra.mrb[118].mxu0 %v14047_v4 }
 0x792   :  { %10392 = vmatpush1.bf16.msra.mxu0 %v10391_v36  ;;  %5582 = vmatprep.mubr.f32.mxu0 %v13677_v1  ;;  %v10427_v36 = vpack.c.bf16 %v7337_v31, %v7335_v30  ;;  %v10459_v30 = vpack.c.bf16 %v7369_v23, %v7367_v22  ;;  %v5920_v22 = vld [vmem:[#allocation7 + $0xd] sm:$0xff]  ;;  %v7404_v23 = vld [vmem:[%s14925_s7 + $0x568] sm:$0xff] }
 0x793   :  { %10394 = vmatprep.subr.bf16.mxu0 %v10393_v38  ;;  %v10429_v38 = vpack.c.bf16 %v7342_v34, %v7340_v32  ;;  %v7371_v32 = vld [vmem:[%s14925_s7 + $0x460] sm:$0xff]  ;;  %v7373_v34 = vld [vmem:[%s14925_s7 + $0x470] sm:$0xff] }
 0x795   :  { %5583 = vmatmul.mubr.f32.gmra.mrb[120].mxu0 %v14057_v49 }
 0x796   :  { %10396 = vmatpush1.bf16.msra.mxu0 %v10395_v52  ;;  %5588 = vmatprep.mubr.f32.mxu0 %v13677_v1  ;;  %v10431_v52 = vpack.c.bf16 %v7341_v42, %v7339_v41  ;;  %v14284_v41 = vld [vmem:[#allocation3] sm:$0xff]  ;;  %v10463_v42 = vpack.c.bf16 %v7373_v34, %v7371_v32  ;;  %v7408_v34 = vld [vmem:[%s14925_s7 + $0x588] sm:$0xff] }
 0x797   :  { %10398 = vmatprep.subr.bf16.mxu0 %v10397_v43  ;;  %v10433_v43 = vpack.c.bf16 %v7346_v59, %v7344_v18  ;;  %v7375_v59 = vld [vmem:[%s14925_s7 + $0x480] sm:$0xff] }
 0x798   :  { %v5921_v32 = vld [vmem:[#allocation7 + $0x15] sm:$0xff] }
 0x799   :  { %5589 = vmatmul.mubr.f32.gmra.mrb[122].mxu0 %v14079_v28 }
 0x79a   :  { %10400 = vmatpush1.bf16.msra.mxu0 %v10399_v51  ;;  %5720 = vmatprep.mubr.f32.mxu0 %v13677_v1  ;;  %v7350_v51 = vld [vmem:[%s14925_s7 + $0x3b8] sm:$0xff] }
 0x79b   :  { %10402 = vmatprep.subr.bf16.mxu0 %v10401_v9  ;;  %v10435_v9 = vpack.c.bf16 %v7345_v46, %v7343_v45  ;;  %v10437_v53 = vpack.c.bf16 %v7350_v51, %v7348_v48  ;;  %v7380_v45 = vld [vmem:[%s14925_s7 + $0x4a8] sm:$0xff]  ;;  %v7382_v46 = vld [vmem:[%s14925_s7 + $0x4b8] sm:$0xff] }
 0x79c   :  { %v10469_v51 = vpack.c.bf16 %v7382_v46, %v7380_v45 }
 0x79e   :  { %10404 = vmatpush1.bf16.msra.mxu0 %v10403_v39  ;;  %v7354_v39 = vld [vmem:[%s14925_s7 + $0x3d8] sm:$0xff] }
 0x79f   :  { %10406 = vmatprep.subr.bf16.mxu0 %v10405_v61  ;;  %v10439_v61 = vpack.c.bf16 %v7349_v57, %v7347_v54  ;;  %v10441_v44 = vpack.c.bf16 %v7354_v39, %v7352_v58  ;;  %v7384_v54 = vld [vmem:[%s14925_s7 + $0x4c8] sm:$0xff]  ;;  %v7386_v57 = vld [vmem:[%s14925_s7 + $0x4d8] sm:$0xff] }
 0x7a0   :  { %v10473_v39 = vpack.c.bf16 %v7386_v57, %v7384_v54 }
 0x7a2   :  { %10408 = vmatpush1.bf16.msra.mxu0 %v10407_v37  ;;  %v7358_v37 = vld [vmem:[%s14925_s7 + $0x3f8] sm:$0xff] }
 0x7a3   :  { %10410 = vmatprep.subr.bf16.mxu0 %v10409_v60  ;;  %v10443_v60 = vpack.c.bf16 %v7353_v0, %v7351_v62  ;;  %v10445_v55 = vpack.c.bf16 %v7358_v37, %v7356_v50  ;;  %v7388_v62 = vld [vmem:[%s14925_s7 + $0x4e8] sm:$0xff]  ;;  %v7390_v0 = vld [vmem:[%s14925_s7 + $0x4f8] sm:$0xff] }
 0x7a4   :  { %v10477_v37 = vpack.c.bf16 %v7390_v0, %v7388_v62 }
 0x7a6   :  { %10412 = vmatpush1.bf16.msra.mxu0 %v10411_v6  ;;  %v7362_v6 = vld [vmem:[%s14925_s7 + $0x418] sm:$0xff] }
 0x7a7   :  { %10414 = vmatprep.subr.bf16.mxu0 %v10413_v10  ;;  %v10447_v10 = vpack.c.bf16 %v7357_v5, %v7355_v2  ;;  %v10449_v16 = vpack.c.bf16 %v7362_v6, %v7360_v63  ;;  %v7392_v2 = vld [vmem:[%s14925_s7 + $0x508] sm:$0xff]  ;;  %v7394_v5 = vld [vmem:[%s14925_s7 + $0x518] sm:$0xff] }
 0x7a8   :  { %v10481_v6 = vpack.c.bf16 %v7394_v5, %v7392_v2 }
 0x7aa   :  { %10416 = vmatpush1.bf16.msra.mxu0 %v10415_v35  ;;  %v7366_v35 = vld [vmem:[%s14925_s7 + $0x438] sm:$0xff] }
 0x7ab   :  { %10418 = vmatprep.subr.bf16.mxu0 %v10417_v40  ;;  %v10451_v40 = vpack.c.bf16 %v7361_v27, %v7359_v17  ;;  %v10453_v7 = vpack.c.bf16 %v7366_v35, %v7364_v33  ;;  %v7396_v17 = vld [vmem:[%s14925_s7 + $0x528] sm:$0xff]  ;;  %v7398_v27 = vld [vmem:[%s14925_s7 + $0x538] sm:$0xff] }
 0x7ac   :  { %v10485_v35 = vpack.c.bf16 %v7398_v27, %v7396_v17 }
 0x7ad   :  { %5721 = vmatmul.mubr.f32.vlgmr.msra.gmra.mrb[116].mxu0 %v5619_v14  ;;  %v7368_v14 = vld [vmem:[%s14925_s7 + $0x448] sm:$0xff] }
 0x7ae   :  { %10420 = vmatpush1.bf16.msra.mxu0 %v10419_v15  ;;  %5726 = vmatprep.mubr.f32.mxu0 %v13677_v1  ;;  %v7370_v15 = vld [vmem:[%s14925_s7 + $0x458] sm:$0xff] }
 0x7af   :  { %10422 = vmatprep.subr.bf16.mxu0 %v10421_v19  ;;  %v10455_v19 = vpack.c.bf16 %v7365_v24, %v7363_v8  ;;  %v10457_v20 = vpack.c.bf16 %v7370_v15, %v7368_v14  ;;  %v5919_v8 = vld [vmem:[#allocation7 + $0x5] sm:$0xff] }
 0x7b0   :  { %v7400_v24 = vld [vmem:[%s14925_s7 + $0x548] sm:$0xff] }
 0x7b1   :  { %5727 = vmatmul.mubr.f32.gmra.mrb[118].mxu0 %v14156_v29 }
 0x7b2   :  { %10424 = vmatpush1.bf16.msra.mxu0 %v10423_v26  ;;  %5732 = vmatprep.mubr.f32.mxu0 %v13677_v1  ;;  %v7372_v26 = vld [vmem:[%s14925_s7 + $0x468] sm:$0xff] }
 0x7b3   :  { %10426 = vmatprep.subr.bf16.mxu0 %v10425_v13  ;;  %v7374_v13 = vld [vmem:[%s14925_s7 + $0x478] sm:$0xff] }
 0x7b4   :  { %v10461_v31 = vpack.c.bf16 %v7374_v13, %v7372_v26 }
 0x7b5   :  { %5733 = vmatmul.mubr.f32.gmra.mrb[120].mxu0 %v14166_v21 }
 0x7b6   :  { %10428 = vmatpush1.bf16.msra.mxu0 %v10427_v36  ;;  %5738 = vmatprep.mubr.f32.mxu0 %v13677_v1  ;;  %v5771_v36 = vld [vmem:[#allocation7 + $0x14] sm:$0xff] }
 0x7b7   :  { %10430 = vmatprep.subr.bf16.mxu0 %v10429_v38  ;;  %v7376_v38 = vld [vmem:[%s14925_s7 + $0x488] sm:$0xff] }
 0x7b9   :  { %5739 = vmatmul.mubr.f32.gmra.mrb[122].mxu0 %v14188_v47 }
 0x7ba   :  { %10432 = vmatpush1.bf16.msra.mxu0 %v10431_v52  ;;  %5870 = vmatprep.mubr.f32.mxu0 %v13677_v1  ;;  %v7377_v52 = vld [vmem:[%s14925_s7 + $0x490] sm:$0xff] }
 0x7bb   :  { %10434 = vmatprep.subr.bf16.mxu0 %v10433_v43  ;;  %v5772_v43 = vld [vmem:[#allocation7 + $0x1c] sm:$0xff]  ;;  %v10467_v48 = vpack.c.bf16 %v7377_v52, %v7375_v59 }
 0x7bc   :  { %v5922_v59 = vld [vmem:[#allocation7 + $0x1d] sm:$0xff] }
 0x7bd   :  { %v7412_v52 = vld [vmem:[%s14925_s7 + $0x5a8] sm:$0xff] }
 0x7be   :  { %10436 = vmatpush1.bf16.msra.mxu0 %v10435_v9  ;;  %v7379_v9 = vld [vmem:[%s14925_s7 + $0x4a0] sm:$0xff] }
 0x7bf   :  { %10438 = vmatprep.subr.bf16.mxu0 %v10437_v53  ;;  %v7381_v53 = vld [vmem:[%s14925_s7 + $0x4b0] sm:$0xff] }
 0x7c0   :  { %v10471_v58 = vpack.c.bf16 %v7381_v53, %v7379_v9  ;;  %v7416_v9 = vld [vmem:[%s14925_s7 + $0x5c8] sm:$0xff]  ;;  %v7418_v53 = vld [vmem:[%s14925_s7 + $0x5d8] sm:$0xff] }
 0x7c1   :  { %v10505_v57 = vpack.c.bf16 %v7418_v53, %v7416_v9 }
 0x7c2   :  { %10440 = vmatpush1.bf16.msra.mxu0 %v10439_v61  ;;  %v7383_v61 = vld [vmem:[%s14925_s7 + $0x4c0] sm:$0xff] }
 0x7c3   :  { %10442 = vmatprep.subr.bf16.mxu0 %v10441_v44  ;;  %v7385_v44 = vld [vmem:[%s14925_s7 + $0x4d0] sm:$0xff] }
 0x7c4   :  { %v10475_v50 = vpack.c.bf16 %v7385_v44, %v7383_v61  ;;  %v7420_v61 = vld [vmem:[%s14925_s7 + $0x5e8] sm:$0xff]  ;;  %v7422_v44 = vld [vmem:[%s14925_s7 + $0x5f8] sm:$0xff] }
 0x7c5   :  { %v10509_v0 = vpack.c.bf16 %v7422_v44, %v7420_v61 }
 0x7c6   :  { %10444 = vmatpush1.bf16.msra.mxu0 %v10443_v60  ;;  %v7387_v60 = vld [vmem:[%s14925_s7 + $0x4e0] sm:$0xff] }
 0x7c7   :  { %10446 = vmatprep.subr.bf16.mxu0 %v10445_v55  ;;  %v7389_v55 = vld [vmem:[%s14925_s7 + $0x4f0] sm:$0xff] }
 0x7c8   :  { %v10479_v63 = vpack.c.bf16 %v7389_v55, %v7387_v60  ;;  %v7424_v60 = vld [vmem:[%s14925_s7 + $0x608] sm:$0xff]  ;;  %v7426_v55 = vld [vmem:[%s14925_s7 + $0x618] sm:$0xff] }
 0x7c9   :  { %v10513_v5 = vpack.c.bf16 %v7426_v55, %v7424_v60 }
 0x7ca   :  { %10448 = vmatpush1.bf16.msra.mxu0 %v10447_v10  ;;  %v7391_v10 = vld [vmem:[%s14925_s7 + $0x500] sm:$0xff] }
 0x7cb   :  { %10450 = vmatprep.subr.bf16.mxu0 %v10449_v16  ;;  %v7393_v16 = vld [vmem:[%s14925_s7 + $0x510] sm:$0xff] }
 0x7cc   :  { %v10483_v33 = vpack.c.bf16 %v7393_v16, %v7391_v10  ;;  %v7428_v10 = vld [vmem:[%s14925_s7 + $0x628] sm:$0xff]  ;;  %v7430_v16 = vld [vmem:[%s14925_s7 + $0x638] sm:$0xff] }
 0x7cd   :  { %5871 = vmatmul.mubr.f32.vlgmr.msra.gmra.mrb[116].mxu0 %v5769_v11  ;;  %v7402_v11 = vld [vmem:[%s14925_s7 + $0x558] sm:$0xff]  ;;  %v10517_v27 = vpack.c.bf16 %v7430_v16, %v7428_v10 }
 0x7ce   :  { %10452 = vmatpush1.bf16.msra.mxu0 %v10451_v40  ;;  %5876 = vmatprep.mubr.f32.mxu0 %v13677_v1  ;;  %v7395_v40 = vld [vmem:[%s14925_s7 + $0x520] sm:$0xff]  ;;  %v10489_v15 = vpack.c.bf16 %v7402_v11, %v7400_v24 }
 0x7cf   :  { %10454 = vmatprep.subr.bf16.mxu0 %v10453_v7  ;;  %v7397_v7 = vld [vmem:[%s14925_s7 + $0x530] sm:$0xff] }
 0x7d0   :  { %v10487_v14 = vpack.c.bf16 %v7397_v7, %v7395_v40  ;;  %v6069_v40 = vld [vmem:[#allocation7 + $0x6] sm:$0xff] }
 0x7d1   :  { %5877 = vmatmul.mubr.f32.gmra.mrb[118].mxu0 %v5770_v25  ;;  %v7406_v25 = vld [vmem:[%s14925_s7 + $0x578] sm:$0xff]  ;;  %v7432_v7 = vld [vmem:[%s14925_s7 + $0x648] sm:$0xff] }
 0x7d2   :  { %10456 = vmatpush1.bf16.msra.mxu0 %v10455_v19  ;;  %5882 = vmatprep.mubr.f32.mxu0 %v13677_v1  ;;  %v7378_v1 = vld [vmem:[%s14925_s7 + $0x498] sm:$0xff]  ;;  %v7399_v19 = vld [vmem:[%s14925_s7 + $0x540] sm:$0xff]  ;;  %v10493_v13 = vpack.c.bf16 %v7406_v25, %v7404_v23 }
 0x7d3   :  { %10458 = vmatprep.subr.bf16.mxu0 %v10457_v20  ;;  %v10465_v18 = vpack.c.bf16 %v7378_v1, %v7376_v38  ;;  %v7401_v20 = vld [vmem:[%s14925_s7 + $0x550] sm:$0xff] }
 0x7d4   :  { %v10491_v26 = vpack.c.bf16 %v7401_v20, %v7399_v19  ;;  %v6070_v19 = vld [vmem:[#allocation7 + $0xe] sm:$0xff]  ;;  %v7436_v20 = vld [vmem:[%s14925_s7 + $0x668] sm:$0xff] }
 0x7d5   :  { %5883 = vmatmul.mubr.f32.gmra.mrb[120].mxu0 %v5771_v36  ;;  %v7410_v36 = vld [vmem:[%s14925_s7 + $0x598] sm:$0xff] }
 0x7d6   :  { %10460 = vmatpush1.bf16.msra.mxu0 %v10459_v30  ;;  %5888 = vmatprep.mubr.f32.mxu0 %v14284_v41  ;;  %v7403_v30 = vld [vmem:[%s14925_s7 + $0x560] sm:$0xff]  ;;  %v10497_v1 = vpack.c.bf16 %v7410_v36, %v7408_v34 }
 0x7d7   :  { %10462 = vmatprep.subr.bf16.mxu0 %v10461_v31  ;;  %v7405_v31 = vld [vmem:[%s14925_s7 + $0x570] sm:$0xff] }
 0x7d8   :  { %v10495_v38 = vpack.c.bf16 %v7405_v31, %v7403_v30  ;;  %v6071_v30 = vld [vmem:[#allocation7 + $0x16] sm:$0xff]  ;;  %v7440_v31 = vld [vmem:[%s14925_s7 + $0x688] sm:$0xff] }
 0x7d9   :  { %5889 = vmatmul.mubr.f32.gmra.mrb[122].mxu0 %v5772_v43  ;;  %v7414_v43 = vld [vmem:[%s14925_s7 + $0x5b8] sm:$0xff] }
 0x7da   :  { %10464 = vmatpush1.bf16.msra.mxu0 %v10463_v42  ;;  %6020 = vmatprep.mubr.f32.mxu0 %v14284_v41  ;;  %v7407_v42 = vld [vmem:[%s14925_s7 + $0x580] sm:$0xff]  ;;  %v10501_v46 = vpack.c.bf16 %v7414_v43, %v7412_v52 }
 0x7db   :  { %10466 = vmatprep.subr.bf16.mxu0 %v10465_v18  ;;  %v7409_v18 = vld [vmem:[%s14925_s7 + $0x590] sm:$0xff] }
 0x7dc   :  { %v10499_v45 = vpack.c.bf16 %v7409_v18, %v7407_v42  ;;  %v6072_v42 = vld [vmem:[#allocation7 + $0x1e] sm:$0xff] }
 0x7dd   :  { %v7444_v18 = vld [vmem:[%s14925_s7 + $0x6a8] sm:$0xff] }
 0x7de   :  { %10468 = vmatpush1.bf16.msra.mxu0 %v10467_v48  ;;  %v7411_v48 = vld [vmem:[%s14925_s7 + $0x5a0] sm:$0xff] }
 0x7df   :  { %10470 = vmatprep.subr.bf16.mxu0 %v10469_v51  ;;  %v7413_v51 = vld [vmem:[%s14925_s7 + $0x5b0] sm:$0xff] }
 0x7e0   :  { %v10503_v54 = vpack.c.bf16 %v7413_v51, %v7411_v48  ;;  %v7448_v48 = vld [vmem:[%s14925_s7 + $0x6c8] sm:$0xff]  ;;  %v7450_v51 = vld [vmem:[%s14925_s7 + $0x6d8] sm:$0xff] }
 0x7e1   :  { %v10537_v53 = vpack.c.bf16 %v7450_v51, %v7448_v48 }
 0x7e2   :  { %10472 = vmatpush1.bf16.msra.mxu0 %v10471_v58  ;;  %v7415_v58 = vld [vmem:[%s14925_s7 + $0x5c0] sm:$0xff] }
 0x7e3   :  { %10474 = vmatprep.subr.bf16.mxu0 %v10473_v39  ;;  %v7417_v39 = vld [vmem:[%s14925_s7 + $0x5d0] sm:$0xff] }
 0x7e4   :  { %v10507_v62 = vpack.c.bf16 %v7417_v39, %v7415_v58  ;;  %v7452_v58 = vld [vmem:[%s14925_s7 + $0x6e8] sm:$0xff]  ;;  %v7454_v39 = vld [vmem:[%s14925_s7 + $0x6f8] sm:$0xff] }
 0x7e5   :  { %v10541_v44 = vpack.c.bf16 %v7454_v39, %v7452_v58 }
 0x7e6   :  { %10476 = vmatpush1.bf16.msra.mxu0 %v10475_v50  ;;  %v7419_v50 = vld [vmem:[%s14925_s7 + $0x5e0] sm:$0xff] }
 0x7e7   :  { %10478 = vmatprep.subr.bf16.mxu0 %v10477_v37  ;;  %v7421_v37 = vld [vmem:[%s14925_s7 + $0x5f0] sm:$0xff] }
 0x7e8   :  { %v10511_v2 = vpack.c.bf16 %v7421_v37, %v7419_v50  ;;  %v7456_v50 = vld [vmem:[%s14925_s7 + $0x708] sm:$0xff]  ;;  %v7458_v37 = vld [vmem:[%s14925_s7 + $0x718] sm:$0xff] }
 0x7e9   :  { %v10545_v55 = vpack.c.bf16 %v7458_v37, %v7456_v50 }
 0x7ea   :  { %10480 = vmatpush1.bf16.msra.mxu0 %v10479_v63  ;;  %v7423_v63 = vld [vmem:[%s14925_s7 + $0x600] sm:$0xff] }
 0x7eb   :  { %10482 = vmatprep.subr.bf16.mxu0 %v10481_v6  ;;  %v7425_v6 = vld [vmem:[%s14925_s7 + $0x610] sm:$0xff] }
 0x7ec   :  { %v10515_v17 = vpack.c.bf16 %v7425_v6, %v7423_v63  ;;  %v7460_v63 = vld [vmem:[%s14925_s7 + $0x728] sm:$0xff]  ;;  %v7462_v6 = vld [vmem:[%s14925_s7 + $0x738] sm:$0xff] }
 0x7ed   :  { %6021 = vmatmul.mubr.f32.vlgmr.msra.gmra.mrb[116].mxu0 %v5919_v8  ;;  %v7434_v8 = vld [vmem:[%s14925_s7 + $0x658] sm:$0xff]  ;;  %v10549_v16 = vpack.c.bf16 %v7462_v6, %v7460_v63 }
 0x7ee   :  { %10484 = vmatpush1.bf16.msra.mxu0 %v10483_v33  ;;  %6026 = vmatprep.mubr.f32.mxu0 %v14284_v41  ;;  %v7427_v33 = vld [vmem:[%s14925_s7 + $0x620] sm:$0xff]  ;;  %v10521_v11 = vpack.c.bf16 %v7434_v8, %v7432_v7 }
 0x7ef   :  { %10486 = vmatprep.subr.bf16.mxu0 %v10485_v35  ;;  %v7429_v35 = vld [vmem:[%s14925_s7 + $0x630] sm:$0xff]  ;;  %v7463_v8 = vld [vmem:[%s14925_s7 + $0x740] sm:$0xff] }
 0x7f0   :  { %v10519_v24 = vpack.c.bf16 %v7429_v35, %v7427_v33  ;;  %v7464_v33 = vld [vmem:[%s14925_s7 + $0x748] sm:$0xff]  ;;  %v7466_v35 = vld [vmem:[%s14925_s7 + $0x758] sm:$0xff] }
 0x7f1   :  { %6027 = vmatmul.mubr.f32.gmra.mrb[118].mxu0 %v5920_v22  ;;  %v7438_v22 = vld [vmem:[%s14925_s7 + $0x678] sm:$0xff]  ;;  %v10553_v7 = vpack.c.bf16 %v7466_v35, %v7464_v33  ;;  %v7499_v35 = vld [vmem:[%s14925_s7 + $0x860] sm:$0xff] }
 0x7f2   :  { %10488 = vmatpush1.bf16.msra.mxu0 %v10487_v14  ;;  %6032 = vmatprep.mubr.f32.mxu0 %v14284_v41  ;;  %v7431_v14 = vld [vmem:[%s14925_s7 + $0x640] sm:$0xff]  ;;  %v10525_v25 = vpack.c.bf16 %v7438_v22, %v7436_v20  ;;  %v7469_v20 = vld [vmem:[%s14925_s7 + $0x770] sm:$0xff]  ;;  %v7472_v22 = vld [vmem:[%s14925_s7 + $0x788] sm:$0xff] }
 0x7f3   :  { %10490 = vmatprep.subr.bf16.mxu0 %v10489_v15  ;;  %v7433_v15 = vld [vmem:[%s14925_s7 + $0x650] sm:$0xff] }
 0x7f4   :  { %v10523_v23 = vpack.c.bf16 %v7433_v15, %v7431_v14 }
 0x7f5   :  { %6033 = vmatmul.mubr.f32.gmra.mrb[120].mxu0 %v5921_v32  ;;  %v7442_v32 = vld [vmem:[%s14925_s7 + $0x698] sm:$0xff] }
 0x7f6   :  { %10492 = vmatpush1.bf16.msra.mxu0 %v10491_v26  ;;  %6038 = vmatprep.mubr.f32.mxu0 %v14284_v41  ;;  %v7435_v26 = vld [vmem:[%s14925_s7 + $0x660] sm:$0xff]  ;;  %v10529_v36 = vpack.c.bf16 %v7442_v32, %v7440_v31  ;;  %v7476_v31 = vld [vmem:[%s14925_s7 + $0x7a8] sm:$0xff] }
 0x7f7   :  { %10494 = vmatprep.subr.bf16.mxu0 %v10493_v13  ;;  %v7437_v13 = vld [vmem:[%s14925_s7 + $0x670] sm:$0xff] }
 0x7f8   :  { %v10527_v34 = vpack.c.bf16 %v7437_v13, %v7435_v26  ;;  %v7471_v13 = vld [vmem:[%s14925_s7 + $0x780] sm:$0xff] }
 0x7f9   :  { %6039 = vmatmul.mubr.f32.gmra.mrb[122].mxu0 %v5922_v59  ;;  %v7446_v59 = vld [vmem:[%s14925_s7 + $0x6b8] sm:$0xff] }
 0x7fa   :  { %10496 = vmatpush1.bf16.msra.mxu0 %v10495_v38  ;;  %6170 = vmatprep.mubr.f32.mxu0 %v14284_v41  ;;  %v7439_v38 = vld [vmem:[%s14925_s7 + $0x680] sm:$0xff]  ;;  %v10533_v43 = vpack.c.bf16 %v7446_v59, %v7444_v18 }
 0x7fb   :  { %10498 = vmatprep.subr.bf16.mxu0 %v10497_v1  ;;  %v7441_v1 = vld [vmem:[%s14925_s7 + $0x690] sm:$0xff] }
 0x7fc   :  { %v10531_v52 = vpack.c.bf16 %v7441_v1, %v7439_v38  ;;  %v7477_v38 = vld [vmem:[%s14925_s7 + $0x7b0] sm:$0xff]  ;;  %v7480_v1 = vld [vmem:[%s14925_s7 + $0x7c8] sm:$0xff] }
 0x7fe   :  { %10500 = vmatpush1.bf16.msra.mxu0 %v10499_v45  ;;  %v7443_v45 = vld [vmem:[%s14925_s7 + $0x6a0] sm:$0xff] }
 0x7ff   :  { %10502 = vmatprep.subr.bf16.mxu0 %v10501_v46  ;;  %v7445_v46 = vld [vmem:[%s14925_s7 + $0x6b0] sm:$0xff] }
 0x800   :  { %v10535_v9 = vpack.c.bf16 %v7445_v46, %v7443_v45  ;;  %v7484_v45 = vld [vmem:[%s14925_s7 + $0x7e8] sm:$0xff]  ;;  %v7486_v46 = vld [vmem:[%s14925_s7 + $0x7f8] sm:$0xff] }
 0x801   :  { %v10573_v51 = vpack.c.bf16 %v7486_v46, %v7484_v45  ;;  %v5362_v45 = vlaneseq }
 0x802   :  { %10504 = vmatpush1.bf16.msra.mxu0 %v10503_v54  ;;  %v7447_v54 = vld [vmem:[%s14925_s7 + $0x6c0] sm:$0xff] }
 0x803   :  { %10506 = vmatprep.subr.bf16.mxu0 %v10505_v57  ;;  %v7449_v57 = vld [vmem:[%s14925_s7 + $0x6d0] sm:$0xff]  ;;  %vm6682_vm3 = vcmp.lt.s32.totalorder %v5362_v45, 256 }
 0x804   :  { %v10539_v61 = vpack.c.bf16 %v7449_v57, %v7447_v54  ;;  %v7488_v54 = vld [vmem:[%s14925_s7 + $0x808] sm:$0xff]  ;;  %v7490_v57 = vld [vmem:[%s14925_s7 + $0x818] sm:$0xff] }
 0x805   :  { %v10577_v39 = vpack.c.bf16 %v7490_v57, %v7488_v54 }
 0x806   :  { %10508 = vmatpush1.bf16.msra.mxu0 %v10507_v62  ;;  %v7451_v62 = vld [vmem:[%s14925_s7 + $0x6e0] sm:$0xff] }
 0x807   :  { %10510 = vmatprep.subr.bf16.mxu0 %v10509_v0  ;;  %v7453_v0 = vld [vmem:[%s14925_s7 + $0x6f0] sm:$0xff] }
 0x808   :  { %v10543_v60 = vpack.c.bf16 %v7453_v0, %v7451_v62  ;;  %v7492_v62 = vld [vmem:[%s14925_s7 + $0x828] sm:$0xff]  ;;  %v7494_v0 = vld [vmem:[%s14925_s7 + $0x838] sm:$0xff] }
 0x809   :  { %v10581_v37 = vpack.c.bf16 %v7494_v0, %v7492_v62 }
 0x80a   :  { %10512 = vmatpush1.bf16.msra.mxu0 %v10511_v2  ;;  %v7455_v2 = vld [vmem:[%s14925_s7 + $0x700] sm:$0xff] }
 0x80b   :  { %10514 = vmatprep.subr.bf16.mxu0 %v10513_v5  ;;  %v7457_v5 = vld [vmem:[%s14925_s7 + $0x710] sm:$0xff] }
 0x80c   :  { %v10547_v10 = vpack.c.bf16 %v7457_v5, %v7455_v2  ;;  %v7496_v2 = vld [vmem:[%s14925_s7 + $0x848] sm:$0xff]  ;;  %v7498_v5 = vld [vmem:[%s14925_s7 + $0x858] sm:$0xff] }
 0x80d   :  { %6171 = vmatmul.mubr.f32.vlgmr.msra.gmra.mrb[116].mxu0 %v6069_v40  ;;  %v10585_v6 = vpack.c.bf16 %v7498_v5, %v7496_v2 }
 0x80e   :  { %10516 = vmatpush1.bf16.msra.mxu0 %v10515_v17  ;;  %6176 = vmatprep.mubr.f32.mxu0 %v14284_v41  ;;  %v7459_v17 = vld [vmem:[%s14925_s7 + $0x720] sm:$0xff] }
 0x80f   :  { %10518 = vmatprep.subr.bf16.mxu0 %v10517_v27  ;;  %v7461_v27 = vld [vmem:[%s14925_s7 + $0x730] sm:$0xff] }
 0x810   :  { %v10551_v40 = vpack.c.bf16 %v7461_v27, %v7459_v17  ;;  %v7500_v17 = vld [vmem:[%s14925_s7 + $0x868] sm:$0xff] }
 0x811   :  { %6177 = vmatmul.mubr.f32.gmra.mrb[118].mxu0 %v6070_v19  ;;  %v7467_v19 = vld [vmem:[%s14925_s7 + $0x760] sm:$0xff] }
 0x812   :  { %10520 = vmatpush1.bf16.msra.mxu0 %v10519_v24  ;;  %6182 = vmatprep.mubr.f32.mxu0 %v14284_v41  ;;  %v7465_v24 = vld [vmem:[%s14925_s7 + $0x750] sm:$0xff] }
 0x813   :  { %10522 = vmatprep.subr.bf16.mxu0 %v10521_v11  ;;  %v7468_v11 = vld [vmem:[%s14925_s7 + $0x768] sm:$0xff]  ;;  %v10555_v14 = vpack.c.bf16 %v7465_v24, %v7463_v8 }
 0x814   :  { %v6372_v24 = vld [vmem:[#allocation7 + $0x21] sm:$0xff] }
 0x815   :  { %6183 = vmatmul.mubr.f32.gmra.mrb[120].mxu0 %v6071_v30  ;;  %v7473_v30 = vld [vmem:[%s14925_s7 + $0x790] sm:$0xff] }
 0x816   :  { %10524 = vmatpush1.bf16.msra.mxu0 %v10523_v23  ;;  %6188 = vmatprep.mubr.f32.mxu0 %v14284_v41  ;;  %v7474_v23 = vld [vmem:[%s14925_s7 + $0x798] sm:$0xff]  ;;  %v10563_v32 = vpack.c.bf16 %v7473_v30, %v7471_v13 }
 0x817   :  { %10526 = vmatprep.subr.bf16.mxu0 %v10525_v25  ;;  %v10559_v25 = vpack.c.bf16 %v7469_v20, %v7467_v19  ;;  %v10561_v26 = vpack.c.bf16 %v7474_v23, %v7472_v22  ;;  %v7507_v22 = vld [vmem:[%s14925_s7 + $0x8a0] sm:$0xff]  ;;  %v7509_v23 = vld [vmem:[%s14925_s7 + $0x8b0] sm:$0xff] }
 0x818   :  { %v10599_v13 = vpack.c.bf16 %v7509_v23, %v7507_v22  ;;  %v6719_v22 = vld [vmem:[%s14927_s9 + $0x8] sm:$0xff] }
 0x819   :  { %6189 = vmatmul.mubr.f32.gmra.mrb[122].mxu0 %v6072_v42  ;;  %v7482_v42 = vld [vmem:[%s14925_s7 + $0x7d8] sm:$0xff] }
 0x81a   :  { %10528 = vmatpush1.bf16.msra.mxu0 %v10527_v34  ;;  %6320 = vmatprep.mubr.f32.mxu0 %v14284_v41  ;;  %v10569_v59 = vpack.c.bf16 %v7482_v42, %v7480_v1  ;;  %v7515_v1 = vld [vmem:[%s14925_s7 + $0x8e0] sm:$0xff]  ;;  %v7517_v42 = vld [vmem:[%s14925_s7 + $0x8f0] sm:$0xff] }
 0x81b   :  { %10530 = vmatprep.subr.bf16.mxu0 %v10529_v36  ;;  %v7475_v36 = vld [vmem:[%s14925_s7 + $0x7a0] sm:$0xff] }
 0x81c   :  { %v10567_v18 = vpack.c.bf16 %v7477_v38, %v7475_v36 }
 0x81e   :  { %10532 = vmatpush1.bf16.msra.mxu0 %v10531_v52  ;;  %v7479_v52 = vld [vmem:[%s14925_s7 + $0x7c0] sm:$0xff] }
 0x81f   :  { %10534 = vmatprep.subr.bf16.mxu0 %v10533_v43  ;;  %v7481_v43 = vld [vmem:[%s14925_s7 + $0x7d0] sm:$0xff] }
 0x820   :  { %v10571_v48 = vpack.c.bf16 %v7481_v43, %v7479_v52  ;;  %v6734_v52 = vld [vmem:[%s14927_s9 + $0x80] sm:$0xff] }
 0x822   :  { %10536 = vmatpush1.bf16.msra.mxu0 %v10535_v9  ;;  %v7483_v9 = vld [vmem:[%s14925_s7 + $0x7e0] sm:$0xff] }
 0x823   :  { %10538 = vmatprep.subr.bf16.mxu0 %v10537_v53  ;;  %v7485_v53 = vld [vmem:[%s14925_s7 + $0x7f0] sm:$0xff] }
 0x824   :  { %v10575_v58 = vpack.c.bf16 %v7485_v53, %v7483_v9 }
 0x826   :  { %10540 = vmatpush1.bf16.msra.mxu0 %v10539_v61  ;;  %v7487_v61 = vld [vmem:[%s14925_s7 + $0x800] sm:$0xff] }
 0x827   :  { %10542 = vmatprep.subr.bf16.mxu0 %v10541_v44  ;;  %v7489_v44 = vld [vmem:[%s14925_s7 + $0x810] sm:$0xff] }
 0x828   :  { %v10579_v50 = vpack.c.bf16 %v7489_v44, %v7487_v61 }
 0x82a   :  { %10544 = vmatpush1.bf16.msra.mxu0 %v10543_v60  ;;  %v7491_v60 = vld [vmem:[%s14925_s7 + $0x820] sm:$0xff] }
 0x82b   :  { %10546 = vmatprep.subr.bf16.mxu0 %v10545_v55  ;;  %v7493_v55 = vld [vmem:[%s14925_s7 + $0x830] sm:$0xff] }
 0x82c   :  { %v10583_v63 = vpack.c.bf16 %v7493_v55, %v7491_v60 }
 0x82d   :  { %6321 = vmatmul.mubr.f32.vlgmr.msra.gmra.mrb[116].mxu0 %v14006_v3  ;;  %v7470_v3 = vld [vmem:[%s14925_s7 + $0x778] sm:$0xff] }
 0x82e   :  { %10548 = vmatpush1.bf16.msra.mxu0 %v10547_v10  ;;  %6326 = vmatprep.mubr.f32.mxu0 %v14284_v41  ;;  %v10557_v15 = vpack.c.bf16 %v7470_v3, %v7468_v11  ;;  %v7495_v10 = vld [vmem:[%s14925_s7 + $0x840] sm:$0xff] }
 0x82f   :  { %10550 = vmatprep.subr.bf16.mxu0 %v10549_v16  ;;  %v7497_v16 = vld [vmem:[%s14925_s7 + $0x850] sm:$0xff]  ;;  %v7503_v3 = vld [vmem:[%s14925_s7 + $0x880] sm:$0xff] }
 0x830   :  { %v10587_v27 = vpack.c.bf16 %v7497_v16, %v7495_v10 }
 0x831   :  { %6327 = vmatmul.mubr.f32.gmra.mrb[118].mxu0 %v14284_v41 }
 0x832   :  { %10552 = vmatpush1.bf16.msra.mxu0 %v10551_v40  ;;  %6332 = vmatprep.mubr.f32.mxu0 %v14284_v41  ;;  %v7501_v40 = vld [vmem:[%s14925_s7 + $0x870] sm:$0xff] }
 0x833   :  { %10554 = vmatprep.subr.bf16.mxu0 %v10553_v7  ;;  %v7504_v7 = vld [vmem:[%s14925_s7 + $0x888] sm:$0xff]  ;;  %v10591_v8 = vpack.c.bf16 %v7501_v40, %v7499_v35 }
 0x835   :  { %6333 = vmatmul.mubr.f32.gmra.mrb[120].mxu0 %v14018_v56  ;;  %v7478_v56 = vld [vmem:[%s14925_s7 + $0x7b8] sm:$0xff] }
 0x836   :  { %10556 = vmatpush1.bf16.msra.mxu0 %v10555_v14  ;;  %6338 = vmatprep.mubr.f32.mxu0 %v14284_v41  ;;  %v10565_v34 = vpack.c.bf16 %v7478_v56, %v7476_v31  ;;  %v7505_v14 = vld [vmem:[%s14925_s7 + $0x890] sm:$0xff]  ;;  %v7511_v31 = vld [vmem:[%s14925_s7 + $0x8c0] sm:$0xff] }
 0x837   :  { %10558 = vmatprep.subr.bf16.mxu0 %v10557_v15  ;;  %v7508_v15 = vld [vmem:[%s14925_s7 + $0x8a8] sm:$0xff]  ;;  %v10595_v19 = vpack.c.bf16 %v7505_v14, %v7503_v3  ;;  %v7513_v56 = vld [vmem:[%s14925_s7 + $0x8d0] sm:$0xff] }
 0x838   :  { %v10603_v36 = vpack.c.bf16 %v7513_v56, %v7511_v31  ;;  %v6721_v31 = vld [vmem:[%s14927_s9 + $0x18] sm:$0xff] }
 0x839   :  { %6339 = vmatmul.mubr.f32.gmra.mrb[122].mxu0 %v14284_v41 }
 0x83a   :  { %10560 = vmatpush1.bf16.msra.mxu0 %v10559_v25  ;;  %6470 = vmatprep.mubr.f32.mxu0 %v14284_v41  ;;  %v7512_v25 = vld [vmem:[%s14925_s7 + $0x8c8] sm:$0xff] }
 0x83b   :  { %10562 = vmatprep.subr.bf16.mxu0 %v10561_v26  ;;  %v7514_v26 = vld [vmem:[%s14925_s7 + $0x8d8] sm:$0xff] }
 0x83c   :  { %v10601_v30 = vpack.c.bf16 %v7514_v26, %v7512_v25  ;;  %v6736_v25 = vld [vmem:[%s14927_s9 + $0x90] sm:$0xff]  ;;  %v6737_v26 = vld [vmem:[%s14927_s9 + $0x98] sm:$0xff] }
 0x83e   :  { %10564 = vmatpush1.bf16.msra.mxu0 %v10563_v32  ;;  %v7516_v32 = vld [vmem:[%s14925_s7 + $0x8e8] sm:$0xff] }
 0x83f   :  { %10566 = vmatprep.subr.bf16.mxu0 %v10565_v34  ;;  %v7518_v34 = vld [vmem:[%s14925_s7 + $0x8f8] sm:$0xff] }
 0x840   :  { %v10605_v38 = vpack.c.bf16 %v7518_v34, %v7516_v32  ;;  %v6738_v32 = vld [vmem:[%s14927_s9 + $0xa0] sm:$0xff]  ;;  %v6739_v34 = vld [vmem:[%s14927_s9 + $0xa8] sm:$0xff] }
 0x842   :  { %10568 = vmatpush1.bf16.msra.mxu0 %v10567_v18  ;;  %v10607_v18 = vpack.c.bf16 %v7517_v42, %v7515_v1  ;;  %v6723_v1 = vld [vmem:[%s14927_s9 + $0x28] sm:$0xff] }
 0x843   :  { %10570 = vmatprep.subr.bf16.mxu0 %v10569_v59  ;;  %v6522_v59 = vld [vmem:[#allocation7 + $0x22] sm:$0xff] }
 0x846   :  { %10572 = vmatpush1.bf16.msra.mxu0 %v10571_v48 }
 0x847   :  { %10574 = vmatprep.subr.bf16.mxu0 %v10573_v51 }
 0x84a   :  { %10576 = vmatpush1.bf16.msra.mxu0 %v10575_v58 }
 0x84b   :  { %10578 = vmatprep.subr.bf16.mxu0 %v10577_v39 }
 0x84d   :  { %6471 = vmatmul.mubr.f32.vlgmr.msra.gmra.mrb[116].mxu0 %v14047_v4  ;;  %v7502_v4 = vld [vmem:[%s14925_s7 + $0x878] sm:$0xff] }
 0x84e   :  { %10580 = vmatpush1.bf16.msra.mxu0 %v10579_v50  ;;  %6476 = vmatprep.mubr.f32.mxu0 %v14284_v41  ;;  %v10589_v33 = vpack.c.bf16 %v7502_v4, %v7500_v17 }
 0x84f   :  { %10582 = vmatprep.subr.bf16.mxu0 %v10581_v37 }
 0x851   :  { %6477 = vmatmul.mubr.f32.gmra.mrb[118].mxu0 %v14057_v49  ;;  %v7506_v49 = vld [vmem:[%s14925_s7 + $0x898] sm:$0xff] }
 0x852   :  { %10584 = vmatpush1.bf16.msra.mxu0 %v10583_v63  ;;  %6482 = vmatprep.mubr.f32.mxu0 %v14284_v41  ;;  %v10593_v11 = vpack.c.bf16 %v7506_v49, %v7504_v7 }
 0x853   :  { %10586 = vmatprep.subr.bf16.mxu0 %v10585_v6 }
 0x855   :  { %6483 = vmatmul.mubr.f32.gmra.mrb[120].mxu0 %v14079_v28  ;;  %v7510_v28 = vld [vmem:[%s14925_s7 + $0x8b8] sm:$0xff] }
 0x856   :  { %10588 = vmatpush1.bf16.msra.mxu0 %v10587_v27  ;;  %6488 = vmatprep.mubr.f32.mxu0 %v14284_v41  ;;  %v10597_v20 = vpack.c.bf16 %v7510_v28, %v7508_v15 }
 0x857   :  { %10590 = vmatprep.subr.bf16.mxu0 %v10589_v33 }
 0x859   :  { %6489 = vmatmul.mubr.f32.gmra.mrb[122].mxu0 %v6372_v24 }
 0x85a   :  { %10592 = vmatpush1.bf16.msra.mxu0 %v10591_v8  ;;  %6620 = vmatprep.mubr.f32.mxu0 %v14284_v41 }
 0x85b   :  { %10594 = vmatprep.subr.bf16.mxu0 %v10593_v11 }
 0x85e   :  { %10596 = vmatpush1.bf16.msra.mxu0 %v10595_v19 }
 0x85f   :  { %10598 = vmatprep.subr.bf16.mxu0 %v10597_v20  ;;  %v6718_v20 = vld [vmem:[%s14927_s9] sm:$0xff] }
 0x860   :  { %v10611_v23 = vpack.c.bf16 %v6719_v22, %v6718_v20 }
 0x862   :  { %10600 = vmatpush1.bf16.msra.mxu0 %v10599_v13  ;;  %v10613_v13 = vpack.c.bf16 %v6737_v26, %v6736_v25  ;;  %v6836_v26 = vld [vmem:[%s14929_s11 + $0x40] sm:$0xff] }
 0x863   :  { %10602 = vmatprep.subr.bf16.mxu0 %v10601_v30  ;;  %v6720_v30 = vld [vmem:[%s14927_s9 + $0x10] sm:$0xff] }
 0x864   :  { %v10615_v56 = vpack.c.bf16 %v6721_v31, %v6720_v30  ;;  %v6838_v31 = vld [vmem:[%s14929_s11 + $0x50] sm:$0xff] }
 0x866   :  { %10604 = vmatpush1.bf16.msra.mxu0 %v10603_v36  ;;  %v10617_v36 = vpack.c.bf16 %v6739_v34, %v6738_v32  ;;  %v6840_v34 = vld [vmem:[%s14929_s11 + $0x60] sm:$0xff] }
 0x867   :  { %10606 = vmatprep.subr.bf16.mxu0 %v10605_v38  ;;  %v6722_v38 = vld [vmem:[%s14927_s9 + $0x20] sm:$0xff] }
 0x868   :  { %v10619_v42 = vpack.c.bf16 %v6723_v1, %v6722_v38  ;;  %v6842_v1 = vld [vmem:[%s14929_s11 + $0x70] sm:$0xff] }
 0x86a   :  { %10608 = vmatpush1.bf16.msra.mxu0 %v10607_v18  ;;  %v6740_v18 = vld [vmem:[%s14927_s9 + $0xb0] sm:$0xff] }
 0x86d   :  { %6621 = vmatmul.mubr.f32.vlgmr.msra.gmra.mrb[116].mxu0 %v14156_v29  ;;  %v6735_v29 = vld [vmem:[%s14927_s9 + $0x88] sm:$0xff] }
 0x86e   :  { %6626 = vmatprep.mubr.f32.mxu0 %v14284_v41  ;;  %v10609_v43 = vpack.c.bf16 %v6735_v29, %v6734_v52  ;;  %v6724_v29 = vld [vmem:[%s14927_s9 + $0x30] sm:$0xff] }
 0x870   :  { %10610 = vmatprep.subr.bf16.mxu0 %v10609_v43  ;;  %v6725_v43 = vld [vmem:[%s14927_s9 + $0x38] sm:$0xff] }
 0x871   :  { %6627 = vmatmul.mubr.f32.gmra.mrb[118].mxu0 %v14166_v21  ;;  %v5363_v21 = vshrl.u32 %v5362_v45, 7  ;;  %v10623_v45 = vpack.c.bf16 %v6725_v43, %v6724_v29 }
 0x872   :  { %6632 = vmatprep.mubr.f32.mxu0 %v14284_v41  ;;  %10612 = vmatpush3.bf16.msra.mxu0 %v10611_v23  ;;  %v6834_v23 = vld [vmem:[%s14929_s11 + $0x30] sm:$0xff] }
 0x873   :  { %v5364_v46 = vsub.s32 0, %v5363_v21  ;;  %v5368_v48 = vsub.s32 1, %v5363_v21  ;;  %10614 = vmatprep.subr.bf16.mxu0 %v10613_v13  ;;  %v6742_v21 = vld [vmem:[%s14927_s9 + $0xc0] sm:$0xff]  ;;  %v6837_v13 = vld [vmem:[%s14929_s11 + $0x48] sm:$0xff] }
 0x874   :  { %v10654_v30 = vpack.c.bf16 %v6837_v13, %v6836_v26 }
 0x875   :  { %6633 = vmatmul.mubr.f32.gmra.mrb[120].mxu0 %v14188_v47  ;;  %v5360_v47 = vld [vmem:[%s14928_s8] sm:$0x3] }
 0x876   :  { %6638 = vmatprep.mubr.f32.mxu0 %v14284_v41  ;;  %v5365_v51 = vrot.slane %v5360_v47, %v5364_v46  ;;  %v5369_v9 = vrot.slane %v5360_v47, %v5368_v48  ;;  %10616 = vmatpush3.bf16.msra.mxu0 %v10615_v56  ;;  %v6743_v46 = vld [vmem:[%s14927_s9 + $0xc8] sm:$0xff]  ;;  %v6726_v47 = vld [vmem:[%s14927_s9 + $0x40] sm:$0xff]  ;;  %v6839_v56 = vld [vmem:[%s14929_s11 + $0x58] sm:$0xff] }
 0x877   :  { %10618 = vmatprep.subr.bf16.mxu0 %v10617_v36  ;;  %v10625_v48 = vpack.c.bf16 %v6743_v46, %v6742_v21  ;;  %v10657_v32 = vpack.c.bf16 %v6839_v56, %v6838_v31  ;;  %v6841_v36 = vld [vmem:[%s14929_s11 + $0x68] sm:$0xff]  ;;  %v7520_v46 = vld [vmem:[%s14931_s12] ss:$0 sm:$0xff] }
 0x878   :  { %v10660_v38 = vpack.c.bf16 %v6841_v36, %v6840_v34 }
 0x879   :  { %6639 = vmatmul.mubr.f32.gmra.mrb[122].mxu0 %v6522_v59  ;;  %v6741_v59 = vld [vmem:[%s14927_s9 + $0xb8] sm:$0xff] }
 0x87a   :  { %10620 = vmatpush3.bf16.msra.mxu0 %v10619_v42  ;;  %v10621_v52 = vpack.c.bf16 %v6741_v59, %v6740_v18  ;;  %v6843_v42 = vld [vmem:[%s14929_s11 + $0x78] sm:$0xff] }
 0x87b   :  { %v10663_v18 = vpack.c.bf16 %v6843_v42, %v6842_v1 }
 0x87c   :  { %10622 = vmatprep.subr.bf16.mxu0 %v10621_v52  ;;  %v7519_v52 = vld [vmem:[%s14930_s10] ss:$0 sm:$0xff] }
 0x87e   :  { %10624 = vmatpush3.bf16.msra.mxu0 %v10623_v45 }
 0x87f   :  { %10626 = vmatprep.subr.bf16.mxu0 %v10625_v48 }
 0x940   :  { %v6622_v53 = vpop.f32.mrb[116].mxu0 }
 0x941   :  { %v10802_v54 = vadd.f32 %v6622_v53, %v5365_v51  ;;  %v6624_v57 = vpop.f32.mrb[117].mxu0  ;;  %v6745_v53 = vld [vmem:[%s14927_s9 + $0xd8] sm:$0xff] }
 0x942   :  { %v10805_v58 = vadd.f32 %v6624_v57, %v5369_v9 }
 0x943   :  { %6661 = vst [vmem:[#allocation8] sm:$0xff] %v10802_v54 }
 0x944   :  { %6662 = vst [vmem:[#allocation8 + $0x8] sm:$0xff] %v10805_v58  ;;  %v6628_v39 = vpop.f32.mrb[118].mxu0  ;;  %v6728_v58 = vld [vmem:[%s14927_s9 + $0x50] sm:$0xff] }
 0x945   :  { %v10808_v61 = vadd.f32 %v6628_v39, %v5365_v51  ;;  %v6630_v44 = vpop.f32.mrb[119].mxu0  ;;  %v6729_v39 = vld [vmem:[%s14927_s9 + $0x58] sm:$0xff] }
 0x946   :  { %v10811_v62 = vadd.f32 %v6630_v44, %v5369_v9  ;;  %v6747_v44 = vld [vmem:[%s14927_s9 + $0xe8] sm:$0xff] }
 0x947   :  { %6663 = vst [vmem:[#allocation8 + $0x10] sm:$0xff] %v10808_v61  ;;  %v6746_v61 = vld [vmem:[%s14927_s9 + $0xe0] sm:$0xff] }
 0x948   :  { %6664 = vst [vmem:[#allocation8 + $0x18] sm:$0xff] %v10811_v62  ;;  %v6634_v0 = vpop.f32.mrb[120].mxu0  ;;  %v10631_v62 = vpack.c.bf16 %v6729_v39, %v6728_v58 }
 0x949   :  { %v10814_v50 = vadd.f32 %v6634_v0, %v5365_v51  ;;  %v6636_v37 = vpop.f32.mrb[121].mxu0  ;;  %v10633_v0 = vpack.c.bf16 %v6747_v44, %v6746_v61 }
 0x94a   :  { %v10817_v60 = vadd.f32 %v6636_v37, %v5369_v9  ;;  %v6731_v37 = vld [vmem:[%s14927_s9 + $0x68] sm:$0xff] }
 0x94b   :  { %6665 = vst [vmem:[#allocation8 + $0x20] sm:$0xff] %v10814_v50  ;;  %v6670_v55 = vld [vmem:[#allocation8 + $0x5] ss:$8 sm:$0x3] }
 0x94c   :  { %6666 = vst [vmem:[#allocation8 + $0x28] sm:$0xff] %v10817_v60  ;;  %v6640_v2 = vpop.f32.mrb[122].mxu0  ;;  %v6672_v5 = vld [vmem:[#allocation8 + $0x6] ss:$8 sm:$0x3]  ;;  %v6748_v60 = vld [vmem:[%s14927_s9 + $0xf0] sm:$0xff] }
 0x94d   :  { %v10820_v63 = vadd.f32 %v6640_v2, %v5365_v51  ;;  %v6642_v6 = vpop.f32.mrb[123].mxu0  ;;  %v6677_v4 = vmax.f32 %v6670_v55, %v6672_v5  ;;  %v6727_v51 = vld [vmem:[%s14927_s9 + $0x48] sm:$0xff]  ;;  %v6730_v50 = vld [vmem:[%s14927_s9 + $0x60] sm:$0xff]  ;;  %v6749_v55 = vld [vmem:[%s14927_s9 + $0xf8] sm:$0xff] }
 0x94e   :  { %v10823_v10 = vadd.f32 %v6642_v6, %v5369_v9  ;;  %v6744_v9 = vld [vmem:[%s14927_s9 + $0xd0] sm:$0xff]  ;;  %v10627_v54 = vpack.c.bf16 %v6727_v51, %v6726_v47  ;;  %v10635_v2 = vpack.c.bf16 %v6731_v37, %v6730_v50  ;;  %v10637_v5 = vpack.c.bf16 %v6749_v55, %v6748_v60  ;;  %v6733_v6 = vld [vmem:[%s14927_s9 + $0x78] sm:$0xff] }
 0x94f   :  { %v6674_v16 = vld [vmem:[#allocation8 + $0x11] ss:$8 sm:$0x3]  ;;  %v6676_v17 = vld [vmem:[#allocation8 + $0x12] ss:$8 sm:$0x3]  ;;  %v10629_v57 = vpack.c.bf16 %v6745_v53, %v6744_v9 }
 0x950   :  { %6667 = vst [vmem:[#allocation8 + $0x30] sm:$0xff] %v10820_v63  ;;  %v6678_v27 = vmax.f32 %v6674_v16, %v6676_v17  ;;  %6668 = vst [vmem:[#allocation8 + $0x38] sm:$0xff] %v10823_v10  ;;  %10628 = vmatpush3.bf16.msra.mxu0 %v10627_v54  ;;  %v6732_v63 = vld [vmem:[%s14927_s9 + $0x70] sm:$0xff] }
 0x951   :  { %10630 = vmatprep.subr.bf16.mxu0 %v10629_v57  ;;  %v10639_v10 = vpack.c.bf16 %v6733_v6, %v6732_v63 }
 0x952   :  { %v6679_v33 = vmax.f32 %v6677_v4, %v6678_v27 }
 0x953   :  { %v6687_v35 = vld [vmem:[#allocation8 + $0x25] ss:$8 sm:$0x3]  ;;  %v6689_v40 = vld [vmem:[#allocation8 + $0x26] ss:$8 sm:$0x3] }
 0x954   :  { %6684 = vst.msk [vmem:[#allocation9] ss:$8 sm:$0x3] %vm6682_vm3, %v6679_v33  ;;  %v6694_v8 = vmax.f32 %v6687_v35, %v6689_v40  ;;  %10632 = vmatpush3.bf16.msra.mxu0 %v10631_v62 }
 0x955   :  { %10634 = vmatprep.subr.bf16.mxu0 %v10633_v0 }
 0x957   :  { %v6691_v7 = vld [vmem:[#allocation8 + $0x31] ss:$8 sm:$0x3]  ;;  %v6693_v49 = vld [vmem:[#allocation8 + $0x32] ss:$8 sm:$0x3] }
 0x958   :  { %v6695_v24 = vmax.f32 %v6691_v7, %v6693_v49  ;;  %10636 = vmatpush3.bf16.msra.mxu0 %v10635_v2  ;;  %v6828_v7 = vld [vmem:[%s14929_s11] sm:$0xff]  ;;  %v6829_v49 = vld [vmem:[%s14929_s11 + $0x8] sm:$0xff] }
 0x959   :  { %10638 = vmatprep.subr.bf16.mxu0 %v10637_v5 }
 0x95a   :  { %v6696_v11 = vmax.f32 %v6694_v8, %v6695_v24 }
 0x95c   :  { %6698 = vst.msk [vmem:[#allocation9 + $0x1] ss:$8 sm:$0x3] %vm6682_vm3, %v6696_v11  ;;  %10640 = vmatpush3.bf16.msra.mxu0 %v10639_v10 }
 0x95d   :  { %10641 = vmatprep.subr.bf16.mxu0 %v11414_v12 }
 0x963   :  { %v14752_v3 = vld [vmem:[#allocation9] sm:$0xff]  ;;  %v14754_v14 = vld [vmem:[#allocation9 + $0x8] sm:$0xff] }
 0x964   :  { %v6702_v15 = vmul.f32 %v14752_v3, %v14752_v3  ;;  %v6703_v28 = vmul.f32 %v14754_v14, %v14754_v14 }
 0x966   :  { %v6704_v19 = vadd.f32 %v6703_v28, %v6702_v15  ;;  %v10642_v15 = vpack.c.bf16 %v6829_v49, %v6828_v7  ;;  %v6830_v28 = vld [vmem:[%s14929_s11 + $0x10] sm:$0xff] }
 0x968   :  { %6705 = vadd.xlane.f32.xlu0 %v6704_v19  ;;  %v6831_v19 = vld [vmem:[%s14929_s11 + $0x18] sm:$0xff] }
 0x969   :  { %v10645_v20 = vpack.c.bf16 %v6831_v19, %v6830_v28 }
 0x9f5   :  { %v6706_v16 = vpop.xlane.xlu0 %6705 }
 0x9f6   :  { %11401 = vrsqrt.f32 %v6706_v16  ;;  %vm6709_vm4 = vcmp.eq.f32.partialorder %v6706_v16, inf  ;;  %v6712_v27 = vand.u32 2147483648, %v6706_v16  ;;  %vm6711_vm5 = vcmp.eq.f32.partialorder %v6706_v16, 0.0 }
 0xa00   :  { %v11402_v17 = vpop.eup %11401 }
 0xa01   :  { %v6708_v4 = vmul.f32 %v11402_v17, %v6706_v16 }
 0xa03   :  { %v6710_v33 = vsel %vm6709_vm4, %v6706_v16, %v6708_v4 }
 0xa04   :  { %v6713_v35 = vsel %vm6711_vm5, %v6712_v27, %v6710_v33 }
 0xa05   :  { %v6714_v40 = vmax.f32 %v6713_v35, 1e-12 }
 0xa07   :  { %11403 = vrcp.f32 %v6714_v40 }
 0xa11   :  { %v11404_v8 = vpop.eup %11403 }
 0xa12   :  { %v6717_v24 = vmul.f32 %v11404_v8, %v14754_v14  ;;  %v6716_v11 = vmul.f32 %v11404_v8, %v14752_v3  ;;  %v6832_v3 = vld [vmem:[%s14929_s11 + $0x20] sm:$0xff]  ;;  %v6833_v14 = vld [vmem:[%s14929_s11 + $0x28] sm:$0xff] }
 0xa13   :  { %v10648_v22 = vpack.c.bf16 %v6833_v14, %v6832_v3 }
 0xa14   :  { %6821 = vmatprep.mubr.f32.mxu0 %v6717_v24 }
 0xa15   :  { %6822 = vmatmul.mubr.f32.vlgmr.msra.gmra.mrb[124].mxu0 %v6716_v11 }
 0xa16   :  { %10643 = vmatpush3.bf16.msra.mxu0 %v10642_v15  ;;  %9874 = vmatprep.mubr.msk.f32.mxu0 %vm11416_vm2, %v14284_v41  ;;  %v6835_v41 = vld [vmem:[%s14929_s11 + $0x38] sm:$0xff] }
 0xa17   :  { %10644 = vmatprep.subr.bf16.mxu0 %v11414_v12  ;;  %v10651_v25 = vpack.c.bf16 %v6835_v41, %v6834_v23 }
 0xa1a   :  { %10646 = vmatpush3.bf16.msra.mxu0 %v10645_v20 }
 0xa1b   :  { %10647 = vmatprep.subr.bf16.mxu0 %v11414_v12 }
 0xa1e   :  { %10649 = vmatpush3.bf16.msra.mxu0 %v10648_v22 }
 0xa1f   :  { %10650 = vmatprep.subr.bf16.mxu0 %v11414_v12 }
 0xa22   :  { %10652 = vmatpush3.bf16.msra.mxu0 %v10651_v25 }
 0xa23   :  { %10653 = vmatprep.subr.bf16.mxu0 %v11414_v12 }
 0xa26   :  { %10655 = vmatpush3.bf16.msra.mxu0 %v10654_v30 }
 0xa27   :  { %10656 = vmatprep.subr.bf16.mxu0 %v11414_v12 }
 0xa2a   :  { %10658 = vmatpush3.bf16.msra.mxu0 %v10657_v32 }
 0xa2b   :  { %10659 = vmatprep.subr.bf16.mxu0 %v11414_v12 }
 0xa2e   :  { %10661 = vmatpush3.bf16.msra.mxu0 %v10660_v38 }
 0xa2f   :  { %10662 = vmatprep.subr.bf16.mxu0 %v11414_v12 }
 0xa32   :  { %10664 = vmatpush3.bf16.msra.mxu0 %v10663_v18 }
 0xae8   :  { %v8218_v59 = vpop.f32.mrb[124].mxu0 }
 0xae9   :  { %v8219_v29 = vpop.f32.mrb[125].mxu0 }
 0xaea   :  { %v8220_v43 = vadd.f32 %v8219_v29, %v8218_v59 }
 0xaec   :  { %v6824_v45 = vadd.f32 %v8220_v43, %v7519_v52 }
 0xaee   :  { %v6827_v21 = vmax.f32 %v6824_v45, 0.0 }
 0xaf0   :  { %9875 = vmatmul.mubr.f32.vlgmr.msra.gmra.mrb[126].mxu0 %v6827_v21 }
 0xbc3   :  { %v6917_v47 = vpop.f32.mrb[126].mxu0 }
 0xbc4   :  { %v6918_v48 = vadd.f32 %v7520_v46, %v6917_v47  ;;  %v9876_v51 = vpop.f32.mrb[127].mxu0 }
 0xbc6   :  { %v6921_v9 = vmul.f32 %v6918_v48, %v6918_v48 }
 0xbc8   :  { %6922 = vadd.xlane.f32.xlu0 %v6921_v9 }
 0xc55   :  { %v6923_v12 = vpop.xlane.xlu0 %6922 }
 0xc56   :  { %11405 = vrsqrt.f32 %v6923_v12  ;;  %vm6926_vm6 = vcmp.eq.f32.partialorder %v6923_v12, inf  ;;  %v6929_v57 = vand.u32 2147483648, %v6923_v12  ;;  %vm6928_vm7 = vcmp.eq.f32.partialorder %v6923_v12, 0.0 }
 0xc60   :  { %v11406_v53 = vpop.eup %11405 }
 0xc61   :  { %v6925_v54 = vmul.f32 %v11406_v53, %v6923_v12 }
 0xc63   :  { %v6927_v58 = vsel %vm6926_vm6, %v6923_v12, %v6925_v54 }
 0xc64   :  { %v6930_v39 = vsel %vm6928_vm7, %v6929_v57, %v6927_v58 }
 0xc65   :  { %v6931_v61 = vmax.f32 %v6930_v39, 1e-12 }
 0xc67   :  { %11407 = vrcp.f32 %v6931_v61 }
 0xc71   :  { %v11408_v44 = vpop.eup %11407 }
 0xc72   :  { %v6933_v62 = vmul.f32 %v11408_v44, %v6918_v48 }
 0xc74   :  { %6934 = vst [vmem:[%s14932_s13] sm:$0xff] %v6933_v62 }

</bundles_post_ra>
